<compile_context>
chip_gen: v7x
topology: tpu7x:2x2x1
jax: 0.10.0
libtpu: 0.0.40
codegen_flags: <defaults>
</compile_context>

<pallas_src>
import functools

import numpy as np
import jax
import jax.numpy as jnp
from jax import lax
from jax.experimental import pallas as pl
from jax.experimental.pallas import tpu as pltpu


# Images per grid step.  Effective matmul M ~= 28*B_TILE: use 8-16 on v6e/v7x
# (M ~ 224-448 against the 256-wide MXU), ~4 on v5e (M ~ 112 against 128).
DEFAULT_B_TILE = 8

# The ~20 folded-weight operands use a constant block index, so the pipeline
# only fetches them once; their double-buffer allocation (~1 MiB bf16) is well
# inside the VMEM budget at the default B_TILE.  Flip this to True on
# toolchains that support BlockSpec pipeline_mode to single-buffer them
# (pl.Buffered(1)) and reclaim that headroom (mainly relevant near the v7x
# 64 MiB VMEM ceiling with a large B_TILE).
SINGLE_BUFFER_WEIGHTS = False


# ============================================================================ kernel
def _mnist_fused_kernel(
    x_ref,                                   # (RB, 28)    f32  B_TILE images, stride-28 rows
    w1_ref, s1_ref, b1_ref,                  # conv1: (3,28,182) bf16, (1,182) f32 x2
    w2_ref, s2_ref, b2_ref,                  # conv2: (3,182,384) bf16, (1,384) x2
    wt0_ref, wt1_ref,                        # transition + W-pool: (384,144) bf16 x2
    w3_ref, s3_ref, b3_ref,                  # conv3: (3,144,160) bf16, (1,160) x2
    w4_ref, s4_ref, b4_ref,                  # conv4: (3,160,128) bf16, (1,128) x2
    w5_ref, s5_ref, b5_ref,                  # conv5: (3,128,96)  bf16, (1,96)  x2
    wh_ref, bh_ref, rsel_ref,                # head: (96,10), (1,10), (B_TILE, RB-17) f32
    o_ref,                                   # (B_TILE, 10) f32 log-probs
    a1_ref, pd_ref, a3_ref, a4_ref,          # VMEM scratch activations
):
    f32 = jnp.float32
    bf16 = jnp.bfloat16

    rb = x_ref.shape[0]                      # B_TILE * 28
    m1, m2 = rb - 2, rb - 4                  # conv1 / conv2 output rows
    mp = rb - 5                              # pooled (H-dense) rows
    m3, m4, m5 = rb - 9, rb - 13, rb - 17    # conv3/4/5 output rows

    def mxu(a, b):                           # MXU matmul, f32 accumulation
        return jnp.dot(a, b, preferred_element_type=f32)

    # convblock1: 3x3 conv 1->7 + BN + ReLU                       -> (rb-2, 26*7)
    # (odd tap offsets -> slice the f32 ref and cast per tap; only 28 lanes wide)
    acc = mxu(x_ref[0:m1, :].astype(bf16), w1_ref[0])
    acc = acc + mxu(x_ref[1:m1 + 1, :].astype(bf16), w1_ref[1])
    acc = acc + mxu(x_ref[2:m1 + 2, :].astype(bf16), w1_ref[2])
    a1_ref[...] = jnp.maximum(acc * s1_ref[...] + b1_ref[...], 0.0)

    # convblock2: 3x3 conv 7->16 + BN + ReLU                      -> (rb-4, 24*16)
    acc = mxu(a1_ref[0:m2, :].astype(bf16), w2_ref[0])
    acc = acc + mxu(a1_ref[1:m2 + 1, :].astype(bf16), w2_ref[1])
    acc = acc + mxu(a1_ref[2:m2 + 2, :].astype(bf16), w2_ref[2])
    a2 = jnp.maximum(acc * s2_ref[...] + b2_ref[...], 0.0).astype(bf16)

    # transition (1x1 conv 16->12) with the column half of MaxPool2d(2,2) folded
    # into the two block weights (even / odd columns); elementwise max merges
    # them.  Row half of the pool: pairwise max of adjacent rows, kept H-dense
    # (the stride-2 row selection is folded into the downstream tap offsets).
    tw = jnp.maximum(mxu(a2, wt0_ref[...]), mxu(a2, wt1_ref[...]))       # (rb-4, 144)
    pd_ref[...] = jnp.maximum(tw[0:mp, :], tw[1:mp + 1, :]).astype(bf16)  # (rb-5, 144)

    # convblock3: 3x3 conv 12->16 + BN + ReLU (even tap offsets, bf16 scratch)
    acc = mxu(pd_ref[0:m3, :], w3_ref[0])
    acc = acc + mxu(pd_ref[2:m3 + 2, :], w3_ref[1])
    acc = acc + mxu(pd_ref[4:m3 + 4, :], w3_ref[2])
    a3_ref[...] = jnp.maximum(acc * s3_ref[...] + b3_ref[...], 0.0).astype(bf16)

    # convblock4: 3x3 conv 16->16 + BN + ReLU
    acc = mxu(a3_ref[0:m4, :], w4_ref[0])
    acc = acc + mxu(a3_ref[2:m4 + 2, :], w4_ref[1])
    acc = acc + mxu(a3_ref[4:m4 + 4, :], w4_ref[2])
    a4_ref[...] = jnp.maximum(acc * s4_ref[...] + b4_ref[...], 0.0).astype(bf16)

    # convblock5: 3x3 conv 16->16 + BN + ReLU
    acc = mxu(a4_ref[0:m5, :], w5_ref[0])
    acc = acc + mxu(a4_ref[2:m5 + 2, :], w5_ref[1])
    acc = acc + mxu(a4_ref[4:m5 + 4, :], w5_ref[2])
    a5 = jnp.maximum(acc * s5_ref[...] + b5_ref[...], 0.0)               # f32 (rb-17, 96)

    # head: AvgPool2d(5) + 1x1 conv(16->10, bias) + log_softmax, batched over
    # B_TILE images.  rsel picks the 5 valid (even) rows of every image; wh
    # holds (conv weight / 25) over the 5 active W blocks.  Kept in f32.
    hsum = mxu(rsel_ref[...], a5)                                        # (B_TILE, 96)
    logits = mxu(hsum, wh_ref[...]) + bh_ref[...]                        # (B_TILE, 10)
    m = jnp.max(logits, axis=-1, keepdims=True)
    lse = jnp.log(jnp.sum(jnp.exp(logits - m), axis=-1, keepdims=True)) + m
    o_ref[...] = logits - lse


# ============================================================================ one-time host-side weight folding
def _conv_row_mats(k_oihw, win_blocks):
    """3x3 conv (lanes w*Cin+ci -> w*Cout+co) as 3 banded matrices, one per kernel row."""
    k = np.asarray(k_oihw, np.float32)
    cout, cin, kh, kw = k.shape
    wout = win_blocks - kw + 1
    sel = np.zeros((kw, win_blocks, wout), np.float32)
    for j in range(kw):
        for wo in range(wout):
            sel[j, wo + j, wo] = 1.0
    rows = np.einsum("jvw,ocij->ivcwo", sel, k)
    return rows.reshape(kh, win_blocks * cin, wout * cout)


def _transition_pool_mats(kt_oihw, win_blocks=24):
    """1x1 conv 16->12 with the even/odd-column selection of MaxPool2d folded in."""
    k = np.asarray(kt_oihw, np.float32)
    cout, cin = k.shape[0], k.shape[1]
    k2 = k.reshape(cout, cin)
    wp = win_blocks // 2
    mats = []
    for dw in range(2):
        sel = np.zeros((win_blocks, wp), np.float32)
        for w in range(wp):
            sel[2 * w + dw, w] = 1.0
        m = np.einsum("vw,oc->vcwo", sel, k2)
        mats.append(m.reshape(win_blocks * cin, wp * cout))
    return mats


def _head_mat(kf_oihw, w_blocks=6, active=5):
    """AvgPool2d(5) (top-left 5x5 window) + 1x1 conv folded into one (96,10) matrix."""
    k = np.asarray(kf_oihw, np.float32)
    cout, cin = k.shape[0], k.shape[1]
    kf = k.reshape(cout, cin)
    mask = np.zeros((w_blocks,), np.float32)
    mask[:active] = 1.0 / (active * active)
    big = np.einsum("w,oc->wco", mask, kf)
    return big.reshape(w_blocks * cin, cout)


def _tile_bn(vec_1xc, wout):
    return np.tile(np.asarray(vec_1xc, np.float32).reshape(1, -1), (1, wout))


def prepare_folded_params(p, b_tile=DEFAULT_B_TILE):
    """One-time prep (host numpy) — kept OUT of the jitted forward path."""
    rb = 28 * b_tile
    wt0, wt1 = _transition_pool_mats(p["wt"], 24)

    # Row-selection matrix for the head: picks rows b*28 + {0,2,4,6,8} of the
    # stacked conv5 output for every image in the tile.
    rsel = np.zeros((b_tile, rb - 17), np.float32)
    for b in range(b_tile):
        rsel[b, 28 * b + np.arange(0, 10, 2)] = 1.0

    f = {
        "w1": jnp.asarray(_conv_row_mats(p["w1"], 28), jnp.bfloat16),    # (3, 28, 182)
        "w2": jnp.asarray(_conv_row_mats(p["w2"], 26), jnp.bfloat16),    # (3, 182, 384)
        "wt0": jnp.asarray(wt0, jnp.bfloat16),                           # (384, 144)
        "wt1": jnp.asarray(wt1, jnp.bfloat16),                           # (384, 144)
        "w3": jnp.asarray(_conv_row_mats(p["w3"], 12), jnp.bfloat16),    # (3, 144, 160)
        "w4": jnp.asarray(_conv_row_mats(p["w4"], 10), jnp.bfloat16),    # (3, 160, 128)
        "w5": jnp.asarray(_conv_row_mats(p["w5"], 8), jnp.bfloat16),     # (3, 128, 96)
        "wh": jnp.asarray(_head_mat(p["wf"]), jnp.float32),              # (96, 10)
        "bh": jnp.asarray(np.asarray(p["bf"], np.float32).reshape(1, 10)),
        "s1": jnp.asarray(_tile_bn(p["s1"], 26)), "b1": jnp.asarray(_tile_bn(p["h1"], 26)),
        "s2": jnp.asarray(_tile_bn(p["s2"], 24)), "b2": jnp.asarray(_tile_bn(p["h2"], 24)),
        "s3": jnp.asarray(_tile_bn(p["s3"], 10)), "b3": jnp.asarray(_tile_bn(p["h3"], 10)),
        "s4": jnp.asarray(_tile_bn(p["s4"], 8)), "b4": jnp.asarray(_tile_bn(p["h4"], 8)),
        "s5": jnp.asarray(_tile_bn(p["s5"], 6)), "b5": jnp.asarray(_tile_bn(p["h5"], 6)),
        "rsel": jnp.asarray(rsel),
    }
    return f


# ============================================================================ forward
_WEIGHT_ORDER = ["w1", "s1", "b1", "w2", "s2", "b2", "wt0", "wt1",
                 "w3", "s3", "b3", "w4", "s4", "b4", "w5", "s5", "b5",
                 "wh", "bh", "rsel"]


def _const_spec(a):
    zeros = (0,) * a.ndim
    if SINGLE_BUFFER_WEIGHTS:
        return pl.BlockSpec(a.shape, lambda i, _z=zeros: _z,
                            pipeline_mode=pl.Buffered(1))
    return pl.BlockSpec(a.shape, lambda i, _z=zeros: _z)


@jax.jit
def mnist_forward_pallas(x_nchw, folded):
    b, c, h, w = x_nchw.shape
    assert (c, h, w) == (1, 28, 28), (c, h, w)

    b_tile = folded["rsel"].shape[0]          # static at trace time
    rb = 28 * b_tile
    g = -(-b // b_tile)                       # ceil-div: number of grid steps
    b_pad = g * b_tile

    x = x_nchw.reshape(b, 28, 28).astype(jnp.float32)
    if b_pad != b:
        x = jnp.pad(x, ((0, b_pad - b), (0, 0), (0, 0)))
    x = x.reshape(g, rb, 28)                  # B_TILE images stacked per grid step

    weights = [folded[k] for k in _WEIGHT_ORDER]
    in_specs = [pl.BlockSpec((None, rb, 28), lambda i: (i, 0, 0))]
    in_specs += [_const_spec(a) for a in weights]

    out = pl.pallas_call(
        _mnist_fused_kernel,
        out_shape=jax.ShapeDtypeStruct((g, b_tile, 10), jnp.float32),
        grid=(g,),
        in_specs=in_specs,
        out_specs=pl.BlockSpec((None, b_tile, 10), lambda i: (i, 0, 0)),
        scratch_shapes=[
            pltpu.VMEM((rb - 2, 182), jnp.float32),    # a1 (f32: conv2 taps at odd offsets)
            pltpu.VMEM((rb - 5, 144), jnp.bfloat16),   # pooled, H-dense
            pltpu.VMEM((rb - 9, 160), jnp.bfloat16),   # conv3 out
            pltpu.VMEM((rb - 13, 128), jnp.bfloat16),  # conv4 out
        ],
        compiler_params=pltpu.CompilerParams(
            # On v7x, consider pltpu.CORE_PARALLEL here if one TC is idle.
            dimension_semantics=("parallel",),
            # ~1 MiB folded weights (2x buffered) + ~0.5 MiB/B_TILE=8 of scratch
            # and temporaries; generous headroom, scales with B_TILE, <=64 MiB
            # to stay inside v7x physical VMEM.
            vmem_limit_bytes=int(min(64, 16 + 3 * b_tile)) * 1024 * 1024,
        ),
    )(x, *weights)
    return out.reshape(b_pad, 10)[:b]


# ============================================================================ pure-JAX reference
def _conv_ref(x, w_oihw):
    w = jnp.transpose(w_oihw, (2, 3, 1, 0))          # OIHW -> HWIO
    return lax.conv_general_dilated(x, w, (1, 1), "VALID",
                                    dimension_numbers=("NHWC", "HWIO", "NHWC"))


def mnist_forward_reference(x_nchw, p):
    x = jnp.transpose(x_nchw, (0, 2, 3, 1)).astype(jnp.float32)

    def block(x, w, s, h, relu):
        y = _conv_ref(x, w) * s.reshape(1, 1, 1, -1) + h.reshape(1, 1, 1, -1)
        return jnp.maximum(y, 0.0) if relu else y

    x = block(x, p["w1"], p["s1"], p["h1"], True)
    x = block(x, p["w2"], p["s2"], p["h2"], True)
    x = _conv_ref(x, p["wt"])
    x = lax.reduce_window(x, -jnp.inf, lax.max, (1, 2, 2, 1), (1, 2, 2, 1), "VALID")
    x = block(x, p["w3"], p["s3"], p["h3"], True)
    x = block(x, p["w4"], p["s4"], p["h4"], True)
    x = block(x, p["w5"], p["s5"], p["h5"], True)
    g = jnp.mean(x[:, 0:5, 0:5, :], axis=(1, 2))
    logits = g @ p["wf"].reshape(10, 16).T + p["bf"]
    return jax.nn.log_softmax(logits, axis=-1)


# ============================================================================ params
def init_params(key):
    ks = jax.random.split(key, 16)

    def conv_w(k, cout, cin, ksz):
        fan_in = cin * ksz * ksz
        return jax.random.normal(k, (cout, cin, ksz, ksz), jnp.float32) / np.sqrt(fan_in)

    def bn(k, c, eps=1e-5):
        k1, k2, k3, k4 = jax.random.split(k, 4)
        gamma = 1.0 + 0.1 * jax.random.normal(k1, (c,), jnp.float32)
        beta = 0.1 * jax.random.normal(k2, (c,), jnp.float32)
        mean = 0.1 * jax.random.normal(k3, (c,), jnp.float32)
        var = jax.random.uniform(k4, (c,), jnp.float32, minval=0.5, maxval=1.5)
        scale = gamma / jnp.sqrt(var + eps)
        shift = beta - mean * scale
        return scale.reshape(1, c), shift.reshape(1, c)

    p = {}
    p["w1"] = conv_w(ks[0], 7, 1, 3);   p["s1"], p["h1"] = bn(ks[1], 7)
    p["w2"] = conv_w(ks[2], 16, 7, 3);  p["s2"], p["h2"] = bn(ks[3], 16)
    p["wt"] = conv_w(ks[4], 12, 16, 1)
    p["w3"] = conv_w(ks[5], 16, 12, 3); p["s3"], p["h3"] = bn(ks[6], 16)
    p["w4"] = conv_w(ks[7], 16, 16, 3); p["s4"], p["h4"] = bn(ks[8], 16)
    p["w5"] = conv_w(ks[9], 16, 16, 3); p["s5"], p["h5"] = bn(ks[10], 16)
    p["wf"] = conv_w(ks[11], 10, 16, 1)
    p["bf"] = 0.1 * jax.random.normal(ks[12], (10,), jnp.float32)
    return p


if __name__ == "__main__":
    key = jax.random.PRNGKey(0)
    pkey, xkey = jax.random.split(key)
    params = init_params(pkey)

    # One-time weight folding, outside the jitted forward (perf-review item 2).
    folded = prepare_folded_params(params, b_tile=DEFAULT_B_TILE)

    # PyTorch-style MNIST input: NCHW.  batch=12 exercises both padding
    # (12 -> 16) and a multi-step grid (2 steps of B_TILE=8).
    x = jax.random.normal(xkey, (12, 1, 28, 28), jnp.float32)

    out = jax.block_until_ready(mnist_forward_pallas(x, folded))
    ref = jax.block_until_ready(mnist_forward_reference(x, params))

    assert out.shape == (12, 10), out.shape
    err = float(jnp.max(jnp.abs(out - ref)))
    # bf16 MXU operands through a 6-conv chain vs f32 reference -> loose tolerance.
    assert err < 0.15, f"mismatch vs pure-JAX reference: max abs err = {err}"
    print("KERNEL_OK")
</pallas_src>

<mosaic_0001>
module attributes {stable_mosaic.version = 11 : i64} {
  func.func @_mnist_fused_kernel(%arg0: i32, %arg1: memref<1x224x28xf32, #tpu.memory_space<vmem>>, %arg2: memref<3x28x182xbf16, #tpu.memory_space<vmem>>, %arg3: memref<1x182xf32, #tpu.memory_space<vmem>>, %arg4: memref<1x182xf32, #tpu.memory_space<vmem>>, %arg5: memref<3x182x384xbf16, #tpu.memory_space<vmem>>, %arg6: memref<1x384xf32, #tpu.memory_space<vmem>>, %arg7: memref<1x384xf32, #tpu.memory_space<vmem>>, %arg8: memref<384x144xbf16, #tpu.memory_space<vmem>>, %arg9: memref<384x144xbf16, #tpu.memory_space<vmem>>, %arg10: memref<3x144x160xbf16, #tpu.memory_space<vmem>>, %arg11: memref<1x160xf32, #tpu.memory_space<vmem>>, %arg12: memref<1x160xf32, #tpu.memory_space<vmem>>, %arg13: memref<3x160x128xbf16, #tpu.memory_space<vmem>>, %arg14: memref<1x128xf32, #tpu.memory_space<vmem>>, %arg15: memref<1x128xf32, #tpu.memory_space<vmem>>, %arg16: memref<3x128x96xbf16, #tpu.memory_space<vmem>>, %arg17: memref<1x96xf32, #tpu.memory_space<vmem>>, %arg18: memref<1x96xf32, #tpu.memory_space<vmem>>, %arg19: memref<96x10xf32, #tpu.memory_space<vmem>>, %arg20: memref<1x10xf32, #tpu.memory_space<vmem>>, %arg21: memref<8x207xf32, #tpu.memory_space<vmem>>, %arg22: memref<1x8x10xf32, #tpu.memory_space<vmem>>, %arg23: memref<222x182xf32, #tpu.memory_space<vmem>>, %arg24: memref<219x144xbf16, #tpu.memory_space<vmem>>, %arg25: memref<215x160xbf16, #tpu.memory_space<vmem>>, %arg26: memref<211x128xbf16, #tpu.memory_space<vmem>>) attributes {dimension_semantics = [#tpu.dimension_semantics<parallel>], iteration_bounds = array<i64: 2>, scalar_prefetch = 0 : i64, scratch_operands = 4 : i64, tpu.core_type = #tpu.core_type<tc>, window_params = [{transform_indices = @transform_0, window_bounds = array<i64: 1, 224, 28>}, {pipeline_mode = #tpu.pipeline_mode<synchronous>, transform_indices = @transform_1, window_bounds = array<i64: 3, 28, 182>}, {pipeline_mode = #tpu.pipeline_mode<synchronous>, transform_indices = @transform_2, window_bounds = array<i64: 1, 182>}, {pipeline_mode = #tpu.pipeline_mode<synchronous>, transform_indices = @transform_3, window_bounds = array<i64: 1, 182>}, {pipeline_mode = #tpu.pipeline_mode<synchronous>, transform_indices = @transform_4, window_bounds = array<i64: 3, 182, 384>}, {pipeline_mode = #tpu.pipeline_mode<synchronous>, transform_indices = @transform_5, window_bounds = array<i64: 1, 384>}, {pipeline_mode = #tpu.pipeline_mode<synchronous>, transform_indices = @transform_6, window_bounds = array<i64: 1, 384>}, {pipeline_mode = #tpu.pipeline_mode<synchronous>, transform_indices = @transform_7, window_bounds = array<i64: 384, 144>}, {pipeline_mode = #tpu.pipeline_mode<synchronous>, transform_indices = @transform_8, window_bounds = array<i64: 384, 144>}, {pipeline_mode = #tpu.pipeline_mode<synchronous>, transform_indices = @transform_9, window_bounds = array<i64: 3, 144, 160>}, {pipeline_mode = #tpu.pipeline_mode<synchronous>, transform_indices = @transform_10, window_bounds = array<i64: 1, 160>}, {pipeline_mode = #tpu.pipeline_mode<synchronous>, transform_indices = @transform_11, window_bounds = array<i64: 1, 160>}, {pipeline_mode = #tpu.pipeline_mode<synchronous>, transform_indices = @transform_12, window_bounds = array<i64: 3, 160, 128>}, {pipeline_mode = #tpu.pipeline_mode<synchronous>, transform_indices = @transform_13, window_bounds = array<i64: 1, 128>}, {pipeline_mode = #tpu.pipeline_mode<synchronous>, transform_indices = @transform_14, window_bounds = array<i64: 1, 128>}, {pipeline_mode = #tpu.pipeline_mode<synchronous>, transform_indices = @transform_15, window_bounds = array<i64: 3, 128, 96>}, {pipeline_mode = #tpu.pipeline_mode<synchronous>, transform_indices = @transform_16, window_bounds = array<i64: 1, 96>}, {pipeline_mode = #tpu.pipeline_mode<synchronous>, transform_indices = @transform_17, window_bounds = array<i64: 1, 96>}, {pipeline_mode = #tpu.pipeline_mode<synchronous>, transform_indices = @transform_18, window_bounds = array<i64: 96, 10>}, {pipeline_mode = #tpu.pipeline_mode<synchronous>, transform_indices = @transform_19, window_bounds = array<i64: 1, 10>}, {pipeline_mode = #tpu.pipeline_mode<synchronous>, transform_indices = @transform_20, window_bounds = array<i64: 8, 207>}, {transform_indices = @transform_21, window_bounds = array<i64: 1, 8, 10>}]} {
    %c0 = arith.constant 0 : index
    %c0_0 = arith.constant 0 : index
    %c0_1 = arith.constant 0 : index
    %0 = vector.load %arg1[%c0, %c0_0, %c0_1] : memref<1x224x28xf32, #tpu.memory_space<vmem>>, vector<1x222x28xf32>
    %1 = vector.shape_cast %0 : vector<1x222x28xf32> to vector<222x28xf32>
    %2 = arith.truncf %1 : vector<222x28xf32> to vector<222x28xbf16>
    %c0_2 = arith.constant 0 : index
    %c0_3 = arith.constant 0 : index
    %c0_4 = arith.constant 0 : index
    %3 = vector.load %arg2[%c0_2, %c0_3, %c0_4] : memref<3x28x182xbf16, #tpu.memory_space<vmem>>, vector<1x28x182xbf16>
    %4 = vector.shape_cast %3 : vector<1x28x182xbf16> to vector<28x182xbf16>
    %cst = arith.constant dense<0.000000e+00> : vector<222x182xf32>
    %5 = tpu.matmul %2, %4, %cst {dimension_numbers = #tpu.dot_dimension_numbers<[1], [0], [0], [1], [0, 0, 1, 1], [], []>} : vector<222x28xbf16>, vector<28x182xbf16>, vector<222x182xf32> -> vector<222x182xf32>
    %c0_5 = arith.constant 0 : index
    %c1 = arith.constant 1 : index
    %c0_6 = arith.constant 0 : index
    %6 = vector.load %arg1[%c0_5, %c1, %c0_6] : memref<1x224x28xf32, #tpu.memory_space<vmem>>, vector<1x222x28xf32>
    %7 = vector.shape_cast %6 : vector<1x222x28xf32> to vector<222x28xf32>
    %8 = arith.truncf %7 : vector<222x28xf32> to vector<222x28xbf16>
    %c1_7 = arith.constant 1 : index
    %c0_8 = arith.constant 0 : index
    %c0_9 = arith.constant 0 : index
    %9 = vector.load %arg2[%c1_7, %c0_8, %c0_9] : memref<3x28x182xbf16, #tpu.memory_space<vmem>>, vector<1x28x182xbf16>
    %10 = vector.shape_cast %9 : vector<1x28x182xbf16> to vector<28x182xbf16>
    %cst_10 = arith.constant dense<0.000000e+00> : vector<222x182xf32>
    %11 = tpu.matmul %8, %10, %cst_10 {dimension_numbers = #tpu.dot_dimension_numbers<[1], [0], [0], [1], [0, 0, 1, 1], [], []>} : vector<222x28xbf16>, vector<28x182xbf16>, vector<222x182xf32> -> vector<222x182xf32>
    %12 = arith.addf %5, %11 : vector<222x182xf32>
    %c0_11 = arith.constant 0 : index
    %c2 = arith.constant 2 : index
    %c0_12 = arith.constant 0 : index
    %13 = vector.load %arg1[%c0_11, %c2, %c0_12] : memref<1x224x28xf32, #tpu.memory_space<vmem>>, vector<1x222x28xf32>
    %14 = vector.shape_cast %13 : vector<1x222x28xf32> to vector<222x28xf32>
    %15 = arith.truncf %14 : vector<222x28xf32> to vector<222x28xbf16>
    %c2_13 = arith.constant 2 : index
    %c0_14 = arith.constant 0 : index
    %c0_15 = arith.constant 0 : index
    %16 = vector.load %arg2[%c2_13, %c0_14, %c0_15] : memref<3x28x182xbf16, #tpu.memory_space<vmem>>, vector<1x28x182xbf16>
    %17 = vector.shape_cast %16 : vector<1x28x182xbf16> to vector<28x182xbf16>
    %cst_16 = arith.constant dense<0.000000e+00> : vector<222x182xf32>
    %18 = tpu.matmul %15, %17, %cst_16 {dimension_numbers = #tpu.dot_dimension_numbers<[1], [0], [0], [1], [0, 0, 1, 1], [], []>} : vector<222x28xbf16>, vector<28x182xbf16>, vector<222x182xf32> -> vector<222x182xf32>
    %19 = arith.addf %12, %18 : vector<222x182xf32>
    %c0_17 = arith.constant 0 : index
    %c0_18 = arith.constant 0 : index
    %20 = vector.load %arg3[%c0_17, %c0_18] : memref<1x182xf32, #tpu.memory_space<vmem>>, vector<1x182xf32>
    %21 = vector.broadcast %20 : vector<1x182xf32> to vector<222x182xf32>
    %22 = arith.mulf %19, %21 : vector<222x182xf32>
    %c0_19 = arith.constant 0 : index
    %c0_20 = arith.constant 0 : index
    %23 = vector.load %arg4[%c0_19, %c0_20] : memref<1x182xf32, #tpu.memory_space<vmem>>, vector<1x182xf32>
    %24 = vector.broadcast %23 : vector<1x182xf32> to vector<222x182xf32>
    %25 = arith.addf %22, %24 : vector<222x182xf32>
    %cst_21 = arith.constant 0.000000e+00 : f32
    %26 = vector.broadcast %cst_21 : f32 to vector<222x182xf32>
    %27 = arith.maximumf %25, %26 : vector<222x182xf32>
    %c0_22 = arith.constant 0 : index
    %c0_23 = arith.constant 0 : index
    %28 = vector.load %arg23[%c0_22, %c0_23] : memref<222x182xf32, #tpu.memory_space<vmem>>, vector<222x182xf32>
    tpu.vector_store %arg23[%c0_22, %c0_23], %27 {strides = array<i32>} : memref<222x182xf32, #tpu.memory_space<vmem>>, vector<222x182xf32>,
    %c0_24 = arith.constant 0 : index
    %c0_25 = arith.constant 0 : index
    %29 = vector.load %arg23[%c0_24, %c0_25] : memref<222x182xf32, #tpu.memory_space<vmem>>, vector<220x182xf32>
    %30 = arith.truncf %29 : vector<220x182xf32> to vector<220x182xbf16>
    %c0_26 = arith.constant 0 : index
    %c0_27 = arith.constant 0 : index
    %c0_28 = arith.constant 0 : index
    %31 = vector.load %arg5[%c0_26, %c0_27, %c0_28] : memref<3x182x384xbf16, #tpu.memory_space<vmem>>, vector<1x182x384xbf16>
    %32 = vector.shape_cast %31 : vector<1x182x384xbf16> to vector<182x384xbf16>
    %cst_29 = arith.constant dense<0.000000e+00> : vector<220x384xf32>
    %33 = tpu.matmul %30, %32, %cst_29 {dimension_numbers = #tpu.dot_dimension_numbers<[1], [0], [0], [1], [0, 0, 1, 1], [], []>} : vector<220x182xbf16>, vector<182x384xbf16>, vector<220x384xf32> -> vector<220x384xf32>
    %c1_30 = arith.constant 1 : index
    %c0_31 = arith.constant 0 : index
    %34 = vector.load %arg23[%c1_30, %c0_31] : memref<222x182xf32, #tpu.memory_space<vmem>>, vector<220x182xf32>
    %35 = arith.truncf %34 : vector<220x182xf32> to vector<220x182xbf16>
    %c1_32 = arith.constant 1 : index
    %c0_33 = arith.constant 0 : index
    %c0_34 = arith.constant 0 : index
    %36 = vector.load %arg5[%c1_32, %c0_33, %c0_34] : memref<3x182x384xbf16, #tpu.memory_space<vmem>>, vector<1x182x384xbf16>
    %37 = vector.shape_cast %36 : vector<1x182x384xbf16> to vector<182x384xbf16>
    %cst_35 = arith.constant dense<0.000000e+00> : vector<220x384xf32>
    %38 = tpu.matmul %35, %37, %cst_35 {dimension_numbers = #tpu.dot_dimension_numbers<[1], [0], [0], [1], [0, 0, 1, 1], [], []>} : vector<220x182xbf16>, vector<182x384xbf16>, vector<220x384xf32> -> vector<220x384xf32>
    %39 = arith.addf %33, %38 : vector<220x384xf32>
    %c2_36 = arith.constant 2 : index
    %c0_37 = arith.constant 0 : index
    %40 = vector.load %arg23[%c2_36, %c0_37] : memref<222x182xf32, #tpu.memory_space<vmem>>, vector<220x182xf32>
    %41 = arith.truncf %40 : vector<220x182xf32> to vector<220x182xbf16>
    %c2_38 = arith.constant 2 : index
    %c0_39 = arith.constant 0 : index
    %c0_40 = arith.constant 0 : index
    %42 = vector.load %arg5[%c2_38, %c0_39, %c0_40] : memref<3x182x384xbf16, #tpu.memory_space<vmem>>, vector<1x182x384xbf16>
    %43 = vector.shape_cast %42 : vector<1x182x384xbf16> to vector<182x384xbf16>
    %cst_41 = arith.constant dense<0.000000e+00> : vector<220x384xf32>
    %44 = tpu.matmul %41, %43, %cst_41 {dimension_numbers = #tpu.dot_dimension_numbers<[1], [0], [0], [1], [0, 0, 1, 1], [], []>} : vector<220x182xbf16>, vector<182x384xbf16>, vector<220x384xf32> -> vector<220x384xf32>
    %45 = arith.addf %39, %44 : vector<220x384xf32>
    %c0_42 = arith.constant 0 : index
    %c0_43 = arith.constant 0 : index
    %46 = vector.load %arg6[%c0_42, %c0_43] : memref<1x384xf32, #tpu.memory_space<vmem>>, vector<1x384xf32>
    %47 = vector.broadcast %46 : vector<1x384xf32> to vector<220x384xf32>
    %48 = arith.mulf %45, %47 : vector<220x384xf32>
    %c0_44 = arith.constant 0 : index
    %c0_45 = arith.constant 0 : index
    %49 = vector.load %arg7[%c0_44, %c0_45] : memref<1x384xf32, #tpu.memory_space<vmem>>, vector<1x384xf32>
    %50 = vector.broadcast %49 : vector<1x384xf32> to vector<220x384xf32>
    %51 = arith.addf %48, %50 : vector<220x384xf32>
    %cst_46 = arith.constant 0.000000e+00 : f32
    %52 = vector.broadcast %cst_46 : f32 to vector<220x384xf32>
    %53 = arith.maximumf %51, %52 : vector<220x384xf32>
    %54 = arith.truncf %53 : vector<220x384xf32> to vector<220x384xbf16>
    %c0_47 = arith.constant 0 : index
    %c0_48 = arith.constant 0 : index
    %55 = vector.load %arg8[%c0_47, %c0_48] : memref<384x144xbf16, #tpu.memory_space<vmem>>, vector<384x144xbf16>
    %cst_49 = arith.constant dense<0.000000e+00> : vector<220x144xf32>
    %56 = tpu.matmul %54, %55, %cst_49 {dimension_numbers = #tpu.dot_dimension_numbers<[1], [0], [0], [1], [0, 0, 1, 1], [], []>} : vector<220x384xbf16>, vector<384x144xbf16>, vector<220x144xf32> -> vector<220x144xf32>
    %c0_50 = arith.constant 0 : index
    %c0_51 = arith.constant 0 : index
    %57 = vector.load %arg9[%c0_50, %c0_51] : memref<384x144xbf16, #tpu.memory_space<vmem>>, vector<384x144xbf16>
    %cst_52 = arith.constant dense<0.000000e+00> : vector<220x144xf32>
    %58 = tpu.matmul %54, %57, %cst_52 {dimension_numbers = #tpu.dot_dimension_numbers<[1], [0], [0], [1], [0, 0, 1, 1], [], []>} : vector<220x384xbf16>, vector<384x144xbf16>, vector<220x144xf32> -> vector<220x144xf32>
    %59 = arith.maximumf %56, %58 : vector<220x144xf32>
    %60 = vector.extract_strided_slice %59 {offsets = [0, 0], sizes = [219, 144], strides = [1, 1]} : vector<220x144xf32> to vector<219x144xf32>
    %61 = vector.extract_strided_slice %59 {offsets = [1, 0], sizes = [219, 144], strides = [1, 1]} : vector<220x144xf32> to vector<219x144xf32>
    %62 = arith.maximumf %60, %61 : vector<219x144xf32>
    %63 = arith.truncf %62 : vector<219x144xf32> to vector<219x144xbf16>
    %c0_53 = arith.constant 0 : index
    %c0_54 = arith.constant 0 : index
    %64 = vector.load %arg24[%c0_53, %c0_54] : memref<219x144xbf16, #tpu.memory_space<vmem>>, vector<219x144xbf16>
    tpu.vector_store %arg24[%c0_53, %c0_54], %63 {strides = array<i32>} : memref<219x144xbf16, #tpu.memory_space<vmem>>, vector<219x144xbf16>,
    %c0_55 = arith.constant 0 : index
    %c0_56 = arith.constant 0 : index
    %65 = vector.load %arg24[%c0_55, %c0_56] : memref<219x144xbf16, #tpu.memory_space<vmem>>, vector<215x144xbf16>
    %c0_57 = arith.constant 0 : index
    %c0_58 = arith.constant 0 : index
    %c0_59 = arith.constant 0 : index
    %66 = vector.load %arg10[%c0_57, %c0_58, %c0_59] : memref<3x144x160xbf16, #tpu.memory_space<vmem>>, vector<1x144x160xbf16>
    %67 = vector.shape_cast %66 : vector<1x144x160xbf16> to vector<144x160xbf16>
    %cst_60 = arith.constant dense<0.000000e+00> : vector<215x160xf32>
    %68 = tpu.matmul %65, %67, %cst_60 {dimension_numbers = #tpu.dot_dimension_numbers<[1], [0], [0], [1], [0, 0, 1, 1], [], []>} : vector<215x144xbf16>, vector<144x160xbf16>, vector<215x160xf32> -> vector<215x160xf32>
    %c2_61 = arith.constant 2 : index
    %c0_62 = arith.constant 0 : index
    %69 = vector.load %arg24[%c2_61, %c0_62] : memref<219x144xbf16, #tpu.memory_space<vmem>>, vector<215x144xbf16>
    %c1_63 = arith.constant 1 : index
    %c0_64 = arith.constant 0 : index
    %c0_65 = arith.constant 0 : index
    %70 = vector.load %arg10[%c1_63, %c0_64, %c0_65] : memref<3x144x160xbf16, #tpu.memory_space<vmem>>, vector<1x144x160xbf16>
    %71 = vector.shape_cast %70 : vector<1x144x160xbf16> to vector<144x160xbf16>
    %cst_66 = arith.constant dense<0.000000e+00> : vector<215x160xf32>
    %72 = tpu.matmul %69, %71, %cst_66 {dimension_numbers = #tpu.dot_dimension_numbers<[1], [0], [0], [1], [0, 0, 1, 1], [], []>} : vector<215x144xbf16>, vector<144x160xbf16>, vector<215x160xf32> -> vector<215x160xf32>
    %73 = arith.addf %68, %72 : vector<215x160xf32>
    %c4 = arith.constant 4 : index
    %c0_67 = arith.constant 0 : index
    %74 = vector.load %arg24[%c4, %c0_67] : memref<219x144xbf16, #tpu.memory_space<vmem>>, vector<215x144xbf16>
    %c2_68 = arith.constant 2 : index
    %c0_69 = arith.constant 0 : index
    %c0_70 = arith.constant 0 : index
    %75 = vector.load %arg10[%c2_68, %c0_69, %c0_70] : memref<3x144x160xbf16, #tpu.memory_space<vmem>>, vector<1x144x160xbf16>
    %76 = vector.shape_cast %75 : vector<1x144x160xbf16> to vector<144x160xbf16>
    %cst_71 = arith.constant dense<0.000000e+00> : vector<215x160xf32>
    %77 = tpu.matmul %74, %76, %cst_71 {dimension_numbers = #tpu.dot_dimension_numbers<[1], [0], [0], [1], [0, 0, 1, 1], [], []>} : vector<215x144xbf16>, vector<144x160xbf16>, vector<215x160xf32> -> vector<215x160xf32>
    %78 = arith.addf %73, %77 : vector<215x160xf32>
    %c0_72 = arith.constant 0 : index
    %c0_73 = arith.constant 0 : index
    %79 = vector.load %arg11[%c0_72, %c0_73] : memref<1x160xf32, #tpu.memory_space<vmem>>, vector<1x160xf32>
    %80 = vector.broadcast %79 : vector<1x160xf32> to vector<215x160xf32>
    %81 = arith.mulf %78, %80 : vector<215x160xf32>
    %c0_74 = arith.constant 0 : index
    %c0_75 = arith.constant 0 : index
    %82 = vector.load %arg12[%c0_74, %c0_75] : memref<1x160xf32, #tpu.memory_space<vmem>>, vector<1x160xf32>
    %83 = vector.broadcast %82 : vector<1x160xf32> to vector<215x160xf32>
    %84 = arith.addf %81, %83 : vector<215x160xf32>
    %cst_76 = arith.constant 0.000000e+00 : f32
    %85 = vector.broadcast %cst_76 : f32 to vector<215x160xf32>
    %86 = arith.maximumf %84, %85 : vector<215x160xf32>
    %87 = arith.truncf %86 : vector<215x160xf32> to vector<215x160xbf16>
    %c0_77 = arith.constant 0 : index
    %c0_78 = arith.constant 0 : index
    %88 = vector.load %arg25[%c0_77, %c0_78] : memref<215x160xbf16, #tpu.memory_space<vmem>>, vector<215x160xbf16>
    tpu.vector_store %arg25[%c0_77, %c0_78], %87 {strides = array<i32>} : memref<215x160xbf16, #tpu.memory_space<vmem>>, vector<215x160xbf16>,
    %c0_79 = arith.constant 0 : index
    %c0_80 = arith.constant 0 : index
    %89 = vector.load %arg25[%c0_79, %c0_80] : memref<215x160xbf16, #tpu.memory_space<vmem>>, vector<211x160xbf16>
    %c0_81 = arith.constant 0 : index
    %c0_82 = arith.constant 0 : index
    %c0_83 = arith.constant 0 : index
    %90 = vector.load %arg13[%c0_81, %c0_82, %c0_83] : memref<3x160x128xbf16, #tpu.memory_space<vmem>>, vector<1x160x128xbf16>
    %91 = vector.shape_cast %90 : vector<1x160x128xbf16> to vector<160x128xbf16>
    %cst_84 = arith.constant dense<0.000000e+00> : vector<211x128xf32>
    %92 = tpu.matmul %89, %91, %cst_84 {dimension_numbers = #tpu.dot_dimension_numbers<[1], [0], [0], [1], [0, 0, 1, 1], [], []>} : vector<211x160xbf16>, vector<160x128xbf16>, vector<211x128xf32> -> vector<211x128xf32>
    %c2_85 = arith.constant 2 : index
    %c0_86 = arith.constant 0 : index
    %93 = vector.load %arg25[%c2_85, %c0_86] : memref<215x160xbf16, #tpu.memory_space<vmem>>, vector<211x160xbf16>
    %c1_87 = arith.constant 1 : index
    %c0_88 = arith.constant 0 : index
    %c0_89 = arith.constant 0 : index
    %94 = vector.load %arg13[%c1_87, %c0_88, %c0_89] : memref<3x160x128xbf16, #tpu.memory_space<vmem>>, vector<1x160x128xbf16>
    %95 = vector.shape_cast %94 : vector<1x160x128xbf16> to vector<160x128xbf16>
    %cst_90 = arith.constant dense<0.000000e+00> : vector<211x128xf32>
    %96 = tpu.matmul %93, %95, %cst_90 {dimension_numbers = #tpu.dot_dimension_numbers<[1], [0], [0], [1], [0, 0, 1, 1], [], []>} : vector<211x160xbf16>, vector<160x128xbf16>, vector<211x128xf32> -> vector<211x128xf32>
    %97 = arith.addf %92, %96 : vector<211x128xf32>
    %c4_91 = arith.constant 4 : index
    %c0_92 = arith.constant 0 : index
    %98 = vector.load %arg25[%c4_91, %c0_92] : memref<215x160xbf16, #tpu.memory_space<vmem>>, vector<211x160xbf16>
    %c2_93 = arith.constant 2 : index
    %c0_94 = arith.constant 0 : index
    %c0_95 = arith.constant 0 : index
    %99 = vector.load %arg13[%c2_93, %c0_94, %c0_95] : memref<3x160x128xbf16, #tpu.memory_space<vmem>>, vector<1x160x128xbf16>
    %100 = vector.shape_cast %99 : vector<1x160x128xbf16> to vector<160x128xbf16>
    %cst_96 = arith.constant dense<0.000000e+00> : vector<211x128xf32>
    %101 = tpu.matmul %98, %100, %cst_96 {dimension_numbers = #tpu.dot_dimension_numbers<[1], [0], [0], [1], [0, 0, 1, 1], [], []>} : vector<211x160xbf16>, vector<160x128xbf16>, vector<211x128xf32> -> vector<211x128xf32>
    %102 = arith.addf %97, %101 : vector<211x128xf32>
    %c0_97 = arith.constant 0 : index
    %c0_98 = arith.constant 0 : index
    %103 = vector.load %arg14[%c0_97, %c0_98] : memref<1x128xf32, #tpu.memory_space<vmem>>, vector<1x128xf32>
    %104 = vector.broadcast %103 : vector<1x128xf32> to vector<211x128xf32>
    %105 = arith.mulf %102, %104 : vector<211x128xf32>
    %c0_99 = arith.constant 0 : index
    %c0_100 = arith.constant 0 : index
    %106 = vector.load %arg15[%c0_99, %c0_100] : memref<1x128xf32, #tpu.memory_space<vmem>>, vector<1x128xf32>
    %107 = vector.broadcast %106 : vector<1x128xf32> to vector<211x128xf32>
    %108 = arith.addf %105, %107 : vector<211x128xf32>
    %cst_101 = arith.constant 0.000000e+00 : f32
    %109 = vector.broadcast %cst_101 : f32 to vector<211x128xf32>
    %110 = arith.maximumf %108, %109 : vector<211x128xf32>
    %111 = arith.truncf %110 : vector<211x128xf32> to vector<211x128xbf16>
    %c0_102 = arith.constant 0 : index
    %c0_103 = arith.constant 0 : index
    %112 = vector.load %arg26[%c0_102, %c0_103] : memref<211x128xbf16, #tpu.memory_space<vmem>>, vector<211x128xbf16>
    tpu.vector_store %arg26[%c0_102, %c0_103], %111 {strides = array<i32>} : memref<211x128xbf16, #tpu.memory_space<vmem>>, vector<211x128xbf16>,
    %c0_104 = arith.constant 0 : index
    %c0_105 = arith.constant 0 : index
    %113 = vector.load %arg26[%c0_104, %c0_105] : memref<211x128xbf16, #tpu.memory_space<vmem>>, vector<207x128xbf16>
    %c0_106 = arith.constant 0 : index
    %c0_107 = arith.constant 0 : index
    %c0_108 = arith.constant 0 : index
    %114 = vector.load %arg16[%c0_106, %c0_107, %c0_108] : memref<3x128x96xbf16, #tpu.memory_space<vmem>>, vector<1x128x96xbf16>
    %115 = vector.shape_cast %114 : vector<1x128x96xbf16> to vector<128x96xbf16>
    %cst_109 = arith.constant dense<0.000000e+00> : vector<207x96xf32>
    %116 = tpu.matmul %113, %115, %cst_109 {dimension_numbers = #tpu.dot_dimension_numbers<[1], [0], [0], [1], [0, 0, 1, 1], [], []>} : vector<207x128xbf16>, vector<128x96xbf16>, vector<207x96xf32> -> vector<207x96xf32>
    %c2_110 = arith.constant 2 : index
    %c0_111 = arith.constant 0 : index
    %117 = vector.load %arg26[%c2_110, %c0_111] : memref<211x128xbf16, #tpu.memory_space<vmem>>, vector<207x128xbf16>
    %c1_112 = arith.constant 1 : index
    %c0_113 = arith.constant 0 : index
    %c0_114 = arith.constant 0 : index
    %118 = vector.load %arg16[%c1_112, %c0_113, %c0_114] : memref<3x128x96xbf16, #tpu.memory_space<vmem>>, vector<1x128x96xbf16>
    %119 = vector.shape_cast %118 : vector<1x128x96xbf16> to vector<128x96xbf16>
    %cst_115 = arith.constant dense<0.000000e+00> : vector<207x96xf32>
    %120 = tpu.matmul %117, %119, %cst_115 {dimension_numbers = #tpu.dot_dimension_numbers<[1], [0], [0], [1], [0, 0, 1, 1], [], []>} : vector<207x128xbf16>, vector<128x96xbf16>, vector<207x96xf32> -> vector<207x96xf32>
    %121 = arith.addf %116, %120 : vector<207x96xf32>
    %c4_116 = arith.constant 4 : index
    %c0_117 = arith.constant 0 : index
    %122 = vector.load %arg26[%c4_116, %c0_117] : memref<211x128xbf16, #tpu.memory_space<vmem>>, vector<207x128xbf16>
    %c2_118 = arith.constant 2 : index
    %c0_119 = arith.constant 0 : index
    %c0_120 = arith.constant 0 : index
    %123 = vector.load %arg16[%c2_118, %c0_119, %c0_120] : memref<3x128x96xbf16, #tpu.memory_space<vmem>>, vector<1x128x96xbf16>
    %124 = vector.shape_cast %123 : vector<1x128x96xbf16> to vector<128x96xbf16>
    %cst_121 = arith.constant dense<0.000000e+00> : vector<207x96xf32>
    %125 = tpu.matmul %122, %124, %cst_121 {dimension_numbers = #tpu.dot_dimension_numbers<[1], [0], [0], [1], [0, 0, 1, 1], [], []>} : vector<207x128xbf16>, vector<128x96xbf16>, vector<207x96xf32> -> vector<207x96xf32>
    %126 = arith.addf %121, %125 : vector<207x96xf32>
    %c0_122 = arith.constant 0 : index
    %c0_123 = arith.constant 0 : index
    %127 = vector.load %arg17[%c0_122, %c0_123] : memref<1x96xf32, #tpu.memory_space<vmem>>, vector<1x96xf32>
    %128 = vector.broadcast %127 : vector<1x96xf32> to vector<207x96xf32>
    %129 = arith.mulf %126, %128 : vector<207x96xf32>
    %c0_124 = arith.constant 0 : index
    %c0_125 = arith.constant 0 : index
    %130 = vector.load %arg18[%c0_124, %c0_125] : memref<1x96xf32, #tpu.memory_space<vmem>>, vector<1x96xf32>
    %131 = vector.broadcast %130 : vector<1x96xf32> to vector<207x96xf32>
    %132 = arith.addf %129, %131 : vector<207x96xf32>
    %cst_126 = arith.constant 0.000000e+00 : f32
    %133 = vector.broadcast %cst_126 : f32 to vector<207x96xf32>
    %134 = arith.maximumf %132, %133 : vector<207x96xf32>
    %c0_127 = arith.constant 0 : index
    %c0_128 = arith.constant 0 : index
    %135 = vector.load %arg21[%c0_127, %c0_128] : memref<8x207xf32, #tpu.memory_space<vmem>>, vector<8x207xf32>
    %cst_129 = arith.constant dense<0.000000e+00> : vector<8x96xf32>
    %136 = tpu.matmul %135, %134, %cst_129 {dimension_numbers = #tpu.dot_dimension_numbers<[1], [0], [0], [1], [0, 0, 1, 1], [], []>} : vector<8x207xf32>, vector<207x96xf32>, vector<8x96xf32> -> vector<8x96xf32>
    %c0_130 = arith.constant 0 : index
    %c0_131 = arith.constant 0 : index
    %137 = vector.load %arg19[%c0_130, %c0_131] : memref<96x10xf32, #tpu.memory_space<vmem>>, vector<96x10xf32>
    %cst_132 = arith.constant dense<0.000000e+00> : vector<8x10xf32>
    %138 = tpu.matmul %136, %137, %cst_132 {dimension_numbers = #tpu.dot_dimension_numbers<[1], [0], [0], [1], [0, 0, 1, 1], [], []>} : vector<8x96xf32>, vector<96x10xf32>, vector<8x10xf32> -> vector<8x10xf32>
    %c0_133 = arith.constant 0 : index
    %c0_134 = arith.constant 0 : index
    %139 = vector.load %arg20[%c0_133, %c0_134] : memref<1x10xf32, #tpu.memory_space<vmem>>, vector<1x10xf32>
    %140 = vector.broadcast %139 : vector<1x10xf32> to vector<8x10xf32>
    %141 = arith.addf %138, %140 : vector<8x10xf32>
    %cst_135 = arith.constant dense<0xFF800000> : vector<8xf32>
    %142 = vector.multi_reduction <maximumf>, %141, %cst_135 [1] : vector<8x10xf32> to vector<8xf32>
    %143 = vector.shape_cast %142 : vector<8xf32> to vector<8x1xf32>
    %144 = vector.broadcast %143 : vector<8x1xf32> to vector<8x10xf32>
    %145 = arith.subf %141, %144 : vector<8x10xf32>
    %146 = math.exp %145 : vector<8x10xf32>
    %cst_136 = arith.constant dense<0.000000e+00> : vector<8xf32>
    %147 = vector.multi_reduction <add>, %146, %cst_136 [1] : vector<8x10xf32> to vector<8xf32>
    %148 = vector.shape_cast %147 : vector<8xf32> to vector<8x1xf32>
    %149 = math.log %148 : vector<8x1xf32>
    %150 = arith.addf %149, %143 : vector<8x1xf32>
    %151 = vector.broadcast %150 : vector<8x1xf32> to vector<8x10xf32>
    %152 = arith.subf %141, %151 : vector<8x10xf32>
    %c0_137 = arith.constant 0 : index
    %c0_138 = arith.constant 0 : index
    %c0_139 = arith.constant 0 : index
    %153 = vector.load %arg22[%c0_137, %c0_138, %c0_139] : memref<1x8x10xf32, #tpu.memory_space<vmem>>, vector<1x8x10xf32>
    %154 = vector.shape_cast %153 : vector<1x8x10xf32> to vector<8x10xf32>
    %155 = vector.shape_cast %152 : vector<8x10xf32> to vector<1x8x10xf32>
    tpu.vector_store %arg22[%c0_137, %c0_138, %c0_139], %155 {strides = array<i32>} : memref<1x8x10xf32, #tpu.memory_space<vmem>>, vector<1x8x10xf32>,
    return
  }
  func.func @transform_0(%arg0: i32) -> (i32, i32, i32) {
    %c0_i32 = arith.constant 0 : i32
    %c0_i32_0 = arith.constant 0 : i32
    %c0_i32_1 = arith.constant 0 : i32
    return %arg0, %c0_i32, %c0_i32_0 : i32, i32, i32
  }
  func.func @transform_1(%arg0: i32) -> (i32, i32, i32) {
    %c0_i32 = arith.constant 0 : i32
    %c0_i32_0 = arith.constant 0 : i32
    %c0_i32_1 = arith.constant 0 : i32
    %c0_i32_2 = arith.constant 0 : i32
    return %c0_i32, %c0_i32_0, %c0_i32_1 : i32, i32, i32
  }
  func.func @transform_2(%arg0: i32) -> (i32, i32) {
    %c0_i32 = arith.constant 0 : i32
    %c0_i32_0 = arith.constant 0 : i32
    %c0_i32_1 = arith.constant 0 : i32
    return %c0_i32, %c0_i32_0 : i32, i32
  }
  func.func @transform_3(%arg0: i32) -> (i32, i32) {
    %c0_i32 = arith.constant 0 : i32
    %c0_i32_0 = arith.constant 0 : i32
    %c0_i32_1 = arith.constant 0 : i32
    return %c0_i32, %c0_i32_0 : i32, i32
  }
  func.func @transform_4(%arg0: i32) -> (i32, i32, i32) {
    %c0_i32 = arith.constant 0 : i32
    %c0_i32_0 = arith.constant 0 : i32
    %c0_i32_1 = arith.constant 0 : i32
    %c0_i32_2 = arith.constant 0 : i32
    return %c0_i32, %c0_i32_0, %c0_i32_1 : i32, i32, i32
  }
  func.func @transform_5(%arg0: i32) -> (i32, i32) {
    %c0_i32 = arith.constant 0 : i32
    %c0_i32_0 = arith.constant 0 : i32
    %c0_i32_1 = arith.constant 0 : i32
    return %c0_i32, %c0_i32_0 : i32, i32
  }
  func.func @transform_6(%arg0: i32) -> (i32, i32) {
    %c0_i32 = arith.constant 0 : i32
    %c0_i32_0 = arith.constant 0 : i32
    %c0_i32_1 = arith.constant 0 : i32
    return %c0_i32, %c0_i32_0 : i32, i32
  }
  func.func @transform_7(%arg0: i32) -> (i32, i32) {
    %c0_i32 = arith.constant 0 : i32
    %c0_i32_0 = arith.constant 0 : i32
    %c0_i32_1 = arith.constant 0 : i32
    return %c0_i32, %c0_i32_0 : i32, i32
  }
  func.func @transform_8(%arg0: i32) -> (i32, i32) {
    %c0_i32 = arith.constant 0 : i32
    %c0_i32_0 = arith.constant 0 : i32
    %c0_i32_1 = arith.constant 0 : i32
    return %c0_i32, %c0_i32_0 : i32, i32
  }
  func.func @transform_9(%arg0: i32) -> (i32, i32, i32) {
    %c0_i32 = arith.constant 0 : i32
    %c0_i32_0 = arith.constant 0 : i32
    %c0_i32_1 = arith.constant 0 : i32
    %c0_i32_2 = arith.constant 0 : i32
    return %c0_i32, %c0_i32_0, %c0_i32_1 : i32, i32, i32
  }
  func.func @transform_10(%arg0: i32) -> (i32, i32) {
    %c0_i32 = arith.constant 0 : i32
    %c0_i32_0 = arith.constant 0 : i32
    %c0_i32_1 = arith.constant 0 : i32
    return %c0_i32, %c0_i32_0 : i32, i32
  }
  func.func @transform_11(%arg0: i32) -> (i32, i32) {
    %c0_i32 = arith.constant 0 : i32
    %c0_i32_0 = arith.constant 0 : i32
    %c0_i32_1 = arith.constant 0 : i32
    return %c0_i32, %c0_i32_0 : i32, i32
  }
  func.func @transform_12(%arg0: i32) -> (i32, i32, i32) {
    %c0_i32 = arith.constant 0 : i32
    %c0_i32_0 = arith.constant 0 : i32
    %c0_i32_1 = arith.constant 0 : i32
    %c0_i32_2 = arith.constant 0 : i32
    return %c0_i32, %c0_i32_0, %c0_i32_1 : i32, i32, i32
  }
  func.func @transform_13(%arg0: i32) -> (i32, i32) {
    %c0_i32 = arith.constant 0 : i32
    %c0_i32_0 = arith.constant 0 : i32
    %c0_i32_1 = arith.constant 0 : i32
    return %c0_i32, %c0_i32_0 : i32, i32
  }
  func.func @transform_14(%arg0: i32) -> (i32, i32) {
    %c0_i32 = arith.constant 0 : i32
    %c0_i32_0 = arith.constant 0 : i32
    %c0_i32_1 = arith.constant 0 : i32
    return %c0_i32, %c0_i32_0 : i32, i32
  }
  func.func @transform_15(%arg0: i32) -> (i32, i32, i32) {
    %c0_i32 = arith.constant 0 : i32
    %c0_i32_0 = arith.constant 0 : i32
    %c0_i32_1 = arith.constant 0 : i32
    %c0_i32_2 = arith.constant 0 : i32
    return %c0_i32, %c0_i32_0, %c0_i32_1 : i32, i32, i32
  }
  func.func @transform_16(%arg0: i32) -> (i32, i32) {
    %c0_i32 = arith.constant 0 : i32
    %c0_i32_0 = arith.constant 0 : i32
    %c0_i32_1 = arith.constant 0 : i32
    return %c0_i32, %c0_i32_0 : i32, i32
  }
  func.func @transform_17(%arg0: i32) -> (i32, i32) {
    %c0_i32 = arith.constant 0 : i32
    %c0_i32_0 = arith.constant 0 : i32
    %c0_i32_1 = arith.constant 0 : i32
    return %c0_i32, %c0_i32_0 : i32, i32
  }
  func.func @transform_18(%arg0: i32) -> (i32, i32) {
    %c0_i32 = arith.constant 0 : i32
    %c0_i32_0 = arith.constant 0 : i32
    %c0_i32_1 = arith.constant 0 : i32
    return %c0_i32, %c0_i32_0 : i32, i32
  }
  func.func @transform_19(%arg0: i32) -> (i32, i32) {
    %c0_i32 = arith.constant 0 : i32
    %c0_i32_0 = arith.constant 0 : i32
    %c0_i32_1 = arith.constant 0 : i32
    return %c0_i32, %c0_i32_0 : i32, i32
  }
  func.func @transform_20(%arg0: i32) -> (i32, i32) {
    %c0_i32 = arith.constant 0 : i32
    %c0_i32_0 = arith.constant 0 : i32
    %c0_i32_1 = arith.constant 0 : i32
    return %c0_i32, %c0_i32_0 : i32, i32
  }
  func.func @transform_21(%arg0: i32) -> (i32, i32, i32) {
    %c0_i32 = arith.constant 0 : i32
    %c0_i32_0 = arith.constant 0 : i32
    %c0_i32_1 = arith.constant 0 : i32
    return %arg0, %c0_i32, %c0_i32_0 : i32, i32, i32
  }
}

</mosaic_0001>

<bundles_post_ra>
// kernel: mnist_forward_pallas.1
= control target key start
LH: loop header
LB: loop body
LE: loop exit
PB: predicated region body
PF: predicated region fallthrough
CT: control target
= control target key end

     0   :  { %s17333_s0 = inlined_call_operand.vmem [shape: f32[2,224,28], index: 0, kind: input, shape index: {}]   ;;  %s17334_s1 = inlined_call_operand.vmem [shape: bf16[3,28,182], index: 1, kind: input, shape index: {}]   ;;  %s17335_s2 = inlined_call_operand.vmem [shape: f32[1,182], index: 2, kind: input, shape index: {}]   ;;  %s17336_s3 = inlined_call_operand.vmem [shape: f32[1,182], index: 3, kind: input, shape index: {}]   ;;  %s17337_s4 = inlined_call_operand.vmem [shape: bf16[3,182,384], index: 4, kind: input, shape index: {}]   ;;  %s17338_s5 = inlined_call_operand.vmem [shape: f32[1,384], index: 5, kind: input, shape index: {}]   ;;  %s17339_s6 = inlined_call_operand.vmem [shape: f32[1,384], index: 6, kind: input, shape index: {}]   ;;  %s17340_s7 = inlined_call_operand.vmem [shape: bf16[384,144], index: 7, kind: input, shape index: {}]   ;;  %s17341_s8 = inlined_call_operand.vmem [shape: bf16[384,144], index: 8, kind: input, shape index: {}]   ;;  %s17342_s9 = inlined_call_operand.vmem [shape: bf16[3,144,160], index: 9, kind: input, shape index: {}]   ;;  %s17343_s10 = inlined_call_operand.vmem [shape: f32[1,160], index: 10, kind: input, shape index: {}]   ;;  %s17344_s11 = inlined_call_operand.vmem [shape: f32[1,160], index: 11, kind: input, shape index: {}]   ;;  %s17345_s12 = inlined_call_operand.vmem [shape: bf16[3,160,128], index: 12, kind: input, shape index: {}]   ;;  %s17346_s13 = inlined_call_operand.vmem [shape: f32[1,128], index: 13, kind: input, shape index: {}]   ;;  %s17347_s14 = inlined_call_operand.vmem [shape: f32[1,128], index: 14, kind: input, shape index: {}]   ;;  %s17348_s15 = inlined_call_operand.vmem [shape: bf16[3,128,96], index: 15, kind: input, shape index: {}]   ;;  %s17349_s16 = inlined_call_operand.vmem [shape: f32[1,96], index: 16, kind: input, shape index: {}]   ;;  %s17350_s17 = inlined_call_operand.vmem [shape: f32[1,96], index: 17, kind: input, shape index: {}]   ;;  %s17351_s18 = inlined_call_operand.vmem [shape: f32[96,10], index: 18, kind: input, shape index: {}]   ;;  %s17352_s19 = inlined_call_operand.vmem [shape: f32[1,10], index: 19, kind: input, shape index: {}]   ;;  %s17353_s20 = inlined_call_operand.vmem [shape: f32[8,207], index: 20, kind: input, shape index: {}]   ;;  %s17354_s21 = inlined_call_operand.hbm [shape: f32[2,8,10], index: 21, kind: output, shape index: {}]  }
   0x1   :  { %17380 = sst [smem:[#allocation26_spill]] %s17333_s0 }
   0x2   :  { %17381 = sst [smem:[#allocation27_spill]] %s17334_s1 }
   0x3   :  { %17382 = sst [smem:[#allocation28_spill]] %s17335_s2 }
   0x4   :  { %17383 = sst [smem:[#allocation29_spill]] %s17336_s3 }
   0x5   :  { %17384 = sst [smem:[#allocation30_spill]] %s17337_s4 }
   0x6   :  { %17385 = sst [smem:[#allocation31_spill]] %s17338_s5 }
   0x7   :  { %26 = vsyncpa [#allocation7], 0 }
   0x8   :  { %28 = vsyncpa [#allocation7 + $0x1], 0  ;;  %s13510_s2 = smov 0   ;;  %s13512_s25 = smov 0  }
   0x9   :  { %s13514_s26 = smov 0   ;;  %s13516_s27 = smov 0  }
   0xa LB: > { %17386 = sst [smem:[#allocation9_spill]] %s13380_s2  ;;  %s13531_s3 = sadd.s32 4294967295, %s13392_s27   ;;  %s13392_s27 = sphi %s13516_s27, %s17447_s27   ;;  %s13388_s26 = sphi %s13514_s26, %s17449_s26   ;;  %s13384_s25 = sphi %s13512_s25, %s17451_s25   ;;  %s13380_s2 = sphi %s13510_s2, %s17450_s2  }
   0xb   : > { %17387 = sst [smem:[#allocation10_spill]] %s13388_s26  ;;  %s10538_s28 = sadd.s32 4294967294, %s13392_s27  }
   0xc   : > { %s13535_s29 = sadd.s32 1, %s13392_s27   ;;  %s487_s0 = sadd.s32 1, %s13388_s26 }
   0xd   : > { %17388 = sst [smem:[#allocation11_spill]] %s13535_s29  ;;  %s484_s4 = ssub.s32 %s13392_s27, %s13535_s29 }
   0xe   : > { %p497_p0 = scmp.ne.s32.totalorder %s13388_s26, %s13384_s25  ;;  %p485_p1 = scmp.eq.s32.totalorder %s484_s4, 0 }
   0xf   : > { %p498_p2 = scmp.eq.s32.totalorder %s13531_s3, 1  ;;  %p503_p3 = scmp.ne.s32.totalorder %s13384_s25, %s13380_s2 }
  0x10   : > { %p504_p4 = scmp.eq.s32.totalorder %s10538_s28, 1  ;;  %p10541_p7 = scmp.ge.s32.totalorder %s13392_s27, 1 }
  0x11   : > { %s13546_s30 = scalar_select %p485_p1, %s13388_s26, %s487_s0  }
  0x12   : > { %p13548_p5 = por %p498_p2, %p497_p0  ;;  %p13552_p6 = por %p504_p4, %p503_p3 }
  0x13   : > { %17389 = sst [smem:[#allocation12_spill]] %s13546_s30  ;;  %p590_p8 = scmp.lt.s32.totalorder %s13392_s27, 3 }
  0x14   : > { %s17391_s22 = scalar_select %p13552_p6, 1, 0 }
  0x15   : > { %p591_p9 = pnand %p10541_p7, %p590_p8 }
  0x16   : > { %17392 = sst [smem:[#allocation13_spill]] %s17391_s22 }
  0x17   : > { %594 = sbr.rel (%p591_p9) target bundleno = 3882 (0xf2a), region = 104 }
  0x1e   : > { %s17393_s24 = sld [smem:[#allocation27_spill]]  ;;  %vm810_vm0 = vcmask 1045504   ;;  %v17363_v2 = vmov 0   ;;  %p650_p10 = scmp.lt.s32.totalorder %s13531_s3, 1  ;;  %vm767_vm1 = vcmask 228352   ;;  %vm2469_vm2 = vcmask 1042432  }
  0x1f   : > { %849 = vmatprep.mubr.bf16.mxu0 %v17363_v2  ;;  %s17394_s30 = sld [smem:[#allocation26_spill]]  ;;  %s17398_s29 = sld [smem:[#allocation28_spill]]  ;;  %vm1764_vm3 = vcmask 441344   ;;  %vm2006_vm4 = vsmask.f32 7424  ;;  %vm1819_vm5 = vcmask 439296  }
  0x20   : > { %s651_s23 = scalar_select %p650_p10, %s13531_s3, 1  ;;  %vm3421_vm6 = vcmask 1046528   ;;  %vm6226_vm7 = vcmask 1043456   ;;  %vm6227_vm8 = vcmask 130052   ;;  %vm6602_vm10 = vcmask 130048  }
  0x21   : > { %s17400_s2 = sld [smem:[#allocation29_spill]]  ;;  %vm15701_vm9 = vmor %vm6227_vm8, %vm6226_vm7  ;;  %vm6256_vm11 = vcmask 1041408   ;;  %vm6257_vm12 = vsmask.f32 1280  ;;  %vm6259_vm13 = vcmask 128004   ;;  %vm8291_vm8 = vcmask 261120  }
  0x22   : > { %s12749_s0 = smul.u32 224, %s651_s23  ;;  %vm6260_vm14 = vsmask.f32 5376  ;;  %vm16038_vm15 = vmand %vm6256_vm11, %vm6257_vm12  ;;  %vm13398_vm12 = vmmov 1   ;;  %s11472_s28 = sshll.u32 %s13531_s3, 7 }
  0x23   : > { %s13399_s3 = smov [#allocation6]  }
  0x24   : > { %v12794_v0 = vld [vmem:[%s17393_s24 + $0x24] ss:$8 sps:$4 sm:$0xff]   ;;  %v12796_v1 = vld [vmem:[%s17393_s24 + $0x20] ss:$8 sps:$4 sm:$0xff]  }
  0x25   : > { %817 = vmatprep.subr.bf16.mxu0 %v12794_v0  ;;  %v12797_v3 = vld [vmem:[%s17393_s24 + $0x34] ss:$8 sps:$4 sm:$0x3f]   ;;  %v12799_v4 = vld [vmem:[%s17393_s24 + $0x30] ss:$8 sps:$4 sm:$0x3f]   ;;  %s13581_s4 = scalar_lea.vmem %s17394_s30, %s12749_s0 }
  0x26   : > { %818 = vmatpush1.bf16.msra.mxu0 %v12796_v1  ;;  %v812_v5 = vsel %vm810_vm0, %v12799_v4, 0  ;;  %v12802_v6 = vld [vmem:[%s17393_s24 + $0x4] ss:$8 sps:$4 sm:$0xff]   ;;  %v12800_v9 = vld [vmem:[%s17393_s24] ss:$8 sps:$4 sm:$0xff]   ;;  %v704_v13 = vld [vmem:[%s13581_s4 + $0x11] sm:$0xff] }
  0x27   : > { %10552 = vmatprep.subr.msk.bf16.mxu0 %vm810_vm0, %v12797_v3  ;;  %v702_v7 = vld [vmem:[%s13581_s4 + $0x1] sm:$0xff]  ;;  %v703_v8 = vld [vmem:[%s13581_s4 + $0x9] sm:$0xff]  ;;  %v12803_v11 = vld [vmem:[%s17393_s24 + $0x14] ss:$8 sps:$4 sm:$0x3f]   ;;  %s17395_s0 = sld [smem:[#allocation30_spill]] }
  0x28   : > { %v730_v10 = vpack.c.bf16 %v703_v8, %v702_v7  ;;  %v12805_v12 = vld [vmem:[%s17393_s24 + $0x10] ss:$8 sps:$4 sm:$0x3f]   ;;  %v12808_v16 = vld [vmem:[%s17393_s24 + $0x44] ss:$8 sps:$4 sm:$0xff]   ;;  %s17408_s30 = sld [smem:[#allocation31_spill]] }
  0x29   : > { %v705_v14 = vld [vmem:[%s13581_s4 + $0x19] sm:$0xff]  ;;  %v1051_v15 = vsel %vm810_vm0, %v12805_v12, 0  ;;  %v706_v18 = vld [vmem:[%s13581_s4 + $0x21] sm:$0xff]  ;;  %v707_v19 = vld [vmem:[%s13581_s4 + $0x29] sm:$0xff] }
  0x2a   : > { %820 = vmatpush1.bf16.msra.mxu0 %v812_v5  ;;  %v731_v17 = vpack.c.bf16 %v705_v14, %v704_v13  ;;  %v732_v20 = vpack.c.bf16 %v707_v19, %v706_v18  ;;  %v708_v21 = vld [vmem:[%s13581_s4 + $0x31] sm:$0xff]  ;;  %v709_v22 = vld [vmem:[%s13581_s4 + $0x39] sm:$0xff]  ;;  %v710_v24 = vld [vmem:[%s13581_s4 + $0x41] sm:$0xff] }
  0x2b   : > { %1056 = vmatprep.subr.bf16.mxu0 %v12802_v6  ;;  %v733_v23 = vpack.c.bf16 %v709_v22, %v708_v21  ;;  %v711_v25 = vld [vmem:[%s13581_s4 + $0x49] sm:$0xff]  ;;  %v712_v27 = vld [vmem:[%s13581_s4 + $0x51] sm:$0xff]  ;;  %v713_v28 = vld [vmem:[%s13581_s4 + $0x59] sm:$0xff] }
  0x2c   : > { %v734_v26 = vpack.c.bf16 %v711_v25, %v710_v24  ;;  %v735_v29 = vpack.c.bf16 %v713_v28, %v712_v27  ;;  %v714_v30 = vld [vmem:[%s13581_s4 + $0x61] sm:$0xff]  ;;  %v715_v31 = vld [vmem:[%s13581_s4 + $0x69] sm:$0xff]  ;;  %v716_v33 = vld [vmem:[%s13581_s4 + $0x71] sm:$0xff] }
  0x2d   : > { %10553 = vmatmul.mubr.msk.bf16.vlgmr.msra.gmra.mrb[0].mxu0 %vm767_vm1, %v730_v10  ;;  %v736_v32 = vpack.c.bf16 %v715_v31, %v714_v30  ;;  %v717_v34 = vld [vmem:[%s13581_s4 + $0x79] sm:$0xff]  ;;  %v718_v36 = vld [vmem:[%s13581_s4 + $0x81] sm:$0xff]  ;;  %v719_v37 = vld [vmem:[%s13581_s4 + $0x89] sm:$0xff] }
  0x2e   : > { %1057 = vmatpush1.bf16.msra.mxu0 %v12800_v9  ;;  %859 = vmatprep.mubr.bf16.mxu0 %v17363_v2  ;;  %v737_v35 = vpack.c.bf16 %v717_v34, %v716_v33  ;;  %v738_v38 = vpack.c.bf16 %v719_v37, %v718_v36  ;;  %v720_v39 = vld [vmem:[%s13581_s4 + $0x91] sm:$0xff]  ;;  %v721_v40 = vld [vmem:[%s13581_s4 + $0x99] sm:$0xff]  ;;  %v722_v42 = vld [vmem:[%s13581_s4 + $0xa1] sm:$0xff] }
  0x2f   : > { %10571 = vmatprep.subr.msk.bf16.mxu0 %vm810_vm0, %v12803_v11  ;;  %v739_v41 = vpack.c.bf16 %v721_v40, %v720_v39  ;;  %v723_v43 = vld [vmem:[%s13581_s4 + $0xa9] sm:$0xff]  ;;  %v724_v45 = vld [vmem:[%s13581_s4 + $0xb1] sm:$0xff]  ;;  %v725_v46 = vld [vmem:[%s13581_s4 + $0xb9] sm:$0xff] }
  0x30   : > { %v740_v44 = vpack.c.bf16 %v723_v43, %v722_v42  ;;  %v741_v47 = vpack.c.bf16 %v725_v46, %v724_v45  ;;  %v726_v48 = vld [vmem:[%s13581_s4 + $0xc1] sm:$0xff]  ;;  %v727_v49 = vld [vmem:[%s13581_s4 + $0xc9] sm:$0xff]  ;;  %v728_v51 = vld [vmem:[%s13581_s4 + $0xd1] sm:$0xff] }
  0x31   : > { %v742_v50 = vpack.c.bf16 %v727_v49, %v726_v48  ;;  %v729_v52 = vld [vmem:[%s13581_s4 + $0xd9] sm:$0x3f]  ;;  %v656_v54 = vld [vmem:[%s13581_s4] sm:$0xff]  ;;  %v657_v55 = vld [vmem:[%s13581_s4 + $0x8] sm:$0xff] }
  0x32   : > { %1059 = vmatpush1.bf16.msra.mxu0 %v1051_v15  ;;  %v743_v53 = vpack.c.bf16 %v729_v52, %v728_v51  ;;  %v12806_v56 = vld [vmem:[%s17393_s24 + $0x40] ss:$8 sps:$4 sm:$0xff]   ;;  %v12811_v57 = vld [vmem:[%s17393_s24 + $0x50] ss:$8 sps:$4 sm:$0x3f]   ;;  %v684_v58 = vpack.c.bf16 %v657_v55, %v656_v54 }
  0x33   : > { %1342 = vmatprep.subr.bf16.mxu0 %v12808_v16  ;;  %v12809_v59 = vld [vmem:[%s17393_s24 + $0x54] ss:$8 sps:$4 sm:$0x3f]   ;;  %v1337_v62 = vsel %vm810_vm0, %v12811_v57, 0  ;;  %v660_v0 = vld [vmem:[%s13581_s4 + $0x20] sm:$0xff]  ;;  %v661_v1 = vld [vmem:[%s13581_s4 + $0x28] sm:$0xff] }
  0x34   : > { %v658_v60 = vld [vmem:[%s13581_s4 + $0x10] sm:$0xff]  ;;  %v659_v61 = vld [vmem:[%s13581_s4 + $0x18] sm:$0xff]  ;;  %v686_v3 = vpack.c.bf16 %v661_v1, %v660_v0  ;;  %v664_v7 = vld [vmem:[%s13581_s4 + $0x40] sm:$0xff] }
  0x35   : > { %10554 = vmatmul.mubr.msk.bf16.gmra.mrb[4].mxu0 %vm767_vm1, %v731_v17  ;;  %v685_v63 = vpack.c.bf16 %v659_v61, %v658_v60  ;;  %v662_v4 = vld [vmem:[%s13581_s4 + $0x30] sm:$0xff]  ;;  %v663_v5 = vld [vmem:[%s13581_s4 + $0x38] sm:$0xff]  ;;  %v665_v8 = vld [vmem:[%s13581_s4 + $0x48] sm:$0xff] }
  0x36   : > { %869 = vmatprep.mubr.bf16.mxu0 %v17363_v2  ;;  %v687_v6 = vpack.c.bf16 %v663_v5, %v662_v4  ;;  %v688_v9 = vpack.c.bf16 %v665_v8, %v664_v7  ;;  %v666_v10 = vld [vmem:[%s13581_s4 + $0x50] sm:$0xff]  ;;  %v667_v11 = vld [vmem:[%s13581_s4 + $0x58] sm:$0xff]  ;;  %v668_v13 = vld [vmem:[%s13581_s4 + $0x60] sm:$0xff] }
  0x37   : > { %v689_v12 = vpack.c.bf16 %v667_v11, %v666_v10  ;;  %v669_v14 = vld [vmem:[%s13581_s4 + $0x68] sm:$0xff]  ;;  %v670_v16 = vld [vmem:[%s13581_s4 + $0x70] sm:$0xff]  ;;  %v671_v17 = vld [vmem:[%s13581_s4 + $0x78] sm:$0xff] }
  0x38   : > { %v690_v15 = vpack.c.bf16 %v669_v14, %v668_v13  ;;  %v691_v18 = vpack.c.bf16 %v671_v17, %v670_v16  ;;  %v672_v19 = vld [vmem:[%s13581_s4 + $0x80] sm:$0xff]  ;;  %v674_v22 = vld [vmem:[%s13581_s4 + $0x90] sm:$0xff]  ;;  %v12817_v36 = vld [vmem:[%s17395_s0 + $0x12c] ss:$12 sps:$4 sm:$0xff]  }
  0x39   : > { %v676_v25 = vld [vmem:[%s13581_s4 + $0xa0] sm:$0xff]  ;;  %v678_v28 = vld [vmem:[%s13581_s4 + $0xb0] sm:$0xff]  ;;  %v683_v42 = vld [vmem:[%s13581_s4 + $0xd8] sm:$0x3f] }
  0x3a   : > { %v12812_v31 = vld [vmem:[%s17395_s0 + $0x118] ss:$12 sps:$4 sm:$0xff]   ;;  %v12815_v33 = vld [vmem:[%s17395_s0 + $0x130] ss:$12 sps:$4 sm:$0xff]   ;;  %v12821_v40 = vld [vmem:[%s17395_s0 + $0x160] ss:$12 sps:$4 sm:$0xff]  }
  0x3b   : > { %v680_v34 = vld [vmem:[%s13581_s4 + $0xc0] sm:$0xff]  ;;  %2479 = vmatprep.subr.bf16.mxu1 %v12812_v31  ;;  %v12823_v43 = vld [vmem:[%s17395_s0 + $0x15c] ss:$12 sps:$4 sm:$0xff]   ;;  %v1231_v48 = vld [vmem:[%s13581_s4 + $0x12] sm:$0xff] }
  0x3c   : > { %v12820_v39 = vld [vmem:[%s17395_s0 + $0x144] ss:$12 sps:$4 sm:$0xff]   ;;  %v1232_v49 = vld [vmem:[%s13581_s4 + $0x1a] sm:$0xff] }
  0x3d   : > { %10555 = vmatmul.mubr.msk.bf16.gmra.mrb[8].mxu0 %vm767_vm1, %v732_v20  ;;  %v673_v20 = vld [vmem:[%s13581_s4 + $0x88] sm:$0xff]  ;;  %v1235_v54 = vld [vmem:[%s13581_s4 + $0x32] sm:$0xff]  ;;  %v1236_v55 = vld [vmem:[%s13581_s4 + $0x3a] sm:$0xff] }
  0x3e   : > { %879 = vmatprep.mubr.bf16.mxu0 %v17363_v2  ;;  %v692_v21 = vpack.c.bf16 %v673_v20, %v672_v19  ;;  %v1229_v45 = vld [vmem:[%s13581_s4 + $0x2] sm:$0xff]  ;;  %v1230_v46 = vld [vmem:[%s13581_s4 + $0xa] sm:$0xff]  ;;  %v1239_v60 = vld [vmem:[%s13581_s4 + $0x52] sm:$0xff] }
  0x3f   : > { %v1233_v51 = vld [vmem:[%s13581_s4 + $0x22] sm:$0xff]  ;;  %v1234_v52 = vld [vmem:[%s13581_s4 + $0x2a] sm:$0xff]  ;;  %v1240_v61 = vld [vmem:[%s13581_s4 + $0x5a] sm:$0xff] }
  0x40   : > { %v1237_v57 = vld [vmem:[%s13581_s4 + $0x42] sm:$0xff]  ;;  %v1242_v0 = vld [vmem:[%s13581_s4 + $0x6a] sm:$0xff]  ;;  %v1244_v4 = vld [vmem:[%s13581_s4 + $0x7a] sm:$0xff] }
  0x41   : > { %v1246_v7 = vld [vmem:[%s13581_s4 + $0x8a] sm:$0xff]  ;;  %v1248_v10 = vld [vmem:[%s13581_s4 + $0x9a] sm:$0xff] }
  0x42   : > { %v1250_v13 = vld [vmem:[%s13581_s4 + $0xaa] sm:$0xff]  ;;  %v1252_v16 = vld [vmem:[%s13581_s4 + $0xba] sm:$0xff] }
  0x43   : > { %v10625_v17 = vld [vmem:[%s17395_s0 + $0x174] sm:$0xff]  ;;  %v12831_v31 = vld [vmem:[%s17395_s0 + $0x1c0] ss:$12 sps:$4 sm:$0xff]  }
  0x44   : > { %v12824_v20 = vld [vmem:[%s17395_s0 + $0x178] ss:$12 sps:$4 sm:$0xff]  }
  0x45   : > { %10556 = vmatmul.mubr.msk.bf16.gmra.mrb[12].mxu0 %vm767_vm1, %v733_v23  ;;  %v675_v23 = vld [vmem:[%s13581_s4 + $0x98] sm:$0xff] }
  0x46   : > { %889 = vmatprep.mubr.bf16.mxu0 %v17363_v2  ;;  %v693_v24 = vpack.c.bf16 %v675_v23, %v674_v22  ;;  %v12826_v22 = vld [vmem:[%s17395_s0 + $0x190] ss:$12 sps:$4 sm:$0xff]   ;;  %v12828_v23 = vld [vmem:[%s17395_s0 + $0x18c] ss:$12 sps:$4 sm:$0xff]  }
  0x4d   : > { %10557 = vmatmul.mubr.msk.bf16.gmra.mrb[16].mxu0 %vm767_vm1, %v734_v26  ;;  %v677_v26 = vld [vmem:[%s13581_s4 + $0xa8] sm:$0xff] }
  0x4e   : > { %899 = vmatprep.mubr.bf16.mxu0 %v17363_v2  ;;  %v694_v27 = vpack.c.bf16 %v677_v26, %v676_v25  ;;  %v1254_v25 = vld [vmem:[%s13581_s4 + $0xca] sm:$0xff] }
  0x4f   : > { %v10633_v26 = vld [vmem:[%s17395_s0 + $0x1a4] sm:$0xff] }
  0x55   : > { %10558 = vmatmul.mubr.msk.bf16.gmra.mrb[20].mxu0 %vm767_vm1, %v735_v29  ;;  %v679_v29 = vld [vmem:[%s13581_s4 + $0xb8] sm:$0xff] }
  0x56   : > { %909 = vmatprep.mubr.bf16.mxu0 %v17363_v2  ;;  %v695_v30 = vpack.c.bf16 %v679_v29, %v678_v28  ;;  %v12829_v28 = vld [vmem:[%s17395_s0 + $0x1a8] ss:$12 sps:$4 sm:$0xff]  }
  0x5d   : > { %10559 = vmatmul.mubr.msk.bf16.gmra.mrb[24].mxu0 %vm767_vm1, %v736_v32  ;;  %v12814_v32 = vld [vmem:[%s17395_s0 + $0x114] ss:$12 sps:$4 sm:$0xff]  }
  0x5e   : > { %919 = vmatprep.mubr.bf16.mxu0 %v17363_v2  ;;  %2480 = vmatpush1.bf16.msra.mxu1 %v12814_v32  ;;  %v12833_v32 = vld [vmem:[%s17395_s0 + $0x1bc] ss:$12 sps:$4 sm:$0xff]  }
  0x5f   : > { %2481 = vmatprep.subr.bf16.mxu1 %v12815_v33  ;;  %v1255_v33 = vld [vmem:[%s13581_s4 + $0xd2] sm:$0xff] }
  0x62   : > { %2482 = vmatpush1.bf16.msra.mxu1 %v12817_v36  ;;  %v10643_v36 = vld [vmem:[%s17395_s0 + $0x1e0] sm:$0xff] }
  0x65   : > { %10560 = vmatmul.mubr.msk.bf16.gmra.mrb[28].mxu0 %vm767_vm1, %v737_v35  ;;  %v681_v35 = vld [vmem:[%s13581_s4 + $0xc8] sm:$0xff] }
  0x66   : > { %929 = vmatprep.mubr.bf16.mxu0 %v17363_v2  ;;  %v696_v37 = vpack.c.bf16 %v681_v35, %v680_v34  ;;  %v1256_v34 = vld [vmem:[%s13581_s4 + $0xda] sm:$0x3f] }
  0x67   : > { %v10641_v35 = vld [vmem:[%s17395_s0 + $0x1d4] sm:$0xff] }
  0x6d   : > { %10561 = vmatmul.mubr.msk.bf16.gmra.mrb[32].mxu0 %vm767_vm1, %v738_v38  ;;  %v12818_v38 = vld [vmem:[%s17395_s0 + $0x148] ss:$12 sps:$4 sm:$0xff]  }
  0x6e   : > { %939 = vmatprep.mubr.bf16.mxu0 %v17363_v2  ;;  %2483 = vmatprep.subr.bf16.mxu1 %v12818_v38  ;;  %v1270_v38 = vpack.c.bf16 %v1256_v34, %v1255_v33 }
  0x6f   : > { %2484 = vmatpush1.bf16.msra.mxu1 %v12820_v39  ;;  %v10679_v39 = vcombine.low %v10641_v35, %v10643_v36 }
  0x70   : > { %2485 = vmatprep.subr.bf16.mxu1 %v12821_v40  ;;  %v12836_v40 = vld [vmem:[%s17395_s0 + $0x1f0] ss:$12 sps:$4 sm:$0xff]  }
  0x73   : > { %2486 = vmatpush1.bf16.msra.mxu1 %v12823_v43  ;;  %v10651_v43 = vld [vmem:[%s17395_s0 + $0x210] sm:$0xff] }
  0x74   : > { %2487 = vmatprep.subr.bf16.mxu1 %v12824_v20 }
  0x75   : > { %10562 = vmatmul.mubr.msk.bf16.gmra.mrb[36].mxu0 %vm767_vm1, %v739_v41  ;;  %v682_v41 = vld [vmem:[%s13581_s4 + $0xd0] sm:$0xff] }
  0x76   : > { %949 = vmatprep.mubr.bf16.mxu0 %v17363_v2 }
  0x7d   : > { %10563 = vmatmul.mubr.msk.bf16.gmra.mrb[40].mxu0 %vm767_vm1, %v740_v44  ;;  %v697_v44 = vpack.c.bf16 %v683_v42, %v682_v41  ;;  %v12838_v41 = vld [vmem:[%s17395_s0 + $0x1ec] ss:$12 sps:$4 sm:$0xff]   ;;  %v10649_v42 = vld [vmem:[%s17395_s0 + $0x204] sm:$0xff] }
  0x7e   : > { %959 = vmatprep.mubr.bf16.mxu0 %v17363_v2 }
  0x85   : > { %10564 = vmatmul.mubr.msk.bf16.gmra.mrb[44].mxu0 %vm767_vm1, %v741_v47  ;;  %v1257_v47 = vpack.c.bf16 %v1230_v46, %v1229_v45  ;;  %v10685_v45 = vcombine.low %v10649_v42, %v10651_v43  ;;  %v10653_v46 = vld [vmem:[%s17395_s0 + $0x21c] sm:$0x77] }
  0x86   : > { %969 = vmatprep.mubr.bf16.mxu0 %v17363_v2 }
  0x8d   : > { %10565 = vmatmul.mubr.msk.bf16.gmra.mrb[48].mxu0 %vm767_vm1, %v742_v50  ;;  %v1258_v50 = vpack.c.bf16 %v1232_v49, %v1231_v48  ;;  %v10688_v48 = vcombine.low %v10653_v46, %v10653_v46 }
  0x8e   : > { %979 = vmatprep.mubr.bf16.mxu0 %v17363_v2 }
  0x8f   : > { %v2471_v49 = vsel %vm2469_vm2, %v10688_v48, 0 }
  0x95   : > { %10566 = vmatmul.mubr.msk.bf16.gmra.mrb[52].mxu0 %vm767_vm1, %v743_v53  ;;  %v1259_v53 = vpack.c.bf16 %v1234_v52, %v1233_v51 }
  0x96   : > { %1088 = vmatprep.mubr.bf16.mxu0 %v17363_v2 }
  0x9d   : > { %10572 = vmatmul.mubr.msk.bf16.vlgmr.msra.gmra.mrb[0].mxu0 %vm767_vm1, %v684_v58  ;;  %v1238_v58 = vld [vmem:[%s13581_s4 + $0x4a] sm:$0xff] }
  0x9e   : > { %1343 = vmatpush1.bf16.msra.mxu0 %v12806_v56  ;;  %1098 = vmatprep.mubr.bf16.mxu0 %v17363_v2  ;;  %v1260_v56 = vpack.c.bf16 %v1236_v55, %v1235_v54  ;;  %v1639_v55 = vld [vmem:[%s17400_s2] sm:$0x3]  ;;  %s647_s2 = sand.u32 1, %s13384_s25  }
  0x9f   : > { %10594 = vmatprep.subr.msk.bf16.mxu0 %vm810_vm0, %v12809_v59  ;;  %v1261_v59 = vpack.c.bf16 %v1238_v58, %v1237_v57  ;;  %s10542_s22 = sshll.u32 %s647_s2, 3  ;;  %s10466_s23 = scalar_lea.sflag [#allocation7], %s647_s2 }
  0xa2   : > { %1345 = vmatpush1.bf16.msra.mxu0 %v1337_v62  ;;  %v1262_v62 = vpack.c.bf16 %v1240_v61, %v1239_v60 }
  0xa5   : > { %10573 = vmatmul.mubr.msk.bf16.gmra.mrb[4].mxu0 %vm767_vm1, %v685_v63  ;;  %v1241_v63 = vld [vmem:[%s13581_s4 + $0x62] sm:$0xff] }
  0xa6   : > { %1108 = vmatprep.mubr.bf16.mxu0 %v17363_v2  ;;  %v1263_v1 = vpack.c.bf16 %v1242_v0, %v1241_v63 }
  0xad   : > { %10574 = vmatmul.mubr.msk.bf16.gmra.mrb[8].mxu0 %vm767_vm1, %v686_v3  ;;  %v1243_v3 = vld [vmem:[%s13581_s4 + $0x72] sm:$0xff] }
  0xae   : > { %1118 = vmatprep.mubr.bf16.mxu0 %v17363_v2  ;;  %v1264_v5 = vpack.c.bf16 %v1244_v4, %v1243_v3 }
  0xb5   : > { %10575 = vmatmul.mubr.msk.bf16.gmra.mrb[12].mxu0 %vm767_vm1, %v687_v6  ;;  %v1245_v6 = vld [vmem:[%s13581_s4 + $0x82] sm:$0xff] }
  0xb6   : > { %1128 = vmatprep.mubr.bf16.mxu0 %v17363_v2  ;;  %v1265_v8 = vpack.c.bf16 %v1246_v7, %v1245_v6 }
  0xbd   : > { %10576 = vmatmul.mubr.msk.bf16.gmra.mrb[16].mxu0 %vm767_vm1, %v688_v9  ;;  %v1247_v9 = vld [vmem:[%s13581_s4 + $0x92] sm:$0xff] }
  0xbe   : > { %1138 = vmatprep.mubr.bf16.mxu0 %v17363_v2  ;;  %v1266_v11 = vpack.c.bf16 %v1248_v10, %v1247_v9 }
  0xc5   : > { %10577 = vmatmul.mubr.msk.bf16.gmra.mrb[20].mxu0 %vm767_vm1, %v689_v12  ;;  %v1249_v12 = vld [vmem:[%s13581_s4 + $0xa2] sm:$0xff] }
  0xc6   : > { %1148 = vmatprep.mubr.bf16.mxu0 %v17363_v2  ;;  %v1267_v14 = vpack.c.bf16 %v1250_v13, %v1249_v12 }
  0xcd   : > { %10578 = vmatmul.mubr.msk.bf16.gmra.mrb[24].mxu0 %vm767_vm1, %v690_v15  ;;  %v1251_v15 = vld [vmem:[%s13581_s4 + $0xb2] sm:$0xff] }
  0xce   : > { %1158 = vmatprep.mubr.bf16.mxu0 %v17363_v2  ;;  %v1268_v19 = vpack.c.bf16 %v1252_v16, %v1251_v15 }
  0xd5   : > { %10579 = vmatmul.mubr.msk.bf16.gmra.mrb[28].mxu0 %vm767_vm1, %v691_v18  ;;  %v10627_v18 = vld [vmem:[%s17395_s0 + $0x180] sm:$0xff] }
  0xd6   : > { %1168 = vmatprep.mubr.bf16.mxu0 %v17363_v2 }
  0xdd   : > { %10580 = vmatmul.mubr.msk.bf16.gmra.mrb[32].mxu0 %vm767_vm1, %v692_v21  ;;  %v10667_v21 = vcombine.low %v10625_v17, %v10627_v18 }
  0xde   : > { %1178 = vmatprep.mubr.bf16.mxu0 %v17363_v2 }
  0xdf   : > { %2488 = vmatpush1.bf16.msra.mxu1 %v10667_v21 }
  0xe0   : > { %2489 = vmatprep.subr.bf16.mxu1 %v12826_v22 }
  0xe3   : > { %2490 = vmatpush1.bf16.msra.mxu1 %v12828_v23 }
  0xe4   : > { %2491 = vmatprep.subr.bf16.mxu1 %v12829_v28 }
  0xe5   : > { %10581 = vmatmul.mubr.msk.bf16.gmra.mrb[36].mxu0 %vm767_vm1, %v693_v24  ;;  %v1253_v24 = vld [vmem:[%s13581_s4 + $0xc2] sm:$0xff] }
  0xe6   : > { %1188 = vmatprep.mubr.bf16.mxu0 %v17363_v2  ;;  %v1269_v29 = vpack.c.bf16 %v1254_v25, %v1253_v24 }
  0xed   : > { %10582 = vmatmul.mubr.msk.bf16.gmra.mrb[40].mxu0 %vm767_vm1, %v694_v27  ;;  %v10635_v27 = vld [vmem:[%s17395_s0 + $0x1b0] sm:$0xff] }
  0xee   : > { %1198 = vmatprep.mubr.bf16.mxu0 %v17363_v2 }
  0xf5   : > { %10583 = vmatmul.mubr.msk.bf16.gmra.mrb[44].mxu0 %vm767_vm1, %v695_v30  ;;  %v10673_v30 = vcombine.low %v10633_v26, %v10635_v27 }
  0xf6   : > { %1208 = vmatprep.mubr.bf16.mxu0 %v17363_v2 }
  0xf7   : > { %2492 = vmatpush1.bf16.msra.mxu1 %v10673_v30 }
  0xf8   : > { %2493 = vmatprep.subr.bf16.mxu1 %v12831_v31 }
  0xfb   : > { %2494 = vmatpush1.bf16.msra.mxu1 %v12833_v32 }
  0xfd   : > { %10584 = vmatmul.mubr.msk.bf16.gmra.mrb[48].mxu0 %vm767_vm1, %v696_v37  ;;  %v12834_v37 = vld [vmem:[%s17395_s0 + $0x1d8] ss:$12 sps:$4 sm:$0xff]  }
  0xfe   : > { %1218 = vmatprep.mubr.bf16.mxu0 %v17363_v2  ;;  %2495 = vmatprep.subr.bf16.mxu1 %v12834_v37 }
  0xff   : > { %2496 = vmatpush1.bf16.msra.mxu1 %v10679_v39 }
 0x100   : > { %2497 = vmatprep.subr.bf16.mxu1 %v12836_v40 }
 0x103   : > { %2498 = vmatpush1.bf16.msra.mxu1 %v12838_v41 }
 0x105   : > { %10585 = vmatmul.mubr.msk.bf16.gmra.mrb[52].mxu0 %vm767_vm1, %v697_v44  ;;  %v12839_v44 = vld [vmem:[%s17395_s0 + $0x208] ss:$12 sps:$4 sm:$0xff]  }
 0x106   : > { %1374 = vmatprep.mubr.bf16.mxu0 %v17363_v2  ;;  %2499 = vmatprep.subr.bf16.mxu1 %v12839_v44 }
 0x107   : > { %2500 = vmatpush1.bf16.msra.mxu1 %v10685_v45 }
 0x10d   : > { %10595 = vmatmul.mubr.msk.bf16.vlgmr.msra.gmra.mrb[0].mxu0 %vm767_vm1, %v1257_v47  ;;  %v10689_v47 = vcombine.high %v10653_v46, %v10653_v46 }
 0x10e   : > { %1384 = vmatprep.mubr.bf16.mxu0 %v17363_v2 }
 0x10f   : > { %10691 = vmatprep.subr.msk.bf16.mxu1 %vm2469_vm2, %v10689_v47 }
 0x110   : > { %2502 = vmatpush1.bf16.msra.mxu1 %v2471_v49 }
 0x111   : > { %2652 = vmatprep.subr.bf16.mxu1 %v17363_v2 }
 0x115   : > { %10596 = vmatmul.mubr.msk.bf16.gmra.mrb[4].mxu0 %vm767_vm1, %v1258_v50  ;;  %v1573_v50 = vlaneseq }
 0x116   : > { %1394 = vmatprep.mubr.bf16.mxu0 %v17363_v2 }
 0x117   : > { %v13859_v51 = vshrl.u32 %v1573_v50, 7 }
 0x119   : > { %17396 = vst [vmem:[#allocation14_spill] sm:$0xff] %v13859_v51  ;;  %v13862_v52 = vsub.s32 0, %v13859_v51  ;;  %v13868_v54 = vsub.s32 1, %v13859_v51 }
 0x11b   : > { %17397 = vst [vmem:[#allocation15_spill] sm:$0xff] %v13862_v52  ;;  %17399 = vst [vmem:[#allocation16_spill] sm:$0xff] %v13868_v54  ;;  %v13880_v58 = vrot.slane %v1639_v55, %v13862_v52  ;;  %v13883_v60 = vrot.slane %v1639_v55, %v13868_v54 }
 0x11d   : > { %10597 = vmatmul.mubr.msk.bf16.gmra.mrb[8].mxu0 %vm767_vm1, %v1259_v53  ;;  %v1571_v53 = vld [vmem:[%s17398_s29] sm:$0x3]  ;;  %s17290_s29 = scalar_lea.hbm %s17354_s21, %s11472_s28 }
 0x11e   : > { %1404 = vmatprep.mubr.bf16.mxu0 %v17363_v2  ;;  %v13877_v57 = vrot.slane %v1571_v53, %v13868_v54 }
 0x125   : > { %10598 = vmatmul.mubr.msk.bf16.gmra.mrb[12].mxu0 %vm767_vm1, %v1260_v56  ;;  %v13874_v56 = vrot.slane %v1571_v53, %v13862_v52 }
 0x126   : > { %1414 = vmatprep.mubr.bf16.mxu0 %v17363_v2 }
 0x12d   : > { %10599 = vmatmul.mubr.msk.bf16.gmra.mrb[16].mxu0 %vm767_vm1, %v1261_v59 }
 0x12e   : > { %1424 = vmatprep.mubr.bf16.mxu0 %v17363_v2 }
 0x135   : > { %10600 = vmatmul.mubr.msk.bf16.gmra.mrb[20].mxu0 %vm767_vm1, %v1262_v62 }
 0x136   : > { %1434 = vmatprep.mubr.bf16.mxu0 %v17363_v2 }
 0x13d   : > { %10601 = vmatmul.mubr.msk.bf16.gmra.mrb[24].mxu0 %vm767_vm1, %v1263_v1 }
 0x13e   : > { %1444 = vmatprep.mubr.bf16.mxu0 %v17363_v2 }
 0x145   : > { %10602 = vmatmul.mubr.msk.bf16.gmra.mrb[28].mxu0 %vm767_vm1, %v1264_v5 }
 0x146   : > { %1454 = vmatprep.mubr.bf16.mxu0 %v17363_v2 }
 0x14d   : > { %10603 = vmatmul.mubr.msk.bf16.gmra.mrb[32].mxu0 %vm767_vm1, %v1265_v8 }
 0x14e   : > { %1464 = vmatprep.mubr.bf16.mxu0 %v17363_v2 }
 0x155   : > { %10604 = vmatmul.mubr.msk.bf16.gmra.mrb[36].mxu0 %vm767_vm1, %v1266_v11 }
 0x156   : > { %1474 = vmatprep.mubr.bf16.mxu0 %v17363_v2 }
 0x15d   : > { %10605 = vmatmul.mubr.msk.bf16.gmra.mrb[40].mxu0 %vm767_vm1, %v1267_v14 }
 0x15e   : > { %1484 = vmatprep.mubr.bf16.mxu0 %v17363_v2 }
 0x165   : > { %10606 = vmatmul.mubr.msk.bf16.gmra.mrb[44].mxu0 %vm767_vm1, %v1268_v19 }
 0x166   : > { %1494 = vmatprep.mubr.bf16.mxu0 %v17363_v2 }
 0x16d   : > { %10607 = vmatmul.mubr.msk.bf16.gmra.mrb[48].mxu0 %vm767_vm1, %v1269_v29 }
 0x16e   : > { %1504 = vmatprep.mubr.bf16.mxu0 %v17363_v2 }
 0x175   : > { %10608 = vmatmul.mubr.msk.bf16.gmra.mrb[52].mxu0 %vm767_vm1, %v1270_v38  ;;  %vm16044_vm1 = vmand %vm6259_vm13, %vm6260_vm14  ;;  %vm10450_vm14 = vcmask 80896  }
 0x176   : > { %vm11979_vm13 = vmpackc.low %vm3421_vm6, %vm13398_vm12 }
 0x1e0   : > { %v1376_v59 = vpop.f32.mrb[0].mxu0 }
 0x1e1   : > { %v1583_v61 = vmul.f32 %v13874_v56, %v1376_v59  ;;  %v1378_v62 = vpop.f32.mrb[1].mxu0 }
 0x1e2   : > { %v1584_v63 = vmul.f32 %v13877_v57, %v1378_v62  ;;  %v1380_v0 = vpop.f32.mrb[2].mxu0 }
 0x1e3   : > { %v1651_v1 = vadd.f32 %v13880_v58, %v1583_v61  ;;  %v1585_v3 = vmul.f32 %v13874_v56, %v1380_v0  ;;  %v1382_v4 = vpop.f32.mrb[3].mxu0 }
 0x1e4   : > { %v1652_v5 = vadd.f32 %v13883_v60, %v1584_v63  ;;  %v1586_v6 = vmul.f32 %v13877_v57, %v1382_v4 }
 0x1e5   : > { %v1707_v7 = vmax.f32 %v1651_v1, 0.0  ;;  %v1653_v8 = vadd.f32 %v13880_v58, %v1585_v3 }
 0x1e6   : > { %v1708_v9 = vmax.f32 %v1652_v5, 0.0  ;;  %v1654_v10 = vadd.f32 %v13883_v60, %v1586_v6 }
 0x1e7   : > { %1763 = vst [vmem:[#allocation2] sm:$0xff] %v1707_v7  ;;  %v1709_v11 = vmax.f32 %v1653_v8, 0.0 }
 0x1e8   : > { %1765 = vst.msk [vmem:[#allocation2 + $0x8] sm:$0xff] %vm1764_vm3, %v1708_v9  ;;  %v1710_v12 = vmax.f32 %v1654_v10, 0.0  ;;  %v1386_v13 = vpop.f32.mrb[4].mxu0 }
 0x1e9   : > { %1766 = vst [vmem:[#allocation2 + $0x10] sm:$0xff] %v1709_v11  ;;  %v1587_v14 = vmul.f32 %v13874_v56, %v1386_v13  ;;  %v1388_v15 = vpop.f32.mrb[5].mxu0 }
 0x1ea   : > { %1767 = vst.msk [vmem:[#allocation2 + $0x18] sm:$0xff] %vm1764_vm3, %v1710_v12  ;;  %v1588_v16 = vmul.f32 %v13877_v57, %v1388_v15  ;;  %v1390_v17 = vpop.f32.mrb[6].mxu0 }
 0x1eb   : > { %v1655_v18 = vadd.f32 %v13880_v58, %v1587_v14  ;;  %v1589_v19 = vmul.f32 %v13874_v56, %v1390_v17  ;;  %v1392_v20 = vpop.f32.mrb[7].mxu0 }
 0x1ec   : > { %v1656_v21 = vadd.f32 %v13883_v60, %v1588_v16  ;;  %v1590_v22 = vmul.f32 %v13877_v57, %v1392_v20 }
 0x1ed   : > { %v1711_v23 = vmax.f32 %v1655_v18, 0.0  ;;  %v1657_v24 = vadd.f32 %v13880_v58, %v1589_v19 }
 0x1ee   : > { %v1712_v25 = vmax.f32 %v1656_v21, 0.0  ;;  %v1658_v26 = vadd.f32 %v13883_v60, %v1590_v22  ;;  %v1951_v27 = vld [vmem:[#allocation2] sm:$0xfe] }
 0x1ef   : > { %v1713_v28 = vmax.f32 %v1657_v24, 0.0  ;;  %v1952_v34 = vld [vmem:[#allocation2 + $0x8] sm:$0xfe]  ;;  %v1955_v36 = vpack.c.bf16 %v1709_v11, %v1951_v27 }
 0x1f0   : > { %1769 = vst.msk [vmem:[#allocation2 + $0x28] sm:$0xff] %vm1764_vm3, %v1712_v25  ;;  %v1714_v29 = vmax.f32 %v1658_v26, 0.0  ;;  %v1396_v30 = vpop.f32.mrb[8].mxu0  ;;  %v12843_v26 = vld [vmem:[%s17395_s0 + $0x11c] ss:$12 sps:$4 sm:$0xff]  }
 0x1f1   : > { %v1591_v31 = vmul.f32 %v13874_v56, %v1396_v30  ;;  %v1398_v32 = vpop.f32.mrb[9].mxu0  ;;  %v1824_v33 = vld [vmem:[#allocation2 + $0x18] sm:$0xff]  ;;  %v13905_v35 = vpack.c.bf16 %v1713_v28, %v1711_v23  ;;  %v2010_v47 = vshll.u32 %v1955_v36, 16  ;;  %v2008_v12 = vshrl.u32 %v1955_v36, 16 }
 0x1f2   : > { %1771 = vst.msk [vmem:[#allocation2 + $0x38] sm:$0xff] %vm1764_vm3, %v1714_v29  ;;  %v1592_v37 = vmul.f32 %v13877_v57, %v1398_v32  ;;  %v1400_v38 = vpop.f32.mrb[10].mxu0  ;;  %v1956_v39 = vpack.c.bf16 %v1824_v33, %v1952_v34 }
 0x1f3   : > { %v1659_v40 = vadd.f32 %v13880_v58, %v1591_v31  ;;  %v1593_v41 = vmul.f32 %v13874_v56, %v1400_v38  ;;  %v1402_v42 = vpop.f32.mrb[11].mxu0  ;;  %v2012_v1 = vrot.slane %v2010_v47, 1  ;;  %v2015_v3 = vshll.u32 %v13905_v35, 16 }
 0x1f4   : > { %v1660_v43 = vadd.f32 %v13883_v60, %v1592_v37  ;;  %v1594_v44 = vmul.f32 %v13877_v57, %v1402_v42  ;;  %v2022_v50 = vshll.u32 %v1956_v39, 16  ;;  %v2020_v15 = vshrl.u32 %v1956_v39, 16 }
 0x1f5   : > { %v1715_v45 = vmax.f32 %v1659_v40, 0.0  ;;  %v1661_v46 = vadd.f32 %v13880_v58, %v1593_v41  ;;  %v2013_v19 = vor.u32 %v2012_v1, %v2008_v12  ;;  %v2017_v20 = vrot.slane %v2015_v3, 1  ;;  %v12845_v3 = vld [vmem:[%s17395_s0 + $0x14c] ss:$12 sps:$4 sm:$0xff]  }
 0x1f6   : > { %v1716_v48 = vmax.f32 %v1660_v43, 0.0  ;;  %v1662_v49 = vadd.f32 %v13883_v60, %v1594_v44  ;;  %v2024_v8 = vrot.slane %v2022_v50, 1  ;;  %v12844_v44 = vld [vmem:[%s17395_s0 + $0x134] ss:$12 sps:$4 sm:$0xff]  }
 0x1f7   : > { %v1717_v53 = vmax.f32 %v1661_v46, 0.0  ;;  %v1826_v63 = vld [vmem:[#allocation2 + $0x28] sm:$0xff]  ;;  %v13942_v32 = vsel %vm2006_vm4, %v2013_v19, %v2017_v20 }
 0x1f8   : > { %1773 = vst.msk [vmem:[#allocation2 + $0x48] sm:$0xff] %vm1764_vm3, %v1716_v48  ;;  %v1718_v55 = vmax.f32 %v1662_v49, 0.0  ;;  %v1406_v59 = vpop.f32.mrb[12].mxu0  ;;  %v2025_v23 = vor.u32 %v2024_v8, %v2020_v15 }
 0x1f9   : > { %v1595_v61 = vmul.f32 %v13874_v56, %v1406_v59  ;;  %v1408_v62 = vpop.f32.mrb[13].mxu0  ;;  %v1828_v0 = vld [vmem:[#allocation2 + $0x38] sm:$0xff]  ;;  %v13918_v4 = vpack.c.bf16 %v1717_v53, %v1715_v45  ;;  %v2031_v53 = vshrl.u32 %v13905_v35, 16 }
 0x1fa   : > { %1775 = vst.msk [vmem:[#allocation2 + $0x58] sm:$0xff] %vm1764_vm3, %v1718_v55  ;;  %v1596_v5 = vmul.f32 %v13877_v57, %v1408_v62  ;;  %v1410_v6 = vpop.f32.mrb[14].mxu0  ;;  %v13922_v7 = vpack.c.bf16 %v1828_v0, %v1826_v63 }
 0x1fb   : > { %v1663_v9 = vadd.f32 %v13880_v58, %v1595_v61  ;;  %v1597_v10 = vmul.f32 %v13874_v56, %v1410_v6  ;;  %v1412_v11 = vpop.f32.mrb[15].mxu0  ;;  %v2035_v36 = vshll.u32 %v13918_v4, 16  ;;  %v2033_v1 = vor.u32 %v2031_v53, %v2017_v20 }
 0x1fc   : > { %v1664_v13 = vadd.f32 %v13883_v60, %v1596_v5  ;;  %v1598_v14 = vmul.f32 %v13877_v57, %v1412_v11  ;;  %v2027_v16 = vshll.u32 %v13922_v7, 16  ;;  %v2039_v46 = vshrl.u32 %v13922_v7, 16 }
 0x1fd   : > { %v1719_v17 = vmax.f32 %v1663_v9, 0.0  ;;  %v1665_v18 = vadd.f32 %v13880_v58, %v1597_v10  ;;  %v2037_v55 = vrot.slane %v2035_v36, 1 }
 0x1fe   : > { %v1720_v21 = vmax.f32 %v1664_v13, 0.0  ;;  %v1666_v22 = vadd.f32 %v13883_v60, %v1598_v14  ;;  %v2029_v24 = vrot.slane %v2027_v16, 1 }
 0x1ff   : > { %v1721_v25 = vmax.f32 %v1665_v18, 0.0  ;;  %v1830_v33 = vld [vmem:[#allocation2 + $0x48] sm:$0xff]  ;;  %v13977_v11 = vsel %vm2006_vm4, %v2033_v1, %v2037_v55 }
 0x200   : > { %1777 = vst.msk [vmem:[#allocation2 + $0x68] sm:$0xff] %vm1764_vm3, %v1720_v21  ;;  %v1722_v27 = vmax.f32 %v1666_v22, 0.0  ;;  %v1416_v28 = vpop.f32.mrb[16].mxu0  ;;  %v13936_v29 = vsel %vm2006_vm4, %v2025_v23, %v2029_v24  ;;  %v2041_v61 = vor.u32 %v2039_v46, %v2029_v24  ;;  %v12846_v22 = vld [vmem:[%s17395_s0 + $0x164] ss:$12 sps:$4 sm:$0xff]  }
 0x201   : > { %v1599_v30 = vmul.f32 %v13874_v56, %v1416_v28  ;;  %v1418_v31 = vpop.f32.mrb[17].mxu0  ;;  %10692 = vmatprep.mubr.msk.bf16.mxu1 %vm1764_vm3, %v13936_v29  ;;  %v1832_v34 = vld [vmem:[#allocation2 + $0x58] sm:$0xff]  ;;  %v13945_v37 = vpack.c.bf16 %v1721_v25, %v1719_v17 }
 0x202   : > { %1779 = vst.msk [vmem:[#allocation2 + $0x78] sm:$0xff] %vm1764_vm3, %v1722_v27  ;;  %v1600_v38 = vmul.f32 %v13877_v57, %v1418_v31  ;;  %v1420_v39 = vpop.f32.mrb[18].mxu0  ;;  %2512 = vmatmul.mubr.bf16.vlgmr.msra.gmra.mrb[0].mxu1 %v13942_v32  ;;  %v13950_v40 = vpack.c.bf16 %v1832_v34, %v1830_v33 }
 0x203   : > { %v1667_v41 = vadd.f32 %v13880_v58, %v1599_v30  ;;  %v1601_v42 = vmul.f32 %v13874_v56, %v1420_v39  ;;  %v1422_v43 = vpop.f32.mrb[19].mxu0  ;;  %2653 = vmatpush1.bf16.msra.mxu1 %v12843_v26  ;;  %v2051_v14 = vshll.u32 %v13945_v37, 16  ;;  %v2047_v30 = vshrl.u32 %v13918_v4, 16 }
 0x204   : > { %v1668_v45 = vadd.f32 %v13883_v60, %v1600_v38  ;;  %v1602_v47 = vmul.f32 %v13877_v57, %v1422_v43  ;;  %v2043_v48 = vshll.u32 %v13950_v40, 16  ;;  %2654 = vmatprep.subr.bf16.mxu1 %v17363_v2  ;;  %v2055_v25 = vshrl.u32 %v13950_v40, 16 }
 0x205   : > { %v1723_v49 = vmax.f32 %v1667_v41, 0.0  ;;  %v1669_v50 = vadd.f32 %v13880_v58, %v1601_v42  ;;  %v2053_v31 = vrot.slane %v2051_v14, 1  ;;  %v2049_v41 = vor.u32 %v2047_v30, %v2037_v55  ;;  %v12847_v42 = vld [vmem:[%s17395_s0 + $0x17c] ss:$12 sps:$4 sm:$0xff]  }
 0x206   : > { %v1724_v59 = vmax.f32 %v1668_v45, 0.0  ;;  %v1670_v62 = vadd.f32 %v13883_v60, %v1602_v47  ;;  %v2045_v63 = vrot.slane %v2043_v48, 1  ;;  %v2063_v14 = vshrl.u32 %v13945_v37, 16 }
 0x207   : > { %v1725_v0 = vmax.f32 %v1669_v50, 0.0  ;;  %2655 = vmatpush1.bf16.msra.mxu1 %v12844_v44  ;;  %v1834_v12 = vld [vmem:[#allocation2 + $0x68] sm:$0xff]  ;;  %v14012_v48 = vsel %vm2006_vm4, %v2049_v41, %v2053_v31 }
 0x208   : > { %1781 = vst.msk [vmem:[#allocation2 + $0x88] sm:$0xff] %vm1764_vm3, %v1724_v59  ;;  %v1726_v5 = vmax.f32 %v1670_v62, 0.0  ;;  %v1426_v6 = vpop.f32.mrb[20].mxu0  ;;  %v13970_v8 = vsel %vm2006_vm4, %v2041_v61, %v2045_v63  ;;  %2656 = vmatprep.subr.bf16.mxu1 %v17363_v2  ;;  %v2057_v36 = vor.u32 %v2055_v25, %v2045_v63 }
 0x209   : > { %v1603_v9 = vmul.f32 %v13874_v56, %v1426_v6  ;;  %v1428_v10 = vpop.f32.mrb[21].mxu0  ;;  %10693 = vmatprep.mubr.msk.bf16.mxu1 %vm1764_vm3, %v13970_v8  ;;  %v1836_v13 = vld [vmem:[#allocation2 + $0x78] sm:$0xff]  ;;  %v13980_v15 = vpack.c.bf16 %v1725_v0, %v1723_v49 }
 0x20a   : > { %1783 = vst.msk [vmem:[#allocation2 + $0x98] sm:$0xff] %vm1764_vm3, %v1726_v5  ;;  %v1604_v16 = vmul.f32 %v13877_v57, %v1428_v10  ;;  %v1430_v17 = vpop.f32.mrb[22].mxu0  ;;  %2522 = vmatmul.mubr.bf16.gmra.mrb[4].mxu1 %v13977_v11  ;;  %v13985_v18 = vpack.c.bf16 %v1836_v13, %v1834_v12 }
 0x20b   : > { %v1671_v19 = vadd.f32 %v13880_v58, %v1603_v9  ;;  %v1605_v20 = vmul.f32 %v13874_v56, %v1430_v17  ;;  %v1432_v21 = vpop.f32.mrb[23].mxu0  ;;  %2657 = vmatpush1.bf16.msra.mxu1 %v12845_v3  ;;  %v2067_v53 = vshll.u32 %v13980_v15, 16  ;;  %v12848_v3 = vld [vmem:[%s17395_s0 + $0x194] ss:$12 sps:$4 sm:$0xff]  }
 0x20c   : > { %v1672_v23 = vadd.f32 %v13883_v60, %v1604_v16  ;;  %v1606_v24 = vmul.f32 %v13877_v57, %v1432_v21  ;;  %v2059_v26 = vshll.u32 %v13985_v18, 16  ;;  %2658 = vmatprep.subr.bf16.mxu1 %v17363_v2  ;;  %v2071_v9 = vshrl.u32 %v13985_v18, 16 }
 0x20d   : > { %v1727_v27 = vmax.f32 %v1671_v19, 0.0  ;;  %v1673_v28 = vadd.f32 %v13880_v58, %v1605_v20  ;;  %v2069_v16 = vrot.slane %v2067_v53, 1 }
 0x20e   : > { %v1728_v33 = vmax.f32 %v1672_v23, 0.0  ;;  %v1674_v34 = vadd.f32 %v13883_v60, %v1606_v24  ;;  %v2061_v38 = vrot.slane %v2059_v26, 1  ;;  %v2065_v23 = vor.u32 %v2063_v14, %v2053_v31  ;;  %v12849_v24 = vld [vmem:[%s17395_s0 + $0x1ac] ss:$12 sps:$4 sm:$0xff]  }
 0x20f   : > { %v1729_v39 = vmax.f32 %v1673_v28, 0.0  ;;  %2659 = vmatpush1.bf16.msra.mxu1 %v12846_v22  ;;  %v1838_v49 = vld [vmem:[#allocation2 + $0x88] sm:$0xff] }
 0x210   : > { %1785 = vst.msk [vmem:[#allocation2 + $0xa8] sm:$0xff] %vm1764_vm3, %v1728_v33  ;;  %v1730_v43 = vmax.f32 %v1674_v34, 0.0  ;;  %v1436_v44 = vpop.f32.mrb[24].mxu0  ;;  %v14005_v45 = vsel %vm2006_vm4, %v2057_v36, %v2061_v38  ;;  %2660 = vmatprep.subr.bf16.mxu1 %v17363_v2  ;;  %v2073_v20 = vor.u32 %v2071_v9, %v2061_v38  ;;  %v14047_v31 = vsel %vm2006_vm4, %v2065_v23, %v2069_v16 }
 0x211   : > { %v1607_v46 = vmul.f32 %v13874_v56, %v1436_v44  ;;  %v1438_v47 = vpop.f32.mrb[25].mxu0  ;;  %10694 = vmatprep.mubr.msk.bf16.mxu1 %vm1764_vm3, %v14005_v45  ;;  %v1840_v50 = vld [vmem:[#allocation2 + $0x98] sm:$0xff]  ;;  %v14015_v55 = vpack.c.bf16 %v1729_v39, %v1727_v27 }
 0x212   : > { %1787 = vst.msk [vmem:[#allocation2 + $0xb8] sm:$0xff] %vm1764_vm3, %v1730_v43  ;;  %v1608_v59 = vmul.f32 %v13877_v57, %v1438_v47  ;;  %v1440_v61 = vpop.f32.mrb[26].mxu0  ;;  %2532 = vmatmul.mubr.bf16.gmra.mrb[8].mxu1 %v14012_v48  ;;  %v14020_v62 = vpack.c.bf16 %v1840_v50, %v1838_v49  ;;  %v12850_v47 = vld [vmem:[%s17395_s0 + $0x1c4] ss:$12 sps:$4 sm:$0xff]  }
 0x213   : > { %v1675_v63 = vadd.f32 %v13880_v58, %v1607_v46  ;;  %v1609_v0 = vmul.f32 %v13874_v56, %v1440_v61  ;;  %v1442_v1 = vpop.f32.mrb[27].mxu0  ;;  %2661 = vmatpush1.bf16.msra.mxu1 %v12847_v42  ;;  %v2083_v36 = vshll.u32 %v14015_v55, 16 }
 0x214   : > { %v1676_v5 = vadd.f32 %v13883_v60, %v1608_v59  ;;  %v1610_v6 = vmul.f32 %v13877_v57, %v1442_v1  ;;  %v2075_v10 = vshll.u32 %v14020_v62, 16  ;;  %2662 = vmatprep.subr.bf16.mxu1 %v17363_v2  ;;  %v2087_v53 = vshrl.u32 %v14020_v62, 16 }
 0x215   : > { %v1731_v12 = vmax.f32 %v1675_v63, 0.0  ;;  %v1677_v13 = vadd.f32 %v13880_v58, %v1609_v0  ;;  %v2079_v0 = vshrl.u32 %v13980_v15, 16  ;;  %v2085_v1 = vrot.slane %v2083_v36, 1 }
 0x216   : > { %v1732_v17 = vmax.f32 %v1676_v5, 0.0  ;;  %v1678_v19 = vadd.f32 %v13883_v60, %v1610_v6  ;;  %v2077_v21 = vrot.slane %v2075_v10, 1 }
 0x217   : > { %v1733_v22 = vmax.f32 %v1677_v13, 0.0  ;;  %2663 = vmatpush1.bf16.msra.mxu1 %v12848_v3  ;;  %v1842_v33 = vld [vmem:[#allocation2 + $0xa8] sm:$0xff] }
 0x218   : > { %1789 = vst.msk [vmem:[#allocation2 + $0xc8] sm:$0xff] %vm1764_vm3, %v1732_v17  ;;  %v1734_v25 = vmax.f32 %v1678_v19, 0.0  ;;  %v1446_v26 = vpop.f32.mrb[28].mxu0  ;;  %v14040_v27 = vsel %vm2006_vm4, %v2073_v20, %v2077_v21  ;;  %2664 = vmatprep.subr.bf16.mxu1 %v17363_v2  ;;  %v2089_v6 = vor.u32 %v2087_v53, %v2077_v21  ;;  %v12851_v13 = vld [vmem:[%s17395_s0 + $0x1dc] ss:$12 sps:$4 sm:$0xff]  }
 0x219   : > { %v1611_v28 = vmul.f32 %v13874_v56, %v1446_v26  ;;  %v1448_v30 = vpop.f32.mrb[29].mxu0  ;;  %10695 = vmatprep.mubr.msk.bf16.mxu1 %vm1764_vm3, %v14040_v27  ;;  %v1844_v34 = vld [vmem:[#allocation2 + $0xb8] sm:$0xff]  ;;  %v14050_v38 = vpack.c.bf16 %v1733_v22, %v1731_v12  ;;  %v2081_v12 = vor.u32 %v2079_v0, %v2069_v16 }
 0x21a   : > { %1791 = vst.msk [vmem:[#allocation2 + $0xd8] sm:$0xff] %vm1764_vm3, %v1734_v25  ;;  %v1612_v39 = vmul.f32 %v13877_v57, %v1448_v30  ;;  %v1450_v41 = vpop.f32.mrb[30].mxu0  ;;  %2542 = vmatmul.mubr.bf16.gmra.mrb[12].mxu1 %v14047_v31  ;;  %v14055_v42 = vpack.c.bf16 %v1844_v34, %v1842_v33 }
 0x21b   : > { %v1679_v43 = vadd.f32 %v13880_v58, %v1611_v28  ;;  %v1613_v44 = vmul.f32 %v13874_v56, %v1450_v41  ;;  %v1452_v46 = vpop.f32.mrb[31].mxu0  ;;  %2665 = vmatpush1.bf16.msra.mxu1 %v12849_v24  ;;  %v14082_v16 = vsel %vm2006_vm4, %v2081_v12, %v2085_v1  ;;  %v2099_v24 = vshll.u32 %v14050_v38, 16 }
 0x21c   : > { %v1680_v49 = vadd.f32 %v13883_v60, %v1612_v39  ;;  %v1614_v50 = vmul.f32 %v13877_v57, %v1452_v46  ;;  %v2091_v59 = vshll.u32 %v14055_v42, 16  ;;  %2666 = vmatprep.subr.bf16.mxu1 %v17363_v2  ;;  %v12852_v39 = vld [vmem:[%s17395_s0 + $0x1f4] ss:$12 sps:$4 sm:$0xff]  }
 0x21d   : > { %v1735_v61 = vmax.f32 %v1679_v43, 0.0  ;;  %v1681_v63 = vadd.f32 %v13880_v58, %v1613_v44  ;;  %v2103_v44 = vshrl.u32 %v14055_v42, 16  ;;  %v2101_v53 = vrot.slane %v2099_v24, 1 }
 0x21e   : > { %v1736_v3 = vmax.f32 %v1680_v49, 0.0  ;;  %v1682_v5 = vadd.f32 %v13883_v60, %v1614_v50  ;;  %v2093_v9 = vrot.slane %v2091_v59, 1  ;;  %v2095_v50 = vshrl.u32 %v14015_v55, 16 }
 0x21f   : > { %v1737_v10 = vmax.f32 %v1681_v63, 0.0  ;;  %2667 = vmatpush1.bf16.msra.mxu1 %v12850_v47  ;;  %v1846_v22 = vld [vmem:[#allocation2 + $0xc8] sm:$0xff] }
 0x220   : > { %1793 = vst.msk [vmem:[#allocation2 + $0xe8] sm:$0xff] %vm1764_vm3, %v1736_v3  ;;  %v1738_v14 = vmax.f32 %v1682_v5, 0.0  ;;  %v1456_v17 = vpop.f32.mrb[32].mxu0  ;;  %v14075_v19 = vsel %vm2006_vm4, %v2089_v6, %v2093_v9  ;;  %2668 = vmatprep.subr.bf16.mxu1 %v17363_v2  ;;  %v2105_v63 = vor.u32 %v2103_v44, %v2093_v9  ;;  %v2097_v5 = vor.u32 %v2095_v50, %v2085_v1  ;;  %v12853_v6 = vld [vmem:[%s17395_s0 + $0x20c] ss:$12 sps:$4 sm:$0xff]  }
 0x221   : > { %v1615_v20 = vmul.f32 %v13874_v56, %v1456_v17  ;;  %v1458_v21 = vpop.f32.mrb[33].mxu0  ;;  %10696 = vmatprep.mubr.msk.bf16.mxu1 %vm1764_vm3, %v14075_v19  ;;  %v1848_v23 = vld [vmem:[#allocation2 + $0xd8] sm:$0xff]  ;;  %v14085_v25 = vpack.c.bf16 %v1737_v10, %v1735_v61  ;;  %v12854_v10 = vld [vmem:[%s17395_s0 + $0x224] ss:$0 sps:$4 sm:$0x77]  }
 0x222   : > { %1795 = vst.msk [vmem:[#allocation2 + $0xf8] sm:$0xff] %vm1764_vm3, %v1738_v14  ;;  %v1616_v26 = vmul.f32 %v13877_v57, %v1458_v21  ;;  %v1460_v28 = vpop.f32.mrb[34].mxu0  ;;  %2552 = vmatmul.mubr.bf16.gmra.mrb[16].mxu1 %v14082_v16  ;;  %v14090_v30 = vpack.c.bf16 %v1848_v23, %v1846_v22  ;;  %v14120_v17 = vsel %vm2006_vm4, %v2097_v5, %v2101_v53 }
 0x223   : > { %v1683_v33 = vadd.f32 %v13880_v58, %v1615_v20  ;;  %v1617_v34 = vmul.f32 %v13874_v56, %v1460_v28  ;;  %v1462_v36 = vpop.f32.mrb[35].mxu0  ;;  %2669 = vmatpush1.bf16.msra.mxu1 %v12851_v13  ;;  %v2115_v22 = vshll.u32 %v14085_v25, 16 }
 0x224   : > { %v1684_v41 = vadd.f32 %v13883_v60, %v1616_v26  ;;  %v1618_v43 = vmul.f32 %v13877_v57, %v1462_v36  ;;  %v2107_v46 = vshll.u32 %v14090_v30, 16  ;;  %2670 = vmatprep.subr.bf16.mxu1 %v17363_v2  ;;  %v2119_v44 = vshrl.u32 %v14090_v30, 16 }
 0x225   : > { %v1739_v47 = vmax.f32 %v1683_v33, 0.0  ;;  %v1685_v49 = vadd.f32 %v13880_v58, %v1617_v34 }
 0x226   : > { %v1740_v59 = vmax.f32 %v1684_v41, 0.0  ;;  %v1686_v61 = vadd.f32 %v13883_v60, %v1618_v43  ;;  %v2109_v0 = vrot.slane %v2107_v46, 1 }
 0x227   : > { %v1741_v3 = vmax.f32 %v1685_v49, 0.0  ;;  %2671 = vmatpush1.bf16.msra.mxu1 %v12852_v39  ;;  %v1850_v20 = vld [vmem:[#allocation2 + $0xe8] sm:$0xff]  ;;  %v2477_v39 = vsel %vm2469_vm2, %v12854_v10, 0 }
 0x228   : > { %1797 = vst.msk [vmem:[#allocation2 + $0x108] sm:$0xff] %vm1764_vm3, %v1740_v59  ;;  %v1742_v12 = vmax.f32 %v1686_v61, 0.0  ;;  %v1466_v13 = vpop.f32.mrb[36].mxu0  ;;  %v14113_v14 = vsel %vm2006_vm4, %v2105_v63, %v2109_v0  ;;  %2672 = vmatprep.subr.bf16.mxu1 %v17363_v2  ;;  %v2111_v59 = vshrl.u32 %v14050_v38, 16  ;;  %v2117_v61 = vrot.slane %v2115_v22, 1 }
 0x229   : > { %v1619_v1 = vmul.f32 %v13874_v56, %v1466_v13  ;;  %v1468_v9 = vpop.f32.mrb[37].mxu0  ;;  %10697 = vmatprep.mubr.msk.bf16.mxu1 %vm1764_vm3, %v14113_v14  ;;  %v1852_v21 = vld [vmem:[#allocation2 + $0xf8] sm:$0xff]  ;;  %v14123_v23 = vpack.c.bf16 %v1741_v3, %v1739_v47  ;;  %v12857_v47 = vld [vmem:[%s17395_s0 + $0x4] ss:$12 sps:$4 sm:$0xff]   ;;  %v2121_v5 = vor.u32 %v2119_v44, %v2109_v0 }
 0x22a   : > { %1799 = vst.msk [vmem:[#allocation2 + $0x118] sm:$0xff] %vm1764_vm3, %v1742_v12  ;;  %v1620_v24 = vmul.f32 %v13877_v57, %v1468_v9  ;;  %v1470_v26 = vpop.f32.mrb[38].mxu0  ;;  %2562 = vmatmul.mubr.bf16.gmra.mrb[20].mxu1 %v14120_v17  ;;  %v14128_v28 = vpack.c.bf16 %v1852_v21, %v1850_v20  ;;  %v2113_v12 = vor.u32 %v2111_v59, %v2101_v53 }
 0x22b   : > { %v1687_v33 = vadd.f32 %v13880_v58, %v1619_v1  ;;  %v1621_v34 = vmul.f32 %v13874_v56, %v1470_v26  ;;  %v1472_v36 = vpop.f32.mrb[39].mxu0  ;;  %2673 = vmatpush1.bf16.msra.mxu1 %v12853_v6 }
 0x22c   : > { %v1688_v41 = vadd.f32 %v13883_v60, %v1620_v24  ;;  %v1622_v43 = vmul.f32 %v13877_v57, %v1472_v36  ;;  %v2123_v46 = vshll.u32 %v14128_v28, 16  ;;  %2674 = vmatprep.subr.bf16.mxu1 %v17363_v2  ;;  %v14152_v0 = vsel %vm2006_vm4, %v2113_v12, %v2117_v61 }
 0x22d   : > { %v1743_v49 = vmax.f32 %v1687_v33, 0.0  ;;  %v1689_v50 = vadd.f32 %v13880_v58, %v1621_v34  ;;  %v2131_v24 = vshll.u32 %v14123_v23, 16 }
 0x22e   : > { %v1744_v63 = vmax.f32 %v1688_v41, 0.0  ;;  %v1690_v3 = vadd.f32 %v13883_v60, %v1622_v43  ;;  %v2125_v6 = vrot.slane %v2123_v46, 1 }
 0x22f   : > { %v1745_v10 = vmax.f32 %v1689_v50, 0.0  ;;  %2675 = vmatpush1.bf16.msra.mxu1 %v2477_v39  ;;  %v1854_v22 = vld [vmem:[#allocation2 + $0x108] sm:$0xff] }
 0x230   : > { %1801 = vst.msk [vmem:[#allocation2 + $0x128] sm:$0xff] %vm1764_vm3, %v1744_v63  ;;  %v1746_v13 = vmax.f32 %v1690_v3, 0.0  ;;  %v1476_v1 = vpop.f32.mrb[40].mxu0  ;;  %v14146_v9 = vsel %vm2006_vm4, %v2121_v5, %v2125_v6  ;;  %3020 = vmatprep.subr.bf16.mxu1 %v12857_v47  ;;  %v2135_v47 = vshrl.u32 %v14128_v28, 16  ;;  %v2127_v63 = vshrl.u32 %v14085_v25, 16 }
 0x231   : > { %v1623_v20 = vmul.f32 %v13874_v56, %v1476_v1  ;;  %v1478_v21 = vpop.f32.mrb[41].mxu0  ;;  %10698 = vmatprep.mubr.msk.bf16.mxu1 %vm1764_vm3, %v14146_v9  ;;  %v1856_v53 = vld [vmem:[#allocation2 + $0x118] sm:$0xff]  ;;  %v14155_v26 = vpack.c.bf16 %v1745_v10, %v1743_v49  ;;  %v2133_v3 = vrot.slane %v2131_v24, 1 }
 0x232   : > { %1803 = vst.msk [vmem:[#allocation2 + $0x138] sm:$0xff] %vm1764_vm3, %v1746_v13  ;;  %v1624_v33 = vmul.f32 %v13877_v57, %v1478_v21  ;;  %v1480_v34 = vpop.f32.mrb[42].mxu0  ;;  %2572 = vmatmul.mubr.bf16.gmra.mrb[24].mxu1 %v14152_v0  ;;  %v14160_v36 = vpack.c.bf16 %v1856_v53, %v1854_v22  ;;  %v2137_v12 = vor.u32 %v2135_v47, %v2125_v6 }
 0x233   : > { %17401 = vst [vmem:[#allocation17_spill] sm:$0xff] %v14155_v26  ;;  %v1691_v39 = vadd.f32 %v13880_v58, %v1623_v20  ;;  %v1625_v41 = vmul.f32 %v13874_v56, %v1480_v34  ;;  %v1482_v43 = vpop.f32.mrb[43].mxu0  ;;  %v2129_v20 = vor.u32 %v2127_v63, %v2117_v61  ;;  %v2147_v61 = vshll.u32 %v14155_v26, 16 }
 0x234   : > { %v1692_v44 = vadd.f32 %v13883_v60, %v1624_v33  ;;  %v1626_v46 = vmul.f32 %v13877_v57, %v1482_v43  ;;  %v2139_v49 = vshll.u32 %v14160_v36, 16 }
 0x235   : > { %v1747_v50 = vmax.f32 %v1691_v39, 0.0  ;;  %v1693_v59 = vadd.f32 %v13880_v58, %v1625_v41  ;;  %v14179_v24 = vsel %vm2006_vm4, %v2129_v20, %v2133_v3  ;;  %v2143_v20 = vshrl.u32 %v14123_v23, 16 }
 0x236   : > { %v1748_v5 = vmax.f32 %v1692_v44, 0.0  ;;  %v1694_v10 = vadd.f32 %v13883_v60, %v1626_v46  ;;  %v2141_v13 = vrot.slane %v2139_v49, 1 }
 0x237   : > { %v1749_v1 = vmax.f32 %v1693_v59, 0.0  ;;  %v1858_v6 = vld [vmem:[#allocation2 + $0x128] sm:$0xff] }
 0x238   : > { %1805 = vst.msk [vmem:[#allocation2 + $0x148] sm:$0xff] %vm1764_vm3, %v1748_v5  ;;  %v1750_v21 = vmax.f32 %v1694_v10, 0.0  ;;  %v1486_v22 = vpop.f32.mrb[44].mxu0  ;;  %v14173_v53 = vsel %vm2006_vm4, %v2137_v12, %v2141_v13 }
 0x239   : > { %v1627_v33 = vmul.f32 %v13874_v56, %v1486_v22  ;;  %v1488_v34 = vpop.f32.mrb[45].mxu0  ;;  %10699 = vmatprep.mubr.msk.bf16.mxu1 %vm1764_vm3, %v14173_v53  ;;  %v1860_v39 = vld [vmem:[#allocation2 + $0x138] sm:$0xff]  ;;  %v14182_v41 = vpack.c.bf16 %v1749_v1, %v1747_v50  ;;  %v2151_v50 = vshrl.u32 %v14160_v36, 16 }
 0x23a   : > { %1807 = vst.msk [vmem:[#allocation2 + $0x158] sm:$0xff] %vm1764_vm3, %v1750_v21  ;;  %v1628_v43 = vmul.f32 %v13877_v57, %v1488_v34  ;;  %v1490_v44 = vpop.f32.mrb[46].mxu0  ;;  %2582 = vmatmul.mubr.bf16.gmra.mrb[28].mxu1 %v14179_v24  ;;  %v14187_v46 = vpack.c.bf16 %v1860_v39, %v1858_v6  ;;  %v2149_v21 = vrot.slane %v2147_v61, 1 }
 0x23b   : > { %v1695_v47 = vadd.f32 %v13880_v58, %v1627_v33  ;;  %v1629_v49 = vmul.f32 %v13874_v56, %v1490_v44  ;;  %v1492_v59 = vpop.f32.mrb[47].mxu0  ;;  %v2153_v34 = vor.u32 %v2151_v50, %v2141_v13  ;;  %v2145_v44 = vor.u32 %v2143_v20, %v2133_v3 }
 0x23c   : > { %17402 = vst [vmem:[#allocation18_spill] sm:$0xff] %v14187_v46  ;;  %v1696_v63 = vadd.f32 %v13883_v60, %v1628_v43  ;;  %v1630_v5 = vmul.f32 %v13877_v57, %v1492_v59  ;;  %v2155_v10 = vshll.u32 %v14187_v46, 16  ;;  %v2163_v3 = vshll.u32 %v14182_v41, 16 }
 0x23d   : > { %v1751_v12 = vmax.f32 %v1695_v47, 0.0  ;;  %v1697_v1 = vadd.f32 %v13880_v58, %v1629_v49  ;;  %v14206_v61 = vsel %vm2006_vm4, %v2145_v44, %v2149_v21 }
 0x23e   : > { %v1752_v22 = vmax.f32 %v1696_v63, 0.0  ;;  %v1698_v33 = vadd.f32 %v13883_v60, %v1630_v5  ;;  %v2157_v6 = vrot.slane %v2155_v10, 1 }
 0x23f   : > { %v1753_v39 = vmax.f32 %v1697_v1, 0.0  ;;  %v1862_v13 = vld [vmem:[#allocation2 + $0x148] sm:$0xff] }
 0x240   : > { %1809 = vst.msk [vmem:[#allocation2 + $0x168] sm:$0xff] %vm1764_vm3, %v1752_v22  ;;  %v1754_v43 = vmax.f32 %v1698_v33, 0.0  ;;  %v1496_v59 = vpop.f32.mrb[48].mxu0  ;;  %v14200_v2 = vsel %vm2006_vm4, %v2153_v34, %v2157_v6 }
 0x241   : > { %v1631_v47 = vmul.f32 %v13874_v56, %v1496_v59  ;;  %v1498_v49 = vpop.f32.mrb[49].mxu0  ;;  %10700 = vmatprep.mubr.msk.bf16.mxu1 %vm1764_vm3, %v14200_v2  ;;  %v1864_v63 = vld [vmem:[#allocation2 + $0x158] sm:$0xff]  ;;  %v14209_v5 = vpack.c.bf16 %v1753_v39, %v1751_v12  ;;  %v2167_v12 = vshrl.u32 %v14187_v46, 16 }
 0x242   : > { %1811 = vst.msk [vmem:[#allocation2 + $0x178] sm:$0xff] %vm1764_vm3, %v1754_v43  ;;  %v1632_v50 = vmul.f32 %v13877_v57, %v1498_v49  ;;  %v1500_v10 = vpop.f32.mrb[50].mxu0  ;;  %2592 = vmatmul.mubr.bf16.gmra.mrb[32].mxu1 %v14206_v61  ;;  %v14214_v1 = vpack.c.bf16 %v1864_v63, %v1862_v13  ;;  %v2159_v49 = vshrl.u32 %v14155_v26, 16  ;;  %v2165_v13 = vrot.slane %v2163_v3, 1 }
 0x243   : > { %17403 = vst [vmem:[#allocation19_spill] sm:$0xff] %v14209_v5  ;;  %v1699_v20 = vadd.f32 %v13880_v58, %v1631_v47  ;;  %v1633_v22 = vmul.f32 %v13874_v56, %v1500_v10  ;;  %v1502_v33 = vpop.f32.mrb[51].mxu0  ;;  %v2169_v51 = vor.u32 %v2167_v12, %v2157_v6 }
 0x244   : > { %v1700_v34 = vadd.f32 %v13883_v60, %v1632_v50  ;;  %v1634_v44 = vmul.f32 %v13877_v57, %v1502_v33  ;;  %v2171_v39 = vshll.u32 %v14214_v1, 16  ;;  %v2161_v52 = vor.u32 %v2159_v49, %v2149_v21 }
 0x245   : > { %v1755_v43 = vmax.f32 %v1699_v20, 0.0  ;;  %v1701_v59 = vadd.f32 %v13880_v58, %v1633_v22  ;;  %v2179_v21 = vshll.u32 %v14209_v5, 16 }
 0x246   : > { %v1756_v63 = vmax.f32 %v1700_v34, 0.0  ;;  %v1702_v47 = vadd.f32 %v13883_v60, %v1634_v44  ;;  %v2173_v10 = vrot.slane %v2171_v39, 1  ;;  %v14233_v3 = vsel %vm2006_vm4, %v2161_v52, %v2165_v13 }
 0x247   : > { %v1757_v54 = vmax.f32 %v1701_v59, 0.0  ;;  %v1866_v6 = vld [vmem:[#allocation2 + $0x168] sm:$0xff] }
 0x248   : > { %1813 = vst.msk [vmem:[#allocation2 + $0x188] sm:$0xff] %vm1764_vm3, %v1756_v63  ;;  %v1758_v50 = vmax.f32 %v1702_v47, 0.0  ;;  %v1506_v33 = vpop.f32.mrb[52].mxu0  ;;  %v14227_v46 = vsel %vm2006_vm4, %v2169_v51, %v2173_v10 }
 0x249   : > { %v1635_v20 = vmul.f32 %v13874_v56, %v1506_v33  ;;  %v1508_v22 = vpop.f32.mrb[53].mxu0  ;;  %10701 = vmatprep.mubr.msk.bf16.mxu1 %vm1764_vm3, %v14227_v46  ;;  %v1868_v34 = vld [vmem:[#allocation2 + $0x178] sm:$0xff]  ;;  %v14236_v44 = vpack.c.bf16 %v1757_v54, %v1755_v43  ;;  %v2183_v54 = vshrl.u32 %v14214_v1, 16 }
 0x24a   : > { %1815 = vst.msk [vmem:[#allocation2 + $0x198] sm:$0xff] %vm1764_vm3, %v1758_v50  ;;  %v1636_v51 = vmul.f32 %v13877_v57, %v1508_v22  ;;  %v1510_v12 = vpop.f32.mrb[54].mxu0  ;;  %2602 = vmatmul.mubr.bf16.gmra.mrb[36].mxu1 %v14233_v3  ;;  %v14241_v39 = vpack.c.bf16 %v1868_v34, %v1866_v6  ;;  %v2175_v22 = vshrl.u32 %v14182_v41, 16  ;;  %v2181_v6 = vrot.slane %v2179_v21, 1 }
 0x24b   : > { %v1703_v59 = vadd.f32 %v13880_v58, %v1635_v20  ;;  %v1637_v52 = vmul.f32 %v13874_v56, %v1510_v12  ;;  %v1512_v49 = vpop.f32.mrb[55].mxu0  ;;  %v2185_v56 = vor.u32 %v2183_v54, %v2173_v10  ;;  %v2195_v10 = vshll.u32 %v14236_v44, 16 }
 0x24c   : > { %v1704_v63 = vadd.f32 %v13883_v60, %v1636_v51  ;;  %v1638_v47 = vmul.f32 %v13877_v57, %v1512_v49  ;;  %v2187_v43 = vshll.u32 %v14241_v39, 16  ;;  %v2177_v51 = vor.u32 %v2175_v22, %v2165_v13 }
 0x24d   : > { %v14249_v50 = vmax.f32 %v1703_v59, 0.0  ;;  %v1705_v33 = vadd.f32 %v13880_v58, %v1637_v52  ;;  %v2199_v59 = vshrl.u32 %v14241_v39, 16 }
 0x24e   : > { %v1760_v34 = vmax.f32 %v1704_v63, 0.0  ;;  %v1706_v20 = vadd.f32 %v13883_v60, %v1638_v47  ;;  %v2189_v12 = vrot.slane %v2187_v43, 1  ;;  %v14261_v58 = vsel %vm2006_vm4, %v2177_v51, %v2181_v6 }
 0x24f   : > { %v1761_v26 = vmax.f32 %v1705_v33, 0.0  ;;  %v1870_v21 = vld [vmem:[#allocation2 + $0x188] sm:$0xff]  ;;  %v2197_v63 = vrot.slane %v2195_v10, 1 }
 0x250   : > { %1817 = vst.msk [vmem:[#allocation2 + $0x1a8] sm:$0xff] %vm1764_vm3, %v1760_v34  ;;  %v1762_v57 = vmax.f32 %v1706_v20, 0.0  ;;  %v14256_v49 = vsel %vm2006_vm4, %v2185_v56, %v2189_v12  ;;  %v2201_v47 = vor.u32 %v2199_v59, %v2189_v12 }
 0x251   : > { %1818 = vst [vmem:[#allocation2 + $0x1b0] sm:$0x3f] %v1761_v26  ;;  %10702 = vmatprep.mubr.msk.bf16.mxu1 %vm1764_vm3, %v14256_v49  ;;  %v1872_v60 = vld [vmem:[#allocation2 + $0x198] sm:$0xff]  ;;  %v2191_v26 = vshrl.u32 %v14209_v5, 16 }
 0x252   : > { %1820 = vst.msk [vmem:[#allocation2 + $0x1b8] sm:$0x3f] %vm1819_vm5, %v1762_v57  ;;  %2612 = vmatmul.mubr.bf16.gmra.mrb[40].mxu1 %v14261_v58  ;;  %v14265_v13 = vpack.c.bf16 %v1872_v60, %v1870_v21  ;;  %v2207_v60 = vshrl.u32 %v14236_v44, 16 }
 0x253   : > { %v2193_v43 = vor.u32 %v2191_v26, %v2181_v6 }
 0x254   : > { %v2203_v52 = vshll.u32 %v14265_v13, 16  ;;  %v2215_v57 = vshrl.u32 %v14265_v13, 16 }
 0x255   : > { %v14276_v34 = vsel %vm2006_vm4, %v2193_v43, %v2197_v63 }
 0x256   : > { %v2205_v54 = vrot.slane %v2203_v52, 1 }
 0x257   : > { %v14278_v20 = vld [vmem:[#allocation2 + $0x1a8] sm:$0xff] }
 0x258   : > { %v14271_v33 = vsel %vm2006_vm4, %v2201_v47, %v2205_v54  ;;  %v1953_v22 = vld [vmem:[#allocation2 + $0x1b0] sm:$0x1f]  ;;  %v2217_v59 = vor.u32 %v2215_v57, %v2205_v54  ;;  %v2209_v47 = vor.u32 %v2207_v60, %v2197_v63  ;;  %v12855_v63 = vld [vmem:[%s17395_s0] ss:$12 sps:$4 sm:$0xff]  }
 0x259   : > { %10703 = vmatprep.mubr.msk.bf16.mxu1 %vm1764_vm3, %v14271_v33  ;;  %v1954_v56 = vld [vmem:[#allocation2 + $0x1b8] sm:$0x1f]  ;;  %v1957_v51 = vpack.c.bf16 %v1953_v22, %v14249_v50  ;;  %v12869_v57 = vld [vmem:[%s17395_s0 + $0x64] ss:$12 sps:$4 sm:$0xff]   ;;  %v12875_v60 = vld [vmem:[%s17395_s0 + $0x94] ss:$12 sps:$4 sm:$0xff]  }
 0x25a   : > { %2622 = vmatmul.mubr.bf16.gmra.mrb[44].mxu1 %v14276_v34  ;;  %v1958_v12 = vpack.c.bf16 %v1954_v56, %v14278_v20 }
 0x25b   : > { %v2211_v6 = vshll.u32 %v1957_v51, 16  ;;  %v2223_v54 = vshrl.u32 %v1957_v51, 16  ;;  %v12858_v51 = vld [vmem:[%s17395_s0 + $0x18] ss:$12 sps:$4 sm:$0xff]  }
 0x25c   : > { %v2219_v21 = vshll.u32 %v1958_v12, 16  ;;  %v2226_v26 = vshrl.u32 %v1958_v12, 16  ;;  %v12860_v12 = vld [vmem:[%s17395_s0 + $0x1c] ss:$12 sps:$4 sm:$0xff]  }
 0x25d   : > { %v2213_v10 = vrot.slane %v2211_v6, 1  ;;  %v12861_v6 = vld [vmem:[%s17395_s0 + $0x30] ss:$12 sps:$4 sm:$0xff]  }
 0x25e   : > { %v2221_v52 = vrot.slane %v2219_v21, 1  ;;  %v12867_v21 = vld [vmem:[%s17395_s0 + $0x60] ss:$12 sps:$4 sm:$0xff]  }
 0x25f   : > { %v14293_v22 = vsel %vm2006_vm4, %v2209_v47, %v2213_v10  ;;  %v14298_v56 = vor.u32 %v2223_v54, %v2213_v10  ;;  %v12873_v10 = vld [vmem:[%s17395_s0 + $0x90] ss:$12 sps:$4 sm:$0xff]   ;;  %v1949_v47 = vld [vmem:[%s17395_s0 + $0x108] sm:$0x77] }
 0x260   : > { %v14286_v43 = vsel %vm2006_vm4, %v2217_v59, %v2221_v52  ;;  %v14288_v5 = vor.u32 %v2226_v26, %v2221_v52  ;;  %v12881_v59 = vld [vmem:[%s17395_s0 + $0xc4] ss:$12 sps:$4 sm:$0xff]   ;;  %v12879_v52 = vld [vmem:[%s17395_s0 + $0xc0] ss:$12 sps:$4 sm:$0xff]   ;;  %v10753_v54 = vcombine.low %v1949_v47, %v1949_v47 }
 0x261   : > { %10704 = vmatprep.mubr.msk.bf16.mxu1 %vm1764_vm3, %v14286_v43  ;;  %v12887_v26 = vld [vmem:[%s17395_s0 + $0xf4] ss:$12 sps:$4 sm:$0xff]  }
 0x262   : > { %2632 = vmatmul.mubr.bf16.gmra.mrb[48].mxu1 %v14293_v22 }
 0x263   : > { %10705 = vmatprep.mubr.msk.bf16.mxu1 %vm1764_vm3, %v14288_v5 }
 0x26a   : > { %2642 = vmatmul.mubr.bf16.gmra.mrb[52].mxu1 %v14298_v56 }
 0x26b   : > { %10706 = vmatprep.mubr.msk.bf16.mxu1 %vm1764_vm3, %v13936_v29  ;;  %v12863_v29 = vld [vmem:[%s17395_s0 + $0x34] ss:$12 sps:$4 sm:$0xff]  }
 0x272   : > { %2685 = vmatmul.mubr.bf16.vlgmr.msra.gmra.mrb[56].mxu1 %v13942_v32  ;;  %v12866_v32 = vld [vmem:[%s17395_s0 + $0x4c] ss:$12 sps:$4 sm:$0xff]  }
 0x273   : > { %10707 = vmatprep.mubr.msk.bf16.mxu1 %vm1764_vm3, %v13970_v8  ;;  %3021 = vmatpush1.bf16.msra.mxu1 %v12855_v63  ;;  %v12864_v8 = vld [vmem:[%s17395_s0 + $0x48] ss:$12 sps:$4 sm:$0xff]   ;;  %v3012_v63 = vsel %vm2469_vm2, %v10753_v54, 0 }
 0x274   : > { %3022 = vmatprep.subr.bf16.mxu1 %v12860_v12  ;;  %v17404_v12 = vmov 0   ;;  %v12922_v54 = vld [vmem:[%s17395_s0 + $0x2bc] ss:$12 sps:$4 sm:$0xff]  }
 0x277   : > { %3023 = vmatpush1.bf16.msra.mxu1 %v12858_v51  ;;  %v12901_v51 = vld [vmem:[%s17395_s0 + $0x110] ss:$0 sps:$4 sm:$0x77]  }
 0x278   : > { %3024 = vmatprep.subr.bf16.mxu1 %v12863_v29  ;;  %v3018_v29 = vsel %vm2469_vm2, %v12901_v51, 0 }
 0x27a   : > { %2693 = vmatmul.mubr.bf16.gmra.mrb[60].mxu1 %v13977_v11  ;;  %v12872_v11 = vld [vmem:[%s17395_s0 + $0x7c] ss:$12 sps:$4 sm:$0xff]  }
 0x27b   : > { %10708 = vmatprep.mubr.msk.bf16.mxu1 %vm1764_vm3, %v14005_v45  ;;  %3025 = vmatpush1.bf16.msra.mxu1 %v12861_v6  ;;  %v12870_v45 = vld [vmem:[%s17395_s0 + $0x78] ss:$12 sps:$4 sm:$0xff]  }
 0x27c   : > { %3026 = vmatprep.subr.bf16.mxu1 %v12866_v32  ;;  %v12904_v6 = vld [vmem:[%s17395_s0 + $0x22c] ss:$12 sps:$4 sm:$0xff]  }
 0x27d   : > { %v17405_v32 = vld [vmem:[#allocation18_spill] sm:$0xff] }
 0x27f   : > { %3027 = vmatpush1.bf16.msra.mxu1 %v12864_v8  ;;  %v17406_v8 = vld [vmem:[#allocation17_spill] sm:$0xff] }
 0x280   : > { %3028 = vmatprep.subr.bf16.mxu1 %v12869_v57  ;;  %v17407_v57 = vld [vmem:[#allocation19_spill] sm:$0xff] }
 0x282   : > { %2701 = vmatmul.mubr.bf16.gmra.mrb[64].mxu1 %v14012_v48  ;;  %v12878_v48 = vld [vmem:[%s17395_s0 + $0xac] ss:$12 sps:$4 sm:$0xff]  }
 0x283   : > { %10709 = vmatprep.mubr.msk.bf16.mxu1 %vm1764_vm3, %v14040_v27  ;;  %3029 = vmatpush1.bf16.msra.mxu1 %v12867_v21  ;;  %v12876_v27 = vld [vmem:[%s17395_s0 + $0xa8] ss:$12 sps:$4 sm:$0xff]   ;;  %v1876_v21 = vld [vmem:[#allocation2 + $0x1b8] sm:$0xf] }
 0x284   : > { %3030 = vmatprep.subr.bf16.mxu1 %v12872_v11  ;;  %v14512_v11 = vpack.c.bf16 %v1876_v21, %v14278_v20  ;;  %v3338_v21 = vld [vmem:[#allocation2] sm:$0xfc] }
 0x287   : > { %3031 = vmatpush1.bf16.msra.mxu1 %v12870_v45  ;;  %v1875_v45 = vld [vmem:[#allocation2 + $0x1b0] sm:$0xf] }
 0x288   : > { %3032 = vmatprep.subr.bf16.mxu1 %v12875_v60  ;;  %v14518_v60 = vpack.c.bf16 %v1875_v45, %v14249_v50 }
 0x28a   : > { %2709 = vmatmul.mubr.bf16.gmra.mrb[68].mxu1 %v14047_v31  ;;  %v12884_v31 = vld [vmem:[%s17395_s0 + $0xdc] ss:$12 sps:$4 sm:$0xff]  }
 0x28b   : > { %10710 = vmatprep.mubr.msk.bf16.mxu1 %vm1764_vm3, %v14075_v19  ;;  %3033 = vmatpush1.bf16.msra.mxu1 %v12873_v10  ;;  %v12882_v19 = vld [vmem:[%s17395_s0 + $0xd8] ss:$12 sps:$4 sm:$0xff]   ;;  %v12902_v10 = vld [vmem:[%s17395_s0 + $0x228] ss:$12 sps:$4 sm:$0xff]  }
 0x28c   : > { %3034 = vmatprep.subr.bf16.mxu1 %v12878_v48  ;;  %v12907_v48 = vld [vmem:[%s17395_s0 + $0x244] ss:$12 sps:$4 sm:$0xff]  }
 0x28f   : > { %3035 = vmatpush1.bf16.msra.mxu1 %v12876_v27  ;;  %v12905_v27 = vld [vmem:[%s17395_s0 + $0x240] ss:$12 sps:$4 sm:$0xff]  }
 0x290   : > { %3036 = vmatprep.subr.bf16.mxu1 %v12881_v59  ;;  %v12910_v59 = vld [vmem:[%s17395_s0 + $0x25c] ss:$12 sps:$4 sm:$0xff]  }
 0x292   : > { %2717 = vmatmul.mubr.bf16.gmra.mrb[72].mxu1 %v14082_v16  ;;  %v12885_v16 = vld [vmem:[%s17395_s0 + $0xf0] ss:$12 sps:$4 sm:$0xff]  }
 0x293   : > { %10711 = vmatprep.mubr.msk.bf16.mxu1 %vm1764_vm3, %v14113_v14  ;;  %3037 = vmatpush1.bf16.msra.mxu1 %v12879_v52  ;;  %v10754_v14 = vcombine.high %v1949_v47, %v1949_v47  ;;  %v12908_v52 = vld [vmem:[%s17395_s0 + $0x258] ss:$12 sps:$4 sm:$0xff]   ;;  %v12914_v47 = vld [vmem:[%s17395_s0 + $0x288] ss:$12 sps:$4 sm:$0xff]  }
 0x294   : > { %3038 = vmatprep.subr.bf16.mxu1 %v12884_v31  ;;  %v12913_v31 = vld [vmem:[%s17395_s0 + $0x274] ss:$12 sps:$4 sm:$0xff]  }
 0x297   : > { %3039 = vmatpush1.bf16.msra.mxu1 %v12882_v19  ;;  %v12911_v19 = vld [vmem:[%s17395_s0 + $0x270] ss:$12 sps:$4 sm:$0xff]  }
 0x298   : > { %3040 = vmatprep.subr.bf16.mxu1 %v12887_v26  ;;  %v12916_v26 = vld [vmem:[%s17395_s0 + $0x28c] ss:$12 sps:$4 sm:$0xff]  }
 0x29a   : > { %2725 = vmatmul.mubr.bf16.gmra.mrb[76].mxu1 %v14120_v17  ;;  %v14411_v17 = vld [vmem:[#allocation2 + $0x18] sm:$0xff] }
 0x29b   : > { %10712 = vmatprep.mubr.msk.bf16.mxu1 %vm1764_vm3, %v14146_v9  ;;  %3041 = vmatpush1.bf16.msra.mxu1 %v12885_v16  ;;  %v12919_v16 = vld [vmem:[%s17395_s0 + $0x2a4] ss:$12 sps:$4 sm:$0xff]  }
 0x29c   : > { %10756 = vmatprep.subr.msk.bf16.mxu1 %vm2469_vm2, %v10754_v14  ;;  %v12917_v14 = vld [vmem:[%s17395_s0 + $0x2a0] ss:$12 sps:$4 sm:$0xff]  }
 0x29f   : > { %3043 = vmatpush1.bf16.msra.mxu1 %v3012_v63  ;;  %v12920_v63 = vld [vmem:[%s17395_s0 + $0x2b8] ss:$12 sps:$4 sm:$0xff]  }
 0x2a0   : > { %3193 = vmatprep.subr.bf16.mxu1 %v17404_v12 }
 0x2a2   : > { %2733 = vmatmul.mubr.bf16.gmra.mrb[80].mxu1 %v14152_v0  ;;  %v1821_v0 = vld [vmem:[#allocation2] sm:$0xff] }
 0x2a3   : > { %10713 = vmatprep.mubr.msk.bf16.mxu1 %vm1764_vm3, %v14173_v53  ;;  %v12890_v53 = vld [vmem:[%s17395_s0 + $0x8] ss:$12 sps:$4 sm:$0xff]  }
 0x2aa   : > { %2741 = vmatmul.mubr.bf16.gmra.mrb[84].mxu1 %v14179_v24  ;;  %v14422_v24 = vld [vmem:[#allocation2 + $0x10] sm:$0xff] }
 0x2ab   : > { %10714 = vmatprep.mubr.msk.bf16.mxu1 %vm1764_vm3, %v14200_v2  ;;  %v1822_v2 = vld [vmem:[#allocation2 + $0x8] sm:$0xff]  ;;  %v3342_v45 = vpack.c.bf16 %v14422_v24, %v3338_v21  ;;  %v3444_v21 = vrot.slane %v14050_v38, 1 }
 0x2ac   : > { %v14414_v9 = vpack.c.bf16 %v14411_v17, %v1822_v2  ;;  %v12925_v2 = vld [vmem:[%s17395_s0 + $0x2d4] ss:$12 sps:$4 sm:$0xff]  }
 0x2b2   : > { %2749 = vmatmul.mubr.bf16.gmra.mrb[88].mxu1 %v14206_v61  ;;  %v12891_v61 = vld [vmem:[%s17395_s0 + $0x20] ss:$12 sps:$4 sm:$0xff]  }
 0x2b3   : > { %10715 = vmatprep.mubr.msk.bf16.mxu1 %vm1764_vm3, %v14227_v46  ;;  %v14425_v46 = vpack.c.bf16 %v14422_v24, %v1821_v0  ;;  %v12928_v0 = vld [vmem:[%s17395_s0 + $0x2ec] ss:$12 sps:$4 sm:$0xff]  }
 0x2ba   : > { %2757 = vmatmul.mubr.bf16.gmra.mrb[92].mxu1 %v14233_v3  ;;  %v12893_v3 = vld [vmem:[%s17395_s0 + $0x50] ss:$12 sps:$4 sm:$0xff]  }
 0x2bb   : > { %10716 = vmatprep.mubr.msk.bf16.mxu1 %vm1764_vm3, %v14256_v49  ;;  %v12894_v49 = vld [vmem:[%s17395_s0 + $0x68] ss:$12 sps:$4 sm:$0xff]  }
 0x2c2   : > { %2765 = vmatmul.mubr.bf16.gmra.mrb[96].mxu1 %v14261_v58  ;;  %v12895_v58 = vld [vmem:[%s17395_s0 + $0x80] ss:$12 sps:$4 sm:$0xff]  }
 0x2c3   : > { %10717 = vmatprep.mubr.msk.bf16.mxu1 %vm1764_vm3, %v14271_v33  ;;  %v12896_v33 = vld [vmem:[%s17395_s0 + $0x98] ss:$12 sps:$4 sm:$0xff]  }
 0x2ca   : > { %2773 = vmatmul.mubr.bf16.gmra.mrb[100].mxu1 %v14276_v34  ;;  %v12897_v34 = vld [vmem:[%s17395_s0 + $0xb0] ss:$12 sps:$4 sm:$0xff]  }
 0x2cb   : > { %10718 = vmatprep.mubr.msk.bf16.mxu1 %vm1764_vm3, %v14286_v43  ;;  %v12898_v43 = vld [vmem:[%s17395_s0 + $0xc8] ss:$12 sps:$4 sm:$0xff]  }
 0x2d2   : > { %2781 = vmatmul.mubr.bf16.gmra.mrb[104].mxu1 %v14293_v22  ;;  %v12899_v22 = vld [vmem:[%s17395_s0 + $0xe0] ss:$12 sps:$4 sm:$0xff]  }
 0x2d3   : > { %10719 = vmatprep.mubr.msk.bf16.mxu1 %vm1764_vm3, %v14288_v5  ;;  %v12892_v5 = vld [vmem:[%s17395_s0 + $0x38] ss:$12 sps:$4 sm:$0xff]  }
 0x2da   : > { %2789 = vmatmul.mubr.bf16.gmra.mrb[108].mxu1 %v14298_v56  ;;  %v12900_v56 = vld [vmem:[%s17395_s0 + $0xf8] ss:$12 sps:$4 sm:$0xff]  }
 0x2db   : > { %10757 = vmatprep.mubr.msk.bf16.mxu1 %vm1764_vm3, %v14414_v9 }
 0x2e2   : > { %3053 = vmatmul.mubr.bf16.vlgmr.msra.gmra.mrb[0].mxu1 %v14425_v46 }
 0x2e3   : > { %10758 = vmatprep.mubr.msk.bf16.mxu1 %vm1764_vm3, %v13922_v7  ;;  %3194 = vmatpush1.bf16.msra.mxu1 %v12890_v53  ;;  %v12926_v53 = vld [vmem:[%s17395_s0 + $0x2e8] ss:$12 sps:$4 sm:$0xff]  }
 0x2e4   : > { %3195 = vmatprep.subr.bf16.mxu1 %v17404_v12 }
 0x2e7   : > { %3196 = vmatpush1.bf16.msra.mxu1 %v12891_v61  ;;  %v12929_v61 = vld [vmem:[%s17395_s0 + $0x300] ss:$12 sps:$4 sm:$0xff]  }
 0x2e8   : > { %3197 = vmatprep.subr.bf16.mxu1 %v17404_v12 }
 0x2ea   : > { %3063 = vmatmul.mubr.bf16.gmra.mrb[4].mxu1 %v13905_v35 }
 0x2eb   : > { %10759 = vmatprep.mubr.msk.bf16.mxu1 %vm1764_vm3, %v13950_v40  ;;  %3198 = vmatpush1.bf16.msra.mxu1 %v12892_v5  ;;  %v12934_v5 = vld [vmem:[%s17395_s0 + $0x31c] ss:$12 sps:$4 sm:$0xff]  }
 0x2ec   : > { %3199 = vmatprep.subr.bf16.mxu1 %v17404_v12 }
 0x2ef   : > { %3200 = vmatpush1.bf16.msra.mxu1 %v12893_v3  ;;  %v10829_v3 = vld [vmem:[%s17395_s0 + $0x330] sm:$0x77] }
 0x2f0   : > { %3201 = vmatprep.subr.bf16.mxu1 %v17404_v12 }
 0x2f2   : > { %3073 = vmatmul.mubr.bf16.gmra.mrb[8].mxu1 %v13918_v4 }
 0x2f3   : > { %10760 = vmatprep.mubr.msk.bf16.mxu1 %vm1764_vm3, %v13985_v18  ;;  %3202 = vmatpush1.bf16.msra.mxu1 %v12894_v49  ;;  %v12932_v49 = vld [vmem:[%s17395_s0 + $0x318] ss:$12 sps:$4 sm:$0xff]  }
 0x2f4   : > { %3203 = vmatprep.subr.bf16.mxu1 %v17404_v12 }
 0x2f7   : > { %3204 = vmatpush1.bf16.msra.mxu1 %v12895_v58  ;;  %v10865_v58 = vcombine.high %v10829_v3, %v10829_v3 }
 0x2f8   : > { %3205 = vmatprep.subr.bf16.mxu1 %v17404_v12 }
 0x2fa   : > { %3083 = vmatmul.mubr.bf16.gmra.mrb[12].mxu1 %v13945_v37 }
 0x2fb   : > { %10761 = vmatprep.mubr.msk.bf16.mxu1 %vm1764_vm3, %v14020_v62  ;;  %3206 = vmatpush1.bf16.msra.mxu1 %v12896_v33  ;;  %v10864_v33 = vcombine.low %v10829_v3, %v10829_v3  ;;  %v3442_v3 = vrot.slane %v14055_v42, 1 }
 0x2fc   : > { %3207 = vmatprep.subr.bf16.mxu1 %v17404_v12 }
 0x2ff   : > { %3208 = vmatpush1.bf16.msra.mxu1 %v12897_v34  ;;  %v3717_v34 = vsel %vm2469_vm2, %v10864_v33, 0  ;;  %v12967_v33 = vld [vmem:[%s17340_s7 + $0x60] ss:$8 sps:$4 sm:$0xff]  }
 0x300   : > { %3209 = vmatprep.subr.bf16.mxu1 %v17404_v12 }
 0x302   : > { %3093 = vmatmul.mubr.bf16.gmra.mrb[16].mxu1 %v13980_v15 }
 0x303   : > { %10762 = vmatprep.mubr.msk.bf16.mxu1 %vm1764_vm3, %v14055_v42  ;;  %3210 = vmatpush1.bf16.msra.mxu1 %v12898_v43  ;;  %v3339_v43 = vld [vmem:[#allocation2 + $0x8] sm:$0xfc] }
 0x304   : > { %3211 = vmatprep.subr.bf16.mxu1 %v17404_v12  ;;  %v3343_v51 = vpack.c.bf16 %v14411_v17, %v3339_v43  ;;  %v12952_v17 = vld [vmem:[%s17340_s7 + $0x10] ss:$8 sps:$4 sm:$0xff]   ;;  %v3440_v43 = vrot.slane %v14015_v55, 1 }
 0x307   : > { %3212 = vmatpush1.bf16.msra.mxu1 %v12899_v22  ;;  %v12949_v22 = vld [vmem:[%s17340_s7] ss:$8 sps:$4 sm:$0xff]  }
 0x308   : > { %3213 = vmatprep.subr.bf16.mxu1 %v17404_v12 }
 0x30a   : > { %3103 = vmatmul.mubr.bf16.gmra.mrb[20].mxu1 %v14015_v55 }
 0x30b   : > { %10763 = vmatprep.mubr.msk.bf16.mxu1 %vm1764_vm3, %v14090_v30  ;;  %3214 = vmatpush1.bf16.msra.mxu1 %v12900_v56  ;;  %v12951_v56 = vld [vmem:[%s17340_s7 + $0x4] ss:$8 sps:$4 sm:$0xff]  }
 0x30c   : > { %3215 = vmatprep.subr.bf16.mxu1 %v17404_v12  ;;  %4743 = vmatprep.subr.bf16.mxu0 %v12951_v56  ;;  %v12945_v56 = vld [vmem:[%s17395_s0 + $0x2f0] ss:$12 sps:$4 sm:$0xff]  }
 0x30d   : > { %4744 = vmatpush1.bf16.msra.mxu0 %v12949_v22  ;;  %v3446_v22 = vrot.slane %v14090_v30, 1 }
 0x30f   : > { %3216 = vmatpush1.bf16.msra.mxu1 %v3018_v29  ;;  %v3426_v29 = vrot.slane %v13922_v7, 1 }
 0x310   : > { %3725 = vmatprep.subr.bf16.mxu1 %v12904_v6  ;;  %v3425_v6 = vrot.slane %v3343_v51, 1 }
 0x312   : > { %3113 = vmatmul.mubr.bf16.gmra.mrb[24].mxu1 %v14050_v38 }
 0x313   : > { %10764 = vmatprep.mubr.msk.bf16.mxu1 %vm1764_vm3, %v14128_v28 }
 0x31a   : > { %3123 = vmatmul.mubr.bf16.gmra.mrb[28].mxu1 %v14085_v25 }
 0x31b   : > { %10765 = vmatprep.mubr.msk.bf16.mxu1 %vm1764_vm3, %v14160_v36 }
 0x322   : > { %3133 = vmatmul.mubr.bf16.gmra.mrb[32].mxu1 %v14123_v23 }
 0x323   : > { %10766 = vmatprep.mubr.msk.bf16.mxu1 %vm1764_vm3, %v17405_v32 }
 0x32a   : > { %3143 = vmatmul.mubr.bf16.gmra.mrb[36].mxu1 %v17406_v8 }
 0x32b   : > { %10767 = vmatprep.mubr.msk.bf16.mxu1 %vm1764_vm3, %v14214_v1 }
 0x332   : > { %3153 = vmatmul.mubr.bf16.gmra.mrb[40].mxu1 %v14182_v41 }
 0x333   : > { %10768 = vmatprep.mubr.msk.bf16.mxu1 %vm1764_vm3, %v14241_v39 }
 0x33a   : > { %3163 = vmatmul.mubr.bf16.gmra.mrb[44].mxu1 %v17407_v57 }
 0x33b   : > { %10769 = vmatprep.mubr.msk.bf16.mxu1 %vm1764_vm3, %v14265_v13 }
 0x342   : > { %3173 = vmatmul.mubr.bf16.gmra.mrb[48].mxu1 %v14236_v44 }
 0x343   : > { %10770 = vmatprep.mubr.msk.bf16.mxu1 %vm1764_vm3, %v14512_v11 }
 0x34a   : > { %3183 = vmatmul.mubr.bf16.gmra.mrb[52].mxu1 %v14518_v60 }
 0x34b   : > { %10771 = vmatprep.mubr.msk.bf16.mxu1 %vm1764_vm3, %v14414_v9  ;;  %v12923_v9 = vld [vmem:[%s17395_s0 + $0x2d0] ss:$12 sps:$4 sm:$0xff]  }
 0x352   : > { %3226 = vmatmul.mubr.bf16.vlgmr.msra.gmra.mrb[56].mxu1 %v14425_v46  ;;  %v12931_v46 = vld [vmem:[%s17395_s0 + $0x304] ss:$12 sps:$4 sm:$0xff]  }
 0x353   : > { %10772 = vmatprep.mubr.msk.bf16.mxu1 %vm1764_vm3, %v13922_v7  ;;  %3726 = vmatpush1.bf16.msra.mxu1 %v12902_v10  ;;  %v12954_v7 = vld [vmem:[%s17340_s7 + $0x14] ss:$8 sps:$4 sm:$0xff]   ;;  %v3423_v10 = vrot.slane %v13905_v35, 1 }
 0x354   : > { %3727 = vmatprep.subr.bf16.mxu1 %v12907_v48  ;;  %4745 = vmatprep.subr.bf16.mxu0 %v12954_v7  ;;  %v3422_v48 = vrot.slane %v3342_v45, 1  ;;  %v3450_v45 = vrot.slane %v14128_v28, 1  ;;  %v12948_v7 = vld [vmem:[%s17395_s0 + $0x338] ss:$0 sps:$4 sm:$0x77]  }
 0x355   : > { %4746 = vmatpush1.bf16.msra.mxu0 %v12952_v17  ;;  %v12947_v17 = vld [vmem:[%s17395_s0 + $0x320] ss:$12 sps:$4 sm:$0xff]  }
 0x356   : > { %v14658_v24 = vsel %vm3421_vm6, %v3422_v48, %v3423_v10  ;;  %v3723_v48 = vsel %vm2469_vm2, %v12948_v7, 0 }
 0x357   : > { %3728 = vmatpush1.bf16.msra.mxu1 %v12905_v27  ;;  %v12937_v27 = vld [vmem:[%s17395_s0 + $0x230] ss:$12 sps:$4 sm:$0xff]  }
 0x358   : > { %3729 = vmatprep.subr.bf16.mxu1 %v12910_v59 }
 0x35a   : > { %3234 = vmatmul.mubr.bf16.gmra.mrb[60].mxu1 %v13905_v35  ;;  %v12938_v35 = vld [vmem:[%s17395_s0 + $0x248] ss:$12 sps:$4 sm:$0xff]  }
 0x35b   : > { %10773 = vmatprep.mubr.msk.bf16.mxu1 %vm1764_vm3, %v13950_v40  ;;  %3730 = vmatpush1.bf16.msra.mxu1 %v12908_v52  ;;  %v12957_v52 = vld [vmem:[%s17340_s7 + $0x24] ss:$8 sps:$4 sm:$0xff]  }
 0x35c   : > { %3731 = vmatprep.subr.bf16.mxu1 %v12913_v31  ;;  %v3428_v31 = vrot.slane %v13918_v4, 1  ;;  %4747 = vmatprep.subr.bf16.mxu0 %v12957_v52 }
 0x35f   : > { %3732 = vmatpush1.bf16.msra.mxu1 %v12911_v19  ;;  %v3434_v19 = vrot.slane %v13985_v18, 1 }
 0x360   : > { %3733 = vmatprep.subr.bf16.mxu1 %v12916_v26  ;;  %v12939_v26 = vld [vmem:[%s17395_s0 + $0x260] ss:$12 sps:$4 sm:$0xff]  }
 0x362   : > { %3242 = vmatmul.mubr.bf16.gmra.mrb[64].mxu1 %v13918_v4  ;;  %v12940_v4 = vld [vmem:[%s17395_s0 + $0x278] ss:$12 sps:$4 sm:$0xff]  }
 0x363   : > { %10774 = vmatprep.mubr.msk.bf16.mxu1 %vm1764_vm3, %v13985_v18  ;;  %3734 = vmatpush1.bf16.msra.mxu1 %v12914_v47  ;;  %v14683_v47 = vsel %vm3421_vm6, %v3423_v10, %v3428_v31  ;;  %v12958_v18 = vld [vmem:[%s17340_s7 + $0x30] ss:$8 sps:$4 sm:$0xff]   ;;  %v14792_v10 = vsel %vm3421_vm6, %v3440_v43, %v3444_v21 }
 0x364   : > { %3735 = vmatprep.subr.bf16.mxu1 %v12919_v16 }
 0x367   : > { %3736 = vmatpush1.bf16.msra.mxu1 %v12917_v14  ;;  %v12960_v14 = vld [vmem:[%s17340_s7 + $0x34] ss:$8 sps:$4 sm:$0xff]  }
 0x368   : > { %3737 = vmatprep.subr.bf16.mxu1 %v12922_v54  ;;  %v3432_v54 = vrot.slane %v13945_v37, 1 }
 0x36a   : > { %3250 = vmatmul.mubr.bf16.gmra.mrb[68].mxu1 %v13945_v37  ;;  %v12961_v37 = vld [vmem:[%s17340_s7 + $0x40] ss:$8 sps:$4 sm:$0xff]  }
 0x36b   : > { %10775 = vmatprep.mubr.msk.bf16.mxu1 %vm1764_vm3, %v14020_v62  ;;  %3738 = vmatpush1.bf16.msra.mxu1 %v12920_v63  ;;  %v3438_v63 = vrot.slane %v14020_v62, 1  ;;  %v12963_v62 = vld [vmem:[%s17340_s7 + $0x44] ss:$8 sps:$4 sm:$0xff]  }
 0x36c   : > { %3739 = vmatprep.subr.bf16.mxu1 %v12925_v2  ;;  %v12941_v2 = vld [vmem:[%s17395_s0 + $0x290] ss:$12 sps:$4 sm:$0xff]  }
 0x36f   : > { %3740 = vmatpush1.bf16.msra.mxu1 %v12923_v9  ;;  %v14708_v9 = vsel %vm3421_vm6, %v3428_v31, %v3432_v54  ;;  %v3452_v31 = vrot.slane %v14123_v23, 1 }
 0x370   : > { %3741 = vmatprep.subr.bf16.mxu1 %v12928_v0  ;;  %v14712_v0 = vsel %vm3421_vm6, %v3434_v19, %v3438_v63 }
 0x372   : > { %3258 = vmatmul.mubr.bf16.gmra.mrb[72].mxu1 %v13980_v15 }
 0x373   : > { %10776 = vmatprep.mubr.msk.bf16.mxu1 %vm1764_vm3, %v14055_v42  ;;  %3742 = vmatpush1.bf16.msra.mxu1 %v12926_v53  ;;  %v12942_v53 = vld [vmem:[%s17395_s0 + $0x2a8] ss:$12 sps:$4 sm:$0xff]   ;;  %v12944_v42 = vld [vmem:[%s17395_s0 + $0x2d8] ss:$12 sps:$4 sm:$0xff]  }
 0x374   : > { %3743 = vmatprep.subr.bf16.mxu1 %v12931_v46  ;;  %v12966_v46 = vld [vmem:[%s17340_s7 + $0x54] ss:$8 sps:$4 sm:$0xff]  }
 0x377   : > { %3744 = vmatpush1.bf16.msra.mxu1 %v12929_v61  ;;  %v3436_v61 = vrot.slane %v13980_v15, 1  ;;  %v14743_v15 = vsel %vm3421_vm6, %v3438_v63, %v3442_v3 }
 0x378   : > { %3745 = vmatprep.subr.bf16.mxu1 %v12934_v5  ;;  %v12964_v5 = vld [vmem:[%s17340_s7 + $0x50] ss:$8 sps:$4 sm:$0xff]  }
 0x379   : > { %v14764_v51 = vsel %vm3421_vm6, %v3436_v61, %v3440_v43 }
 0x37a   : > { %3266 = vmatmul.mubr.bf16.gmra.mrb[76].mxu1 %v14015_v55  ;;  %v12946_v55 = vld [vmem:[%s17395_s0 + $0x308] ss:$12 sps:$4 sm:$0xff]  }
 0x37b   : > { %10777 = vmatprep.mubr.msk.bf16.mxu1 %vm1764_vm3, %v14090_v30  ;;  %3746 = vmatpush1.bf16.msra.mxu1 %v12932_v49  ;;  %v12943_v49 = vld [vmem:[%s17395_s0 + $0x2c0] ss:$12 sps:$4 sm:$0xff]   ;;  %v12970_v30 = vld [vmem:[%s17340_s7 + $0x70] ss:$8 sps:$4 sm:$0xff]  }
 0x37c   : > { %10867 = vmatprep.subr.msk.bf16.mxu1 %vm2469_vm2, %v10865_v58  ;;  %v14739_v58 = vsel %vm3421_vm6, %v3432_v54, %v3436_v61  ;;  %v12987_v61 = vld [vmem:[%s17340_s7 + $0xc4] ss:$8 sps:$4 sm:$0xff]   ;;  %vm6262_vm2 = vmor %vm16044_vm1, %vm16038_vm15 }
 0x37f   : > { %3748 = vmatpush1.bf16.msra.mxu1 %v3717_v34  ;;  %v12969_v34 = vld [vmem:[%s17340_s7 + $0x64] ss:$8 sps:$4 sm:$0xff]  }
 0x380   : > { %3898 = vmatprep.subr.bf16.mxu1 %v17404_v12 }
 0x382   : > { %3274 = vmatmul.mubr.bf16.gmra.mrb[80].mxu1 %v14050_v38  ;;  %v14796_v38 = vsel %vm3421_vm6, %v3446_v22, %v3450_v45 }
 0x383   : > { %10778 = vmatprep.mubr.msk.bf16.mxu1 %vm1764_vm3, %v14128_v28  ;;  %v12973_v28 = vld [vmem:[%s17340_s7 + $0x80] ss:$8 sps:$4 sm:$0xff]  }
 0x38a   : > { %3282 = vmatmul.mubr.bf16.gmra.mrb[84].mxu1 %v14085_v25 }
 0x38b   : > { %10779 = vmatprep.mubr.msk.bf16.mxu1 %vm1764_vm3, %v14160_v36 }
 0x392   : > { %3290 = vmatmul.mubr.bf16.gmra.mrb[88].mxu1 %v14123_v23  ;;  %v12981_v23 = vld [vmem:[%s17340_s7 + $0xa4] ss:$8 sps:$4 sm:$0xff]  }
 0x393   : > { %10780 = vmatprep.mubr.msk.bf16.mxu1 %vm1764_vm3, %v17405_v32 }
 0x39a   : > { %3298 = vmatmul.mubr.bf16.gmra.mrb[92].mxu1 %v17406_v8 }
 0x39b   : > { %10781 = vmatprep.mubr.msk.bf16.mxu1 %vm1764_vm3, %v14214_v1 }
 0x3a2   : > { %3306 = vmatmul.mubr.bf16.gmra.mrb[96].mxu1 %v14182_v41 }
 0x3a3   : > { %10782 = vmatprep.mubr.msk.bf16.mxu1 %vm1764_vm3, %v14241_v39 }
 0x3aa   : > { %3314 = vmatmul.mubr.bf16.gmra.mrb[100].mxu1 %v17407_v57 }
 0x3ab   : > { %10783 = vmatprep.mubr.msk.bf16.mxu1 %vm1764_vm3, %v14265_v13 }
 0x3b2   : > { %3322 = vmatmul.mubr.bf16.gmra.mrb[104].mxu1 %v14236_v44 }
 0x3b3   : > { %10784 = vmatprep.mubr.msk.bf16.mxu1 %vm1764_vm3, %v14512_v11  ;;  %v14641_v11 = vsel %vm3421_vm6, %v3425_v6, %v3426_v29  ;;  %v12972_v6 = vld [vmem:[%s17340_s7 + $0x74] ss:$8 sps:$4 sm:$0xff]  }
 0x3ba   : > { %3330 = vmatmul.mubr.bf16.gmra.mrb[108].mxu1 %v14518_v60  ;;  %v3430_v60 = vrot.slane %v13950_v40, 1  ;;  %v12955_v40 = vld [vmem:[%s17340_s7 + $0x20] ss:$8 sps:$4 sm:$0xff]  }
 0x3bb   : > { %10868 = vmatprep.mubr.msk.bf16.mxu1 %vm1764_vm3, %v14641_v11  ;;  %4748 = vmatpush1.bf16.msra.mxu0 %v12955_v40 }
 0x3bc   : > { %v14662_v59 = vsel %vm3421_vm6, %v3426_v29, %v3430_v60  ;;  %v14687_v16 = vsel %vm3421_vm6, %v3430_v60, %v3434_v19  ;;  %4749 = vmatprep.subr.bf16.mxu0 %v12960_v14  ;;  %v14768_v29 = vsel %vm3421_vm6, %v3442_v3, %v3446_v22  ;;  %v12975_v60 = vld [vmem:[%s17340_s7 + $0x84] ss:$8 sps:$4 sm:$0xff]   ;;  %v3458_v19 = vrot.slane %v17405_v32, 1  ;;  %v3340_v22 = vld [vmem:[#allocation2 + $0x1b0] sm:$0x3f] }
 0x3bd   : > { %v3456_v32 = vrot.slane %v17406_v8, 1  ;;  %v3462_v14 = vrot.slane %v14214_v1, 1  ;;  %v12984_v1 = vld [vmem:[%s17340_s7 + $0xb4] ss:$8 sps:$4 sm:$0xff]   ;;  %v3460_v8 = vrot.slane %v14182_v41, 1  ;;  %v3470_v3 = vrot.slane %v14265_v13, 1 }
 0x3be   : > { %v12990_v41 = vld [vmem:[%s17340_s7 + $0xd4] ss:$8 sps:$4 sm:$0xff]   ;;  %v3344_v13 = vpack.c.bf16 %v3340_v22, %v14249_v50 }
 0x3bf   : > { %4750 = vmatpush1.bf16.msra.mxu0 %v12958_v18  ;;  %v12979_v18 = vld [vmem:[%s17340_s7 + $0xa0] ss:$8 sps:$4 sm:$0xff]   ;;  %v14845_v54 = vsel %vm3421_vm6, %v3452_v31, %v3456_v32  ;;  %v14849_v63 = vsel %vm3421_vm6, %v3458_v19, %v3462_v14  ;;  %v12996_v50 = vld [vmem:[%s17340_s7 + $0xf4] ss:$8 sps:$4 sm:$0xff]  }
 0x3c0   : > { %4751 = vmatprep.subr.bf16.mxu0 %v12963_v62  ;;  %v3461_v62 = vsel %vm3421_vm6, %v3456_v32, %v3460_v8 }
 0x3c2   : > { %3758 = vmatmul.mubr.bf16.vlgmr.msra.gmra.mrb[0].mxu1 %v14658_v24 }
 0x3c3   : > { %10869 = vmatprep.mubr.msk.bf16.mxu1 %vm1764_vm3, %v14662_v59  ;;  %3899 = vmatpush1.bf16.msra.mxu1 %v12937_v27  ;;  %v3448_v27 = vrot.slane %v14085_v25, 1  ;;  %v12976_v25 = vld [vmem:[%s17340_s7 + $0x90] ss:$8 sps:$4 sm:$0xff]  }
 0x3c4   : > { %3900 = vmatprep.subr.bf16.mxu1 %v17404_v12  ;;  %4752 = vmatpush1.bf16.msra.mxu0 %v12961_v37  ;;  %v3466_v37 = vrot.slane %v14241_v39, 1  ;;  %v3464_v39 = vrot.slane %v17407_v57, 1  ;;  %v3468_v57 = vrot.slane %v14236_v44, 1  ;;  %v12993_v44 = vld [vmem:[%s17340_s7 + $0xe4] ss:$8 sps:$4 sm:$0xff]  }
 0x3c5   : > { %4753 = vmatprep.subr.bf16.mxu0 %v12966_v46  ;;  %v14811_v40 = vsel %vm3421_vm6, %v3444_v21, %v3448_v27  ;;  %v12985_v46 = vld [vmem:[%s17340_s7 + $0xc0] ss:$8 sps:$4 sm:$0xff]   ;;  %v12994_v21 = vld [vmem:[%s17340_s7 + $0xf0] ss:$8 sps:$4 sm:$0xff]  }
 0x3c7   : > { %3901 = vmatpush1.bf16.msra.mxu1 %v12938_v35  ;;  %v3454_v35 = vrot.slane %v14160_v36, 1  ;;  %v12978_v36 = vld [vmem:[%s17340_s7 + $0x94] ss:$8 sps:$4 sm:$0xff]  }
 0x3c8   : > { %3902 = vmatprep.subr.bf16.mxu1 %v17404_v12  ;;  %4754 = vmatpush1.bf16.msra.mxu0 %v12964_v5  ;;  %v12988_v5 = vld [vmem:[%s17340_s7 + $0xd0] ss:$8 sps:$4 sm:$0xff]  }
 0x3c9   : > { %4755 = vmatprep.subr.bf16.mxu0 %v12969_v34  ;;  %v14815_v52 = vsel %vm3421_vm6, %v3450_v45, %v3454_v35  ;;  %v12999_v45 = vld [vmem:[%s17340_s7 + $0x104] ss:$8 sps:$4 sm:$0xff]  }
 0x3ca   : > { %3768 = vmatmul.mubr.bf16.gmra.mrb[4].mxu1 %v14683_v47 }
 0x3cb   : > { %10870 = vmatprep.mubr.msk.bf16.mxu1 %vm1764_vm3, %v14687_v16  ;;  %3903 = vmatpush1.bf16.msra.mxu1 %v12939_v26  ;;  %v14828_v26 = vsel %vm3421_vm6, %v3448_v27, %v3452_v31 }
 0x3cc   : > { %3904 = vmatprep.subr.bf16.mxu1 %v17404_v12  ;;  %4756 = vmatpush1.bf16.msra.mxu0 %v12967_v33  ;;  %v3471_v33 = vsel %vm3421_vm6, %v3466_v37, %v3470_v3 }
 0x3cd   : > { %4757 = vmatprep.subr.bf16.mxu0 %v12972_v6 }
 0x3cf   : > { %3905 = vmatpush1.bf16.msra.mxu1 %v12940_v4  ;;  %v14832_v4 = vsel %vm3421_vm6, %v3454_v35, %v3458_v19 }
 0x3d0   : > { %3906 = vmatprep.subr.bf16.mxu1 %v17404_v12  ;;  %4758 = vmatpush1.bf16.msra.mxu0 %v12970_v30  ;;  %v3472_v30 = vrot.slane %v3344_v13, 1 }
 0x3d1   : > { %4759 = vmatprep.subr.bf16.mxu0 %v12975_v60 }
 0x3d2   : > { %3778 = vmatmul.mubr.bf16.gmra.mrb[8].mxu1 %v14708_v9  ;;  %v3473_v6 = vsel %vm3421_vm6, %v3468_v57, %v3472_v30 }
 0x3d3   : > { %10871 = vmatprep.mubr.msk.bf16.mxu1 %vm1764_vm3, %v14712_v0  ;;  %3907 = vmatpush1.bf16.msra.mxu1 %v12941_v2  ;;  %v12982_v2 = vld [vmem:[%s17340_s7 + $0xb0] ss:$8 sps:$4 sm:$0xff]  }
 0x3d4   : > { %3908 = vmatprep.subr.bf16.mxu1 %v17404_v12  ;;  %4760 = vmatpush1.bf16.msra.mxu0 %v12973_v28 }
 0x3d5   : > { %4761 = vmatprep.subr.bf16.mxu0 %v12978_v36 }
 0x3d7   : > { %3909 = vmatpush1.bf16.msra.mxu1 %v12942_v53  ;;  %v3467_v53 = vsel %vm3421_vm6, %v3462_v14, %v3466_v37  ;;  %v12997_v14 = vld [vmem:[%s17340_s7 + $0x100] ss:$8 sps:$4 sm:$0xff]  }
 0x3d8   : > { %3910 = vmatprep.subr.bf16.mxu1 %v17404_v12  ;;  %4762 = vmatpush1.bf16.msra.mxu0 %v12976_v25 }
 0x3d9   : > { %4763 = vmatprep.subr.bf16.mxu0 %v12981_v23 }
 0x3da   : > { %3788 = vmatmul.mubr.bf16.gmra.mrb[12].mxu1 %v14739_v58 }
 0x3db   : > { %10872 = vmatprep.mubr.msk.bf16.mxu1 %vm1764_vm3, %v14743_v15  ;;  %3911 = vmatpush1.bf16.msra.mxu1 %v12943_v49  ;;  %v3341_v49 = vld [vmem:[#allocation2 + $0x1b8] sm:$0x3f] }
 0x3dc   : > { %3912 = vmatprep.subr.bf16.mxu1 %v17404_v12  ;;  %4764 = vmatpush1.bf16.msra.mxu0 %v12979_v18  ;;  %v3345_v34 = vpack.c.bf16 %v3341_v49, %v14278_v20  ;;  %v12991_v20 = vld [vmem:[%s17340_s7 + $0xe0] ss:$8 sps:$4 sm:$0xff]  }
 0x3dd   : > { %4765 = vmatprep.subr.bf16.mxu0 %v12984_v1  ;;  %v13002_v1 = vld [vmem:[%s17340_s7 + $0x114] ss:$8 sps:$4 sm:$0xff]  }
 0x3de   : > { %v3474_v43 = vrot.slane %v3345_v34, 1 }
 0x3df   : > { %3913 = vmatpush1.bf16.msra.mxu1 %v12944_v42  ;;  %v3465_v42 = vsel %vm3421_vm6, %v3460_v8, %v3464_v39 }
 0x3e0   : > { %3914 = vmatprep.subr.bf16.mxu1 %v17404_v12  ;;  %4766 = vmatpush1.bf16.msra.mxu0 %v12982_v2 }
 0x3e1   : > { %4767 = vmatprep.subr.bf16.mxu0 %v12987_v61 }
 0x3e2   : > { %3798 = vmatmul.mubr.bf16.gmra.mrb[16].mxu1 %v14764_v51 }
 0x3e3   : > { %10873 = vmatprep.mubr.msk.bf16.mxu1 %vm1764_vm3, %v14768_v29  ;;  %3915 = vmatpush1.bf16.msra.mxu1 %v12945_v56  ;;  %v3469_v56 = vsel %vm3421_vm6, %v3464_v39, %v3468_v57  ;;  %v13005_v39 = vld [vmem:[%s17340_s7 + $0x124] ss:$8 sps:$4 sm:$0xff]  }
 0x3e4   : > { %3916 = vmatprep.subr.bf16.mxu1 %v17404_v12  ;;  %4768 = vmatpush1.bf16.msra.mxu0 %v12985_v46  ;;  %v13000_v46 = vld [vmem:[%s17340_s7 + $0x110] ss:$8 sps:$4 sm:$0xff]  }
 0x3e5   : > { %4769 = vmatprep.subr.bf16.mxu0 %v12990_v41 }
 0x3e7   : > { %3917 = vmatpush1.bf16.msra.mxu1 %v12946_v55  ;;  %v3475_v55 = vsel %vm3421_vm6, %v3470_v3, %v3474_v43 }
 0x3e8   : > { %3918 = vmatprep.subr.bf16.mxu1 %v17404_v12  ;;  %4770 = vmatpush1.bf16.msra.mxu0 %v12988_v5 }
 0x3e9   : > { %4771 = vmatprep.subr.bf16.mxu0 %v12993_v44 }
 0x3ea   : > { %3808 = vmatmul.mubr.bf16.gmra.mrb[20].mxu1 %v14792_v10 }
 0x3eb   : > { %10874 = vmatprep.mubr.msk.bf16.mxu1 %vm1764_vm3, %v14796_v38  ;;  %3919 = vmatpush1.bf16.msra.mxu1 %v12947_v17 }
 0x3ec   : > { %3920 = vmatprep.subr.bf16.mxu1 %v17404_v12  ;;  %4772 = vmatpush1.bf16.msra.mxu0 %v12991_v20  ;;  %v13008_v20 = vld [vmem:[%s17340_s7 + $0x134] ss:$8 sps:$4 sm:$0xff]  }
 0x3ed   : > { %4773 = vmatprep.subr.bf16.mxu0 %v12996_v50 }
 0x3ef   : > { %3921 = vmatpush1.bf16.msra.mxu1 %v3723_v48 }
 0x3f0   : > { %4774 = vmatpush1.bf16.msra.mxu0 %v12994_v21 }
 0x3f1   : > { %4916 = vmatprep.subr.bf16.mxu0 %v12999_v45  ;;  %v13006_v45 = vld [vmem:[%s17340_s7 + $0x130] ss:$8 sps:$4 sm:$0xff]  }
 0x3f2   : > { %3818 = vmatmul.mubr.bf16.gmra.mrb[24].mxu1 %v14811_v40 }
 0x3f3   : > { %10875 = vmatprep.mubr.msk.bf16.mxu1 %vm1764_vm3, %v14815_v52 }
 0x3fa   : > { %3828 = vmatmul.mubr.bf16.gmra.mrb[28].mxu1 %v14828_v26 }
 0x3fb   : > { %10876 = vmatprep.mubr.msk.bf16.mxu1 %vm1764_vm3, %v14832_v4 }
 0x402   : > { %3838 = vmatmul.mubr.bf16.gmra.mrb[32].mxu1 %v14845_v54 }
 0x403   : > { %10877 = vmatprep.mubr.msk.bf16.mxu1 %vm1764_vm3, %v14849_v63 }
 0x40a   : > { %3848 = vmatmul.mubr.bf16.gmra.mrb[36].mxu1 %v3461_v62 }
 0x40b   : > { %10878 = vmatprep.mubr.msk.bf16.mxu1 %vm1764_vm3, %v3467_v53 }
 0x412   : > { %3858 = vmatmul.mubr.bf16.gmra.mrb[40].mxu1 %v3465_v42 }
 0x413   : > { %10879 = vmatprep.mubr.msk.bf16.mxu1 %vm1764_vm3, %v3471_v33 }
 0x41a   : > { %3868 = vmatmul.mubr.bf16.gmra.mrb[44].mxu1 %v3469_v56 }
 0x41b   : > { %10880 = vmatprep.mubr.msk.bf16.mxu1 %vm1764_vm3, %v3475_v55 }
 0x422   : > { %3878 = vmatmul.mubr.bf16.gmra.mrb[48].mxu1 %v3473_v6 }
 0x423   : > { %10881 = vmatprep.mubr.msk.bf16.mxu1 %vm1764_vm3, %v3474_v43 }
 0x42a   : > { %3888 = vmatmul.mubr.bf16.gmra.mrb[52].mxu1 %v3472_v30 }
 0x42b   : > { %10882 = vmatprep.mubr.msk.bf16.mxu1 %vm1764_vm3, %v14641_v11  ;;  %v14939_v11 = vld [vmem:[%s17408_s30] sm:$0x7]  ;;  %s649_s30 = scalar_lea.vmem [#allocation6], %s10542_s22  ;;  %s13334_s22 = sshll.u32 %s13399_s3, 4  ;;  %s13335_s22 = int_to_ptr.vmem [resolvable:$false] %s13334_s22 }
 0x42c   : > { %s10479_s4 = sshll.u32 %s649_s30, 4  ;;  %s13336_s0 = scalar_lea.vmem %s13335_s22, 256  ;;  %s17292_s4 = int_to_ptr.vmem [resolvable:$true] %s10479_s4 }
 0x42d   : > { %s13330_s1 = scalar_lea.vmem %s17292_s4, 128  ;;  %p13337_p0 = scmp.lt.s32.totalorder %s17292_s4, %s13335_s22 }
 0x42e   : > { %p13331_p11 = scmp.ne.s32.totalorder %s17292_s4, %s13330_s1  ;;  %p13338_p1 = scmp.lt.s32.totalorder %s13336_s0, %s13330_s1 }
 0x430   : > { %p13332_p12 = pnand %p13331_p11, %p13548_p5  ;;  %p13339_p2 = por %p13338_p1, %p13337_p0 }
 0x432   : > { %3931 = vmatmul.mubr.bf16.vlgmr.msra.gmra.mrb[56].mxu1 %v14658_v24  ;;  %v14944_v24 = vld [vmem:[%s17339_s6] sm:$0x7]  ;;  %p13333_p13 = pneg %p13332_p12 }
 0x433   : > { %10883 = vmatprep.mubr.msk.bf16.mxu1 %vm1764_vm3, %v14662_v59  ;;  %v17409_v59 = vld [vmem:[#allocation15_spill] sm:$0xff] }
 0x434   : > { %p13340_p3 = pnand %p13339_p2, %p13333_p13 }
 0x43a   : > { %3939 = vmatmul.mubr.bf16.gmra.mrb[60].mxu1 %v14683_v47  ;;  %v14948_v47 = vrot.slane %v14939_v11, %v17409_v59 }
 0x43b   : > { %10884 = vmatprep.mubr.msk.bf16.mxu1 %vm1764_vm3, %v14687_v16  ;;  %v17410_v16 = vld [vmem:[#allocation16_spill] sm:$0xff] }
 0x442   : > { %3947 = vmatmul.mubr.bf16.gmra.mrb[64].mxu1 %v14708_v9  ;;  %v14953_v9 = vrot.slane %v14939_v11, %v17410_v16 }
 0x443   : > { %10885 = vmatprep.mubr.msk.bf16.mxu1 %vm1764_vm3, %v14712_v0  ;;  %v14957_v0 = vrot.slane %v14944_v24, %v17409_v59 }
 0x44a   : > { %3955 = vmatmul.mubr.bf16.gmra.mrb[68].mxu1 %v14739_v58 }
 0x44b   : > { %10886 = vmatprep.mubr.msk.bf16.mxu1 %vm1764_vm3, %v14743_v15  ;;  %v14961_v15 = vrot.slane %v14944_v24, %v17410_v16  ;;  %v13119_v16 = vld [vmem:[%s17342_s9 + $0x114] ss:$8 sps:$4 sm:$0xff]  }
 0x452   : > { %3963 = vmatmul.mubr.bf16.gmra.mrb[72].mxu1 %v14764_v51 }
 0x453   : > { %10887 = vmatprep.mubr.msk.bf16.mxu1 %vm1764_vm3, %v14768_v29 }
 0x45a   : > { %3971 = vmatmul.mubr.bf16.gmra.mrb[76].mxu1 %v14792_v10 }
 0x45b   : > { %10888 = vmatprep.mubr.msk.bf16.mxu1 %vm1764_vm3, %v14796_v38 }
 0x462   : > { %3979 = vmatmul.mubr.bf16.gmra.mrb[80].mxu1 %v14811_v40 }
 0x463   : > { %10889 = vmatprep.mubr.msk.bf16.mxu1 %vm1764_vm3, %v14815_v52 }
 0x46a   : > { %3987 = vmatmul.mubr.bf16.gmra.mrb[84].mxu1 %v14828_v26 }
 0x46b   : > { %10890 = vmatprep.mubr.msk.bf16.mxu1 %vm1764_vm3, %v14832_v4 }
 0x472   : > { %3995 = vmatmul.mubr.bf16.gmra.mrb[88].mxu1 %v14845_v54 }
 0x473   : > { %10891 = vmatprep.mubr.msk.bf16.mxu1 %vm1764_vm3, %v14849_v63 }
 0x47a   : > { %4003 = vmatmul.mubr.bf16.gmra.mrb[92].mxu1 %v3461_v62 }
 0x47b   : > { %10892 = vmatprep.mubr.msk.bf16.mxu1 %vm1764_vm3, %v3467_v53 }
 0x482   : > { %4011 = vmatmul.mubr.bf16.gmra.mrb[96].mxu1 %v3465_v42 }
 0x483   : > { %10893 = vmatprep.mubr.msk.bf16.mxu1 %vm1764_vm3, %v3471_v33 }
 0x48a   : > { %4019 = vmatmul.mubr.bf16.gmra.mrb[100].mxu1 %v3469_v56  ;;  %v13003_v56 = vld [vmem:[%s17340_s7 + $0x120] ss:$8 sps:$4 sm:$0xff]  }
 0x48b   : > { %10894 = vmatprep.mubr.msk.bf16.mxu1 %vm1764_vm3, %v3475_v55 }
 0x492   : > { %4027 = vmatmul.mubr.bf16.gmra.mrb[104].mxu1 %v3473_v6 }
 0x493   : > { %10895 = vmatprep.mubr.msk.bf16.mxu1 %vm1764_vm3, %v3474_v43  ;;  %vm7947_vm3 = vcmask 261124  }
 0x494   : > { %vm16316_vm5 = vmor %vm7947_vm3, %vm6226_vm7 }
 0x495   : > { %v3759_v58 = vpop.f32.mrb[0].mxu1 }
 0x496   : > { %v4144_v51 = vmul.f32 %v14948_v47, %v3759_v58  ;;  %v3761_v29 = vpop.f32.mrb[1].mxu1 }
 0x497   : > { %v4145_v17 = vmul.f32 %v14953_v9, %v3761_v29  ;;  %v3763_v7 = vpop.f32.mrb[2].mxu1  ;;  %v13011_v29 = vld [vmem:[%s17340_s7 + $0x144] ss:$8 sps:$4 sm:$0xff]  }
 0x498   : > { %v4245_v10 = vadd.f32 %v14957_v0, %v4144_v51  ;;  %v4147_v38 = vmul.f32 %v14948_v47, %v3763_v7  ;;  %v3765_v28 = vpop.f32.mrb[3].mxu1 }
 0x499   : > { %v4246_v60 = vadd.f32 %v14961_v15, %v4145_v17  ;;  %v4148_v48 = vmul.f32 %v14953_v9, %v3765_v28 }
 0x49a   : > { %v4248_v27 = vadd.f32 %v14957_v0, %v4147_v38  ;;  %4035 = vmatmul.mubr.bf16.gmra.mrb[108].mxu1 %v3472_v30  ;;  %v4329_v40 = vmax.f32 %v4245_v10, 0.0 }
 0x49b   : > { %v4249_v35 = vadd.f32 %v14961_v15, %v4148_v48  ;;  %v4330_v25 = vmax.f32 %v4246_v60, 0.0 }
 0x49c   : > { %v4332_v52 = vmax.f32 %v4248_v27, 0.0 }
 0x49d   : > { %v4333_v36 = vmax.f32 %v4249_v35, 0.0  ;;  %v3769_v31 = vpop.f32.mrb[4].mxu1 }
 0x49e   : > { %v14971_v19 = vpack.c.bf16 %v4332_v52, %v4329_v40  ;;  %v4150_v26 = vmul.f32 %v14948_v47, %v3769_v31  ;;  %v3771_v4 = vpop.f32.mrb[5].mxu1  ;;  %v13009_v40 = vld [vmem:[%s17340_s7 + $0x140] ss:$8 sps:$4 sm:$0xff]   ;;  %v13014_v31 = vld [vmem:[%s17340_s7 + $0x154] ss:$8 sps:$4 sm:$0xff]  }
 0x49f   : > { %v4151_v18 = vmul.f32 %v14953_v9, %v3771_v4  ;;  %v3773_v23 = vpop.f32.mrb[6].mxu1  ;;  %v14975_v32 = vpack.c.bf16 %v4333_v36, %v4330_v25 }
 0x4a0   : > { %v4251_v54 = vadd.f32 %v14957_v0, %v4150_v26  ;;  %v4153_v63 = vmul.f32 %v14948_v47, %v3773_v23  ;;  %v3775_v2 = vpop.f32.mrb[7].mxu1 }
 0x4a1   : > { %v4252_v8 = vadd.f32 %v14961_v15, %v4151_v18  ;;  %v4154_v37 = vmul.f32 %v14953_v9, %v3775_v2  ;;  %4775 = vmatprep.mubr.bf16.mxu0 %v14975_v32  ;;  %v13017_v2 = vld [vmem:[%s17340_s7 + $0x164] ss:$8 sps:$4 sm:$0xff]  }
 0x4a2   : > { %v4254_v62 = vadd.f32 %v14957_v0, %v4153_v63  ;;  %4776 = vmatmul.mubr.bf16.vlgmr.msra.gmra.mrb[56].mxu0 %v14971_v19  ;;  %v4335_v61 = vmax.f32 %v4251_v54, 0.0 }
 0x4a3   : > { %v4255_v53 = vadd.f32 %v14961_v15, %v4154_v37  ;;  %4917 = vmatpush1.bf16.msra.mxu0 %v12997_v14  ;;  %v4336_v5 = vmax.f32 %v4252_v8, 0.0  ;;  %v13012_v14 = vld [vmem:[%s17340_s7 + $0x150] ss:$8 sps:$4 sm:$0xff]  }
 0x4a4   : > { %v4338_v41 = vmax.f32 %v4254_v62, 0.0  ;;  %4918 = vmatprep.subr.bf16.mxu0 %v13002_v1 }
 0x4a5   : > { %v4339_v3 = vmax.f32 %v4255_v53, 0.0  ;;  %v3779_v49 = vpop.f32.mrb[8].mxu1 }
 0x4a6   : > { %v4156_v42 = vmul.f32 %v14948_v47, %v3779_v49  ;;  %v3781_v33 = vpop.f32.mrb[9].mxu1  ;;  %v14998_v34 = vpack.c.bf16 %v4338_v41, %v4335_v61 }
 0x4a7   : > { %v4157_v57 = vmul.f32 %v14953_v9, %v3781_v33  ;;  %v3783_v43 = vpop.f32.mrb[10].mxu1  ;;  %v15001_v22 = vpack.c.bf16 %v4339_v3, %v4336_v5  ;;  %4919 = vmatpush1.bf16.msra.mxu0 %v13000_v46  ;;  %v13015_v5 = vld [vmem:[%s17340_s7 + $0x160] ss:$8 sps:$4 sm:$0xff]   ;;  %v13020_v33 = vld [vmem:[%s17340_s7 + $0x174] ss:$8 sps:$4 sm:$0xff]  }
 0x4a8   : > { %v4257_v13 = vadd.f32 %v14957_v0, %v4156_v42  ;;  %v4159_v55 = vmul.f32 %v14948_v47, %v3783_v43  ;;  %v3785_v30 = vpop.f32.mrb[11].mxu1  ;;  %4920 = vmatprep.subr.bf16.mxu0 %v13005_v39 }
 0x4a9   : > { %v4258_v44 = vadd.f32 %v14961_v15, %v4157_v57  ;;  %v4160_v6 = vmul.f32 %v14953_v9, %v3785_v30  ;;  %4785 = vmatprep.mubr.bf16.mxu0 %v15001_v22 }
 0x4aa   : > { %v4260_v50 = vadd.f32 %v14957_v0, %v4159_v55  ;;  %4786 = vmatmul.mubr.bf16.gmra.mrb[60].mxu0 %v14998_v34  ;;  %v4341_v58 = vmax.f32 %v4257_v13, 0.0  ;;  %v13018_v55 = vld [vmem:[%s17340_s7 + $0x170] ss:$8 sps:$4 sm:$0xff]  }
 0x4ab   : > { %v4261_v21 = vadd.f32 %v14961_v15, %v4160_v6  ;;  %4921 = vmatpush1.bf16.msra.mxu0 %v13003_v56  ;;  %v4342_v17 = vmax.f32 %v4258_v44, 0.0  ;;  %v13023_v44 = vld [vmem:[%s17341_s8 + $0x4] ss:$8 sps:$4 sm:$0xff]  }
 0x4ac   : > { %v4344_v51 = vmax.f32 %v4260_v50, 0.0  ;;  %4922 = vmatprep.subr.bf16.mxu0 %v13008_v20 }
 0x4ad   : > { %v4345_v7 = vmax.f32 %v4261_v21, 0.0  ;;  %v3789_v10 = vpop.f32.mrb[12].mxu1 }
 0x4ae   : > { %v4162_v38 = vmul.f32 %v14948_v47, %v3789_v10  ;;  %v3791_v28 = vpop.f32.mrb[13].mxu1  ;;  %v15024_v60 = vpack.c.bf16 %v4344_v51, %v4341_v58 }
 0x4af   : > { %v4163_v48 = vmul.f32 %v14953_v9, %v3791_v28  ;;  %v3793_v27 = vpop.f32.mrb[14].mxu1  ;;  %v15027_v35 = vpack.c.bf16 %v4345_v7, %v4342_v17  ;;  %4923 = vmatpush1.bf16.msra.mxu0 %v13006_v45 }
 0x4b0   : > { %v4263_v52 = vadd.f32 %v14957_v0, %v4162_v38  ;;  %v4165_v25 = vmul.f32 %v14948_v47, %v3793_v27  ;;  %v3795_v36 = vpop.f32.mrb[15].mxu1  ;;  %4924 = vmatprep.subr.bf16.mxu0 %v13011_v29 }
 0x4b1   : > { %v4264_v26 = vadd.f32 %v14961_v15, %v4163_v48  ;;  %v4166_v4 = vmul.f32 %v14953_v9, %v3795_v36  ;;  %4795 = vmatprep.mubr.bf16.mxu0 %v15027_v35 }
 0x4b2   : > { %v4266_v18 = vadd.f32 %v14957_v0, %v4165_v25  ;;  %4796 = vmatmul.mubr.bf16.gmra.mrb[64].mxu0 %v15024_v60  ;;  %v4347_v54 = vmax.f32 %v4263_v52, 0.0 }
 0x4b3   : > { %v4267_v23 = vadd.f32 %v14961_v15, %v4166_v4  ;;  %4925 = vmatpush1.bf16.msra.mxu0 %v13009_v40  ;;  %v4348_v1 = vmax.f32 %v4264_v26, 0.0 }
 0x4b4   : > { %v4350_v63 = vmax.f32 %v4266_v18, 0.0  ;;  %4926 = vmatprep.subr.bf16.mxu0 %v13014_v31 }
 0x4b5   : > { %v4351_v8 = vmax.f32 %v4267_v23, 0.0  ;;  %v3799_v37 = vpop.f32.mrb[16].mxu1 }
 0x4b6   : > { %v4168_v62 = vmul.f32 %v14948_v47, %v3799_v37  ;;  %v3801_v53 = vpop.f32.mrb[17].mxu1  ;;  %v15050_v46 = vpack.c.bf16 %v4350_v63, %v4347_v54 }
 0x4b7   : > { %v4169_v61 = vmul.f32 %v14953_v9, %v3801_v53  ;;  %v3803_v41 = vpop.f32.mrb[18].mxu1  ;;  %v15053_v39 = vpack.c.bf16 %v4351_v8, %v4348_v1  ;;  %4927 = vmatpush1.bf16.msra.mxu0 %v13012_v14 }
 0x4b8   : > { %v4269_v3 = vadd.f32 %v14957_v0, %v4168_v62  ;;  %v4171_v49 = vmul.f32 %v14948_v47, %v3803_v41  ;;  %v3805_v42 = vpop.f32.mrb[19].mxu1  ;;  %4928 = vmatprep.subr.bf16.mxu0 %v13017_v2 }
 0x4b9   : > { %v4270_v57 = vadd.f32 %v14961_v15, %v4169_v61  ;;  %v4172_v43 = vmul.f32 %v14953_v9, %v3805_v42  ;;  %4805 = vmatprep.mubr.bf16.mxu0 %v15053_v39 }
 0x4ba   : > { %v4272_v56 = vadd.f32 %v14957_v0, %v4171_v49  ;;  %4806 = vmatmul.mubr.bf16.gmra.mrb[68].mxu0 %v15050_v46  ;;  %v4353_v30 = vmax.f32 %v4269_v3, 0.0 }
 0x4bb   : > { %v4273_v13 = vadd.f32 %v14961_v15, %v4172_v43  ;;  %4929 = vmatpush1.bf16.msra.mxu0 %v13015_v5  ;;  %v4354_v6 = vmax.f32 %v4270_v57, 0.0 }
 0x4bc   : > { %v4356_v20 = vmax.f32 %v4272_v56, 0.0  ;;  %4930 = vmatprep.subr.bf16.mxu0 %v13020_v33 }
 0x4bd   : > { %v4357_v50 = vmax.f32 %v4273_v13, 0.0  ;;  %v3809_v21 = vpop.f32.mrb[20].mxu1 }
 0x4be   : > { %v4174_v45 = vmul.f32 %v14948_v47, %v3809_v21  ;;  %v3811_v58 = vpop.f32.mrb[21].mxu1  ;;  %v15076_v51 = vpack.c.bf16 %v4356_v20, %v4353_v30 }
 0x4bf   : > { %v4175_v29 = vmul.f32 %v14953_v9, %v3811_v58  ;;  %v3813_v17 = vpop.f32.mrb[22].mxu1  ;;  %v15079_v7 = vpack.c.bf16 %v4357_v50, %v4354_v6  ;;  %4931 = vmatpush1.bf16.msra.mxu0 %v13018_v55 }
 0x4c0   : > { %v4275_v10 = vadd.f32 %v14957_v0, %v4174_v45  ;;  %v4177_v38 = vmul.f32 %v14948_v47, %v3813_v17  ;;  %v3815_v28 = vpop.f32.mrb[23].mxu1  ;;  %5377 = vmatprep.subr.bf16.mxu0 %v13023_v44 }
 0x4c1   : > { %v4276_v48 = vadd.f32 %v14961_v15, %v4175_v29  ;;  %v4178_v27 = vmul.f32 %v14953_v9, %v3815_v28  ;;  %4815 = vmatprep.mubr.bf16.mxu0 %v15079_v7 }
 0x4c2   : > { %v4278_v40 = vadd.f32 %v14957_v0, %v4177_v38  ;;  %4816 = vmatmul.mubr.bf16.gmra.mrb[72].mxu0 %v15076_v51  ;;  %v4359_v25 = vmax.f32 %v4275_v10, 0.0 }
 0x4c3   : > { %v4279_v52 = vadd.f32 %v14961_v15, %v4178_v27  ;;  %v4360_v31 = vmax.f32 %v4276_v48, 0.0 }
 0x4c4   : > { %v4362_v36 = vmax.f32 %v4278_v40, 0.0 }
 0x4c5   : > { %v4363_v26 = vmax.f32 %v4279_v52, 0.0  ;;  %v3819_v4 = vpop.f32.mrb[24].mxu1 }
 0x4c6   : > { %v4180_v18 = vmul.f32 %v14948_v47, %v3819_v4  ;;  %v3821_v23 = vpop.f32.mrb[25].mxu1  ;;  %v15090_v14 = vpack.c.bf16 %v4362_v36, %v4359_v25 }
 0x4c7   : > { %v4181_v54 = vmul.f32 %v14953_v9, %v3821_v23  ;;  %v3823_v63 = vpop.f32.mrb[26].mxu1  ;;  %v15093_v2 = vpack.c.bf16 %v4363_v26, %v4360_v31 }
 0x4c8   : > { %v4281_v1 = vadd.f32 %v14957_v0, %v4180_v18  ;;  %v4183_v8 = vmul.f32 %v14948_v47, %v3823_v63  ;;  %v3825_v37 = vpop.f32.mrb[27].mxu1 }
 0x4c9   : > { %v4282_v62 = vadd.f32 %v14961_v15, %v4181_v54  ;;  %v4184_v53 = vmul.f32 %v14953_v9, %v3825_v37  ;;  %4825 = vmatprep.mubr.bf16.mxu0 %v15093_v2 }
 0x4ca   : > { %v4284_v61 = vadd.f32 %v14957_v0, %v4183_v8  ;;  %4826 = vmatmul.mubr.bf16.gmra.mrb[76].mxu0 %v15090_v14  ;;  %v4365_v5 = vmax.f32 %v4281_v1, 0.0 }
 0x4cb   : > { %v4285_v41 = vadd.f32 %v14961_v15, %v4184_v53  ;;  %v4366_v49 = vmax.f32 %v4282_v62, 0.0 }
 0x4cc   : > { %v4368_v3 = vmax.f32 %v4284_v61, 0.0 }
 0x4cd   : > { %v4369_v42 = vmax.f32 %v4285_v41, 0.0  ;;  %v3829_v33 = vpop.f32.mrb[28].mxu1 }
 0x4ce   : > { %v4186_v57 = vmul.f32 %v14948_v47, %v3829_v33  ;;  %v3831_v43 = vpop.f32.mrb[29].mxu1  ;;  %v15104_v56 = vpack.c.bf16 %v4368_v3, %v4365_v5 }
 0x4cf   : > { %v4187_v13 = vmul.f32 %v14953_v9, %v3831_v43  ;;  %v3833_v55 = vpop.f32.mrb[30].mxu1  ;;  %v15107_v30 = vpack.c.bf16 %v4369_v42, %v4366_v49 }
 0x4d0   : > { %v4287_v20 = vadd.f32 %v14957_v0, %v4186_v57  ;;  %v4189_v44 = vmul.f32 %v14948_v47, %v3833_v55  ;;  %v3835_v6 = vpop.f32.mrb[31].mxu1 }
 0x4d1   : > { %v4288_v50 = vadd.f32 %v14961_v15, %v4187_v13  ;;  %v4190_v21 = vmul.f32 %v14953_v9, %v3835_v6  ;;  %4835 = vmatprep.mubr.bf16.mxu0 %v15107_v30 }
 0x4d2   : > { %v4290_v45 = vadd.f32 %v14957_v0, %v4189_v44  ;;  %4836 = vmatmul.mubr.bf16.gmra.mrb[80].mxu0 %v15104_v56  ;;  %v4371_v29 = vmax.f32 %v4287_v20, 0.0 }
 0x4d3   : > { %v4291_v58 = vadd.f32 %v14961_v15, %v4190_v21  ;;  %v4372_v10 = vmax.f32 %v4288_v50, 0.0 }
 0x4d4   : > { %v4374_v17 = vmax.f32 %v4290_v45, 0.0 }
 0x4d5   : > { %v4375_v38 = vmax.f32 %v4291_v58, 0.0  ;;  %v3839_v28 = vpop.f32.mrb[32].mxu1 }
 0x4d6   : > { %v4192_v48 = vmul.f32 %v14948_v47, %v3839_v28  ;;  %v3841_v27 = vpop.f32.mrb[33].mxu1  ;;  %v15118_v40 = vpack.c.bf16 %v4374_v17, %v4371_v29 }
 0x4d7   : > { %v4193_v52 = vmul.f32 %v14953_v9, %v3841_v27  ;;  %v3843_v25 = vpop.f32.mrb[34].mxu1  ;;  %v15121_v36 = vpack.c.bf16 %v4375_v38, %v4372_v10 }
 0x4d8   : > { %v4293_v31 = vadd.f32 %v14957_v0, %v4192_v48  ;;  %v4195_v26 = vmul.f32 %v14948_v47, %v3843_v25  ;;  %v3845_v4 = vpop.f32.mrb[35].mxu1 }
 0x4d9   : > { %v4294_v18 = vadd.f32 %v14961_v15, %v4193_v52  ;;  %v4196_v23 = vmul.f32 %v14953_v9, %v3845_v4  ;;  %4845 = vmatprep.mubr.bf16.mxu0 %v15121_v36 }
 0x4da   : > { %v4296_v54 = vadd.f32 %v14957_v0, %v4195_v26  ;;  %4846 = vmatmul.mubr.bf16.gmra.mrb[84].mxu0 %v15118_v40  ;;  %v4377_v1 = vmax.f32 %v4293_v31, 0.0 }
 0x4db   : > { %v4297_v63 = vadd.f32 %v14961_v15, %v4196_v23  ;;  %v4378_v37 = vmax.f32 %v4294_v18, 0.0 }
 0x4dc   : > { %v4380_v8 = vmax.f32 %v4296_v54, 0.0 }
 0x4dd   : > { %v4381_v62 = vmax.f32 %v4297_v63, 0.0  ;;  %v3849_v53 = vpop.f32.mrb[36].mxu1 }
 0x4de   : > { %v4198_v61 = vmul.f32 %v14948_v47, %v3849_v53  ;;  %v3851_v41 = vpop.f32.mrb[37].mxu1  ;;  %v15132_v5 = vpack.c.bf16 %v4380_v8, %v4377_v1 }
 0x4df   : > { %v4199_v3 = vmul.f32 %v14953_v9, %v3851_v41  ;;  %v3853_v49 = vpop.f32.mrb[38].mxu1  ;;  %v15135_v42 = vpack.c.bf16 %v4381_v62, %v4378_v37 }
 0x4e0   : > { %v4299_v33 = vadd.f32 %v14957_v0, %v4198_v61  ;;  %v4201_v57 = vmul.f32 %v14948_v47, %v3853_v49  ;;  %v3855_v43 = vpop.f32.mrb[39].mxu1 }
 0x4e1   : > { %v4300_v13 = vadd.f32 %v14961_v15, %v4199_v3  ;;  %v4202_v55 = vmul.f32 %v14953_v9, %v3855_v43  ;;  %4855 = vmatprep.mubr.bf16.mxu0 %v15135_v42 }
 0x4e2   : > { %v4302_v20 = vadd.f32 %v14957_v0, %v4201_v57  ;;  %4856 = vmatmul.mubr.bf16.gmra.mrb[88].mxu0 %v15132_v5  ;;  %v4383_v6 = vmax.f32 %v4299_v33, 0.0 }
 0x4e3   : > { %v4303_v44 = vadd.f32 %v14961_v15, %v4202_v55  ;;  %v4384_v21 = vmax.f32 %v4300_v13, 0.0 }
 0x4e4   : > { %v4386_v50 = vmax.f32 %v4302_v20, 0.0 }
 0x4e5   : > { %v4387_v45 = vmax.f32 %v4303_v44, 0.0  ;;  %v3859_v58 = vpop.f32.mrb[40].mxu1 }
 0x4e6   : > { %v4204_v29 = vmul.f32 %v14948_v47, %v3859_v58  ;;  %v3861_v17 = vpop.f32.mrb[41].mxu1  ;;  %v15146_v10 = vpack.c.bf16 %v4386_v50, %v4383_v6 }
 0x4e7   : > { %v4205_v38 = vmul.f32 %v14953_v9, %v3861_v17  ;;  %v3863_v28 = vpop.f32.mrb[42].mxu1  ;;  %v15149_v48 = vpack.c.bf16 %v4387_v45, %v4384_v21 }
 0x4e8   : > { %v4305_v27 = vadd.f32 %v14957_v0, %v4204_v29  ;;  %v4207_v52 = vmul.f32 %v14948_v47, %v3863_v28  ;;  %v3865_v25 = vpop.f32.mrb[43].mxu1 }
 0x4e9   : > { %v4306_v31 = vadd.f32 %v14961_v15, %v4205_v38  ;;  %v4208_v26 = vmul.f32 %v14953_v9, %v3865_v25  ;;  %4865 = vmatprep.mubr.bf16.mxu0 %v15149_v48 }
 0x4ea   : > { %v4308_v4 = vadd.f32 %v14957_v0, %v4207_v52  ;;  %4866 = vmatmul.mubr.bf16.gmra.mrb[92].mxu0 %v15146_v10  ;;  %v4389_v23 = vmax.f32 %v4305_v27, 0.0 }
 0x4eb   : > { %v4309_v18 = vadd.f32 %v14961_v15, %v4208_v26  ;;  %v4390_v63 = vmax.f32 %v4306_v31, 0.0 }
 0x4ec   : > { %v4392_v54 = vmax.f32 %v4308_v4, 0.0 }
 0x4ed   : > { %v4393_v1 = vmax.f32 %v4309_v18, 0.0  ;;  %v3869_v8 = vpop.f32.mrb[44].mxu1 }
 0x4ee   : > { %v4210_v37 = vmul.f32 %v14948_v47, %v3869_v8  ;;  %v3871_v62 = vpop.f32.mrb[45].mxu1  ;;  %v15160_v53 = vpack.c.bf16 %v4392_v54, %v4389_v23 }
 0x4ef   : > { %v4211_v61 = vmul.f32 %v14953_v9, %v3871_v62  ;;  %v3873_v41 = vpop.f32.mrb[46].mxu1  ;;  %v15163_v3 = vpack.c.bf16 %v4393_v1, %v4390_v63 }
 0x4f0   : > { %v4311_v49 = vadd.f32 %v14957_v0, %v4210_v37  ;;  %v4213_v33 = vmul.f32 %v14948_v47, %v3873_v41  ;;  %v3875_v57 = vpop.f32.mrb[47].mxu1 }
 0x4f1   : > { %v4312_v43 = vadd.f32 %v14961_v15, %v4211_v61  ;;  %v4214_v13 = vmul.f32 %v14953_v9, %v3875_v57  ;;  %4875 = vmatprep.mubr.bf16.mxu0 %v15163_v3 }
 0x4f2   : > { %v4314_v55 = vadd.f32 %v14957_v0, %v4213_v33  ;;  %4876 = vmatmul.mubr.bf16.gmra.mrb[96].mxu0 %v15160_v53  ;;  %v4395_v44 = vmax.f32 %v4311_v49, 0.0  ;;  %v17411_v49 = vld [vmem:[#allocation14_spill] sm:$0xff] }
 0x4f3   : > { %v4315_v20 = vadd.f32 %v14961_v15, %v4214_v13  ;;  %v4396_v50 = vmax.f32 %v4312_v43, 0.0  ;;  %v4139_v33 = vsub.s32 2, %v17411_v49 }
 0x4f4   : > { %v4398_v6 = vmax.f32 %v4314_v55, 0.0 }
 0x4f5   : > { %v4399_v21 = vmax.f32 %v4315_v20, 0.0  ;;  %v3879_v45 = vpop.f32.mrb[48].mxu1 }
 0x4f6   : > { %v4216_v58 = vmul.f32 %v14948_v47, %v3879_v45  ;;  %v3881_v29 = vpop.f32.mrb[49].mxu1  ;;  %v15174_v17 = vpack.c.bf16 %v4398_v6, %v4395_v44  ;;  %v15202_v45 = vrot.slane %v14939_v11, %v4139_v33 }
 0x4f7   : > { %v4217_v38 = vmul.f32 %v14953_v9, %v3881_v29  ;;  %v3883_v28 = vpop.f32.mrb[50].mxu1  ;;  %v15177_v27 = vpack.c.bf16 %v4399_v21, %v4396_v50 }
 0x4f8   : > { %v4317_v52 = vadd.f32 %v14957_v0, %v4216_v58  ;;  %v4219_v25 = vmul.f32 %v14948_v47, %v3883_v28  ;;  %v3885_v31 = vpop.f32.mrb[51].mxu1 }
 0x4f9   : > { %v4318_v26 = vadd.f32 %v14961_v15, %v4217_v38  ;;  %v4220_v4 = vmul.f32 %v14953_v9, %v3885_v31  ;;  %4885 = vmatprep.mubr.bf16.mxu0 %v15177_v27 }
 0x4fa   : > { %v4320_v18 = vadd.f32 %v14957_v0, %v4219_v25  ;;  %4886 = vmatmul.mubr.bf16.gmra.mrb[100].mxu0 %v15174_v17  ;;  %v4401_v54 = vmax.f32 %v4317_v52, 0.0 }
 0x4fb   : > { %v4321_v23 = vadd.f32 %v14961_v15, %v4220_v4  ;;  %v4402_v1 = vmax.f32 %v4318_v26, 0.0 }
 0x4fc   : > { %v4404_v63 = vmax.f32 %v4320_v18, 0.0 }
 0x4fd   : > { %v4405_v8 = vmax.f32 %v4321_v23, 0.0  ;;  %v3889_v37 = vpop.f32.mrb[52].mxu1 }
 0x4fe   : > { %v4222_v62 = vmul.f32 %v14948_v47, %v3889_v37  ;;  %v3891_v61 = vpop.f32.mrb[53].mxu1  ;;  %v15188_v41 = vpack.c.bf16 %v4404_v63, %v4401_v54 }
 0x4ff   : > { %v4223_v57 = vmul.f32 %v14953_v9, %v3891_v61  ;;  %v3893_v43 = vpop.f32.mrb[54].mxu1  ;;  %v15192_v13 = vpack.c.bf16 %v4405_v8, %v4402_v1  ;;  %v13021_v61 = vld [vmem:[%s17341_s8] ss:$8 sps:$4 sm:$0xff]  }
 0x500   : > { %v4323_v55 = vadd.f32 %v14957_v0, %v4222_v62  ;;  %v4225_v20 = vmul.f32 %v14948_v47, %v3893_v43  ;;  %v3895_v44 = vpop.f32.mrb[55].mxu1  ;;  %v15206_v47 = vrot.slane %v14944_v24, %v4139_v33  ;;  %v13026_v43 = vld [vmem:[%s17341_s8 + $0x14] ss:$8 sps:$4 sm:$0xff]  }
 0x501   : > { %v4324_v6 = vadd.f32 %v14961_v15, %v4223_v57  ;;  %v4226_v50 = vmul.f32 %v14953_v9, %v3895_v44  ;;  %4895 = vmatprep.mubr.bf16.mxu0 %v15192_v13 }
 0x502   : > { %v4326_v21 = vadd.f32 %v14957_v0, %v4225_v20  ;;  %4896 = vmatmul.mubr.bf16.gmra.mrb[104].mxu0 %v15188_v41  ;;  %v4407_v29 = vmax.f32 %v4323_v55, 0.0  ;;  %v13024_v20 = vld [vmem:[%s17341_s8 + $0x10] ss:$8 sps:$4 sm:$0xff]  }
 0x503   : > { %v4327_v58 = vadd.f32 %v14961_v15, %v4226_v50  ;;  %v4408_v28 = vmax.f32 %v4324_v6, 0.0  ;;  %v13029_v50 = vld [vmem:[%s17341_s8 + $0x24] ss:$8 sps:$4 sm:$0xff]  }
 0x504   : > { %v4410_v38 = vmax.f32 %v4326_v21, 0.0 }
 0x505   : > { %v4411_v52 = vmax.f32 %v4327_v58, 0.0  ;;  %v3932_v25 = vpop.f32.mrb[56].mxu1 }
 0x506   : > { %v4146_v9 = vmul.f32 %v15202_v45, %v3932_v25  ;;  %v3934_v31 = vpop.f32.mrb[57].mxu1  ;;  %v15209_v26 = vpack.c.bf16 %v4410_v38, %v4407_v29 }
 0x507   : > { %v3935_v0 = vpop.f32.mrb[58].mxu1  ;;  %v15211_v4 = vpack.c.bf16 %v4411_v52, %v4408_v28  ;;  %v13027_v52 = vld [vmem:[%s17341_s8 + $0x20] ss:$8 sps:$4 sm:$0xff]  }
 0x508   : > { %v4247_v11 = vadd.f32 %v15206_v47, %v4146_v9  ;;  %v4149_v15 = vmul.f32 %v15202_v45, %v3935_v0  ;;  %v3937_v18 = vpop.f32.mrb[59].mxu1  ;;  %v13032_v0 = vld [vmem:[%s17341_s8 + $0x34] ss:$8 sps:$4 sm:$0xff]  }
 0x509   : > { %4905 = vmatprep.mubr.bf16.mxu0 %v15211_v4 }
 0x50a   : > { %v4250_v24 = vadd.f32 %v15206_v47, %v4149_v15  ;;  %4906 = vmatmul.mubr.bf16.gmra.mrb[108].mxu0 %v15209_v26  ;;  %v4331_v23 = vmax.f32 %v4247_v11, 0.0  ;;  %v13030_v15 = vld [vmem:[%s17341_s8 + $0x30] ss:$8 sps:$4 sm:$0xff]  }
 0x50b   : > { %4948 = vmatprep.mubr.bf16.mxu0 %v17404_v12 }
 0x50c   : > { %v4334_v54 = vmax.f32 %v4250_v24, 0.0 }
 0x50d   : > { %v3940_v63 = vpop.f32.mrb[60].mxu1 }
 0x50e   : > { %v15219_v1 = vpack.c.bf16 %v4334_v54, %v4331_v23  ;;  %v4152_v8 = vmul.f32 %v15202_v45, %v3940_v63  ;;  %v3942_v37 = vpop.f32.mrb[61].mxu1  ;;  %v13035_v23 = vld [vmem:[%s17341_s8 + $0x44] ss:$8 sps:$4 sm:$0xff]  }
 0x50f   : > { %v3943_v62 = vpop.f32.mrb[62].mxu1 }
 0x510   : > { %v4253_v49 = vadd.f32 %v15206_v47, %v4152_v8  ;;  %v4155_v33 = vmul.f32 %v15202_v45, %v3943_v62  ;;  %v3945_v57 = vpop.f32.mrb[63].mxu1 }
 0x512   : > { %v4256_v55 = vadd.f32 %v15206_v47, %v4155_v33  ;;  %4949 = vmatmul.mubr.bf16.vlgmr.msra.gmra.mrb[56].mxu0 %v15219_v1  ;;  %v4337_v44 = vmax.f32 %v4253_v49, 0.0 }
 0x513   : > { %5378 = vmatpush1.bf16.msra.mxu0 %v13021_v61  ;;  %4958 = vmatprep.mubr.bf16.mxu0 %v17404_v12  ;;  %v13033_v61 = vld [vmem:[%s17341_s8 + $0x40] ss:$8 sps:$4 sm:$0xff]  }
 0x514   : > { %v4340_v6 = vmax.f32 %v4256_v55, 0.0  ;;  %5379 = vmatprep.subr.bf16.mxu0 %v13026_v43  ;;  %v13038_v43 = vld [vmem:[%s17341_s8 + $0x54] ss:$8 sps:$4 sm:$0xff]  }
 0x515   : > { %v3948_v21 = vpop.f32.mrb[64].mxu1 }
 0x516   : > { %v4158_v58 = vmul.f32 %v15202_v45, %v3948_v21  ;;  %v3950_v29 = vpop.f32.mrb[65].mxu1  ;;  %v15240_v38 = vpack.c.bf16 %v4340_v6, %v4337_v44 }
 0x517   : > { %v3951_v28 = vpop.f32.mrb[66].mxu1  ;;  %5380 = vmatpush1.bf16.msra.mxu0 %v13024_v20  ;;  %v13036_v20 = vld [vmem:[%s17341_s8 + $0x50] ss:$8 sps:$4 sm:$0xff]  }
 0x518   : > { %v4259_v25 = vadd.f32 %v15206_v47, %v4158_v58  ;;  %v4161_v9 = vmul.f32 %v15202_v45, %v3951_v28  ;;  %v3953_v31 = vpop.f32.mrb[67].mxu1  ;;  %5381 = vmatprep.subr.bf16.mxu0 %v13029_v50  ;;  %v13041_v50 = vld [vmem:[%s17341_s8 + $0x64] ss:$8 sps:$4 sm:$0xff]  }
 0x51a   : > { %v4262_v11 = vadd.f32 %v15206_v47, %v4161_v9  ;;  %4959 = vmatmul.mubr.bf16.gmra.mrb[60].mxu0 %v15240_v38  ;;  %v4343_v18 = vmax.f32 %v4259_v25, 0.0  ;;  %v13039_v25 = vld [vmem:[%s17341_s8 + $0x60] ss:$8 sps:$4 sm:$0xff]  }
 0x51b   : > { %4968 = vmatprep.mubr.bf16.mxu0 %v17404_v12  ;;  %5382 = vmatpush1.bf16.msra.mxu0 %v13027_v52 }
 0x51c   : > { %v4346_v24 = vmax.f32 %v4262_v11, 0.0  ;;  %5383 = vmatprep.subr.bf16.mxu0 %v13032_v0  ;;  %v13044_v11 = vld [vmem:[%s17341_s8 + $0x74] ss:$8 sps:$4 sm:$0xff]  }
 0x51d   : > { %v3956_v54 = vpop.f32.mrb[68].mxu1 }
 0x51e   : > { %v4164_v63 = vmul.f32 %v15202_v45, %v3956_v54  ;;  %v3958_v8 = vpop.f32.mrb[69].mxu1  ;;  %v15260_v37 = vpack.c.bf16 %v4346_v24, %v4343_v18  ;;  %v13042_v18 = vld [vmem:[%s17341_s8 + $0x70] ss:$8 sps:$4 sm:$0xff]   ;;  %v13047_v54 = vld [vmem:[%s17341_s8 + $0x84] ss:$8 sps:$4 sm:$0xff]  }
 0x51f   : > { %v3959_v62 = vpop.f32.mrb[70].mxu1  ;;  %5384 = vmatpush1.bf16.msra.mxu0 %v13030_v15 }
 0x520   : > { %v4265_v49 = vadd.f32 %v15206_v47, %v4164_v63  ;;  %v4167_v33 = vmul.f32 %v15202_v45, %v3959_v62  ;;  %v3961_v57 = vpop.f32.mrb[71].mxu1  ;;  %5385 = vmatprep.subr.bf16.mxu0 %v13035_v23 }
 0x522   : > { %v4268_v55 = vadd.f32 %v15206_v47, %v4167_v33  ;;  %4969 = vmatmul.mubr.bf16.gmra.mrb[64].mxu0 %v15260_v37  ;;  %v4349_v44 = vmax.f32 %v4265_v49, 0.0  ;;  %v13045_v33 = vld [vmem:[%s17341_s8 + $0x80] ss:$8 sps:$4 sm:$0xff]  }
 0x523   : > { %4978 = vmatprep.mubr.bf16.mxu0 %v17404_v12  ;;  %5386 = vmatpush1.bf16.msra.mxu0 %v13033_v61 }
 0x524   : > { %v4352_v6 = vmax.f32 %v4268_v55, 0.0  ;;  %5387 = vmatprep.subr.bf16.mxu0 %v13038_v43 }
 0x525   : > { %v3964_v21 = vpop.f32.mrb[72].mxu1 }
 0x526   : > { %v4170_v58 = vmul.f32 %v15202_v45, %v3964_v21  ;;  %v3966_v29 = vpop.f32.mrb[73].mxu1  ;;  %v15280_v28 = vpack.c.bf16 %v4352_v6, %v4349_v44  ;;  %v13048_v6 = vld [vmem:[%s17341_s8 + $0x90] ss:$8 sps:$4 sm:$0xff]  }
 0x527   : > { %v3967_v52 = vpop.f32.mrb[74].mxu1  ;;  %5388 = vmatpush1.bf16.msra.mxu0 %v13036_v20  ;;  %v13050_v20 = vld [vmem:[%s17341_s8 + $0x94] ss:$8 sps:$4 sm:$0xff]  }
 0x528   : > { %v4271_v9 = vadd.f32 %v15206_v47, %v4170_v58  ;;  %v4173_v31 = vmul.f32 %v15202_v45, %v3967_v52  ;;  %v3969_v0 = vpop.f32.mrb[75].mxu1  ;;  %5389 = vmatprep.subr.bf16.mxu0 %v13041_v50  ;;  %v13053_v58 = vld [vmem:[%s17341_s8 + $0xa4] ss:$8 sps:$4 sm:$0xff]  }
 0x529   : > { %v13051_v0 = vld [vmem:[%s17341_s8 + $0xa0] ss:$8 sps:$4 sm:$0xff]  }
 0x52a   : > { %v4274_v15 = vadd.f32 %v15206_v47, %v4173_v31  ;;  %4979 = vmatmul.mubr.bf16.gmra.mrb[68].mxu0 %v15280_v28  ;;  %v4355_v24 = vmax.f32 %v4271_v9, 0.0 }
 0x52b   : > { %4988 = vmatprep.mubr.bf16.mxu0 %v17404_v12  ;;  %5390 = vmatpush1.bf16.msra.mxu0 %v13039_v25 }
 0x52c   : > { %v4358_v23 = vmax.f32 %v4274_v15, 0.0  ;;  %5391 = vmatprep.subr.bf16.mxu0 %v13044_v11 }
 0x52d   : > { %v3972_v63 = vpop.f32.mrb[76].mxu1 }
 0x52e   : > { %v4176_v8 = vmul.f32 %v15202_v45, %v3972_v63  ;;  %v3974_v62 = vpop.f32.mrb[77].mxu1  ;;  %v15300_v61 = vpack.c.bf16 %v4358_v23, %v4355_v24  ;;  %v13056_v24 = vld [vmem:[%s17341_s8 + $0xb4] ss:$8 sps:$4 sm:$0xff]  }
 0x52f   : > { %v3975_v49 = vpop.f32.mrb[78].mxu1  ;;  %5392 = vmatpush1.bf16.msra.mxu0 %v13042_v18  ;;  %v13059_v62 = vld [vmem:[%s17341_s8 + $0xc4] ss:$8 sps:$4 sm:$0xff]  }
 0x530   : > { %v4277_v57 = vadd.f32 %v15206_v47, %v4176_v8  ;;  %v4179_v43 = vmul.f32 %v15202_v45, %v3975_v49  ;;  %v3977_v55 = vpop.f32.mrb[79].mxu1  ;;  %5393 = vmatprep.subr.bf16.mxu0 %v13047_v54  ;;  %v13054_v54 = vld [vmem:[%s17341_s8 + $0xb0] ss:$8 sps:$4 sm:$0xff]  }
 0x532   : > { %v4280_v44 = vadd.f32 %v15206_v47, %v4179_v43  ;;  %4989 = vmatmul.mubr.bf16.gmra.mrb[72].mxu0 %v15300_v61  ;;  %v4361_v50 = vmax.f32 %v4277_v57, 0.0 }
 0x533   : > { %4998 = vmatprep.mubr.bf16.mxu0 %v17404_v12  ;;  %5394 = vmatpush1.bf16.msra.mxu0 %v13045_v33 }
 0x534   : > { %v4364_v21 = vmax.f32 %v4280_v44, 0.0  ;;  %5395 = vmatprep.subr.bf16.mxu0 %v13050_v20  ;;  %v13057_v20 = vld [vmem:[%s17341_s8 + $0xc0] ss:$8 sps:$4 sm:$0xff]  }
 0x535   : > { %v3980_v29 = vpop.f32.mrb[80].mxu1 }
 0x536   : > { %v4182_v52 = vmul.f32 %v15202_v45, %v3980_v29  ;;  %v3982_v25 = vpop.f32.mrb[81].mxu1  ;;  %v15320_v9 = vpack.c.bf16 %v4364_v21, %v4361_v50  ;;  %v13062_v21 = vld [vmem:[%s17341_s8 + $0xd4] ss:$8 sps:$4 sm:$0xff]   ;;  %v13060_v29 = vld [vmem:[%s17341_s8 + $0xd0] ss:$8 sps:$4 sm:$0xff]  }
 0x537   : > { %v3983_v31 = vpop.f32.mrb[82].mxu1  ;;  %5396 = vmatpush1.bf16.msra.mxu0 %v13048_v6 }
 0x538   : > { %v4283_v11 = vadd.f32 %v15206_v47, %v4182_v52  ;;  %v4185_v15 = vmul.f32 %v15202_v45, %v3983_v31  ;;  %v3985_v18 = vpop.f32.mrb[83].mxu1  ;;  %5397 = vmatprep.subr.bf16.mxu0 %v13053_v58  ;;  %v13065_v31 = vld [vmem:[%s17341_s8 + $0xe4] ss:$8 sps:$4 sm:$0xff]  }
 0x53a   : > { %v4286_v23 = vadd.f32 %v15206_v47, %v4185_v15  ;;  %4999 = vmatmul.mubr.bf16.gmra.mrb[76].mxu0 %v15320_v9  ;;  %v4367_v63 = vmax.f32 %v4283_v11, 0.0 }
 0x53b   : > { %5008 = vmatprep.mubr.bf16.mxu0 %v17404_v12  ;;  %5398 = vmatpush1.bf16.msra.mxu0 %v13051_v0 }
 0x53c   : > { %v4370_v8 = vmax.f32 %v4286_v23, 0.0  ;;  %5399 = vmatprep.subr.bf16.mxu0 %v13056_v24  ;;  %v13063_v23 = vld [vmem:[%s17341_s8 + $0xe0] ss:$8 sps:$4 sm:$0xff]  }
 0x53d   : > { %v3988_v49 = vpop.f32.mrb[84].mxu1 }
 0x53e   : > { %v4188_v33 = vmul.f32 %v15202_v45, %v3988_v49  ;;  %v3990_v57 = vpop.f32.mrb[85].mxu1  ;;  %v15340_v43 = vpack.c.bf16 %v4370_v8, %v4367_v63 }
 0x53f   : > { %v3991_v55 = vpop.f32.mrb[86].mxu1  ;;  %5400 = vmatpush1.bf16.msra.mxu0 %v13054_v54 }
 0x540   : > { %v4289_v44 = vadd.f32 %v15206_v47, %v4188_v33  ;;  %v4191_v6 = vmul.f32 %v15202_v45, %v3991_v55  ;;  %v3993_v50 = vpop.f32.mrb[87].mxu1  ;;  %5401 = vmatprep.subr.bf16.mxu0 %v13059_v62  ;;  %v13068_v62 = vld [vmem:[%s17341_s8 + $0xf4] ss:$8 sps:$4 sm:$0xff]   ;;  %v13066_v33 = vld [vmem:[%s17341_s8 + $0xf0] ss:$8 sps:$4 sm:$0xff]  }
 0x542   : > { %v4292_v58 = vadd.f32 %v15206_v47, %v4191_v6  ;;  %5009 = vmatmul.mubr.bf16.gmra.mrb[80].mxu0 %v15340_v43  ;;  %v4373_v52 = vmax.f32 %v4289_v44, 0.0 }
 0x543   : > { %5018 = vmatprep.mubr.bf16.mxu0 %v17404_v12  ;;  %5402 = vmatpush1.bf16.msra.mxu0 %v13057_v20  ;;  %v13071_v20 = vld [vmem:[%s17341_s8 + $0x104] ss:$8 sps:$4 sm:$0xff]  }
 0x544   : > { %v4376_v25 = vmax.f32 %v4292_v58, 0.0  ;;  %5403 = vmatprep.subr.bf16.mxu0 %v13062_v21 }
 0x545   : > { %v3996_v0 = vpop.f32.mrb[88].mxu1 }
 0x546   : > { %v4194_v11 = vmul.f32 %v15202_v45, %v3996_v0  ;;  %v3998_v15 = vpop.f32.mrb[89].mxu1  ;;  %v15360_v18 = vpack.c.bf16 %v4376_v25, %v4373_v52 }
 0x547   : > { %v3999_v24 = vpop.f32.mrb[90].mxu1  ;;  %5404 = vmatpush1.bf16.msra.mxu0 %v13060_v29 }
 0x548   : > { %v4295_v54 = vadd.f32 %v15206_v47, %v4194_v11  ;;  %v4197_v63 = vmul.f32 %v15202_v45, %v3999_v24  ;;  %v4001_v8 = vpop.f32.mrb[91].mxu1  ;;  %5405 = vmatprep.subr.bf16.mxu0 %v13065_v31 }
 0x54a   : > { %v4298_v49 = vadd.f32 %v15206_v47, %v4197_v63  ;;  %5019 = vmatmul.mubr.bf16.gmra.mrb[84].mxu0 %v15360_v18  ;;  %v4379_v57 = vmax.f32 %v4295_v54, 0.0 }
 0x54b   : > { %5028 = vmatprep.mubr.bf16.mxu0 %v17404_v12  ;;  %5406 = vmatpush1.bf16.msra.mxu0 %v13063_v23 }
 0x54c   : > { %v4382_v55 = vmax.f32 %v4298_v49, 0.0  ;;  %5407 = vmatprep.subr.bf16.mxu0 %v13068_v62 }
 0x54d   : > { %v4004_v44 = vpop.f32.mrb[92].mxu1 }
 0x54e   : > { %v4200_v6 = vmul.f32 %v15202_v45, %v4004_v44  ;;  %v4006_v50 = vpop.f32.mrb[93].mxu1  ;;  %v15380_v21 = vpack.c.bf16 %v4382_v55, %v4379_v57 }
 0x54f   : > { %v4007_v58 = vpop.f32.mrb[94].mxu1  ;;  %5408 = vmatpush1.bf16.msra.mxu0 %v13066_v33 }
 0x550   : > { %v4301_v29 = vadd.f32 %v15206_v47, %v4200_v6  ;;  %v4203_v52 = vmul.f32 %v15202_v45, %v4007_v58  ;;  %v4009_v25 = vpop.f32.mrb[95].mxu1  ;;  %5550 = vmatprep.subr.bf16.mxu0 %v13071_v20 }
 0x552   : > { %v4304_v31 = vadd.f32 %v15206_v47, %v4203_v52  ;;  %5029 = vmatmul.mubr.bf16.gmra.mrb[88].mxu0 %v15380_v21  ;;  %v4385_v0 = vmax.f32 %v4301_v29, 0.0 }
 0x553   : > { %5038 = vmatprep.mubr.bf16.mxu0 %v17404_v12 }
 0x554   : > { %v4388_v11 = vmax.f32 %v4304_v31, 0.0 }
 0x555   : > { %v4012_v15 = vpop.f32.mrb[96].mxu1 }
 0x556   : > { %v4206_v24 = vmul.f32 %v15202_v45, %v4012_v15  ;;  %v4014_v23 = vpop.f32.mrb[97].mxu1  ;;  %v15388_v54 = vpack.c.bf16 %v4388_v11, %v4385_v0 }
 0x557   : > { %v4015_v63 = vpop.f32.mrb[98].mxu1 }
 0x558   : > { %v4307_v8 = vadd.f32 %v15206_v47, %v4206_v24  ;;  %v4209_v62 = vmul.f32 %v15202_v45, %v4015_v63  ;;  %v4017_v49 = vpop.f32.mrb[99].mxu1 }
 0x55a   : > { %v4310_v33 = vadd.f32 %v15206_v47, %v4209_v62  ;;  %5039 = vmatmul.mubr.bf16.gmra.mrb[92].mxu0 %v15388_v54  ;;  %v4391_v57 = vmax.f32 %v4307_v8, 0.0 }
 0x55b   : > { %5048 = vmatprep.mubr.bf16.mxu0 %v17404_v12 }
 0x55c   : > { %v4394_v55 = vmax.f32 %v4310_v33, 0.0 }
 0x55d   : > { %v4020_v20 = vpop.f32.mrb[100].mxu1 }
 0x55e   : > { %v4212_v44 = vmul.f32 %v15202_v45, %v4020_v20  ;;  %v4022_v6 = vpop.f32.mrb[101].mxu1  ;;  %v15396_v50 = vpack.c.bf16 %v4394_v55, %v4391_v57 }
 0x55f   : > { %v4023_v58 = vpop.f32.mrb[102].mxu1 }
 0x560   : > { %v4313_v29 = vadd.f32 %v15206_v47, %v4212_v44  ;;  %v4215_v52 = vmul.f32 %v15202_v45, %v4023_v58  ;;  %v4025_v25 = vpop.f32.mrb[103].mxu1 }
 0x562   : > { %v4316_v31 = vadd.f32 %v15206_v47, %v4215_v52  ;;  %5049 = vmatmul.mubr.bf16.gmra.mrb[96].mxu0 %v15396_v50  ;;  %v4397_v0 = vmax.f32 %v4313_v29, 0.0 }
 0x563   : > { %5058 = vmatprep.mubr.bf16.mxu0 %v17404_v12 }
 0x564   : > { %v4400_v11 = vmax.f32 %v4316_v31, 0.0 }
 0x565   : > { %v4028_v15 = vpop.f32.mrb[104].mxu1 }
 0x566   : > { %v4218_v24 = vmul.f32 %v15202_v45, %v4028_v15  ;;  %v4030_v23 = vpop.f32.mrb[105].mxu1  ;;  %v15404_v63 = vpack.c.bf16 %v4400_v11, %v4397_v0 }
 0x567   : > { %v4031_v8 = vpop.f32.mrb[106].mxu1 }
 0x568   : > { %v4319_v62 = vadd.f32 %v15206_v47, %v4218_v24  ;;  %v4221_v49 = vmul.f32 %v15202_v45, %v4031_v8  ;;  %v4033_v33 = vpop.f32.mrb[107].mxu1  ;;  %v13069_v8 = vld [vmem:[%s17341_s8 + $0x100] ss:$8 sps:$4 sm:$0xff]  }
 0x569   : > { %v13081_v33 = vld [vmem:[%s17341_s8 + $0x140] ss:$8 sps:$4 sm:$0xff]  }
 0x56a   : > { %v4322_v57 = vadd.f32 %v15206_v47, %v4221_v49  ;;  %5059 = vmatmul.mubr.bf16.gmra.mrb[100].mxu0 %v15404_v63  ;;  %v4403_v55 = vmax.f32 %v4319_v62, 0.0  ;;  %v13075_v62 = vld [vmem:[%s17341_s8 + $0x120] ss:$8 sps:$4 sm:$0xff]   ;;  %v13083_v49 = vld [vmem:[%s17341_s8 + $0x144] ss:$8 sps:$4 sm:$0xff]  }
 0x56b   : > { %5068 = vmatprep.mubr.bf16.mxu0 %v17404_v12 }
 0x56c   : > { %v4406_v20 = vmax.f32 %v4322_v57, 0.0  ;;  %v13089_v57 = vld [vmem:[%s17341_s8 + $0x164] ss:$8 sps:$4 sm:$0xff]  }
 0x56d   : > { %v4036_v44 = vpop.f32.mrb[108].mxu1 }
 0x56e   : > { %v4224_v6 = vmul.f32 %v15202_v45, %v4036_v44  ;;  %v4038_v58 = vpop.f32.mrb[109].mxu1  ;;  %v15412_v29 = vpack.c.bf16 %v4406_v20, %v4403_v55  ;;  %v13087_v55 = vld [vmem:[%s17341_s8 + $0x160] ss:$8 sps:$4 sm:$0xff]  }
 0x56f   : > { %v4039_v52 = vpop.f32.mrb[110].mxu1 }
 0x570   : > { %v4325_v25 = vadd.f32 %v15206_v47, %v4224_v6  ;;  %v4227_v31 = vmul.f32 %v15202_v45, %v4039_v52  ;;  %v4041_v0 = vpop.f32.mrb[111].mxu1  ;;  %v13074_v45 = vld [vmem:[%s17341_s8 + $0x114] ss:$8 sps:$4 sm:$0xff]  }
 0x572   : > { %v4328_v11 = vadd.f32 %v15206_v47, %v4227_v31  ;;  %5069 = vmatmul.mubr.bf16.gmra.mrb[104].mxu0 %v15412_v29  ;;  %v4409_v15 = vmax.f32 %v4325_v25, 0.0  ;;  %v13072_v47 = vld [vmem:[%s17341_s8 + $0x110] ss:$8 sps:$4 sm:$0xff]  }
 0x573   : > { %5078 = vmatprep.mubr.bf16.mxu0 %v17404_v12 }
 0x574   : > { %v4412_v24 = vmax.f32 %v4328_v11, 0.0 }
 0x576   : > { %v15419_v23 = vpack.c.bf16 %v4412_v24, %v4409_v15 }
 0x57a   : > { %5079 = vmatmul.mubr.bf16.gmra.mrb[108].mxu0 %v15419_v23 }
 0x57b   : > { %5409 = vmatprep.mubr.bf16.mxu0 %v14975_v32  ;;  %v13077_v32 = vld [vmem:[%s17341_s8 + $0x124] ss:$8 sps:$4 sm:$0xff]  }
 0x582   : > { %5410 = vmatmul.mubr.bf16.vlgmr.msra.gmra.mrb[112].mxu0 %v14971_v19  ;;  %v13080_v19 = vld [vmem:[%s17341_s8 + $0x134] ss:$8 sps:$4 sm:$0xff]  }
 0x583   : > { %5419 = vmatprep.mubr.bf16.mxu0 %v15001_v22  ;;  %5551 = vmatpush1.bf16.msra.mxu0 %v13069_v8  ;;  %v13078_v22 = vld [vmem:[%s17341_s8 + $0x130] ss:$8 sps:$4 sm:$0xff]  }
 0x584   : > { %5552 = vmatprep.subr.bf16.mxu0 %v13074_v45 }
 0x587   : > { %5553 = vmatpush1.bf16.msra.mxu0 %v13072_v47 }
 0x588   : > { %5554 = vmatprep.subr.bf16.mxu0 %v13077_v32 }
 0x58a   : > { %5420 = vmatmul.mubr.bf16.gmra.mrb[116].mxu0 %v14998_v34  ;;  %v13086_v34 = vld [vmem:[%s17341_s8 + $0x154] ss:$8 sps:$4 sm:$0xff]  }
 0x58b   : > { %5429 = vmatprep.mubr.bf16.mxu0 %v15027_v35  ;;  %5555 = vmatpush1.bf16.msra.mxu0 %v13075_v62  ;;  %v13084_v35 = vld [vmem:[%s17341_s8 + $0x150] ss:$8 sps:$4 sm:$0xff]  }
 0x58c   : > { %5556 = vmatprep.subr.bf16.mxu0 %v13080_v19 }
 0x58f   : > { %5557 = vmatpush1.bf16.msra.mxu0 %v13078_v22 }
 0x590   : > { %5558 = vmatprep.subr.bf16.mxu0 %v13083_v49 }
 0x592   : > { %5430 = vmatmul.mubr.bf16.gmra.mrb[120].mxu0 %v15024_v60  ;;  %v13092_v60 = vld [vmem:[%s17341_s8 + $0x174] ss:$8 sps:$4 sm:$0xff]  }
 0x593   : > { %5439 = vmatprep.mubr.bf16.mxu0 %v15053_v39  ;;  %5559 = vmatpush1.bf16.msra.mxu0 %v13081_v33  ;;  %v13090_v39 = vld [vmem:[%s17341_s8 + $0x170] ss:$8 sps:$4 sm:$0xff]  }
 0x594   : > { %5560 = vmatprep.subr.bf16.mxu0 %v13086_v34 }
 0x597   : > { %5561 = vmatpush1.bf16.msra.mxu0 %v13084_v35 }
 0x598   : > { %5562 = vmatprep.subr.bf16.mxu0 %v13089_v57 }
 0x59a   : > { %5440 = vmatmul.mubr.bf16.gmra.mrb[124].mxu0 %v15050_v46  ;;  %v13093_v46 = vld [vmem:[%s17342_s9 + $0x90] ss:$8 sps:$4 sm:$0xff]  }
 0x59b   : > { %5449 = vmatprep.mubr.bf16.mxu0 %v15079_v7  ;;  %5563 = vmatpush1.bf16.msra.mxu0 %v13087_v55  ;;  %v13098_v7 = vld [vmem:[%s17342_s9 + $0xa4] ss:$8 sps:$4 sm:$0xff]  }
 0x59c   : > { %5564 = vmatprep.subr.bf16.mxu0 %v13092_v60 }
 0x59f   : > { %5565 = vmatpush1.bf16.msra.mxu0 %v13090_v39 }
 0x5a0   : > { %8334 = vmatprep.subr.bf16.mxu0 %v17404_v12 }
 0x5a2   : > { %5450 = vmatmul.mubr.bf16.gmra.mrb[128].mxu0 %v15076_v51  ;;  %v13095_v51 = vld [vmem:[%s17342_s9 + $0x94] ss:$8 sps:$4 sm:$0xff]  }
 0x5a3   : > { %5459 = vmatprep.mubr.bf16.mxu0 %v15093_v2  ;;  %6645 = vmatprep.subr.bf16.mxu1 %v13095_v51  ;;  %v13101_v2 = vld [vmem:[%s17342_s9 + $0xb4] ss:$8 sps:$4 sm:$0xff]  }
 0x5a4   : > { %6646 = vmatpush1.bf16.msra.mxu1 %v13093_v46 }
 0x5a5   : > { %6647 = vmatprep.subr.bf16.mxu1 %v13098_v7 }
 0x5aa   : > { %5460 = vmatmul.mubr.bf16.gmra.mrb[132].mxu0 %v15090_v14  ;;  %v13096_v14 = vld [vmem:[%s17342_s9 + $0xa0] ss:$8 sps:$4 sm:$0xff]  }
 0x5ab   : > { %5469 = vmatprep.mubr.bf16.mxu0 %v15107_v30  ;;  %6648 = vmatpush1.bf16.msra.mxu1 %v13096_v14  ;;  %v13104_v30 = vld [vmem:[%s17342_s9 + $0xc4] ss:$8 sps:$4 sm:$0xff]  }
 0x5ac   : > { %6649 = vmatprep.subr.bf16.mxu1 %v13101_v2 }
 0x5b2   : > { %5470 = vmatmul.mubr.bf16.gmra.mrb[136].mxu0 %v15104_v56  ;;  %v13099_v56 = vld [vmem:[%s17342_s9 + $0xb0] ss:$8 sps:$4 sm:$0xff]  }
 0x5b3   : > { %5479 = vmatprep.mubr.bf16.mxu0 %v15121_v36  ;;  %6650 = vmatpush1.bf16.msra.mxu1 %v13099_v56  ;;  %v13102_v36 = vld [vmem:[%s17342_s9 + $0xc0] ss:$8 sps:$4 sm:$0xff]  }
 0x5b4   : > { %6651 = vmatprep.subr.bf16.mxu1 %v13104_v30 }
 0x5b7   : > { %6652 = vmatpush1.bf16.msra.mxu1 %v13102_v36 }
 0x5ba   : > { %5480 = vmatmul.mubr.bf16.gmra.mrb[140].mxu0 %v15118_v40 }
 0x5bb   : > { %5489 = vmatprep.mubr.bf16.mxu0 %v15135_v42  ;;  %v13107_v42 = vld [vmem:[%s17342_s9 + $0xd4] ss:$8 sps:$4 sm:$0xff]  }
 0x5bc   : > { %6653 = vmatprep.subr.bf16.mxu1 %v13107_v42 }
 0x5c2   : > { %5490 = vmatmul.mubr.bf16.gmra.mrb[144].mxu0 %v15132_v5 }
 0x5c3   : > { %5499 = vmatprep.mubr.bf16.mxu0 %v15149_v48 }
 0x5ca   : > { %5500 = vmatmul.mubr.bf16.gmra.mrb[148].mxu0 %v15146_v10 }
 0x5cb   : > { %5509 = vmatprep.mubr.bf16.mxu0 %v15163_v3  ;;  %v13110_v3 = vld [vmem:[%s17342_s9 + $0xe4] ss:$8 sps:$4 sm:$0xff]  }
 0x5d2   : > { %5510 = vmatmul.mubr.bf16.gmra.mrb[152].mxu0 %v15160_v53  ;;  %v13105_v53 = vld [vmem:[%s17342_s9 + $0xd0] ss:$8 sps:$4 sm:$0xff]  }
 0x5d3   : > { %5519 = vmatprep.mubr.bf16.mxu0 %v15177_v27  ;;  %6654 = vmatpush1.bf16.msra.mxu1 %v13105_v53  ;;  %v13108_v27 = vld [vmem:[%s17342_s9 + $0xe0] ss:$8 sps:$4 sm:$0xff]  }
 0x5d4   : > { %6655 = vmatprep.subr.bf16.mxu1 %v13110_v3  ;;  %v13111_v3 = vld [vmem:[%s17342_s9 + $0xf0] ss:$8 sps:$4 sm:$0xff]  }
 0x5d7   : > { %6656 = vmatpush1.bf16.msra.mxu1 %v13108_v27  ;;  %v13114_v27 = vld [vmem:[%s17342_s9 + $0x100] ss:$8 sps:$4 sm:$0xff]  }
 0x5da   : > { %5520 = vmatmul.mubr.bf16.gmra.mrb[156].mxu0 %v15174_v17 }
 0x5db   : > { %5529 = vmatprep.mubr.bf16.mxu0 %v15192_v13 }
 0x5e2   : > { %5530 = vmatmul.mubr.bf16.gmra.mrb[160].mxu0 %v15188_v41 }
 0x5e3   : > { %5539 = vmatprep.mubr.bf16.mxu0 %v15211_v4 }
 0x5e5   : > { %v15516_v40 = vpop.f32.mrb[56].mxu0 }
 0x5e6   : > { %v15521_v5 = vpop.f32.mrb[57].mxu0 }
 0x5e7   : > { %v15526_v10 = vpop.f32.mrb[58].mxu0 }
 0x5e8   : > { %v15528_v48 = vpop.f32.mrb[59].mxu0 }
 0x5ea   : > { %5540 = vmatmul.mubr.bf16.gmra.mrb[164].mxu0 %v15209_v26 }
 0x5eb   : > { %5582 = vmatprep.mubr.bf16.mxu0 %v17404_v12 }
 0x5ed   : > { %v15538_v17 = vpop.f32.mrb[60].mxu0 }
 0x5ee   : > { %v15543_v41 = vpop.f32.mrb[61].mxu0 }
 0x5ef   : > { %v15545_v13 = vpop.f32.mrb[62].mxu0 }
 0x5f0   : > { %v15547_v26 = vpop.f32.mrb[63].mxu0 }
 0x5f2   : > { %5583 = vmatmul.mubr.bf16.vlgmr.msra.gmra.mrb[112].mxu0 %v15219_v1 }
 0x5f3   : > { %5592 = vmatprep.mubr.bf16.mxu0 %v17404_v12 }
 0x5f5   : > { %v15551_v4 = vpop.f32.mrb[64].mxu0 }
 0x5f6   : > { %v15553_v20 = vpop.f32.mrb[65].mxu0 }
 0x5f7   : > { %v15555_v44 = vpop.f32.mrb[66].mxu0 }
 0x5f8   : > { %v15557_v6 = vpop.f32.mrb[67].mxu0 }
 0x5fa   : > { %5593 = vmatmul.mubr.bf16.gmra.mrb[116].mxu0 %v15240_v38 }
 0x5fb   : > { %5602 = vmatprep.mubr.bf16.mxu0 %v17404_v12 }
 0x5fd   : > { %v15561_v58 = vpop.f32.mrb[68].mxu0 }
 0x5fe   : > { %v15563_v52 = vpop.f32.mrb[69].mxu0 }
 0x5ff   : > { %v15565_v25 = vpop.f32.mrb[70].mxu0 }
 0x600   : > { %v15567_v1 = vpop.f32.mrb[71].mxu0 }
 0x602   : > { %5603 = vmatmul.mubr.bf16.gmra.mrb[120].mxu0 %v15260_v37 }
 0x603   : > { %5612 = vmatprep.mubr.bf16.mxu0 %v17404_v12 }
 0x605   : > { %v15571_v31 = vpop.f32.mrb[72].mxu0 }
 0x606   : > { %v15573_v0 = vpop.f32.mrb[73].mxu0 }
 0x607   : > { %v15575_v11 = vpop.f32.mrb[74].mxu0 }
 0x608   : > { %v15577_v38 = vpop.f32.mrb[75].mxu0 }
 0x60a   : > { %5613 = vmatmul.mubr.bf16.gmra.mrb[124].mxu0 %v15280_v28 }
 0x60b   : > { %5622 = vmatprep.mubr.bf16.mxu0 %v17404_v12 }
 0x60d   : > { %v15581_v15 = vpop.f32.mrb[76].mxu0 }
 0x60e   : > { %v15583_v24 = vpop.f32.mrb[77].mxu0 }
 0x60f   : > { %v15585_v8 = vpop.f32.mrb[78].mxu0 }
 0x610   : > { %v15587_v37 = vpop.f32.mrb[79].mxu0 }
 0x612   : > { %5623 = vmatmul.mubr.bf16.gmra.mrb[128].mxu0 %v15300_v61 }
 0x613   : > { %5632 = vmatprep.mubr.bf16.mxu0 %v17404_v12 }
 0x615   : > { %v15591_v45 = vpop.f32.mrb[80].mxu0 }
 0x616   : > { %v15593_v47 = vpop.f32.mrb[81].mxu0 }
 0x617   : > { %v15595_v32 = vpop.f32.mrb[82].mxu0 }
 0x618   : > { %v15597_v28 = vpop.f32.mrb[83].mxu0 }
 0x61a   : > { %5633 = vmatmul.mubr.bf16.gmra.mrb[132].mxu0 %v15320_v9 }
 0x61b   : > { %5642 = vmatprep.mubr.bf16.mxu0 %v17404_v12 }
 0x61d   : > { %v15601_v62 = vpop.f32.mrb[84].mxu0 }
 0x61e   : > { %v15603_v19 = vpop.f32.mrb[85].mxu0 }
 0x61f   : > { %v15605_v22 = vpop.f32.mrb[86].mxu0 }
 0x620   : > { %v15607_v61 = vpop.f32.mrb[87].mxu0 }
 0x622   : > { %5643 = vmatmul.mubr.bf16.gmra.mrb[136].mxu0 %v15340_v43 }
 0x623   : > { %5652 = vmatprep.mubr.bf16.mxu0 %v17404_v12 }
 0x625   : > { %v15611_v49 = vpop.f32.mrb[88].mxu0 }
 0x626   : > { %v15613_v33 = vpop.f32.mrb[89].mxu0 }
 0x627   : > { %v15615_v34 = vpop.f32.mrb[90].mxu0 }
 0x628   : > { %v15617_v9 = vpop.f32.mrb[91].mxu0 }
 0x62a   : > { %5653 = vmatmul.mubr.bf16.gmra.mrb[140].mxu0 %v15360_v18 }
 0x62b   : > { %5662 = vmatprep.mubr.bf16.mxu0 %v17404_v12 }
 0x62d   : > { %v15621_v35 = vpop.f32.mrb[92].mxu0 }
 0x62e   : > { %v15623_v57 = vpop.f32.mrb[93].mxu0 }
 0x62f   : > { %v15625_v55 = vpop.f32.mrb[94].mxu0 }
 0x630   : > { %v15627_v43 = vpop.f32.mrb[95].mxu0 }
 0x632   : > { %5663 = vmatmul.mubr.bf16.gmra.mrb[144].mxu0 %v15380_v21 }
 0x633   : > { %5672 = vmatprep.mubr.bf16.mxu0 %v17404_v12 }
 0x635   : > { %v15631_v60 = vpop.f32.mrb[96].mxu0 }
 0x636   : > { %v15633_v39 = vpop.f32.mrb[97].mxu0 }
 0x637   : > { %v15635_v46 = vpop.f32.mrb[98].mxu0 }
 0x638   : > { %v15637_v18 = vpop.f32.mrb[99].mxu0 }
 0x63a   : > { %5673 = vmatmul.mubr.bf16.gmra.mrb[148].mxu0 %v15388_v54 }
 0x63b   : > { %5682 = vmatprep.mubr.bf16.mxu0 %v17404_v12 }
 0x63d   : > { %v15641_v51 = vpop.f32.mrb[100].mxu0 }
 0x63e   : > { %v15643_v7 = vpop.f32.mrb[101].mxu0 }
 0x63f   : > { %v15645_v14 = vpop.f32.mrb[102].mxu0 }
 0x640   : > { %17412 = vst [vmem:[#allocation18_spill] sm:$0xff] %v15645_v14  ;;  %v15647_v21 = vpop.f32.mrb[103].mxu0 }
 0x641   : > { %17413 = vst [vmem:[#allocation17_spill] sm:$0xff] %v15647_v21 }
 0x642   : > { %5683 = vmatmul.mubr.bf16.gmra.mrb[152].mxu0 %v15396_v50 }
 0x643   : > { %5692 = vmatprep.mubr.bf16.mxu0 %v17404_v12 }
 0x645   : > { %v15651_v2 = vpop.f32.mrb[104].mxu0 }
 0x646   : > { %17414 = vst [vmem:[#allocation19_spill] sm:$0xff] %v15651_v2  ;;  %v15653_v56 = vpop.f32.mrb[105].mxu0 }
 0x647   : > { %17415 = vst [vmem:[#allocation14_spill] sm:$0xff] %v15653_v56  ;;  %v15655_v30 = vpop.f32.mrb[106].mxu0 }
 0x648   : > { %17416 = vst [vmem:[#allocation20_spill] sm:$0xff] %v15655_v30  ;;  %v15657_v54 = vpop.f32.mrb[107].mxu0 }
 0x649   : > { %17417 = vst [vmem:[#allocation21_spill] sm:$0xff] %v15657_v54 }
 0x64a   : > { %5693 = vmatmul.mubr.bf16.gmra.mrb[156].mxu0 %v15404_v63  ;;  %v13113_v63 = vld [vmem:[%s17342_s9 + $0xf4] ss:$8 sps:$4 sm:$0xff]  }
 0x64b   : > { %5702 = vmatprep.mubr.bf16.mxu0 %v17404_v12  ;;  %6657 = vmatprep.subr.bf16.mxu1 %v13113_v63 }
 0x64c   : > { %6658 = vmatpush1.bf16.msra.mxu1 %v13111_v3  ;;  %v13117_v3 = vld [vmem:[%s17342_s9 + $0x110] ss:$8 sps:$4 sm:$0xff]  }
 0x64d   : > { %v15661_v36 = vpop.f32.mrb[108].mxu0 }
 0x64e   : > { %17418 = vst [vmem:[#allocation22_spill] sm:$0xff] %v15661_v36  ;;  %v15663_v42 = vpop.f32.mrb[109].mxu0 }
 0x64f   : > { %17419 = vst [vmem:[#allocation23_spill] sm:$0xff] %v15663_v42  ;;  %v15665_v53 = vpop.f32.mrb[110].mxu0 }
 0x650   : > { %17420 = vst [vmem:[#allocation24_spill] sm:$0xff] %v15665_v53  ;;  %v15667_v50 = vpop.f32.mrb[111].mxu0 }
 0x651   : > { %17421 = vst [vmem:[#allocation25_spill] sm:$0xff] %v15667_v50 }
 0x652   : > { %5703 = vmatmul.mubr.bf16.gmra.mrb[160].mxu0 %v15412_v29  ;;  %v13116_v29 = vld [vmem:[%s17342_s9 + $0x104] ss:$8 sps:$4 sm:$0xff]  }
 0x653   : > { %5712 = vmatprep.mubr.bf16.mxu0 %v17404_v12  ;;  %6659 = vmatprep.subr.bf16.mxu1 %v13116_v29 }
 0x654   : > { %6660 = vmatpush1.bf16.msra.mxu1 %v13114_v27 }
 0x655   : > { %6661 = vmatprep.subr.bf16.mxu1 %v13119_v16 }
 0x658   : > { %6662 = vmatpush1.bf16.msra.mxu1 %v13117_v3 }
 0x65a   : > { %5713 = vmatmul.mubr.bf16.gmra.mrb[164].mxu0 %v15419_v23  ;;  %v13127_v23 = vld [vmem:[%s17342_s9 + $0x4] ss:$8 sps:$4 sm:$0xff]  }
 0x65b   : > { %6969 = vmatprep.subr.bf16.mxu1 %v13127_v23 }
 0x6c5   : > { %v5584_v63 = vpop.f32.mrb[112].mxu0 }
 0x6c6   : > { %v5723_v59 = vmax.f32 %v15516_v40, %v5584_v63  ;;  %v5586_v29 = vpop.f32.mrb[113].mxu0 }
 0x6c7   : > { %v5724_v27 = vmax.f32 %v15521_v5, %v5586_v29  ;;  %v5588_v12 = vpop.f32.mrb[114].mxu0 }
 0x6c8   : > { %v5725_v50 = vmax.f32 %v15526_v10, %v5588_v12  ;;  %v5590_v53 = vpop.f32.mrb[115].mxu0  ;;  %v5836_v36 = vrot.slane %v5723_v59, 1 }
 0x6c9   : > { %v5726_v42 = vmax.f32 %v15528_v48, %v5590_v53  ;;  %v5839_v3 = vrot.slane %v5724_v27, 1 }
 0x6ca   : > { %v5837_v16 = vrot.slane %v5725_v50, 1 }
 0x6cb   : > { %v5840_v54 = vrot.slane %v5726_v42, 1 }
 0x6cc   : > { %v5838_v30 = vsel %vm3421_vm6, %v5836_v36, %v5837_v16 }
 0x6cd   : > { %v6002_v23 = vmax.f32 %v5723_v59, %v5838_v30  ;;  %v5841_v40 = vsel %vm3421_vm6, %v5839_v3, %v5840_v54  ;;  %v5594_v63 = vpop.f32.mrb[116].mxu0 }
 0x6ce   : > { %v6003_v56 = vmax.f32 %v5724_v27, %v5841_v40  ;;  %v5727_v5 = vmax.f32 %v15538_v17, %v5594_v63  ;;  %v5596_v29 = vpop.f32.mrb[117].mxu0 }
 0x6cf   : > { %v5728_v10 = vmax.f32 %v15543_v41, %v5596_v29  ;;  %v5598_v48 = vpop.f32.mrb[118].mxu0 }
 0x6d0   : > { %v11475_v53 = vpack.c.bf16 %v6003_v56, %v6002_v23  ;;  %v5842_v36 = vrot.slane %v5727_v5, 1  ;;  %v5729_v2 = vmax.f32 %v15545_v13, %v5598_v48  ;;  %v5600_v59 = vpop.f32.mrb[119].mxu0 }
 0x6d1   : > { %v5844_v30 = vrot.slane %v5728_v10, 1  ;;  %v5730_v3 = vmax.f32 %v15547_v26, %v5600_v59 }
 0x6d2   : > { %6229 = vst.msk [vmem:[#allocation3] sm:$0xff] %vm15701_vm9, %v11475_v53  ;;  %v5843_v17 = vsel %vm3421_vm6, %v5837_v16, %v5842_v36  ;;  %v5846_v27 = vrot.slane %v5729_v2, 1 }
 0x6d3   : > { %v6004_v40 = vmax.f32 %v5725_v50, %v5843_v17  ;;  %v5845_v63 = vsel %vm3421_vm6, %v5840_v54, %v5844_v30  ;;  %v5848_v21 = vrot.slane %v5730_v3, 1 }
 0x6d4   : > { %v6005_v41 = vmax.f32 %v5726_v42, %v5845_v63  ;;  %v5847_v56 = vsel %vm3421_vm6, %v5842_v36, %v5846_v27 }
 0x6d5   : > { %v6006_v23 = vmax.f32 %v5727_v5, %v5847_v56  ;;  %v5849_v13 = vsel %vm3421_vm6, %v5844_v30, %v5848_v21  ;;  %v5604_v29 = vpop.f32.mrb[120].mxu0 }
 0x6d6   : > { %v11476_v48 = vpack.c.bf16 %v6005_v41, %v6004_v40  ;;  %v6007_v14 = vmax.f32 %v5728_v10, %v5849_v13  ;;  %v5731_v26 = vmax.f32 %v15551_v4, %v5604_v29  ;;  %v5606_v59 = vpop.f32.mrb[121].mxu0 }
 0x6d7   : > { %v5732_v53 = vmax.f32 %v15553_v20, %v5606_v59  ;;  %v5608_v16 = vpop.f32.mrb[122].mxu0 }
 0x6d8   : > { %6230 = vst.msk [vmem:[#allocation3 + $0x8] sm:$0xff] %vm15701_vm9, %v11476_v48  ;;  %v11477_v54 = vpack.c.bf16 %v6007_v14, %v6006_v23  ;;  %v5850_v50 = vrot.slane %v5731_v26, 1  ;;  %v5733_v42 = vmax.f32 %v15555_v44, %v5608_v16  ;;  %v5610_v36 = vpop.f32.mrb[123].mxu0 }
 0x6d9   : > { %v5852_v5 = vrot.slane %v5732_v53, 1  ;;  %v5734_v30 = vmax.f32 %v15557_v6, %v5610_v36 }
 0x6da   : > { %6231 = vst.msk [vmem:[#allocation3 + $0x10] sm:$0xff] %vm15701_vm9, %v11477_v54  ;;  %v5851_v4 = vsel %vm3421_vm6, %v5846_v27, %v5850_v50  ;;  %v5854_v10 = vrot.slane %v5733_v42, 1 }
 0x6db   : > { %v6008_v17 = vmax.f32 %v5729_v2, %v5851_v4  ;;  %v5853_v20 = vsel %vm3421_vm6, %v5848_v21, %v5852_v5  ;;  %v5856_v40 = vrot.slane %v5734_v30, 1 }
 0x6dc   : > { %v6009_v63 = vmax.f32 %v5730_v3, %v5853_v20  ;;  %v5855_v14 = vsel %vm3421_vm6, %v5850_v50, %v5854_v10 }
 0x6dd   : > { %v6010_v41 = vmax.f32 %v5731_v26, %v5855_v14  ;;  %v5857_v44 = vsel %vm3421_vm6, %v5852_v5, %v5856_v40  ;;  %v5614_v56 = vpop.f32.mrb[124].mxu0  ;;  %v6311_v5 = vld [vmem:[#allocation3] sm:$0xee] }
 0x6de   : > { %v11478_v23 = vpack.c.bf16 %v6009_v63, %v6008_v17  ;;  %v6011_v13 = vmax.f32 %v5732_v53, %v5857_v44  ;;  %v5735_v6 = vmax.f32 %v15561_v58, %v5614_v56  ;;  %v5616_v29 = vpop.f32.mrb[125].mxu0 }
 0x6df   : > { %v5736_v48 = vmax.f32 %v15563_v52, %v5616_v29  ;;  %v5618_v27 = vpop.f32.mrb[126].mxu0  ;;  %v15732_v54 = vld [vmem:[#allocation3 + $0x8] sm:$0xff] }
 0x6e0   : > { %6232 = vst.msk [vmem:[#allocation3 + $0x18] sm:$0xff] %vm15701_vm9, %v11478_v23  ;;  %v11479_v21 = vpack.c.bf16 %v6011_v13, %v6010_v41  ;;  %v5858_v2 = vrot.slane %v5735_v6, 1  ;;  %v5737_v3 = vmax.f32 %v15565_v25, %v5618_v27  ;;  %v5620_v59 = vpop.f32.mrb[127].mxu0  ;;  %v11039_v17 = vcombine.high %v6311_v5, %v15732_v54 }
 0x6e1   : > { %v5860_v26 = vrot.slane %v5736_v48, 1  ;;  %v5738_v16 = vmax.f32 %v15567_v1, %v5620_v59 }
 0x6e2   : > { %6233 = vst.msk [vmem:[#allocation3 + $0x20] sm:$0xff] %vm15701_vm9, %v11479_v21  ;;  %v5859_v58 = vsel %vm3421_vm6, %v5854_v10, %v5858_v2  ;;  %v5862_v52 = vrot.slane %v5737_v3, 1 }
 0x6e3   : > { %v6012_v53 = vmax.f32 %v5733_v42, %v5859_v58  ;;  %v5861_v50 = vsel %vm3421_vm6, %v5856_v40, %v5860_v26  ;;  %v5864_v36 = vrot.slane %v5738_v16, 1  ;;  %v11038_v42 = vcombine.low %v6311_v5, %v15732_v54 }
 0x6e4   : > { %v6013_v4 = vmax.f32 %v5734_v30, %v5861_v50  ;;  %v5863_v25 = vsel %vm3421_vm6, %v5858_v2, %v5862_v52 }
 0x6e5   : > { %v6014_v20 = vmax.f32 %v5735_v6, %v5863_v25  ;;  %v5865_v1 = vsel %vm3421_vm6, %v5860_v26, %v5864_v36  ;;  %v5624_v63 = vpop.f32.mrb[128].mxu0  ;;  %v6444_v58 = vrot.slane %v11038_v42, 1 }
 0x6e6   : > { %v11480_v14 = vpack.c.bf16 %v6013_v4, %v6012_v53  ;;  %v6015_v41 = vmax.f32 %v5736_v48, %v5865_v1  ;;  %v5739_v10 = vmax.f32 %v15571_v31, %v5624_v63  ;;  %v5626_v44 = vpop.f32.mrb[129].mxu0  ;;  %v6447_v31 = vrot.slane %v11039_v17, 1  ;;  %v13134_v4 = vld [vmem:[%s17342_s9 + $0x14] ss:$8 sps:$4 sm:$0xff]  }
 0x6e7   : > { %v5740_v40 = vmax.f32 %v15573_v0, %v5626_v44  ;;  %v5628_v56 = vpop.f32.mrb[130].mxu0  ;;  %v15744_v30 = vld [vmem:[#allocation3 + $0x10] ss:$8 sps:$4 sm:$0xff]   ;;  %v15746_v23 = vld [vmem:[#allocation3 + $0x14] ss:$8 sps:$4 sm:$0xff]  }
 0x6e8   : > { %6234 = vst.msk [vmem:[#allocation3 + $0x28] sm:$0xff] %vm15701_vm9, %v11480_v14  ;;  %v11481_v13 = vpack.c.bf16 %v6015_v41, %v6014_v20  ;;  %v5866_v6 = vrot.slane %v5739_v10, 1  ;;  %v15751_v29 = vmax.f32 %v15575_v11, %v5628_v56  ;;  %v5630_v48 = vpop.f32.mrb[131].mxu0  ;;  %v6448_v0 = vrot.slane %v15746_v23, 1  ;;  %v13125_v11 = vld [vmem:[%s17342_s9] ss:$8 sps:$4 sm:$0xff]  }
 0x6e9   : > { %v5868_v27 = vrot.slane %v5740_v40, 1  ;;  %v15754_v21 = vmax.f32 %v15577_v38, %v5630_v48  ;;  %v6445_v2 = vrot.slane %v15744_v30, 1  ;;  %v13139_v44 = vld [vmem:[%s17342_s9 + $0x24] ss:$8 sps:$4 sm:$0xff]  }
 0x6ea   : > { %6235 = vst.msk [vmem:[#allocation3 + $0x30] sm:$0xff] %vm15701_vm9, %v11481_v13  ;;  %v5867_v59 = vsel %vm3421_vm6, %v5862_v52, %v5866_v6  ;;  %v5870_v26 = vrot.slane %v15751_v29, 1  ;;  %v6449_v5 = vsel %vm3421_vm6, %v6447_v31, %v6448_v0  ;;  %v6270_v56 = vld [vmem:[#allocation3 + $0x20] sm:$0xff] }
 0x6eb   : > { %v6016_v53 = vmax.f32 %v5737_v3, %v5867_v59  ;;  %v5869_v38 = vsel %vm3421_vm6, %v5864_v36, %v5868_v27  ;;  %v5872_v50 = vrot.slane %v15754_v21, 1  ;;  %11084 = vmatprep.mubr.msk.bf16.mxu1 %vm6602_vm10, %v6449_v5  ;;  %v6446_v17 = vsel %vm3421_vm6, %v6444_v58, %v6445_v2 }
 0x6ec   : > { %v6017_v25 = vmax.f32 %v5738_v16, %v5869_v38  ;;  %v5871_v52 = vsel %vm3421_vm6, %v5866_v6, %v5870_v26  ;;  %6678 = vmatmul.mubr.bf16.vlgmr.msra.gmra.mrb[112].mxu1 %v6446_v17  ;;  %v13132_v16 = vld [vmem:[%s17342_s9 + $0x10] ss:$8 sps:$4 sm:$0xff]  }
 0x6ed   : > { %v6018_v20 = vmax.f32 %v5739_v10, %v5871_v52  ;;  %v5873_v3 = vsel %vm3421_vm6, %v5868_v27, %v5872_v50  ;;  %v5634_v1 = vpop.f32.mrb[132].mxu0  ;;  %6970 = vmatpush1.bf16.msra.mxu1 %v13125_v11 }
 0x6ee   : > { %v11482_v36 = vpack.c.bf16 %v6017_v25, %v6016_v53  ;;  %v6019_v63 = vmax.f32 %v5740_v40, %v5873_v3  ;;  %v5743_v14 = vmax.f32 %v15581_v15, %v5634_v1  ;;  %v5636_v41 = vpop.f32.mrb[133].mxu0  ;;  %6971 = vmatprep.subr.bf16.mxu1 %v13134_v4 }
 0x6ef   : > { %v5744_v10 = vmax.f32 %v15583_v24, %v5636_v41  ;;  %v5638_v42 = vpop.f32.mrb[134].mxu0  ;;  %v6271_v13 = vld [vmem:[#allocation3 + $0x28] sm:$0xff] }
 0x6f0   : > { %v15783_v6 = vld [vmem:[#allocation3 + $0x24] ss:$8 sps:$4 sm:$0xff]   ;;  %6236 = vst.msk [vmem:[#allocation3 + $0x38] sm:$0xff] %vm15701_vm9, %v11482_v36  ;;  %v11483_v15 = vpack.c.bf16 %v6019_v63, %v6018_v20  ;;  %v5874_v40 = vrot.slane %v5743_v14, 1  ;;  %v15788_v48 = vmax.f32 %v15585_v8, %v5638_v42  ;;  %v5640_v31 = vpop.f32.mrb[135].mxu0  ;;  %v15790_v27 = vcombine.low %v6270_v56, %v6271_v13 }
 0x6f1   : > { %v5876_v59 = vrot.slane %v5744_v10, 1  ;;  %v15793_v24 = vmax.f32 %v15587_v37, %v5640_v31  ;;  %v6452_v58 = vrot.slane %v15783_v6, 1  ;;  %6972 = vmatpush1.bf16.msra.mxu1 %v13132_v16  ;;  %v13137_v8 = vld [vmem:[%s17342_s9 + $0x20] ss:$8 sps:$4 sm:$0xff]   ;;  %v13151_v41 = vld [vmem:[%s17342_s9 + $0x44] ss:$8 sps:$4 sm:$0xff]  }
 0x6f2   : > { %6237 = vst.msk [vmem:[#allocation3 + $0x40] sm:$0xff] %vm15701_vm9, %v11483_v15  ;;  %v5875_v11 = vsel %vm3421_vm6, %v5870_v26, %v5874_v40  ;;  %v5878_v53 = vrot.slane %v15788_v48, 1  ;;  %v6450_v38 = vrot.slane %v15790_v27, 1  ;;  %6973 = vmatprep.subr.bf16.mxu1 %v13139_v44  ;;  %v13146_v26 = vld [vmem:[%s17342_s9 + $0x34] ss:$8 sps:$4 sm:$0xff]  }
 0x6f3   : > { %v6020_v5 = vmax.f32 %v15751_v29, %v5875_v11  ;;  %v5877_v37 = vsel %vm3421_vm6, %v5872_v50, %v5876_v59  ;;  %v5880_v4 = vrot.slane %v15793_v24, 1  ;;  %v6453_v25 = vsel %vm3421_vm6, %v6448_v0, %v6452_v58  ;;  %v6272_v16 = vld [vmem:[#allocation3 + $0x30] sm:$0xff] }
 0x6f4   : > { %v6021_v52 = vmax.f32 %v15754_v21, %v5877_v37  ;;  %v5879_v17 = vsel %vm3421_vm6, %v5874_v40, %v5878_v53  ;;  %11085 = vmatprep.mubr.msk.bf16.mxu1 %vm6602_vm10, %v6453_v25  ;;  %v6451_v20 = vsel %vm3421_vm6, %v6445_v2, %v6450_v38  ;;  %v13144_v21 = vld [vmem:[%s17342_s9 + $0x30] ss:$8 sps:$4 sm:$0xff]  }
 0x6f5   : > { %v6022_v29 = vmax.f32 %v5743_v14, %v5879_v17  ;;  %v5881_v50 = vsel %vm3421_vm6, %v5876_v59, %v5880_v4  ;;  %v5644_v3 = vpop.f32.mrb[136].mxu0  ;;  %6688 = vmatmul.mubr.bf16.gmra.mrb[116].mxu1 %v6451_v20 }
 0x6f6   : > { %v11484_v1 = vpack.c.bf16 %v6021_v52, %v6020_v5  ;;  %v6023_v0 = vmax.f32 %v5744_v10, %v5881_v50  ;;  %v5747_v36 = vmax.f32 %v15591_v45, %v5644_v3  ;;  %v5646_v63 = vpop.f32.mrb[137].mxu0  ;;  %6974 = vmatpush1.bf16.msra.mxu1 %v13137_v8 }
 0x6f7   : > { %v5748_v2 = vmax.f32 %v15593_v47, %v5646_v63  ;;  %v5648_v14 = vpop.f32.mrb[138].mxu0  ;;  %v6273_v44 = vld [vmem:[#allocation3 + $0x38] sm:$0xff]  ;;  %6975 = vmatprep.subr.bf16.mxu1 %v13146_v26 }
 0x6f8   : > { %v15824_v42 = vld [vmem:[#allocation3 + $0x34] ss:$8 sps:$4 sm:$0xff]   ;;  %6238 = vst.msk [vmem:[#allocation3 + $0x48] sm:$0xff] %vm15701_vm9, %v11484_v1  ;;  %v11485_v45 = vpack.c.bf16 %v6023_v0, %v6022_v29  ;;  %v5882_v10 = vrot.slane %v5747_v36, 1  ;;  %v15829_v56 = vmax.f32 %v15595_v32, %v5648_v14  ;;  %v5650_v13 = vpop.f32.mrb[139].mxu0  ;;  %v15831_v15 = vcombine.low %v6272_v16, %v6273_v44 }
 0x6f9   : > { %v5884_v40 = vrot.slane %v5748_v2, 1  ;;  %v15834_v47 = vmax.f32 %v15597_v28, %v5650_v13  ;;  %v6456_v31 = vrot.slane %v15824_v42, 1  ;;  %v13149_v32 = vld [vmem:[%s17342_s9 + $0x40] ss:$8 sps:$4 sm:$0xff]   ;;  %v13166_v1 = vld [vmem:[%s17342_s9 + $0x64] ss:$8 sps:$4 sm:$0xff]  }
 0x6fa   : > { %6239 = vst.msk [vmem:[#allocation3 + $0x50] sm:$0xff] %vm15701_vm9, %v11485_v45  ;;  %v5883_v59 = vsel %vm3421_vm6, %v5878_v53, %v5882_v10  ;;  %v5886_v11 = vrot.slane %v15829_v56, 1  ;;  %v6454_v8 = vrot.slane %v15831_v15, 1  ;;  %6976 = vmatpush1.bf16.msra.mxu1 %v13144_v21  ;;  %v13158_v53 = vld [vmem:[%s17342_s9 + $0x54] ss:$8 sps:$4 sm:$0xff]  }
 0x6fb   : > { %v6024_v5 = vmax.f32 %v15788_v48, %v5883_v59  ;;  %v5885_v28 = vsel %vm3421_vm6, %v5880_v4, %v5884_v40  ;;  %v5888_v37 = vrot.slane %v15834_v47, 1  ;;  %v6457_v25 = vsel %vm3421_vm6, %v6452_v58, %v6456_v31  ;;  %6977 = vmatprep.subr.bf16.mxu1 %v13151_v41 }
 0x6fc   : > { %v6025_v26 = vmax.f32 %v15793_v24, %v5885_v28  ;;  %v5887_v52 = vsel %vm3421_vm6, %v5882_v10, %v5886_v11  ;;  %11086 = vmatprep.mubr.msk.bf16.mxu1 %vm6602_vm10, %v6457_v25  ;;  %v6455_v17 = vsel %vm3421_vm6, %v6450_v38, %v6454_v8  ;;  %v13156_v24 = vld [vmem:[%s17342_s9 + $0x50] ss:$8 sps:$4 sm:$0xff]  }
 0x6fd   : > { %v6026_v48 = vmax.f32 %v5747_v36, %v5887_v52  ;;  %v5889_v4 = vsel %vm3421_vm6, %v5884_v40, %v5888_v37  ;;  %v5654_v20 = vpop.f32.mrb[140].mxu0  ;;  %6698 = vmatmul.mubr.bf16.gmra.mrb[120].mxu1 %v6455_v17  ;;  %v6274_v36 = vld [vmem:[#allocation3 + $0x40] sm:$0xff] }
 0x6fe   : > { %v11486_v29 = vpack.c.bf16 %v6025_v26, %v6024_v5  ;;  %v6027_v58 = vmax.f32 %v5748_v2, %v5889_v4  ;;  %v5751_v50 = vmax.f32 %v15601_v62, %v5654_v20  ;;  %v5656_v3 = vpop.f32.mrb[141].mxu0  ;;  %6978 = vmatpush1.bf16.msra.mxu1 %v13149_v32  ;;  %v13178_v4 = vld [vmem:[%s17342_s9 + $0x84] ss:$8 sps:$4 sm:$0xff]  }
 0x6ff   : > { %v5752_v38 = vmax.f32 %v15603_v19, %v5656_v3  ;;  %v5658_v0 = vpop.f32.mrb[142].mxu0  ;;  %v6275_v63 = vld [vmem:[#allocation3 + $0x48] sm:$0xff]  ;;  %6979 = vmatprep.subr.bf16.mxu1 %v13158_v53 }
 0x700   : > { %v15865_v21 = vld [vmem:[#allocation3 + $0x44] ss:$8 sps:$4 sm:$0xff]   ;;  %6240 = vst.msk [vmem:[#allocation3 + $0x58] sm:$0xff] %vm15701_vm9, %v11486_v29  ;;  %v11487_v62 = vpack.c.bf16 %v6027_v58, %v6026_v48  ;;  %v5890_v41 = vrot.slane %v5751_v50, 1  ;;  %v15870_v2 = vmax.f32 %v15605_v22, %v5658_v0  ;;  %v5660_v14 = vpop.f32.mrb[143].mxu0  ;;  %v15872_v16 = vcombine.low %v6274_v36, %v6275_v63 }
 0x701   : > { %v5892_v44 = vrot.slane %v5752_v38, 1  ;;  %v15875_v19 = vmax.f32 %v15607_v61, %v5660_v14  ;;  %v6460_v45 = vrot.slane %v15865_v21, 1  ;;  %v13164_v22 = vld [vmem:[%s17342_s9 + $0x60] ss:$8 sps:$4 sm:$0xff]   ;;  %v6276_v29 = vld [vmem:[#allocation3 + $0x50] sm:$0xff] }
 0x702   : > { %6241 = vst.msk [vmem:[#allocation3 + $0x60] sm:$0xff] %vm15701_vm9, %v11487_v62  ;;  %v5891_v10 = vsel %vm3421_vm6, %v5886_v11, %v5890_v41  ;;  %v5894_v13 = vrot.slane %v15870_v2, 1  ;;  %v6458_v40 = vrot.slane %v15872_v16, 1  ;;  %6980 = vmatpush1.bf16.msra.mxu1 %v13156_v24  ;;  %v13174_v11 = vld [vmem:[%s17342_s9 + $0x74] ss:$8 sps:$4 sm:$0xff]  }
 0x703   : > { %v6028_v59 = vmax.f32 %v15829_v56, %v5891_v10  ;;  %v5893_v61 = vsel %vm3421_vm6, %v5888_v37, %v5892_v44  ;;  %v5896_v32 = vrot.slane %v15875_v19, 1  ;;  %v6461_v5 = vsel %vm3421_vm6, %v6456_v31, %v6460_v45  ;;  %6981 = vmatprep.subr.bf16.mxu1 %v13166_v1 }
 0x704   : > { %v6029_v28 = vmax.f32 %v15834_v47, %v5893_v61  ;;  %v5895_v25 = vsel %vm3421_vm6, %v5890_v41, %v5894_v13  ;;  %11087 = vmatprep.mubr.msk.bf16.mxu1 %vm6602_vm10, %v6461_v5  ;;  %v6459_v53 = vsel %vm3421_vm6, %v6454_v8, %v6458_v40  ;;  %v13172_v47 = vld [vmem:[%s17342_s9 + $0x70] ss:$8 sps:$4 sm:$0xff]  }
 0x705   : > { %v6030_v56 = vmax.f32 %v5751_v50, %v5895_v25  ;;  %v5897_v37 = vsel %vm3421_vm6, %v5892_v44, %v5896_v32  ;;  %v5664_v26 = vpop.f32.mrb[144].mxu0  ;;  %6708 = vmatmul.mubr.bf16.gmra.mrb[124].mxu1 %v6459_v53 }
 0x706   : > { %v11488_v52 = vpack.c.bf16 %v6029_v28, %v6028_v59  ;;  %v6031_v31 = vmax.f32 %v5752_v38, %v5897_v37  ;;  %v5755_v17 = vmax.f32 %v15611_v49, %v5664_v26  ;;  %v5666_v48 = vpop.f32.mrb[145].mxu0  ;;  %6982 = vmatpush1.bf16.msra.mxu1 %v13164_v22 }
 0x707   : > { %v5756_v8 = vmax.f32 %v15613_v33, %v5666_v48  ;;  %v5668_v20 = vpop.f32.mrb[146].mxu0  ;;  %v6277_v58 = vld [vmem:[#allocation3 + $0x58] sm:$0xff]  ;;  %6983 = vmatprep.subr.bf16.mxu1 %v13174_v11 }
 0x708   : > { %v15906_v50 = vld [vmem:[#allocation3 + $0x54] ss:$8 sps:$4 sm:$0xff]   ;;  %6242 = vst.msk [vmem:[#allocation3 + $0x68] sm:$0xff] %vm15701_vm9, %v11488_v52  ;;  %v11489_v49 = vpack.c.bf16 %v6031_v31, %v6030_v56  ;;  %v5898_v3 = vrot.slane %v5755_v17, 1  ;;  %v15911_v24 = vmax.f32 %v15615_v34, %v5668_v20  ;;  %v5670_v1 = vpop.f32.mrb[147].mxu0  ;;  %v15913_v38 = vcombine.low %v6276_v29, %v6277_v58 }
 0x709   : > { %v5900_v0 = vrot.slane %v5756_v8, 1  ;;  %v5758_v33 = vmax.f32 %v15617_v9, %v5670_v1  ;;  %v6464_v36 = vrot.slane %v15906_v50, 1  ;;  %v13176_v34 = vld [vmem:[%s17342_s9 + $0x80] ss:$8 sps:$4 sm:$0xff]  }
 0x70a   : > { %6243 = vst.msk [vmem:[#allocation3 + $0x70] sm:$0xff] %vm15701_vm9, %v11489_v49  ;;  %v5899_v63 = vsel %vm3421_vm6, %v5894_v13, %v5898_v3  ;;  %v5902_v62 = vrot.slane %v15911_v24, 1  ;;  %v6462_v41 = vrot.slane %v15913_v38, 1  ;;  %6984 = vmatpush1.bf16.msra.mxu1 %v13172_v47  ;;  %v13181_v13 = vld [vmem:[%s17342_s9 + $0x124] ss:$8 sps:$4 sm:$0xff]  }
 0x70b   : > { %v6032_v14 = vmax.f32 %v15870_v2, %v5899_v63  ;;  %v5901_v9 = vsel %vm3421_vm6, %v5896_v32, %v5900_v0  ;;  %v5904_v44 = vrot.slane %v5758_v33, 1  ;;  %v6465_v10 = vsel %vm3421_vm6, %v6460_v45, %v6464_v36  ;;  %6985 = vmatprep.subr.bf16.mxu1 %v13178_v4  ;;  %v6278_v56 = vld [vmem:[#allocation3 + $0x60] sm:$0xff] }
 0x70c   : > { %v6033_v22 = vmax.f32 %v15875_v19, %v5901_v9  ;;  %v5903_v59 = vsel %vm3421_vm6, %v5898_v3, %v5902_v62  ;;  %11088 = vmatprep.mubr.msk.bf16.mxu1 %vm6602_vm10, %v6465_v10  ;;  %v6463_v61 = vsel %vm3421_vm6, %v6458_v40, %v6462_v41 }
 0x70d   : > { %v6034_v5 = vmax.f32 %v5755_v17, %v5903_v59  ;;  %v5905_v2 = vsel %vm3421_vm6, %v5900_v0, %v5904_v44  ;;  %v5674_v32 = vpop.f32.mrb[148].mxu0  ;;  %6718 = vmatmul.mubr.bf16.gmra.mrb[128].mxu1 %v6463_v61 }
 0x70e   : > { %v11490_v11 = vpack.c.bf16 %v6033_v22, %v6032_v14  ;;  %v6035_v45 = vmax.f32 %v5756_v8, %v5905_v2  ;;  %v5759_v28 = vmax.f32 %v15621_v35, %v5674_v32  ;;  %v5676_v25 = vpop.f32.mrb[149].mxu0  ;;  %6986 = vmatpush1.bf16.msra.mxu1 %v13176_v34 }
 0x70f   : > { %v5760_v53 = vmax.f32 %v15623_v57, %v5676_v25  ;;  %v5678_v19 = vpop.f32.mrb[150].mxu0  ;;  %v6279_v37 = vld [vmem:[#allocation3 + $0x68] sm:$0xff]  ;;  %7372 = vmatprep.subr.bf16.mxu1 %v13181_v13 }
 0x710   : > { %v15938_v26 = vld [vmem:[#allocation3 + $0x64] ss:$8 sps:$4 sm:$0xff]   ;;  %6244 = vst.msk [vmem:[#allocation3 + $0x78] sm:$0xff] %vm15701_vm9, %v11490_v11  ;;  %v11491_v40 = vpack.c.bf16 %v6035_v45, %v6034_v5  ;;  %v5906_v52 = vrot.slane %v5759_v28, 1  ;;  %v5761_v31 = vmax.f32 %v15625_v55, %v5678_v19  ;;  %v5680_v17 = vpop.f32.mrb[151].mxu0  ;;  %v15943_v48 = vcombine.low %v6278_v56, %v6279_v37 }
 0x711   : > { %v5908_v35 = vrot.slane %v5760_v53, 1  ;;  %v5762_v47 = vmax.f32 %v15627_v43, %v5680_v17  ;;  %v6468_v57 = vrot.slane %v15938_v26, 1 }
 0x712   : > { %6245 = vst.msk [vmem:[#allocation3 + $0x80] sm:$0xff] %vm15701_vm9, %v11491_v40  ;;  %v5907_v4 = vsel %vm3421_vm6, %v5902_v62, %v5906_v52  ;;  %v5910_v8 = vrot.slane %v5761_v31, 1  ;;  %v6466_v20 = vrot.slane %v15943_v48, 1 }
 0x713   : > { %v6036_v29 = vmax.f32 %v15911_v24, %v5907_v4  ;;  %v5909_v55 = vsel %vm3421_vm6, %v5904_v44, %v5908_v35  ;;  %v5912_v58 = vrot.slane %v5762_v47, 1  ;;  %v6469_v49 = vsel %vm3421_vm6, %v6464_v36, %v6468_v57 }
 0x714   : > { %v6037_v3 = vmax.f32 %v5758_v33, %v5909_v55  ;;  %v5911_v43 = vsel %vm3421_vm6, %v5906_v52, %v5910_v8  ;;  %11089 = vmatprep.mubr.msk.bf16.mxu1 %vm6602_vm10, %v6469_v49  ;;  %v6467_v1 = vsel %vm3421_vm6, %v6462_v41, %v6466_v20  ;;  %v6280_v33 = vld [vmem:[#allocation3 + $0x70] sm:$0xff] }
 0x715   : > { %v6038_v0 = vmax.f32 %v5759_v28, %v5911_v43  ;;  %v5913_v63 = vsel %vm3421_vm6, %v5908_v35, %v5912_v58  ;;  %v5684_v62 = vpop.f32.mrb[152].mxu0  ;;  %6728 = vmatmul.mubr.bf16.gmra.mrb[132].mxu1 %v6467_v1  ;;  %v17424_v49 = vld [vmem:[#allocation18_spill] sm:$0xff] }
 0x716   : > { %v11492_v34 = vpack.c.bf16 %v6037_v3, %v6036_v29  ;;  %v6039_v14 = vmax.f32 %v5760_v53, %v5913_v63  ;;  %v5763_v24 = vmax.f32 %v15631_v60, %v5684_v62  ;;  %v5686_v9 = vpop.f32.mrb[153].mxu0 }
 0x717   : > { %v5764_v44 = vmax.f32 %v15633_v39, %v5686_v9  ;;  %v5688_v36 = vpop.f32.mrb[154].mxu0  ;;  %v6281_v10 = vld [vmem:[#allocation3 + $0x78] sm:$0xff] }
 0x718   : > { %v15960_v13 = vld [vmem:[#allocation3 + $0x74] ss:$8 sps:$4 sm:$0xff]   ;;  %6246 = vst.msk [vmem:[#allocation3 + $0x88] sm:$0xff] %vm15701_vm9, %v11492_v34  ;;  %v11493_v41 = vpack.c.bf16 %v6039_v14, %v6038_v0  ;;  %v5914_v22 = vrot.slane %v5763_v24, 1  ;;  %v5765_v59 = vmax.f32 %v15635_v46, %v5688_v36  ;;  %v5690_v61 = vpop.f32.mrb[155].mxu0  ;;  %v15965_v5 = vcombine.low %v6280_v33, %v6281_v10 }
 0x719   : > { %v5916_v2 = vrot.slane %v5764_v44, 1  ;;  %v5766_v60 = vmax.f32 %v15637_v18, %v5690_v61  ;;  %v6472_v39 = vrot.slane %v15960_v13, 1 }
 0x71a   : > { %6247 = vst.msk [vmem:[#allocation3 + $0x90] sm:$0xff] %vm15701_vm9, %v11493_v41  ;;  %v5915_v32 = vsel %vm3421_vm6, %v5910_v8, %v5914_v22  ;;  %v5918_v11 = vrot.slane %v5765_v59, 1  ;;  %v6470_v45 = vrot.slane %v15965_v5, 1 }
 0x71b   : > { %v6040_v28 = vmax.f32 %v5761_v31, %v5915_v32  ;;  %v5917_v25 = vsel %vm3421_vm6, %v5912_v58, %v5916_v2  ;;  %v5920_v46 = vrot.slane %v5766_v60, 1  ;;  %v6473_v53 = vsel %vm3421_vm6, %v6468_v57, %v6472_v39 }
 0x71c   : > { %v6041_v19 = vmax.f32 %v5762_v47, %v5917_v25  ;;  %v5919_v56 = vsel %vm3421_vm6, %v5914_v22, %v5918_v11  ;;  %11090 = vmatprep.mubr.msk.bf16.mxu1 %vm6602_vm10, %v6473_v53  ;;  %v6471_v18 = vsel %vm3421_vm6, %v6466_v20, %v6470_v45  ;;  %v6282_v47 = vld [vmem:[#allocation3 + $0x80] sm:$0xff] }
 0x71d   : > { %v6042_v37 = vmax.f32 %v5763_v24, %v5919_v56  ;;  %v5921_v40 = vsel %vm3421_vm6, %v5916_v2, %v5920_v46  ;;  %v5694_v52 = vpop.f32.mrb[156].mxu0  ;;  %6738 = vmatmul.mubr.bf16.gmra.mrb[136].mxu1 %v6471_v18 }
 0x71e   : > { %v11494_v17 = vpack.c.bf16 %v6041_v19, %v6040_v28  ;;  %v6043_v35 = vmax.f32 %v5764_v44, %v5921_v40  ;;  %v5767_v31 = vmax.f32 %v15641_v51, %v5694_v52  ;;  %v5696_v4 = vpop.f32.mrb[157].mxu0  ;;  %v17425_v51 = vld [vmem:[#allocation17_spill] sm:$0xff] }
 0x71f   : > { %v5768_v8 = vmax.f32 %v15643_v7, %v5696_v4  ;;  %v5698_v57 = vpop.f32.mrb[158].mxu0  ;;  %v6283_v29 = vld [vmem:[#allocation3 + $0x88] sm:$0xff] }
 0x720   : > { %v15981_v55 = vld [vmem:[#allocation3 + $0x84] ss:$8 sps:$4 sm:$0xff]   ;;  %6248 = vst.msk [vmem:[#allocation3 + $0x98] sm:$0xff] %vm15701_vm9, %v11494_v17  ;;  %v11495_v20 = vpack.c.bf16 %v6043_v35, %v6042_v37  ;;  %v5922_v58 = vrot.slane %v5767_v31, 1  ;;  %v5769_v3 = vmax.f32 %v17424_v49, %v5698_v57  ;;  %v5700_v43 = vpop.f32.mrb[159].mxu0  ;;  %v15986_v1 = vcombine.low %v6282_v47, %v6283_v29 }
 0x721   : > { %v5924_v0 = vrot.slane %v5768_v8, 1  ;;  %v5770_v63 = vmax.f32 %v17425_v51, %v5700_v43  ;;  %v6476_v7 = vrot.slane %v15981_v55, 1  ;;  %v17428_v37 = vld [vmem:[#allocation20_spill] sm:$0xff] }
 0x722   : > { %6249 = vst.msk [vmem:[#allocation3 + $0xa0] sm:$0xff] %vm15701_vm9, %v11495_v20  ;;  %v5923_v62 = vsel %vm3421_vm6, %v5918_v11, %v5922_v58  ;;  %v5926_v34 = vrot.slane %v5769_v3, 1  ;;  %v6474_v14 = vrot.slane %v15986_v1, 1 }
 0x723   : > { %v6044_v24 = vmax.f32 %v5765_v59, %v5923_v62  ;;  %v5925_v9 = vsel %vm3421_vm6, %v5920_v46, %v5924_v0  ;;  %v5928_v44 = vrot.slane %v5770_v63, 1  ;;  %v6477_v36 = vsel %vm3421_vm6, %v6472_v39, %v6476_v7  ;;  %v17426_v59 = vld [vmem:[#allocation19_spill] sm:$0xff]  ;;  %v17427_v46 = vld [vmem:[#allocation14_spill] sm:$0xff] }
 0x724   : > { %v6045_v33 = vmax.f32 %v5766_v60, %v5925_v9  ;;  %v5927_v10 = vsel %vm3421_vm6, %v5922_v58, %v5926_v34  ;;  %11091 = vmatprep.mubr.msk.bf16.mxu1 %vm6602_vm10, %v6477_v36  ;;  %v6475_v41 = vsel %vm3421_vm6, %v6470_v45, %v6474_v14  ;;  %v6284_v60 = vld [vmem:[#allocation3 + $0x90] sm:$0xff] }
 0x725   : > { %v6046_v22 = vmax.f32 %v5767_v31, %v5927_v10  ;;  %v5929_v61 = vsel %vm3421_vm6, %v5924_v0, %v5928_v44  ;;  %v5704_v2 = vpop.f32.mrb[160].mxu0  ;;  %6748 = vmatmul.mubr.bf16.gmra.mrb[140].mxu1 %v6475_v41  ;;  %v17429_v31 = vld [vmem:[#allocation21_spill] sm:$0xff] }
 0x726   : > { %v11496_v32 = vpack.c.bf16 %v6045_v33, %v6044_v24  ;;  %v6047_v11 = vmax.f32 %v5768_v8, %v5929_v61  ;;  %v5771_v28 = vmax.f32 %v17426_v59, %v5704_v2  ;;  %v5706_v25 = vpop.f32.mrb[161].mxu0 }
 0x727   : > { %v5772_v53 = vmax.f32 %v17427_v46, %v5706_v25  ;;  %v5708_v39 = vpop.f32.mrb[162].mxu0  ;;  %v6285_v19 = vld [vmem:[#allocation3 + $0x98] sm:$0xff]  ;;  %v17433_v25 = vld [vmem:[#allocation25_spill] sm:$0xff] }
 0x728   : > { %v16002_v56 = vld [vmem:[#allocation3 + $0x94] ss:$8 sps:$4 sm:$0xff]   ;;  %6250 = vst.msk [vmem:[#allocation3 + $0xa8] sm:$0xff] %vm15701_vm9, %v11496_v32  ;;  %v11497_v45 = vpack.c.bf16 %v6047_v11, %v6046_v22  ;;  %v5930_v18 = vrot.slane %v5771_v28, 1  ;;  %v5773_v40 = vmax.f32 %v17428_v37, %v5708_v39  ;;  %v5710_v52 = vpop.f32.mrb[163].mxu0  ;;  %v16007_v17 = vcombine.low %v6284_v60, %v6285_v19  ;;  %v17432_v32 = vld [vmem:[#allocation24_spill] sm:$0xff] }
 0x729   : > { %v5932_v35 = vrot.slane %v5772_v53, 1  ;;  %v5774_v4 = vmax.f32 %v17429_v31, %v5710_v52  ;;  %v6480_v8 = vrot.slane %v16002_v56, 1 }
 0x72a   : > { %6251 = vst.msk [vmem:[#allocation3 + $0xb0] sm:$0xff] %vm15701_vm9, %v11497_v45  ;;  %v5931_v57 = vsel %vm3421_vm6, %v5926_v34, %v5930_v18  ;;  %v5934_v47 = vrot.slane %v5773_v40, 1  ;;  %v6478_v29 = vrot.slane %v16007_v17, 1 }
 0x72b   : > { %v6048_v20 = vmax.f32 %v5769_v3, %v5931_v57  ;;  %v5933_v58 = vsel %vm3421_vm6, %v5928_v44, %v5932_v35  ;;  %v5936_v49 = vrot.slane %v5774_v4, 1  ;;  %v6481_v43 = vsel %vm3421_vm6, %v6476_v7, %v6480_v8  ;;  %v17430_v44 = vld [vmem:[#allocation22_spill] sm:$0xff] }
 0x72c   : > { %v6049_v0 = vmax.f32 %v5770_v63, %v5933_v58  ;;  %v5935_v51 = vsel %vm3421_vm6, %v5930_v18, %v5934_v47  ;;  %11092 = vmatprep.mubr.msk.bf16.mxu1 %vm6602_vm10, %v6481_v43  ;;  %v6479_v62 = vsel %vm3421_vm6, %v6474_v14, %v6478_v29  ;;  %v17431_v63 = vld [vmem:[#allocation23_spill] sm:$0xff] }
 0x72d   : > { %v6050_v24 = vmax.f32 %v5771_v28, %v5935_v51  ;;  %v5937_v9 = vsel %vm3421_vm6, %v5932_v35, %v5936_v49  ;;  %v5714_v34 = vpop.f32.mrb[164].mxu0  ;;  %6758 = vmatmul.mubr.bf16.gmra.mrb[144].mxu1 %v6479_v62  ;;  %v13190_v35 = vld [vmem:[%s17342_s9 + $0x154] ss:$8 sps:$4 sm:$0xff]  }
 0x72e   : > { %v11498_v3 = vpack.c.bf16 %v6049_v0, %v6048_v20  ;;  %v6051_v36 = vmax.f32 %v5772_v53, %v5937_v9  ;;  %v5775_v33 = vmax.f32 %v17430_v44, %v5714_v34  ;;  %v5716_v10 = vpop.f32.mrb[165].mxu0 }
 0x72f   : > { %v5776_v7 = vmax.f32 %v17431_v63, %v5716_v10  ;;  %v5718_v41 = vpop.f32.mrb[166].mxu0  ;;  %v16023_v22 = vld [vmem:[#allocation3 + $0xa4] ss:$8 sps:$4 sm:$0xff]   ;;  %v16025_v61 = vld [vmem:[#allocation3 + $0xa0] ss:$8 sps:$4 sm:$0xff]  }
 0x730   : > { %6252 = vst.msk [vmem:[#allocation3 + $0xb8] sm:$0xff] %vm15701_vm9, %v11498_v3  ;;  %v11499_v14 = vpack.c.bf16 %v6051_v36, %v6050_v24  ;;  %v5938_v2 = vrot.slane %v5775_v33, 1  ;;  %v5777_v11 = vmax.f32 %v17432_v32, %v5718_v41  ;;  %v5720_v59 = vpop.f32.mrb[167].mxu0  ;;  %v6484_v53 = vrot.slane %v16023_v22, 1 }
 0x731   : > { %v5940_v28 = vrot.slane %v5776_v7, 1  ;;  %v5778_v46 = vmax.f32 %v17433_v25, %v5720_v59  ;;  %v6482_v39 = vrot.slane %v16025_v61, 1 }
 0x732   : > { %6253 = vst.msk [vmem:[#allocation3 + $0xc0] sm:$0xff] %vm15701_vm9, %v11499_v14  ;;  %v5939_v60 = vsel %vm3421_vm6, %v5934_v47, %v5938_v2  ;;  %v5942_v19 = vrot.slane %v5777_v11, 1  ;;  %v6485_v31 = vsel %vm3421_vm6, %v6480_v8, %v6484_v53 }
 0x733   : > { %v6052_v18 = vmax.f32 %v5773_v40, %v5939_v60  ;;  %v5941_v37 = vsel %vm3421_vm6, %v5936_v49, %v5940_v28  ;;  %v5944_v52 = vrot.slane %v5778_v46, 1  ;;  %11093 = vmatprep.mubr.msk.bf16.mxu1 %vm6602_vm10, %v6485_v31  ;;  %v6483_v58 = vsel %vm3421_vm6, %v6478_v29, %v6482_v39  ;;  %v13179_v60 = vld [vmem:[%s17342_s9 + $0x120] ss:$8 sps:$4 sm:$0xff]   ;;  %v13188_v31 = vld [vmem:[%s17342_s9 + $0x150] ss:$8 sps:$4 sm:$0xff]  }
 0x734   : > { %v6053_v57 = vmax.f32 %v5774_v4, %v5941_v37  ;;  %v5943_v47 = vsel %vm3421_vm6, %v5938_v2, %v5942_v19  ;;  %v6056_v20 = vmax.f32 %v5777_v11, %v5942_v19  ;;  %v6263_v4 = vld [vmem:[#allocation3 + $0xd8] sm:$0x33] }
 0x735   : > { %v6054_v43 = vmax.f32 %v5775_v33, %v5943_v47  ;;  %v5945_v40 = vsel %vm3421_vm6, %v5940_v28, %v5944_v52  ;;  %v6057_v49 = vmax.f32 %v5778_v46, %v5944_v52  ;;  %6768 = vmatmul.mubr.bf16.gmra.mrb[148].mxu1 %v6483_v58  ;;  %v13182_v37 = vld [vmem:[%s17342_s9 + $0x130] ss:$8 sps:$4 sm:$0xff]   ;;  %v13187_v52 = vld [vmem:[%s17342_s9 + $0x144] ss:$8 sps:$4 sm:$0xff]   ;;  %v13191_v47 = vld [vmem:[%s17342_s9 + $0x160] ss:$8 sps:$4 sm:$0xff]  }
 0x736   : > { %v11500_v0 = vpack.c.bf16 %v6053_v57, %v6052_v18  ;;  %v6055_v51 = vmax.f32 %v5776_v7, %v5945_v40  ;;  %v13184_v18 = vld [vmem:[%s17342_s9 + $0x134] ss:$8 sps:$4 sm:$0xff]   ;;  %v13193_v57 = vld [vmem:[%s17342_s9 + $0x164] ss:$8 sps:$4 sm:$0xff]   ;;  %v13194_v58 = vld [vmem:[%s17342_s9 + $0x170] ss:$8 sps:$4 sm:$0xff]  }
 0x737   : > { %v11502_v8 = vpack.c.bf16 %v6057_v49, %v6056_v20  ;;  %v16057_v62 = vld [vmem:[#allocation3 + $0xb4] ss:$8 sps:$4 sm:$0xff]   ;;  %v16059_v24 = vld [vmem:[#allocation3 + $0xb0] ss:$8 sps:$4 sm:$0xff]   ;;  %v13197_v40 = vld [vmem:[%s17342_s9 + $0x180] ss:$8 sps:$4 sm:$0xff]  }
 0x738   : > { %6254 = vst.msk [vmem:[#allocation3 + $0xc8] sm:$0xff] %vm15701_vm9, %v11500_v0  ;;  %v11501_v29 = vpack.c.bf16 %v6055_v51, %v6054_v43  ;;  %v6488_v34 = vrot.slane %v16057_v62, 1  ;;  %v6486_v3 = vrot.slane %v16059_v24, 1  ;;  %v13196_v20 = vld [vmem:[%s17342_s9 + $0x174] ss:$8 sps:$4 sm:$0xff]  }
 0x739   : > { %v6264_v9 = vsel %vm6262_vm2, %v11502_v8, %v6263_v4  ;;  %v13199_v43 = vld [vmem:[%s17342_s9 + $0x184] ss:$8 sps:$4 sm:$0xff]   ;;  %v13202_v49 = vld [vmem:[%s17342_s9 + $0x194] ss:$8 sps:$4 sm:$0xff]   ;;  %v13200_v0 = vld [vmem:[%s17342_s9 + $0x190] ss:$8 sps:$4 sm:$0xff]  }
 0x73a   : > { %6255 = vst.msk [vmem:[#allocation3 + $0xd0] sm:$0xff] %vm15701_vm9, %v11501_v29  ;;  %6265 = vst [vmem:[#allocation3 + $0xd8] sm:$0x33] %v6264_v9  ;;  %v6489_v36 = vsel %vm3421_vm6, %v6484_v53, %v6488_v34  ;;  %v6487_v44 = vsel %vm3421_vm6, %v6482_v39, %v6486_v3  ;;  %v6266_v53 = vld [vmem:[#allocation3] sm:$0xff]  ;;  %v13210_v8 = vld [vmem:[%s17345_s12 + $0x50] sm:$0xff]   ;;  %v17438_v9 = vmov 0  }
 0x73b   : > { %11094 = vmatprep.mubr.msk.bf16.mxu1 %vm6602_vm10, %v6489_v36  ;;  %v11099_v39 = vcombine.high %v6266_v53, %v15732_v54  ;;  %v11098_v19 = vcombine.low %v6266_v53, %v15732_v54  ;;  %v13185_v54 = vld [vmem:[%s17342_s9 + $0x140] ss:$8 sps:$4 sm:$0xff]   ;;  %v13207_v51 = vld [vmem:[%s17342_s9 + $0x1a4] ss:$8 sps:$4 sm:$0xff]   ;;  %8335 = vmatpush1.bf16.msra.mxu0 %v13210_v8  ;;  %v13211_v29 = vld [vmem:[%s17345_s12 + $0x58] sm:$0xff]  }
 0x73c   : > { %v13205_v4 = vld [vmem:[%s17342_s9 + $0x1a0] ss:$8 sps:$4 sm:$0xff]   ;;  %8336 = vmatprep.subr.bf16.mxu0 %v17438_v9  ;;  %vm7976_vm9 = vsmask.f32 3328 }
 0x73d   : > { %6778 = vmatmul.mubr.bf16.gmra.mrb[152].mxu1 %v6487_v44  ;;  %v7140_v36 = vld [vmem:[#allocation3] sm:$0xcc]  ;;  %v13329_v44 = vld [vmem:[#allocation3 + $0x8] sm:$0xff]  ;;  %vm7977_vm11 = vmand %vm6226_vm7, %vm7976_vm9  ;;  %vm13396_vm7 = vmmov 0  }
 0x73e   : > { %v13216_v53 = vld [vmem:[%s17345_s12 + $0x80] sm:$0xff]  }
 0x73f   : > { %v16070_v33 = vld [vmem:[#allocation3 + $0xc4] ss:$8 sps:$4 sm:$0xff]   ;;  %v16072_v10 = vld [vmem:[#allocation3 + $0xc0] ss:$8 sps:$4 sm:$0xff]   ;;  %8337 = vmatpush1.bf16.msra.mxu0 %v13211_v29 }
 0x740   : > { %v6492_v63 = vrot.slane %v16070_v33, 1  ;;  %v6490_v7 = vrot.slane %v16072_v10, 1  ;;  %8338 = vmatprep.subr.bf16.mxu0 %v17438_v9 }
 0x741   : > { %v16076_v41 = vld [vmem:[#allocation3 + $0xd0] sm:$0xff]  ;;  %v6312_v12 = vld [vmem:[#allocation3 + $0xd8] sm:$0x11] }
 0x742   : > { %v11065_v14 = vcombine.high %v16076_v41, %v6312_v12  ;;  %v6493_v2 = vsel %vm3421_vm6, %v6488_v34, %v6492_v63  ;;  %v6491_v32 = vsel %vm3421_vm6, %v6486_v3, %v6490_v7  ;;  %v11064_v59 = vcombine.low %v16076_v41, %v6312_v12  ;;  %v13212_v34 = vld [vmem:[%s17345_s12 + $0x60] sm:$0xff]  }
 0x743   : > { %11095 = vmatprep.mubr.msk.bf16.mxu1 %vm6602_vm10, %v6493_v2  ;;  %v11101_v3 = vcombine.high %v16076_v41, %v16076_v41  ;;  %8339 = vmatpush1.bf16.msra.mxu0 %v13212_v34  ;;  %v7176_v12 = vrot.slane %v15746_v23, 2 }
 0x744   : > { %v6496_v11 = vrot.slane %v11065_v14, 1  ;;  %v6494_v25 = vrot.slane %v11064_v59, 1  ;;  %8340 = vmatprep.subr.bf16.mxu0 %v17438_v9  ;;  %v11100_v14 = vcombine.low %v16076_v41, %v16076_v41  ;;  %v11152_v59 = vcombine.low %v7140_v36, %v13329_v44 }
 0x745   : > { %6788 = vmatmul.mubr.bf16.gmra.mrb[156].mxu1 %v6491_v32  ;;  %v13214_v32 = vld [vmem:[%s17345_s12 + $0x70] sm:$0xff]  }
 0x746   : > { %v6497_v28 = vsel %vm3421_vm6, %v6492_v63, %v6496_v11  ;;  %v6495_v46 = vsel %vm3421_vm6, %v6490_v7, %v6494_v25  ;;  %v11153_v63 = vcombine.high %v7140_v36, %v13329_v44  ;;  %v13213_v7 = vld [vmem:[%s17345_s12 + $0x68] sm:$0xff]  }
 0x747   : > { %11096 = vmatprep.mubr.msk.bf16.mxu1 %vm6602_vm10, %v6497_v28  ;;  %8341 = vmatpush1.bf16.msra.mxu0 %v13213_v7  ;;  %v7173_v28 = vrot.slane %v15744_v30, 2 }
 0x748   : > { %v7175_v2 = vrot.slane %v11153_v63, 2  ;;  %8342 = vmatprep.subr.bf16.mxu0 %v17438_v9 }
 0x74b   : > { %8343 = vmatpush1.bf16.msra.mxu0 %v13214_v32  ;;  %v7597_v32 = vld [vmem:[%s17343_s10] sm:$0x3] }
 0x74c   : > { %8344 = vmatprep.subr.bf16.mxu0 %v17438_v9 }
 0x74d   : > { %6798 = vmatmul.mubr.bf16.gmra.mrb[160].mxu1 %v6495_v46  ;;  %v7172_v46 = vrot.slane %v11152_v59, 2  ;;  %v17439_v59 = vld [vmem:[#allocation15_spill] sm:$0xff] }
 0x74e   : > { %11097 = vmatprep.mubr.msk.bf16.mxu1 %vm6602_vm10, %v6496_v11  ;;  %v7177_v11 = vsel %vm810_vm0, %v7175_v2, %v7176_v12  ;;  %v13217_v2 = vld [vmem:[%s17345_s12 + $0x88] sm:$0xff]  }
 0x755   : > { %6808 = vmatmul.mubr.bf16.gmra.mrb[164].mxu1 %v6494_v25  ;;  %v7180_v25 = vrot.slane %v15783_v6, 2 }
 0x756   : > { %11120 = vmatprep.mubr.msk.bf16.mxu1 %vm6602_vm10, %v11099_v39  ;;  %v7174_v39 = vsel %vm810_vm0, %v7172_v46, %v7173_v28 }
 0x75d   : > { %7002 = vmatmul.mubr.bf16.vlgmr.msra.gmra.mrb[112].mxu1 %v11098_v19 }
 0x75e   : > { %11121 = vmatprep.mubr.msk.bf16.mxu1 %vm6602_vm10, %v15746_v23  ;;  %7373 = vmatpush1.bf16.msra.mxu1 %v13179_v60  ;;  %v13215_v23 = vld [vmem:[%s17345_s12 + $0x78] sm:$0xff]   ;;  %v7181_v60 = vsel %vm810_vm0, %v7176_v12, %v7180_v25 }
 0x75f   : > { %7374 = vmatprep.subr.bf16.mxu1 %v13184_v18  ;;  %8345 = vmatpush1.bf16.msra.mxu0 %v13215_v23  ;;  %v16295_v23 = vrot.slane %v7597_v32, %v17439_v59 }
 0x760   : > { %8346 = vmatprep.subr.bf16.mxu0 %v17438_v9 }
 0x762   : > { %7375 = vmatpush1.bf16.msra.mxu1 %v13182_v37  ;;  %v7182_v37 = vrot.slane %v15831_v15, 2 }
 0x763   : > { %7376 = vmatprep.subr.bf16.mxu1 %v13187_v52  ;;  %8347 = vmatpush1.bf16.msra.mxu0 %v13216_v53  ;;  %v7188_v52 = vrot.slane %v15865_v21, 2 }
 0x764   : > { %8348 = vmatprep.subr.bf16.mxu0 %v17438_v9 }
 0x765   : > { %7012 = vmatmul.mubr.bf16.gmra.mrb[116].mxu1 %v15744_v30  ;;  %v7178_v30 = vrot.slane %v15790_v27, 2 }
 0x766   : > { %11122 = vmatprep.mubr.msk.bf16.mxu1 %vm6602_vm10, %v15783_v6  ;;  %7377 = vmatpush1.bf16.msra.mxu1 %v13185_v54  ;;  %v7184_v6 = vrot.slane %v15824_v42, 2 }
 0x767   : > { %7378 = vmatprep.subr.bf16.mxu1 %v13190_v35  ;;  %v7179_v19 = vsel %vm810_vm0, %v7173_v28, %v7178_v30  ;;  %v7183_v54 = vsel %vm810_vm0, %v7178_v30, %v7182_v37  ;;  %v7192_v35 = vrot.slane %v15906_v50, 2  ;;  %8349 = vmatpush1.bf16.msra.mxu0 %v13217_v2  ;;  %v17440_v28 = vld [vmem:[#allocation16_spill] sm:$0xff] }
 0x768   : > { %v7185_v18 = vsel %vm810_vm0, %v7180_v25, %v7184_v6  ;;  %8350 = vmatprep.subr.bf16.mxu0 %v17438_v9  ;;  %v16298_v25 = vrot.slane %v7597_v32, %v17440_v28 }
 0x76a   : > { %7379 = vmatpush1.bf16.msra.mxu1 %v13188_v31 }
 0x76b   : > { %7380 = vmatprep.subr.bf16.mxu1 %v13193_v57  ;;  %v7193_v57 = vsel %vm810_vm0, %v7188_v52, %v7192_v35 }
 0x76d   : > { %7022 = vmatmul.mubr.bf16.gmra.mrb[120].mxu1 %v15790_v27  ;;  %v7189_v27 = vsel %vm810_vm0, %v7184_v6, %v7188_v52 }
 0x76e   : > { %11123 = vmatprep.mubr.msk.bf16.mxu1 %vm6602_vm10, %v15824_v42  ;;  %7381 = vmatpush1.bf16.msra.mxu1 %v13191_v47  ;;  %v7186_v42 = vrot.slane %v15872_v16, 2 }
 0x76f   : > { %7382 = vmatprep.subr.bf16.mxu1 %v13196_v20 }
 0x770   : > { %v7187_v31 = vsel %vm810_vm0, %v7182_v37, %v7186_v42 }
 0x772   : > { %7383 = vmatpush1.bf16.msra.mxu1 %v13194_v58 }
 0x773   : > { %7384 = vmatprep.subr.bf16.mxu1 %v13199_v43 }
 0x775   : > { %7032 = vmatmul.mubr.bf16.gmra.mrb[124].mxu1 %v15831_v15  ;;  %v7190_v15 = vrot.slane %v15913_v38, 2 }
 0x776   : > { %11124 = vmatprep.mubr.msk.bf16.mxu1 %vm6602_vm10, %v15865_v21  ;;  %7385 = vmatpush1.bf16.msra.mxu1 %v13197_v40  ;;  %v7196_v21 = vrot.slane %v15938_v26, 2 }
 0x777   : > { %7386 = vmatprep.subr.bf16.mxu1 %v13202_v49  ;;  %v7191_v47 = vsel %vm810_vm0, %v7186_v42, %v7190_v15 }
 0x778   : > { %v7197_v20 = vsel %vm810_vm0, %v7192_v35, %v7196_v21 }
 0x77a   : > { %7387 = vmatpush1.bf16.msra.mxu1 %v13200_v0 }
 0x77b   : > { %7388 = vmatprep.subr.bf16.mxu1 %v13207_v51 }
 0x77d   : > { %7042 = vmatmul.mubr.bf16.gmra.mrb[128].mxu1 %v15872_v16  ;;  %v7194_v16 = vrot.slane %v15943_v48, 2 }
 0x77e   : > { %11125 = vmatprep.mubr.msk.bf16.mxu1 %vm6602_vm10, %v15906_v50  ;;  %7389 = vmatpush1.bf16.msra.mxu1 %v13205_v4  ;;  %v7200_v50 = vrot.slane %v15960_v13, 2 }
 0x77f   : > { %v7195_v58 = vsel %vm810_vm0, %v7190_v15, %v7194_v16 }
 0x780   : > { %v7201_v43 = vsel %vm810_vm0, %v7196_v21, %v7200_v50 }
 0x785   : > { %7052 = vmatmul.mubr.bf16.gmra.mrb[132].mxu1 %v15913_v38  ;;  %v7198_v38 = vrot.slane %v15965_v5, 2 }
 0x786   : > { %11126 = vmatprep.mubr.msk.bf16.mxu1 %vm6602_vm10, %v15938_v26  ;;  %v7204_v26 = vrot.slane %v15981_v55, 2 }
 0x787   : > { %v7199_v40 = vsel %vm810_vm0, %v7194_v16, %v7198_v38 }
 0x788   : > { %v7205_v49 = vsel %vm810_vm0, %v7200_v50, %v7204_v26 }
 0x78d   : > { %7062 = vmatmul.mubr.bf16.gmra.mrb[136].mxu1 %v15943_v48  ;;  %v7202_v48 = vrot.slane %v15986_v1, 2 }
 0x78e   : > { %11127 = vmatprep.mubr.msk.bf16.mxu1 %vm6602_vm10, %v15960_v13  ;;  %v7208_v13 = vrot.slane %v16002_v56, 2 }
 0x78f   : > { %v7203_v0 = vsel %vm810_vm0, %v7198_v38, %v7202_v48 }
 0x790   : > { %v7209_v51 = vsel %vm810_vm0, %v7204_v26, %v7208_v13 }
 0x795   : > { %7072 = vmatmul.mubr.bf16.gmra.mrb[140].mxu1 %v15965_v5  ;;  %v7206_v5 = vrot.slane %v16007_v17, 2 }
 0x796   : > { %11128 = vmatprep.mubr.msk.bf16.mxu1 %vm6602_vm10, %v15981_v55  ;;  %v7212_v55 = vrot.slane %v16023_v22, 2 }
 0x797   : > { %v7207_v4 = vsel %vm810_vm0, %v7202_v48, %v7206_v5 }
 0x798   : > { %v7213_v8 = vsel %vm810_vm0, %v7208_v13, %v7212_v55 }
 0x79d   : > { %7082 = vmatmul.mubr.bf16.gmra.mrb[144].mxu1 %v15986_v1  ;;  %v7210_v1 = vrot.slane %v16025_v61, 2 }
 0x79e   : > { %11129 = vmatprep.mubr.msk.bf16.mxu1 %vm6602_vm10, %v16002_v56  ;;  %v7216_v56 = vrot.slane %v16057_v62, 2 }
 0x79f   : > { %v7211_v29 = vsel %vm810_vm0, %v7206_v5, %v7210_v1 }
 0x7a0   : > { %v7217_v34 = vsel %vm810_vm0, %v7212_v55, %v7216_v56 }
 0x7a5   : > { %7092 = vmatmul.mubr.bf16.gmra.mrb[148].mxu1 %v16007_v17  ;;  %v7214_v17 = vrot.slane %v16059_v24, 2 }
 0x7a6   : > { %11130 = vmatprep.mubr.msk.bf16.mxu1 %vm6602_vm10, %v16023_v22  ;;  %v7220_v22 = vrot.slane %v16070_v33, 2 }
 0x7a7   : > { %v7215_v36 = vsel %vm810_vm0, %v7210_v1, %v7214_v17 }
 0x7a8   : > { %v7221_v44 = vsel %vm810_vm0, %v7216_v56, %v7220_v22 }
 0x7ad   : > { %7102 = vmatmul.mubr.bf16.gmra.mrb[152].mxu1 %v16025_v61 }
 0x7ae   : > { %11131 = vmatprep.mubr.msk.bf16.mxu1 %vm6602_vm10, %v16057_v62  ;;  %v7218_v62 = vrot.slane %v16072_v10, 2 }
 0x7b0   : > { %v7219_v7 = vsel %vm810_vm0, %v7214_v17, %v7218_v62 }
 0x7b5   : > { %7112 = vmatmul.mubr.bf16.gmra.mrb[156].mxu1 %v16059_v24 }
 0x7b6   : > { %11132 = vmatprep.mubr.msk.bf16.mxu1 %vm6602_vm10, %v16070_v33 }
 0x7bd   : > { %7122 = vmatmul.mubr.bf16.gmra.mrb[160].mxu1 %v16072_v10  ;;  %v13218_v10 = vld [vmem:[%s17345_s12 + $0x90] sm:$0xff]  }
 0x7be   : > { %11133 = vmatprep.mubr.msk.bf16.mxu1 %vm6602_vm10, %v11101_v3  ;;  %v7141_v3 = vld [vmem:[#allocation3 + $0xd8] sm:$0x33]  ;;  %8351 = vmatpush1.bf16.msra.mxu0 %v13218_v10 }
 0x7bf   : > { %v11155_v61 = vcombine.high %v16076_v41, %v7141_v3  ;;  %v11154_v12 = vcombine.low %v16076_v41, %v7141_v3  ;;  %8352 = vmatprep.subr.bf16.mxu0 %v17438_v9  ;;  %v13219_v41 = vld [vmem:[%s17345_s12 + $0x98] sm:$0xff]  }
 0x7c1   : > { %v7224_v63 = vrot.slane %v11155_v61, 2  ;;  %v7222_v33 = vrot.slane %v11154_v12, 2 }
 0x7c2   : > { %8353 = vmatpush1.bf16.msra.mxu0 %v13219_v41 }
 0x7c3   : > { %v7225_v24 = vsel %vm810_vm0, %v7220_v22, %v7224_v63  ;;  %8604 = vmatprep.subr.bf16.mxu0 %v17438_v9 }
 0x7c5   : > { %7132 = vmatmul.mubr.bf16.gmra.mrb[164].mxu1 %v11100_v14  ;;  %v7223_v14 = vsel %vm810_vm0, %v7218_v62, %v7222_v33 }
 0x7c6   : > { %11174 = vmatprep.mubr.msk.bf16.mxu1 %vm6602_vm10, %v7177_v11  ;;  %v7663_v11 = vld [vmem:[%s17344_s11] sm:$0x3] }
 0x7c7   : > { %v16301_v46 = vrot.slane %v7663_v11, %v17439_v59 }
 0x7cd   : > { %7405 = vmatmul.mubr.bf16.vlgmr.msra.gmra.mrb[112].mxu1 %v7174_v39  ;;  %v16304_v39 = vrot.slane %v7663_v11, %v17440_v28 }
 0x7ce   : > { %11175 = vmatprep.mubr.msk.bf16.mxu1 %vm6602_vm10, %v7181_v60 }
 0x7d5   : > { %7415 = vmatmul.mubr.bf16.gmra.mrb[116].mxu1 %v7179_v19 }
 0x7d6   : > { %11176 = vmatprep.mubr.msk.bf16.mxu1 %vm6602_vm10, %v7185_v18 }
 0x7dd   : > { %7425 = vmatmul.mubr.bf16.gmra.mrb[120].mxu1 %v7183_v54 }
 0x7de   : > { %11177 = vmatprep.mubr.msk.bf16.mxu1 %vm6602_vm10, %v7189_v27 }
 0x7e5   : > { %7435 = vmatmul.mubr.bf16.gmra.mrb[124].mxu1 %v7187_v31 }
 0x7e6   : > { %11178 = vmatprep.mubr.msk.bf16.mxu1 %vm6602_vm10, %v7193_v57 }
 0x7ed   : > { %7445 = vmatmul.mubr.bf16.gmra.mrb[128].mxu1 %v7191_v47 }
 0x7ee   : > { %11179 = vmatprep.mubr.msk.bf16.mxu1 %vm6602_vm10, %v7197_v20 }
 0x7f5   : > { %7455 = vmatmul.mubr.bf16.gmra.mrb[132].mxu1 %v7195_v58 }
 0x7f6   : > { %11180 = vmatprep.mubr.msk.bf16.mxu1 %vm6602_vm10, %v7201_v43 }
 0x7fd   : > { %7465 = vmatmul.mubr.bf16.gmra.mrb[136].mxu1 %v7199_v40 }
 0x7fe   : > { %11181 = vmatprep.mubr.msk.bf16.mxu1 %vm6602_vm10, %v7205_v49 }
 0x805   : > { %7475 = vmatmul.mubr.bf16.gmra.mrb[140].mxu1 %v7203_v0 }
 0x806   : > { %11182 = vmatprep.mubr.msk.bf16.mxu1 %vm6602_vm10, %v7209_v51 }
 0x80d   : > { %7485 = vmatmul.mubr.bf16.gmra.mrb[144].mxu1 %v7207_v4 }
 0x80e   : > { %11183 = vmatprep.mubr.msk.bf16.mxu1 %vm6602_vm10, %v7213_v8 }
 0x815   : > { %7495 = vmatmul.mubr.bf16.gmra.mrb[148].mxu1 %v7211_v29 }
 0x816   : > { %11184 = vmatprep.mubr.msk.bf16.mxu1 %vm6602_vm10, %v7217_v34 }
 0x81d   : > { %7505 = vmatmul.mubr.bf16.gmra.mrb[152].mxu1 %v7215_v36 }
 0x81e   : > { %11185 = vmatprep.mubr.msk.bf16.mxu1 %vm6602_vm10, %v7221_v44 }
 0x825   : > { %7515 = vmatmul.mubr.bf16.gmra.mrb[156].mxu1 %v7219_v7 }
 0x826   : > { %11186 = vmatprep.mubr.msk.bf16.mxu1 %vm6602_vm10, %v7225_v24 }
 0x82d   : > { %7525 = vmatmul.mubr.bf16.gmra.mrb[160].mxu1 %v7223_v14 }
 0x82e   : > { %11187 = vmatprep.mubr.msk.bf16.mxu1 %vm6602_vm10, %v7224_v63  ;;  %vm16604_vm10 = vmand %vm7947_vm3, %vm2006_vm4 }
 0x82f   : > { %vm7980_vm4 = vmor %vm16604_vm10, %vm7977_vm11 }
 0x835   : > { %7535 = vmatmul.mubr.bf16.gmra.mrb[164].mxu1 %v7222_v33 }
 0x8a0   : > { %v7406_v53 = vpop.f32.mrb[112].mxu1 }
 0x8a1   : > { %v7609_v60 = vmul.f32 %v16295_v23, %v7406_v53  ;;  %v7408_v30 = vpop.f32.mrb[113].mxu1 }
 0x8a2   : > { %v7610_v6 = vmul.f32 %v16298_v25, %v7408_v30  ;;  %v7410_v19 = vpop.f32.mrb[114].mxu1 }
 0x8a3   : > { %v7675_v18 = vadd.f32 %v16301_v46, %v7609_v60  ;;  %v7611_v37 = vmul.f32 %v16295_v23, %v7410_v19  ;;  %v7412_v52 = vpop.f32.mrb[115].mxu1 }
 0x8a4   : > { %v7676_v54 = vadd.f32 %v16304_v39, %v7610_v6  ;;  %v7612_v27 = vmul.f32 %v16298_v25, %v7412_v52 }
 0x8a5   : > { %v7729_v42 = vmax.f32 %v7675_v18, 0.0  ;;  %v7677_v35 = vadd.f32 %v16301_v46, %v7611_v37 }
 0x8a6   : > { %v7730_v31 = vmax.f32 %v7676_v54, 0.0  ;;  %v7678_v57 = vadd.f32 %v16304_v39, %v7612_v27 }
 0x8a7   : > { %v7731_v21 = vmax.f32 %v7677_v35, 0.0 }
 0x8a8   : > { %v11503_v47 = vpack.c.bf16 %v7730_v31, %v7729_v42  ;;  %v7732_v20 = vmax.f32 %v7678_v57, 0.0  ;;  %v7416_v16 = vpop.f32.mrb[116].mxu1 }
 0x8a9   : > { %v7613_v50 = vmul.f32 %v16295_v23, %v7416_v16  ;;  %v7418_v58 = vpop.f32.mrb[117].mxu1 }
 0x8aa   : > { %7949 = vst.msk [vmem:[#allocation4] sm:$0xff] %vm16316_vm5, %v11503_v47  ;;  %v11504_v43 = vpack.c.bf16 %v7732_v20, %v7731_v21  ;;  %v7614_v38 = vmul.f32 %v16298_v25, %v7418_v58  ;;  %v7420_v26 = vpop.f32.mrb[118].mxu1 }
 0x8ab   : > { %v7679_v40 = vadd.f32 %v16301_v46, %v7613_v50  ;;  %v7615_v49 = vmul.f32 %v16295_v23, %v7420_v26  ;;  %v7422_v48 = vpop.f32.mrb[119].mxu1 }
 0x8ac   : > { %7950 = vst.msk [vmem:[#allocation4 + $0x8] sm:$0xff] %vm16316_vm5, %v11504_v43  ;;  %v7680_v13 = vadd.f32 %v16304_v39, %v7614_v38  ;;  %v7616_v0 = vmul.f32 %v16298_v25, %v7422_v48  ;;  %v13225_v38 = vld [vmem:[%s17345_s12] sm:$0xff]  }
 0x8ad   : > { %v7733_v51 = vmax.f32 %v7679_v40, 0.0  ;;  %v7681_v5 = vadd.f32 %v16301_v46, %v7615_v49 }
 0x8ae   : > { %v7734_v55 = vmax.f32 %v7680_v13, 0.0  ;;  %v7682_v4 = vadd.f32 %v16304_v39, %v7616_v0 }
 0x8af   : > { %v7735_v8 = vmax.f32 %v7681_v5, 0.0 }
 0x8b0   : > { %v11505_v1 = vpack.c.bf16 %v7734_v55, %v7733_v51  ;;  %v7736_v56 = vmax.f32 %v7682_v4, 0.0  ;;  %v7426_v29 = vpop.f32.mrb[120].mxu1 }
 0x8b1   : > { %v7617_v34 = vmul.f32 %v16295_v23, %v7426_v29  ;;  %v7428_v17 = vpop.f32.mrb[121].mxu1  ;;  %v8031_v41 = vld [vmem:[#allocation4] sm:$0xee] }
 0x8b2   : > { %7951 = vst.msk [vmem:[#allocation4 + $0x10] sm:$0xff] %vm16316_vm5, %v11505_v1  ;;  %v11506_v22 = vpack.c.bf16 %v7736_v56, %v7735_v8  ;;  %v7618_v3 = vmul.f32 %v16298_v25, %v7428_v17  ;;  %v7430_v36 = vpop.f32.mrb[122].mxu1  ;;  %v13232_v1 = vld [vmem:[%s17345_s12 + $0x8] sm:$0xff]  }
 0x8b3   : > { %v7683_v44 = vadd.f32 %v16301_v46, %v7617_v34  ;;  %v7619_v61 = vmul.f32 %v16295_v23, %v7430_v36  ;;  %v7432_v62 = vpop.f32.mrb[123].mxu1  ;;  %v16343_v33 = vld [vmem:[#allocation4 + $0x8] sm:$0xff] }
 0x8b4   : > { %7952 = vst.msk [vmem:[#allocation4 + $0x18] sm:$0xff] %vm16316_vm5, %v11506_v22  ;;  %v7684_v63 = vadd.f32 %v16304_v39, %v7618_v3  ;;  %v7620_v7 = vmul.f32 %v16298_v25, %v7432_v62  ;;  %v11235_v28 = vcombine.low %v8031_v41, %v16343_v33  ;;  %v11236_v53 = vcombine.high %v8031_v41, %v16343_v33 }
 0x8b5   : > { %v7737_v12 = vmax.f32 %v7683_v44, 0.0  ;;  %v7685_v24 = vadd.f32 %v16301_v46, %v7619_v61 }
 0x8b6   : > { %v7738_v14 = vmax.f32 %v7684_v63, 0.0  ;;  %v7686_v2 = vadd.f32 %v16304_v39, %v7620_v7  ;;  %v8166_v57 = vrot.slane %v11236_v53, 1  ;;  %v8163_v21 = vrot.slane %v11235_v28, 1 }
 0x8b7   : > { %v7739_v10 = vmax.f32 %v7685_v24, 0.0  ;;  %v13236_v24 = vld [vmem:[%s17345_s12 + $0x10] sm:$0xff]  }
 0x8b8   : > { %v11507_v32 = vpack.c.bf16 %v7738_v14, %v7737_v12  ;;  %v7740_v11 = vmax.f32 %v7686_v2, 0.0  ;;  %v7436_v59 = vpop.f32.mrb[124].mxu1 }
 0x8b9   : > { %v7621_v60 = vmul.f32 %v16295_v23, %v7436_v59  ;;  %v7438_v30 = vpop.f32.mrb[125].mxu1 }
 0x8ba   : > { %7953 = vst.msk [vmem:[#allocation4 + $0x20] sm:$0xff] %vm16316_vm5, %v11507_v32  ;;  %v11508_v6 = vpack.c.bf16 %v7740_v11, %v7739_v10  ;;  %v7622_v19 = vmul.f32 %v16298_v25, %v7438_v30  ;;  %v7440_v18 = vpop.f32.mrb[126].mxu1 }
 0x8bb   : > { %v7687_v37 = vadd.f32 %v16301_v46, %v7621_v60  ;;  %v7623_v52 = vmul.f32 %v16295_v23, %v7440_v18  ;;  %v7442_v54 = vpop.f32.mrb[127].mxu1  ;;  %v16354_v27 = vld [vmem:[#allocation4 + $0x10] ss:$8 sps:$4 sm:$0xff]   ;;  %v16356_v42 = vld [vmem:[#allocation4 + $0x14] ss:$8 sps:$4 sm:$0xff]  }
 0x8bc   : > { %7954 = vst.msk [vmem:[#allocation4 + $0x28] sm:$0xff] %vm16316_vm5, %v11508_v6  ;;  %v7688_v35 = vadd.f32 %v16304_v39, %v7622_v19  ;;  %v7624_v31 = vmul.f32 %v16298_v25, %v7442_v54  ;;  %v8167_v16 = vrot.slane %v16356_v42, 1  ;;  %v8164_v50 = vrot.slane %v16354_v27, 1  ;;  %v13242_v6 = vld [vmem:[%s17345_s12 + $0x18] sm:$0xff]  }
 0x8bd   : > { %v7741_v47 = vmax.f32 %v7687_v37, 0.0  ;;  %v7689_v20 = vadd.f32 %v16301_v46, %v7623_v52 }
 0x8be   : > { %v7742_v58 = vmax.f32 %v7688_v35, 0.0  ;;  %v7690_v43 = vadd.f32 %v16304_v39, %v7624_v31  ;;  %v8168_v40 = vsel %vm3421_vm6, %v8166_v57, %v8167_v16  ;;  %v8165_v49 = vsel %vm3421_vm6, %v8163_v21, %v8164_v50 }
 0x8bf   : > { %v7743_v26 = vmax.f32 %v7689_v20, 0.0  ;;  %11273 = vmatprep.mubr.msk.bf16.mxu0 %vm8291_vm8, %v8168_v40 }
 0x8c0   : > { %v11509_v48 = vpack.c.bf16 %v7742_v58, %v7741_v47  ;;  %v7744_v13 = vmax.f32 %v7690_v43, 0.0  ;;  %v7446_v0 = vpop.f32.mrb[128].mxu1  ;;  %8367 = vmatmul.mubr.bf16.vlgmr.msra.gmra.mrb[168].mxu0 %v8165_v49  ;;  %v13247_v58 = vld [vmem:[%s17345_s12 + $0x20] sm:$0xff]  }
 0x8c1   : > { %v7625_v51 = vmul.f32 %v16295_v23, %v7446_v0  ;;  %v7448_v5 = vpop.f32.mrb[129].mxu1  ;;  %8605 = vmatpush1.bf16.msra.mxu0 %v13225_v38 }
 0x8c2   : > { %7955 = vst.msk [vmem:[#allocation4 + $0x30] sm:$0xff] %vm16316_vm5, %v11509_v48  ;;  %v11510_v55 = vpack.c.bf16 %v7744_v13, %v7743_v26  ;;  %v7626_v4 = vmul.f32 %v16298_v25, %v7448_v5  ;;  %v7450_v8 = vpop.f32.mrb[130].mxu1  ;;  %8606 = vmatprep.subr.bf16.mxu0 %v17438_v9 }
 0x8c3   : > { %v7691_v56 = vadd.f32 %v16301_v46, %v7625_v51  ;;  %v7627_v29 = vmul.f32 %v16295_v23, %v7450_v8  ;;  %v7452_v34 = vpop.f32.mrb[131].mxu1  ;;  %v16381_v17 = vld [vmem:[#allocation4 + $0x24] ss:$8 sps:$4 sm:$0xff]   ;;  %v16383_v22 = vld [vmem:[#allocation4 + $0x20] ss:$8 sps:$4 sm:$0xff]  }
 0x8c4   : > { %7956 = vst.msk [vmem:[#allocation4 + $0x38] sm:$0xff] %vm16316_vm5, %v11510_v55  ;;  %v7692_v3 = vadd.f32 %v16304_v39, %v7626_v4  ;;  %v7628_v36 = vmul.f32 %v16298_v25, %v7452_v34  ;;  %v8171_v62 = vrot.slane %v16381_v17, 1  ;;  %v8169_v63 = vrot.slane %v16383_v22, 1  ;;  %v13251_v4 = vld [vmem:[%s17345_s12 + $0x28] sm:$0xff]  }
 0x8c5   : > { %v7745_v44 = vmax.f32 %v7691_v56, 0.0  ;;  %v7693_v61 = vadd.f32 %v16301_v46, %v7627_v29  ;;  %8607 = vmatpush1.bf16.msra.mxu0 %v13232_v1 }
 0x8c6   : > { %v7746_v7 = vmax.f32 %v7692_v3, 0.0  ;;  %v7694_v12 = vadd.f32 %v16304_v39, %v7628_v36  ;;  %v8172_v2 = vsel %vm3421_vm6, %v8167_v16, %v8171_v62  ;;  %v8170_v10 = vsel %vm3421_vm6, %v8164_v50, %v8169_v63  ;;  %8608 = vmatprep.subr.bf16.mxu0 %v17438_v9 }
 0x8c7   : > { %v7747_v14 = vmax.f32 %v7693_v61, 0.0  ;;  %11274 = vmatprep.mubr.msk.bf16.mxu0 %vm8291_vm8, %v8172_v2 }
 0x8c8   : > { %v11511_v41 = vpack.c.bf16 %v7746_v7, %v7745_v44  ;;  %v7748_v32 = vmax.f32 %v7694_v12, 0.0  ;;  %v7456_v11 = vpop.f32.mrb[132].mxu1  ;;  %8375 = vmatmul.mubr.bf16.gmra.mrb[172].mxu0 %v8170_v10 }
 0x8c9   : > { %v7629_v59 = vmul.f32 %v16295_v23, %v7456_v11  ;;  %v7458_v28 = vpop.f32.mrb[133].mxu1  ;;  %8609 = vmatpush1.bf16.msra.mxu0 %v13236_v24  ;;  %v13258_v24 = vld [vmem:[%s17345_s12 + $0x30] sm:$0xff]  }
 0x8ca   : > { %7957 = vst.msk [vmem:[#allocation4 + $0x40] sm:$0xff] %vm16316_vm5, %v11511_v41  ;;  %v11512_v53 = vpack.c.bf16 %v7748_v32, %v7747_v14  ;;  %v7630_v60 = vmul.f32 %v16298_v25, %v7458_v28  ;;  %v7460_v30 = vpop.f32.mrb[134].mxu1  ;;  %8610 = vmatprep.subr.bf16.mxu0 %v17438_v9 }
 0x8cb   : > { %v7695_v19 = vadd.f32 %v16301_v46, %v7629_v59  ;;  %v7631_v18 = vmul.f32 %v16295_v23, %v7460_v30  ;;  %v7462_v37 = vpop.f32.mrb[135].mxu1  ;;  %v16410_v52 = vld [vmem:[#allocation4 + $0x34] ss:$8 sps:$4 sm:$0xff]   ;;  %v16412_v54 = vld [vmem:[#allocation4 + $0x30] ss:$8 sps:$4 sm:$0xff]  }
 0x8cc   : > { %7958 = vst.msk [vmem:[#allocation4 + $0x48] sm:$0xff] %vm16316_vm5, %v11512_v53  ;;  %v7696_v35 = vadd.f32 %v16304_v39, %v7630_v60  ;;  %v7632_v31 = vmul.f32 %v16298_v25, %v7462_v37  ;;  %v8175_v47 = vrot.slane %v16410_v52, 1  ;;  %v8173_v20 = vrot.slane %v16412_v54, 1 }
 0x8cd   : > { %v7749_v57 = vmax.f32 %v7695_v19, 0.0  ;;  %v7697_v21 = vadd.f32 %v16301_v46, %v7631_v18  ;;  %8611 = vmatpush1.bf16.msra.mxu0 %v13242_v6  ;;  %v13262_v6 = vld [vmem:[%s17345_s12 + $0x38] sm:$0xff]  }
 0x8ce   : > { %v7750_v16 = vmax.f32 %v7696_v35, 0.0  ;;  %v7698_v50 = vadd.f32 %v16304_v39, %v7632_v31  ;;  %v8176_v38 = vsel %vm3421_vm6, %v8171_v62, %v8175_v47  ;;  %v8174_v26 = vsel %vm3421_vm6, %v8169_v63, %v8173_v20  ;;  %8612 = vmatprep.subr.bf16.mxu0 %v17438_v9 }
 0x8cf   : > { %v7751_v43 = vmax.f32 %v7697_v21, 0.0  ;;  %11275 = vmatprep.mubr.msk.bf16.mxu0 %vm8291_vm8, %v8176_v38  ;;  %v13267_v38 = vld [vmem:[%s17345_s12 + $0x40] sm:$0xff]  }
 0x8d0   : > { %v11513_v40 = vpack.c.bf16 %v7750_v16, %v7749_v57  ;;  %v7752_v49 = vmax.f32 %v7698_v50, 0.0  ;;  %v7466_v48 = vpop.f32.mrb[136].mxu1  ;;  %8383 = vmatmul.mubr.bf16.gmra.mrb[176].mxu0 %v8174_v26 }
 0x8d1   : > { %v7633_v13 = vmul.f32 %v16295_v23, %v7466_v48  ;;  %v7468_v0 = vpop.f32.mrb[137].mxu1  ;;  %8613 = vmatpush1.bf16.msra.mxu0 %v13247_v58 }
 0x8d2   : > { %7959 = vst.msk [vmem:[#allocation4 + $0x50] sm:$0xff] %vm16316_vm5, %v11513_v40  ;;  %v11514_v51 = vpack.c.bf16 %v7752_v49, %v7751_v43  ;;  %v7634_v5 = vmul.f32 %v16298_v25, %v7468_v0  ;;  %v7470_v55 = vpop.f32.mrb[138].mxu1  ;;  %8614 = vmatprep.subr.bf16.mxu0 %v17438_v9 }
 0x8d3   : > { %v7699_v8 = vadd.f32 %v16301_v46, %v7633_v13  ;;  %v7635_v1 = vmul.f32 %v16295_v23, %v7470_v55  ;;  %v7472_v56 = vpop.f32.mrb[139].mxu1  ;;  %v16439_v29 = vld [vmem:[#allocation4 + $0x44] ss:$8 sps:$4 sm:$0xff]   ;;  %v16441_v34 = vld [vmem:[#allocation4 + $0x40] ss:$8 sps:$4 sm:$0xff]  }
 0x8d4   : > { %7960 = vst.msk [vmem:[#allocation4 + $0x58] sm:$0xff] %vm16316_vm5, %v11514_v51  ;;  %v7700_v3 = vadd.f32 %v16304_v39, %v7634_v5  ;;  %v7636_v36 = vmul.f32 %v16298_v25, %v7472_v56  ;;  %v8179_v62 = vrot.slane %v16439_v29, 1  ;;  %v8177_v63 = vrot.slane %v16441_v34, 1 }
 0x8d5   : > { %v7753_v44 = vmax.f32 %v7699_v8, 0.0  ;;  %v7701_v61 = vadd.f32 %v16301_v46, %v7635_v1  ;;  %8615 = vmatpush1.bf16.msra.mxu0 %v13251_v4  ;;  %v13269_v1 = vld [vmem:[%s17345_s12 + $0x48] sm:$0xff]  }
 0x8d6   : > { %v7754_v7 = vmax.f32 %v7700_v3, 0.0  ;;  %v7702_v12 = vadd.f32 %v16304_v39, %v7636_v36  ;;  %v8180_v2 = vsel %vm3421_vm6, %v8175_v47, %v8179_v62  ;;  %v8178_v10 = vsel %vm3421_vm6, %v8173_v20, %v8177_v63  ;;  %8616 = vmatprep.subr.bf16.mxu0 %v17438_v9 }
 0x8d7   : > { %v7755_v14 = vmax.f32 %v7701_v61, 0.0  ;;  %11276 = vmatprep.mubr.msk.bf16.mxu0 %vm8291_vm8, %v8180_v2 }
 0x8d8   : > { %v11515_v41 = vpack.c.bf16 %v7754_v7, %v7753_v44  ;;  %v7756_v32 = vmax.f32 %v7702_v12, 0.0  ;;  %v7476_v11 = vpop.f32.mrb[140].mxu1  ;;  %8391 = vmatmul.mubr.bf16.gmra.mrb[180].mxu0 %v8178_v10 }
 0x8d9   : > { %v7637_v59 = vmul.f32 %v16295_v23, %v7476_v11  ;;  %v7478_v28 = vpop.f32.mrb[141].mxu1  ;;  %8617 = vmatpush1.bf16.msra.mxu0 %v13258_v24 }
 0x8da   : > { %7961 = vst.msk [vmem:[#allocation4 + $0x60] sm:$0xff] %vm16316_vm5, %v11515_v41  ;;  %v11516_v53 = vpack.c.bf16 %v7756_v32, %v7755_v14  ;;  %v7638_v60 = vmul.f32 %v16298_v25, %v7478_v28  ;;  %v7480_v30 = vpop.f32.mrb[142].mxu1  ;;  %8618 = vmatprep.subr.bf16.mxu0 %v17438_v9 }
 0x8db   : > { %v7703_v19 = vadd.f32 %v16301_v46, %v7637_v59  ;;  %v7639_v18 = vmul.f32 %v16295_v23, %v7480_v30  ;;  %v7482_v37 = vpop.f32.mrb[143].mxu1  ;;  %v16468_v35 = vld [vmem:[#allocation4 + $0x54] ss:$8 sps:$4 sm:$0xff]   ;;  %v16470_v31 = vld [vmem:[#allocation4 + $0x50] ss:$8 sps:$4 sm:$0xff]  }
 0x8dc   : > { %7962 = vst.msk [vmem:[#allocation4 + $0x68] sm:$0xff] %vm16316_vm5, %v11516_v53  ;;  %v7704_v57 = vadd.f32 %v16304_v39, %v7638_v60  ;;  %v7640_v21 = vmul.f32 %v16298_v25, %v7482_v37  ;;  %v8183_v16 = vrot.slane %v16468_v35, 1  ;;  %v8181_v50 = vrot.slane %v16470_v31, 1 }
 0x8dd   : > { %v7757_v47 = vmax.f32 %v7703_v19, 0.0  ;;  %v7705_v20 = vadd.f32 %v16301_v46, %v7639_v18  ;;  %8619 = vmatpush1.bf16.msra.mxu0 %v13262_v6 }
 0x8de   : > { %v7758_v58 = vmax.f32 %v7704_v57, 0.0  ;;  %v7706_v43 = vadd.f32 %v16304_v39, %v7640_v21  ;;  %v8184_v40 = vsel %vm3421_vm6, %v8179_v62, %v8183_v16  ;;  %v8182_v49 = vsel %vm3421_vm6, %v8177_v63, %v8181_v50  ;;  %8620 = vmatprep.subr.bf16.mxu0 %v17438_v9 }
 0x8df   : > { %v7759_v26 = vmax.f32 %v7705_v20, 0.0  ;;  %11277 = vmatprep.mubr.msk.bf16.mxu0 %vm8291_vm8, %v8184_v40 }
 0x8e0   : > { %v11517_v48 = vpack.c.bf16 %v7758_v58, %v7757_v47  ;;  %v7760_v13 = vmax.f32 %v7706_v43, 0.0  ;;  %v7486_v0 = vpop.f32.mrb[144].mxu1  ;;  %8399 = vmatmul.mubr.bf16.gmra.mrb[184].mxu0 %v8182_v49 }
 0x8e1   : > { %v7641_v51 = vmul.f32 %v16295_v23, %v7486_v0  ;;  %v7488_v5 = vpop.f32.mrb[145].mxu1  ;;  %8621 = vmatpush1.bf16.msra.mxu0 %v13267_v38 }
 0x8e2   : > { %7963 = vst.msk [vmem:[#allocation4 + $0x70] sm:$0xff] %vm16316_vm5, %v11517_v48  ;;  %v11518_v55 = vpack.c.bf16 %v7760_v13, %v7759_v26  ;;  %v7642_v4 = vmul.f32 %v16298_v25, %v7488_v5  ;;  %v7490_v8 = vpop.f32.mrb[146].mxu1  ;;  %8622 = vmatprep.subr.bf16.mxu0 %v17438_v9 }
 0x8e3   : > { %v7707_v56 = vadd.f32 %v16301_v46, %v7641_v51  ;;  %v7643_v3 = vmul.f32 %v16295_v23, %v7490_v8  ;;  %v7492_v36 = vpop.f32.mrb[147].mxu1  ;;  %v16497_v44 = vld [vmem:[#allocation4 + $0x64] ss:$8 sps:$4 sm:$0xff]   ;;  %v16499_v61 = vld [vmem:[#allocation4 + $0x60] ss:$8 sps:$4 sm:$0xff]  }
 0x8e4   : > { %7964 = vst.msk [vmem:[#allocation4 + $0x78] sm:$0xff] %vm16316_vm5, %v11518_v55  ;;  %v7708_v62 = vadd.f32 %v16304_v39, %v7642_v4  ;;  %v7644_v63 = vmul.f32 %v16298_v25, %v7492_v36  ;;  %v8187_v24 = vrot.slane %v16497_v44, 1  ;;  %v8185_v14 = vrot.slane %v16499_v61, 1 }
 0x8e5   : > { %v7761_v7 = vmax.f32 %v7707_v56, 0.0  ;;  %v7709_v12 = vadd.f32 %v16301_v46, %v7643_v3  ;;  %8623 = vmatpush1.bf16.msra.mxu0 %v13269_v1 }
 0x8e6   : > { %v7762_v2 = vmax.f32 %v7708_v62, 0.0  ;;  %v7710_v10 = vadd.f32 %v16304_v39, %v7644_v63  ;;  %v8188_v32 = vsel %vm3421_vm6, %v8183_v16, %v8187_v24  ;;  %v8186_v11 = vsel %vm3421_vm6, %v8181_v50, %v8185_v14  ;;  %8951 = vmatprep.subr.bf16.mxu0 %v17438_v9 }
 0x8e7   : > { %v7763_v41 = vmax.f32 %v7709_v12, 0.0  ;;  %11278 = vmatprep.mubr.msk.bf16.mxu0 %vm8291_vm8, %v8188_v32 }
 0x8e8   : > { %v11519_v59 = vpack.c.bf16 %v7762_v2, %v7761_v7  ;;  %v7764_v28 = vmax.f32 %v7710_v10, 0.0  ;;  %v7496_v53 = vpop.f32.mrb[148].mxu1  ;;  %8407 = vmatmul.mubr.bf16.gmra.mrb[188].mxu0 %v8186_v11 }
 0x8e9   : > { %v7645_v60 = vmul.f32 %v16295_v23, %v7496_v53  ;;  %v7498_v30 = vpop.f32.mrb[149].mxu1 }
 0x8ea   : > { %7965 = vst.msk [vmem:[#allocation4 + $0x80] sm:$0xff] %vm16316_vm5, %v11519_v59  ;;  %v11520_v6 = vpack.c.bf16 %v7764_v28, %v7763_v41  ;;  %v7646_v19 = vmul.f32 %v16298_v25, %v7498_v30  ;;  %v7500_v18 = vpop.f32.mrb[150].mxu1 }
 0x8eb   : > { %v7711_v37 = vadd.f32 %v16301_v46, %v7645_v60  ;;  %v7647_v57 = vmul.f32 %v16295_v23, %v7500_v18  ;;  %v7502_v21 = vpop.f32.mrb[151].mxu1  ;;  %v16520_v47 = vld [vmem:[#allocation4 + $0x74] ss:$8 sps:$4 sm:$0xff]   ;;  %v16522_v20 = vld [vmem:[#allocation4 + $0x70] ss:$8 sps:$4 sm:$0xff]  }
 0x8ec   : > { %7966 = vst.msk [vmem:[#allocation4 + $0x88] sm:$0xff] %vm16316_vm5, %v11520_v6  ;;  %v7712_v16 = vadd.f32 %v16304_v39, %v7646_v19  ;;  %v7648_v50 = vmul.f32 %v16298_v25, %v7502_v21  ;;  %v8191_v38 = vrot.slane %v16520_v47, 1  ;;  %v8189_v26 = vrot.slane %v16522_v20, 1 }
 0x8ed   : > { %v7765_v58 = vmax.f32 %v7711_v37, 0.0  ;;  %v7713_v43 = vadd.f32 %v16301_v46, %v7647_v57 }
 0x8ee   : > { %v7766_v40 = vmax.f32 %v7712_v16, 0.0  ;;  %v7714_v49 = vadd.f32 %v16304_v39, %v7648_v50  ;;  %v8192_v13 = vsel %vm3421_vm6, %v8187_v24, %v8191_v38  ;;  %v8190_v0 = vsel %vm3421_vm6, %v8185_v14, %v8189_v26 }
 0x8ef   : > { %v7767_v48 = vmax.f32 %v7713_v43, 0.0  ;;  %11279 = vmatprep.mubr.msk.bf16.mxu0 %vm8291_vm8, %v8192_v13 }
 0x8f0   : > { %v11521_v51 = vpack.c.bf16 %v7766_v40, %v7765_v58  ;;  %v7768_v5 = vmax.f32 %v7714_v49, 0.0  ;;  %v7506_v55 = vpop.f32.mrb[152].mxu1  ;;  %8415 = vmatmul.mubr.bf16.gmra.mrb[192].mxu0 %v8190_v0 }
 0x8f1   : > { %v7649_v4 = vmul.f32 %v16295_v23, %v7506_v55  ;;  %v7508_v8 = vpop.f32.mrb[153].mxu1 }
 0x8f2   : > { %7967 = vst.msk [vmem:[#allocation4 + $0x90] sm:$0xff] %vm16316_vm5, %v11521_v51  ;;  %v11522_v1 = vpack.c.bf16 %v7768_v5, %v7767_v48  ;;  %v7650_v56 = vmul.f32 %v16298_v25, %v7508_v8  ;;  %v7510_v3 = vpop.f32.mrb[154].mxu1 }
 0x8f3   : > { %v7715_v36 = vadd.f32 %v16301_v46, %v7649_v4  ;;  %v7651_v62 = vmul.f32 %v16295_v23, %v7510_v3  ;;  %v7512_v63 = vpop.f32.mrb[155].mxu1  ;;  %v16541_v7 = vld [vmem:[#allocation4 + $0x84] ss:$8 sps:$4 sm:$0xff]   ;;  %v16543_v12 = vld [vmem:[#allocation4 + $0x80] ss:$8 sps:$4 sm:$0xff]  }
 0x8f4   : > { %7968 = vst.msk [vmem:[#allocation4 + $0x98] sm:$0xff] %vm16316_vm5, %v11522_v1  ;;  %v7716_v24 = vadd.f32 %v16304_v39, %v7650_v56  ;;  %v7652_v14 = vmul.f32 %v16298_v25, %v7512_v63  ;;  %v8195_v41 = vrot.slane %v16541_v7, 1  ;;  %v8193_v32 = vrot.slane %v16543_v12, 1 }
 0x8f5   : > { %v7769_v2 = vmax.f32 %v7715_v36, 0.0  ;;  %v7717_v10 = vadd.f32 %v16301_v46, %v7651_v62 }
 0x8f6   : > { %v7770_v11 = vmax.f32 %v7716_v24, 0.0  ;;  %v7718_v59 = vadd.f32 %v16304_v39, %v7652_v14  ;;  %v8196_v53 = vsel %vm3421_vm6, %v8191_v38, %v8195_v41  ;;  %v8194_v60 = vsel %vm3421_vm6, %v8189_v26, %v8193_v32 }
 0x8f7   : > { %v7771_v28 = vmax.f32 %v7717_v10, 0.0  ;;  %11280 = vmatprep.mubr.msk.bf16.mxu0 %vm8291_vm8, %v8196_v53 }
 0x8f8   : > { %v11523_v30 = vpack.c.bf16 %v7770_v11, %v7769_v2  ;;  %v7772_v6 = vmax.f32 %v7718_v59, 0.0  ;;  %v7516_v19 = vpop.f32.mrb[156].mxu1  ;;  %8423 = vmatmul.mubr.bf16.gmra.mrb[196].mxu0 %v8194_v60 }
 0x8f9   : > { %v7653_v18 = vmul.f32 %v16295_v23, %v7516_v19  ;;  %v7518_v37 = vpop.f32.mrb[157].mxu1 }
 0x8fa   : > { %7969 = vst.msk [vmem:[#allocation4 + $0xa0] sm:$0xff] %vm16316_vm5, %v11523_v30  ;;  %v11524_v57 = vpack.c.bf16 %v7772_v6, %v7771_v28  ;;  %v7654_v21 = vmul.f32 %v16298_v25, %v7518_v37  ;;  %v7520_v16 = vpop.f32.mrb[158].mxu1 }
 0x8fb   : > { %v7719_v50 = vadd.f32 %v16301_v46, %v7653_v18  ;;  %v7655_v58 = vmul.f32 %v16295_v23, %v7520_v16  ;;  %v7522_v43 = vpop.f32.mrb[159].mxu1  ;;  %v16562_v38 = vld [vmem:[#allocation4 + $0x94] ss:$8 sps:$4 sm:$0xff]   ;;  %v16564_v26 = vld [vmem:[#allocation4 + $0x90] ss:$8 sps:$4 sm:$0xff]  }
 0x8fc   : > { %7970 = vst.msk [vmem:[#allocation4 + $0xa8] sm:$0xff] %vm16316_vm5, %v11524_v57  ;;  %v7720_v40 = vadd.f32 %v16304_v39, %v7654_v21  ;;  %v7656_v49 = vmul.f32 %v16298_v25, %v7522_v43  ;;  %v8199_v0 = vrot.slane %v16562_v38, 1  ;;  %v8197_v51 = vrot.slane %v16564_v26, 1 }
 0x8fd   : > { %v7773_v48 = vmax.f32 %v7719_v50, 0.0  ;;  %v7721_v13 = vadd.f32 %v16301_v46, %v7655_v58 }
 0x8fe   : > { %v7774_v5 = vmax.f32 %v7720_v40, 0.0  ;;  %v7722_v55 = vadd.f32 %v16304_v39, %v7656_v49  ;;  %v8200_v8 = vsel %vm3421_vm6, %v8195_v41, %v8199_v0  ;;  %v8198_v1 = vsel %vm3421_vm6, %v8193_v32, %v8197_v51 }
 0x8ff   : > { %v7775_v4 = vmax.f32 %v7721_v13, 0.0  ;;  %11281 = vmatprep.mubr.msk.bf16.mxu0 %vm8291_vm8, %v8200_v8 }
 0x900   : > { %v11525_v56 = vpack.c.bf16 %v7774_v5, %v7773_v48  ;;  %v7776_v3 = vmax.f32 %v7722_v55, 0.0  ;;  %v7526_v36 = vpop.f32.mrb[160].mxu1  ;;  %8431 = vmatmul.mubr.bf16.gmra.mrb[200].mxu0 %v8198_v1 }
 0x901   : > { %v7657_v62 = vmul.f32 %v16295_v23, %v7526_v36  ;;  %v7528_v63 = vpop.f32.mrb[161].mxu1 }
 0x902   : > { %7971 = vst.msk [vmem:[#allocation4 + $0xb0] sm:$0xff] %vm16316_vm5, %v11525_v56  ;;  %v11526_v24 = vpack.c.bf16 %v7776_v3, %v7775_v4  ;;  %v7658_v14 = vmul.f32 %v16298_v25, %v7528_v63  ;;  %v7530_v2 = vpop.f32.mrb[162].mxu1 }
 0x903   : > { %v7723_v10 = vadd.f32 %v16301_v46, %v7657_v62  ;;  %v7659_v41 = vmul.f32 %v16295_v23, %v7530_v2  ;;  %v7532_v32 = vpop.f32.mrb[163].mxu1  ;;  %v16583_v11 = vld [vmem:[#allocation4 + $0xa4] ss:$8 sps:$4 sm:$0xff]   ;;  %v16585_v59 = vld [vmem:[#allocation4 + $0xa0] ss:$8 sps:$4 sm:$0xff]  }
 0x904   : > { %7972 = vst.msk [vmem:[#allocation4 + $0xb8] sm:$0xff] %vm16316_vm5, %v11526_v24  ;;  %v7724_v28 = vadd.f32 %v16304_v39, %v7658_v14  ;;  %v7660_v53 = vmul.f32 %v16298_v25, %v7532_v32  ;;  %v8203_v6 = vrot.slane %v16583_v11, 1  ;;  %v8201_v19 = vrot.slane %v16585_v59, 1 }
 0x905   : > { %v7777_v60 = vmax.f32 %v7723_v10, 0.0  ;;  %v7725_v30 = vadd.f32 %v16301_v46, %v7659_v41 }
 0x906   : > { %v7778_v18 = vmax.f32 %v7724_v28, 0.0  ;;  %v7726_v37 = vadd.f32 %v16304_v39, %v7660_v53  ;;  %v8204_v21 = vsel %vm3421_vm6, %v8199_v0, %v8203_v6  ;;  %v8202_v16 = vsel %vm3421_vm6, %v8197_v51, %v8201_v19  ;;  %v13281_v0 = vld [vmem:[%s17345_s12 + $0xe8] sm:$0xff]  }
 0x907   : > { %v7779_v57 = vmax.f32 %v7725_v30, 0.0  ;;  %11282 = vmatprep.mubr.msk.bf16.mxu0 %vm8291_vm8, %v8204_v21 }
 0x908   : > { %v11527_v50 = vpack.c.bf16 %v7778_v18, %v7777_v60  ;;  %v7780_v58 = vmax.f32 %v7726_v37, 0.0  ;;  %v7536_v43 = vpop.f32.mrb[164].mxu1  ;;  %8439 = vmatmul.mubr.bf16.gmra.mrb[204].mxu0 %v8202_v16  ;;  %v7984_v18 = vld [vmem:[#allocation4] sm:$0xff]  ;;  %v13271_v16 = vld [vmem:[%s17345_s12 + $0xa8] sm:$0xff]  }
 0x909   : > { %v7661_v40 = vmul.f32 %v16295_v23, %v7536_v43  ;;  %v7538_v49 = vpop.f32.mrb[165].mxu1  ;;  %v11288_v37 = vcombine.high %v7984_v18, %v16343_v33  ;;  %v11287_v21 = vcombine.low %v7984_v18, %v16343_v33  ;;  %v13274_v43 = vld [vmem:[%s17345_s12 + $0xc0] sm:$0xff]  }
 0x90a   : > { %7973 = vst.msk [vmem:[#allocation4 + $0xc0] sm:$0xff] %vm16316_vm5, %v11527_v50  ;;  %v11528_v48 = vpack.c.bf16 %v7780_v58, %v7779_v57  ;;  %v7662_v13 = vmul.f32 %v16298_v25, %v7538_v49  ;;  %v7540_v51 = vpop.f32.mrb[166].mxu1  ;;  %v13270_v57 = vld [vmem:[%s17345_s12 + $0xa0] sm:$0xff]   ;;  %v13272_v50 = vld [vmem:[%s17345_s12 + $0xb0] sm:$0xff]   ;;  %v13273_v58 = vld [vmem:[%s17345_s12 + $0xb8] sm:$0xff]  }
 0x90b   : > { %v7727_v5 = vadd.f32 %v16301_v46, %v7661_v40  ;;  %v7541_v55 = vpop.f32.mrb[167].mxu1  ;;  %v16609_v23 = vld [vmem:[#allocation4 + $0xb4] ss:$8 sps:$4 sm:$0xff]   ;;  %v16611_v4 = vld [vmem:[#allocation4 + $0xb0] ss:$8 sps:$4 sm:$0xff]   ;;  %v13275_v40 = vld [vmem:[%s17345_s12 + $0xc8] sm:$0xff]  }
 0x90c   : > { %7974 = vst.msk [vmem:[#allocation4 + $0xc8] sm:$0xff] %vm16316_vm5, %v11528_v48  ;;  %v7728_v8 = vadd.f32 %v16304_v39, %v7662_v13  ;;  %v8207_v1 = vrot.slane %v16609_v23, 1  ;;  %v8205_v56 = vrot.slane %v16611_v4, 1  ;;  %v7981_v46 = vld [vmem:[#allocation4 + $0xd0] sm:$0xff]  ;;  %v13277_v48 = vld [vmem:[%s17345_s12 + $0xd8] sm:$0xff]   ;;  %v13278_v13 = vld [vmem:[%s17345_s12 + $0xe0] sm:$0xff]  }
 0x90d   : > { %v7781_v25 = vmax.f32 %v7727_v5, 0.0  ;;  %v13276_v49 = vld [vmem:[%s17345_s12 + $0xd0] sm:$0xff]   ;;  %v13395_v51 = vmov 0.0   ;;  %v13283_v5 = vld [vmem:[%s17348_s15 + $0x8] sm:$0xff]  }
 0x90e   : > { %v7782_v3 = vmax.f32 %v7728_v8, 0.0  ;;  %v8208_v36 = vsel %vm3421_vm6, %v8203_v6, %v8207_v1  ;;  %v8206_v62 = vsel %vm3421_vm6, %v8201_v19, %v8205_v56  ;;  %11778 = vmatprep.subr.bf16.mxu1 %v13395_v51  ;;  %v13284_v8 = vld [vmem:[%s17348_s15 + $0x10] sm:$0xff]   ;;  %11794 = vmatprep.mubr.msk.bf16.mxu1 %vm13396_vm7, %v13395_v51 }
 0x90f   : > { %11283 = vmatprep.mubr.msk.bf16.mxu0 %vm8291_vm8, %v8208_v36 }
 0x910   : > { %v11529_v15 = vpack.c.bf16 %v7782_v3, %v7781_v25  ;;  %8447 = vmatmul.mubr.bf16.gmra.mrb[208].mxu0 %v8206_v62  ;;  %v13285_v3 = vld [vmem:[%s17348_s15 + $0x18] sm:$0xff]  }
 0x912   : > { %v16624_v39 = vsel %vm7980_vm4, %v11529_v15, %v7981_v46  ;;  %v8785_v46 = vrot.slane %v16356_v42, 2  ;;  %v13286_v15 = vld [vmem:[%s17348_s15 + $0x20] sm:$0xff]  }
 0x913   : > { %7983 = vst [vmem:[#allocation4 + $0xd0] sm:$0xff] %v16624_v39  ;;  %v16627_v63 = vld [vmem:[#allocation4 + $0xc4] ss:$8 sps:$4 sm:$0xff]   ;;  %v16629_v24 = vld [vmem:[#allocation4 + $0xc0] ss:$8 sps:$4 sm:$0xff]  }
 0x914   : > { %v8211_v14 = vrot.slane %v16627_v63, 1  ;;  %v8209_v2 = vrot.slane %v16629_v24, 1 }
 0x916   : > { %v8212_v10 = vsel %vm3421_vm6, %v8207_v1, %v8211_v14  ;;  %v8210_v41 = vsel %vm3421_vm6, %v8205_v56, %v8209_v2  ;;  %v8748_v1 = vld [vmem:[#allocation4] sm:$0xcc] }
 0x917   : > { %11284 = vmatprep.mubr.msk.bf16.mxu0 %vm8291_vm8, %v8212_v10  ;;  %v11336_v56 = vcombine.high %v8748_v1, %v16343_v33  ;;  %v8782_v10 = vrot.slane %v16354_v27, 2 }
 0x918   : > { %8455 = vmatmul.mubr.bf16.gmra.mrb[212].mxu0 %v8210_v41  ;;  %v8789_v41 = vrot.slane %v16381_v17, 2 }
 0x919   : > { %v8784_v62 = vrot.slane %v11336_v56, 2 }
 0x91a   : > { %v8032_v32 = vld [vmem:[#allocation4 + $0xd0] sm:$0x77] }
 0x91b   : > { %v11262_v28 = vcombine.high %v8032_v32, %v8032_v32  ;;  %v11261_v53 = vcombine.low %v8032_v32, %v8032_v32  ;;  %v8010_v55 = vld [vmem:[#allocation4 + $0xd0] sm:$0x33] }
 0x91c   : > { %v11290_v25 = vcombine.high %v8010_v55, %v8010_v55  ;;  %v11289_v36 = vcombine.low %v8010_v55, %v8010_v55 }
 0x91d   : > { %v8215_v60 = vrot.slane %v11262_v28, 1  ;;  %v8213_v30 = vrot.slane %v11261_v53, 1  ;;  %v13288_v28 = vld [vmem:[%s17348_s15 + $0x30] sm:$0xff]   ;;  %v8790_v53 = vsel %vm810_vm0, %v8785_v46, %v8789_v41 }
 0x91f   : > { %v8216_v6 = vsel %vm3421_vm6, %v8211_v14, %v8215_v60  ;;  %v8214_v19 = vsel %vm3421_vm6, %v8209_v2, %v8213_v30  ;;  %v8786_v14 = vsel %vm810_vm0, %v8784_v62, %v8785_v46  ;;  %v11335_v2 = vcombine.low %v8748_v1, %v16343_v33  ;;  %v13293_v62 = vld [vmem:[%s17348_s15 + $0x58] sm:$0xff]  }
 0x920   : > { %11285 = vmatprep.mubr.msk.bf16.mxu0 %vm8291_vm8, %v8216_v6  ;;  %v8791_v6 = vrot.slane %v16412_v54, 2 }
 0x921   : > { %8463 = vmatmul.mubr.bf16.gmra.mrb[216].mxu0 %v8214_v19  ;;  %v8781_v32 = vrot.slane %v11335_v2, 2  ;;  %v8797_v19 = vrot.slane %v16439_v29, 2  ;;  %v13295_v2 = vld [vmem:[%s17348_s15 + $0x68] sm:$0xff]  }
 0x922   : > { %11286 = vmatprep.mubr.msk.bf16.mxu0 %vm8291_vm8, %v8215_v60 }
 0x923   : > { %v8783_v33 = vsel %vm810_vm0, %v8781_v32, %v8782_v10 }
 0x929   : > { %8471 = vmatmul.mubr.bf16.gmra.mrb[220].mxu0 %v8213_v30 }
 0x92a   : > { %11301 = vmatprep.mubr.msk.bf16.mxu0 %vm8291_vm8, %v11288_v37  ;;  %v8801_v37 = vrot.slane %v16468_v35, 2 }
 0x931   : > { %8637 = vmatmul.mubr.bf16.vlgmr.msra.gmra.mrb[168].mxu0 %v11287_v21  ;;  %v8802_v21 = vsel %vm810_vm0, %v8797_v19, %v8801_v37 }
 0x932   : > { %11302 = vmatprep.mubr.msk.bf16.mxu0 %vm8291_vm8, %v16356_v42  ;;  %8952 = vmatpush1.bf16.msra.mxu0 %v13270_v57  ;;  %v13287_v42 = vld [vmem:[%s17348_s15 + $0x28] sm:$0xff]  }
 0x933   : > { %8953 = vmatprep.subr.bf16.mxu0 %v17438_v9 }
 0x936   : > { %8954 = vmatpush1.bf16.msra.mxu0 %v13271_v16 }
 0x937   : > { %8955 = vmatprep.subr.bf16.mxu0 %v17438_v9 }
 0x939   : > { %8645 = vmatmul.mubr.bf16.gmra.mrb[172].mxu0 %v16354_v27  ;;  %v8787_v27 = vrot.slane %v16383_v22, 2 }
 0x93a   : > { %11303 = vmatprep.mubr.msk.bf16.mxu0 %vm8291_vm8, %v16381_v17  ;;  %8956 = vmatpush1.bf16.msra.mxu0 %v13272_v50  ;;  %v8793_v17 = vrot.slane %v16410_v52, 2 }
 0x93b   : > { %8957 = vmatprep.subr.bf16.mxu0 %v17438_v9  ;;  %v8788_v60 = vsel %vm810_vm0, %v8782_v10, %v8787_v27  ;;  %v8792_v18 = vsel %vm810_vm0, %v8787_v27, %v8791_v6  ;;  %v13299_v10 = vld [vmem:[%s17348_s15 + $0x78] sm:$0xff]  }
 0x93c   : > { %v8794_v30 = vsel %vm810_vm0, %v8789_v41, %v8793_v17  ;;  %v16861_v41 = vld [vmem:[%s17346_s13] ss:$0 sm:$0xff] }
 0x93e   : > { %8958 = vmatpush1.bf16.msra.mxu0 %v13273_v58 }
 0x93f   : > { %8959 = vmatprep.subr.bf16.mxu0 %v17438_v9 }
 0x941   : > { %8653 = vmatmul.mubr.bf16.gmra.mrb[176].mxu0 %v16383_v22  ;;  %v8798_v22 = vsel %vm810_vm0, %v8793_v17, %v8797_v19 }
 0x942   : > { %11304 = vmatprep.mubr.msk.bf16.mxu0 %vm8291_vm8, %v16410_v52  ;;  %8960 = vmatpush1.bf16.msra.mxu0 %v13274_v43  ;;  %v8795_v52 = vrot.slane %v16441_v34, 2 }
 0x943   : > { %8961 = vmatprep.subr.bf16.mxu0 %v17438_v9 }
 0x944   : > { %v8796_v57 = vsel %vm810_vm0, %v8791_v6, %v8795_v52 }
 0x946   : > { %8962 = vmatpush1.bf16.msra.mxu0 %v13275_v40 }
 0x947   : > { %8963 = vmatprep.subr.bf16.mxu0 %v17438_v9 }
 0x949   : > { %8661 = vmatmul.mubr.bf16.gmra.mrb[180].mxu0 %v16412_v54  ;;  %v8799_v54 = vrot.slane %v16470_v31, 2 }
 0x94a   : > { %11305 = vmatprep.mubr.msk.bf16.mxu0 %vm8291_vm8, %v16439_v29  ;;  %8964 = vmatpush1.bf16.msra.mxu0 %v13276_v49  ;;  %v8805_v29 = vrot.slane %v16497_v44, 2 }
 0x94b   : > { %8965 = vmatprep.subr.bf16.mxu0 %v17438_v9  ;;  %v8800_v16 = vsel %vm810_vm0, %v8795_v52, %v8799_v54 }
 0x94c   : > { %v8806_v50 = vsel %vm810_vm0, %v8801_v37, %v8805_v29 }
 0x94e   : > { %8966 = vmatpush1.bf16.msra.mxu0 %v13277_v48 }
 0x94f   : > { %8967 = vmatprep.subr.bf16.mxu0 %v17438_v9 }
 0x951   : > { %8669 = vmatmul.mubr.bf16.gmra.mrb[184].mxu0 %v16441_v34  ;;  %v8803_v34 = vrot.slane %v16499_v61, 2 }
 0x952   : > { %11306 = vmatprep.mubr.msk.bf16.mxu0 %vm8291_vm8, %v16468_v35  ;;  %8968 = vmatpush1.bf16.msra.mxu0 %v13278_v13  ;;  %v8809_v35 = vrot.slane %v16520_v47, 2 }
 0x953   : > { %8969 = vmatprep.subr.bf16.mxu0 %v17438_v9  ;;  %v13282_v9 = vld [vmem:[%s17348_s15] sm:$0xff]   ;;  %v8804_v58 = vsel %vm810_vm0, %v8799_v54, %v8803_v34 }
 0x954   : > { %11779 = vmatpush3.bf16.msra.mxu1 %v13282_v9  ;;  %v8810_v43 = vsel %vm810_vm0, %v8805_v29, %v8809_v35 }
 0x955   : > { %11780 = vmatprep.subr.bf16.mxu1 %v13395_v51 }
 0x956   : > { %8970 = vmatpush1.bf16.msra.mxu0 %v13281_v0 }
 0x957   : > { %11710 = vmatprep.subr.bf16.mxu0 %v13395_v51 }
 0x958   : > { %11781 = vmatpush3.bf16.msra.mxu1 %v13283_v5 }
 0x959   : > { %8677 = vmatmul.mubr.bf16.gmra.mrb[188].mxu0 %v16470_v31  ;;  %11782 = vmatprep.subr.bf16.mxu1 %v13395_v51  ;;  %v8807_v31 = vrot.slane %v16522_v20, 2 }
 0x95a   : > { %11307 = vmatprep.mubr.msk.bf16.mxu0 %vm8291_vm8, %v16497_v44  ;;  %v8813_v44 = vrot.slane %v16541_v7, 2 }
 0x95b   : > { %v8808_v40 = vsel %vm810_vm0, %v8803_v34, %v8807_v31 }
 0x95c   : > { %11783 = vmatpush3.bf16.msra.mxu1 %v13284_v8  ;;  %v8814_v49 = vsel %vm810_vm0, %v8809_v35, %v8813_v44 }
 0x95d   : > { %11784 = vmatprep.subr.bf16.mxu1 %v13395_v51 }
 0x960   : > { %11785 = vmatpush3.bf16.msra.mxu1 %v13285_v3 }
 0x961   : > { %8685 = vmatmul.mubr.bf16.gmra.mrb[192].mxu0 %v16499_v61  ;;  %11786 = vmatprep.subr.bf16.mxu1 %v13395_v51  ;;  %v8811_v61 = vrot.slane %v16543_v12, 2 }
 0x962   : > { %11308 = vmatprep.mubr.msk.bf16.mxu0 %vm8291_vm8, %v16520_v47  ;;  %v8817_v47 = vrot.slane %v16562_v38, 2 }
 0x963   : > { %v8812_v48 = vsel %vm810_vm0, %v8807_v31, %v8811_v61 }
 0x964   : > { %11787 = vmatpush3.bf16.msra.mxu1 %v13286_v15  ;;  %v8818_v13 = vsel %vm810_vm0, %v8813_v44, %v8817_v47  ;;  %v13292_v15 = vld [vmem:[%s17348_s15 + $0x38] sm:$0xff]  }
 0x965   : > { %11788 = vmatprep.subr.bf16.mxu1 %v13395_v51 }
 0x968   : > { %11789 = vmatpush3.bf16.msra.mxu1 %v13287_v42  ;;  %v13297_v42 = vld [vmem:[%s17348_s15 + $0x70] sm:$0xff]  }
 0x969   : > { %8693 = vmatmul.mubr.bf16.gmra.mrb[196].mxu0 %v16522_v20  ;;  %11790 = vmatprep.subr.bf16.mxu1 %v13395_v51  ;;  %v8815_v20 = vrot.slane %v16564_v26, 2 }
 0x96a   : > { %11309 = vmatprep.mubr.msk.bf16.mxu0 %vm8291_vm8, %v16541_v7  ;;  %v8821_v7 = vrot.slane %v16583_v11, 2 }
 0x96b   : > { %v8816_v0 = vsel %vm810_vm0, %v8811_v61, %v8815_v20 }
 0x96c   : > { %11791 = vmatpush3.bf16.msra.mxu1 %v13288_v28  ;;  %v8822_v9 = vsel %vm810_vm0, %v8817_v47, %v8821_v7  ;;  %v16866_v28 = vld [vmem:[%s17347_s14] ss:$0 sm:$0xff] }
 0x96d   : > { %11792 = vmatprep.subr.bf16.mxu1 %v13395_v51  ;;  %v13298_v47 = vld [vmem:[%s17348_s15 + $0x80] sm:$0xff]  }
 0x970   : > { %11793 = vmatpush3.bf16.msra.mxu1 %v13292_v15 }
 0x971   : > { %8701 = vmatmul.mubr.bf16.gmra.mrb[200].mxu0 %v16543_v12  ;;  %v8819_v12 = vrot.slane %v16585_v59, 2  ;;  %11846 = vmatprep.subr.bf16.mxu1 %v13395_v51 }
 0x972   : > { %11310 = vmatprep.mubr.msk.bf16.mxu0 %vm8291_vm8, %v16562_v38  ;;  %v8825_v38 = vrot.slane %v16609_v23, 2 }
 0x973   : > { %v8820_v5 = vsel %vm810_vm0, %v8815_v20, %v8819_v12 }
 0x974   : > { %v8826_v55 = vsel %vm810_vm0, %v8821_v7, %v8825_v38 }
 0x979   : > { %8709 = vmatmul.mubr.bf16.gmra.mrb[204].mxu0 %v16564_v26  ;;  %v8823_v26 = vrot.slane %v16611_v4, 2 }
 0x97a   : > { %11311 = vmatprep.mubr.msk.bf16.mxu0 %vm8291_vm8, %v16583_v11  ;;  %v8829_v11 = vrot.slane %v16627_v63, 2 }
 0x97b   : > { %v8824_v8 = vsel %vm810_vm0, %v8819_v12, %v8823_v26 }
 0x981   : > { %8717 = vmatmul.mubr.bf16.gmra.mrb[208].mxu0 %v16585_v59  ;;  %v11338_v59 = vcombine.high %v16624_v39, %v16624_v39 }
 0x982   : > { %11312 = vmatprep.mubr.msk.bf16.mxu0 %vm8291_vm8, %v16609_v23  ;;  %v8827_v23 = vrot.slane %v16629_v24, 2 }
 0x983   : > { %v8833_v1 = vrot.slane %v11338_v59, 2 }
 0x984   : > { %v8828_v56 = vsel %vm810_vm0, %v8823_v26, %v8827_v23 }
 0x985   : > { %v8834_v3 = vsel %vm810_vm0, %v8829_v11, %v8833_v1 }
 0x989   : > { %8725 = vmatmul.mubr.bf16.gmra.mrb[212].mxu0 %v16611_v4  ;;  %v11337_v4 = vcombine.low %v16624_v39, %v16624_v39 }
 0x98a   : > { %11313 = vmatprep.mubr.msk.bf16.mxu0 %vm8291_vm8, %v16627_v63  ;;  %v13289_v63 = vld [vmem:[%s17348_s15 + $0x40] sm:$0xff]  }
 0x98b   : > { %v8831_v46 = vrot.slane %v11337_v4, 2 }
 0x98d   : > { %v8832_v39 = vsel %vm810_vm0, %v8827_v23, %v8831_v46 }
 0x991   : > { %8733 = vmatmul.mubr.bf16.gmra.mrb[216].mxu0 %v16629_v24  ;;  %v13290_v24 = vld [vmem:[%s17348_s15 + $0x48] sm:$0xff]  }
 0x992   : > { %11314 = vmatprep.mubr.msk.bf16.mxu0 %vm8291_vm8, %v11290_v25  ;;  %v8830_v25 = vsel %vm810_vm0, %v8825_v38, %v8829_v11  ;;  %v13303_v38 = vld [vmem:[%s17348_s15 + $0x88] sm:$0xff]  }
 0x999   : > { %8741 = vmatmul.mubr.bf16.gmra.mrb[220].mxu0 %v11289_v36  ;;  %v13291_v36 = vld [vmem:[%s17348_s15 + $0x50] sm:$0xff]  }
 0x99a   : > { %11349 = vmatprep.mubr.msk.bf16.mxu0 %vm8291_vm8, %v8786_v14  ;;  %v13294_v14 = vld [vmem:[%s17348_s15 + $0x60] sm:$0xff]  }
 0x9a1   : > { %8984 = vmatmul.mubr.bf16.vlgmr.msra.gmra.mrb[168].mxu0 %v8783_v33 }
 0x9a2   : > { %11350 = vmatprep.mubr.msk.bf16.mxu0 %vm8291_vm8, %v8790_v53  ;;  %11711 = vmatpush3.bf16.msra.mxu0 %v13289_v63 }
 0x9a3   : > { %11712 = vmatprep.subr.bf16.mxu0 %v13395_v51 }
 0x9a6   : > { %11713 = vmatpush3.bf16.msra.mxu0 %v13290_v24 }
 0x9a7   : > { %11714 = vmatprep.subr.bf16.mxu0 %v13395_v51 }
 0x9a9   : > { %8992 = vmatmul.mubr.bf16.gmra.mrb[172].mxu0 %v8788_v60 }
 0x9aa   : > { %11351 = vmatprep.mubr.msk.bf16.mxu0 %vm8291_vm8, %v8794_v30  ;;  %11715 = vmatpush3.bf16.msra.mxu0 %v13291_v36 }
 0x9ab   : > { %11716 = vmatprep.subr.bf16.mxu0 %v13395_v51 }
 0x9ae   : > { %11717 = vmatpush3.bf16.msra.mxu0 %v13293_v62 }
 0x9af   : > { %11718 = vmatprep.subr.bf16.mxu0 %v13395_v51 }
 0x9b1   : > { %9000 = vmatmul.mubr.bf16.gmra.mrb[176].mxu0 %v8792_v18 }
 0x9b2   : > { %11352 = vmatprep.mubr.msk.bf16.mxu0 %vm8291_vm8, %v8798_v22  ;;  %11719 = vmatpush3.bf16.msra.mxu0 %v13294_v14 }
 0x9b3   : > { %11720 = vmatprep.subr.bf16.mxu0 %v13395_v51 }
 0x9b6   : > { %11721 = vmatpush3.bf16.msra.mxu0 %v13295_v2  ;;  %v13308_v2 = vld [vmem:[%s17348_s15 + $0x98] sm:$0xff]  }
 0x9b7   : > { %11722 = vmatprep.subr.bf16.mxu0 %v13395_v51 }
 0x9b9   : > { %9008 = vmatmul.mubr.bf16.gmra.mrb[180].mxu0 %v8796_v57 }
 0x9ba   : > { %11353 = vmatprep.mubr.msk.bf16.mxu0 %vm8291_vm8, %v8802_v21  ;;  %11723 = vmatpush3.bf16.msra.mxu0 %v13297_v42 }
 0x9bb   : > { %11724 = vmatprep.subr.bf16.mxu0 %v13395_v51 }
 0x9be   : > { %11725 = vmatpush3.bf16.msra.mxu0 %v13299_v10 }
 0x9c1   : > { %9016 = vmatmul.mubr.bf16.gmra.mrb[184].mxu0 %v8800_v16 }
 0x9c2   : > { %11354 = vmatprep.mubr.msk.bf16.mxu0 %vm8291_vm8, %v8806_v50 }
 0x9c9   : > { %9024 = vmatmul.mubr.bf16.gmra.mrb[188].mxu0 %v8804_v58 }
 0x9ca   : > { %11355 = vmatprep.mubr.msk.bf16.mxu0 %vm8291_vm8, %v8810_v43 }
 0x9d1   : > { %9032 = vmatmul.mubr.bf16.gmra.mrb[192].mxu0 %v8808_v40 }
 0x9d2   : > { %11356 = vmatprep.mubr.msk.bf16.mxu0 %vm8291_vm8, %v8814_v49 }
 0x9d9   : > { %9040 = vmatmul.mubr.bf16.gmra.mrb[196].mxu0 %v8812_v48 }
 0x9da   : > { %11357 = vmatprep.mubr.msk.bf16.mxu0 %vm8291_vm8, %v8818_v13 }
 0x9e1   : > { %9048 = vmatmul.mubr.bf16.gmra.mrb[200].mxu0 %v8816_v0 }
 0x9e2   : > { %11358 = vmatprep.mubr.msk.bf16.mxu0 %vm8291_vm8, %v8822_v9 }
 0x9e9   : > { %9056 = vmatmul.mubr.bf16.gmra.mrb[204].mxu0 %v8820_v5 }
 0x9ea   : > { %11359 = vmatprep.mubr.msk.bf16.mxu0 %vm8291_vm8, %v8826_v55 }
 0x9f1   : > { %9064 = vmatmul.mubr.bf16.gmra.mrb[208].mxu0 %v8824_v8 }
 0x9f2   : > { %11360 = vmatprep.mubr.msk.bf16.mxu0 %vm8291_vm8, %v8830_v25 }
 0x9f9   : > { %9072 = vmatmul.mubr.bf16.gmra.mrb[212].mxu0 %v8828_v56 }
 0x9fa   : > { %11361 = vmatprep.mubr.msk.bf16.mxu0 %vm8291_vm8, %v8834_v3 }
 0xa01   : > { %9080 = vmatmul.mubr.bf16.gmra.mrb[216].mxu0 %v8832_v39 }
 0xa02   : > { %11362 = vmatprep.mubr.msk.bf16.mxu0 %vm8291_vm8, %v8833_v1  ;;  %v13305_v1 = vld [vmem:[%s17348_s15 + $0x90] sm:$0xff]  }
 0xa09   : > { %9088 = vmatmul.mubr.bf16.gmra.mrb[220].mxu0 %v8831_v46 }
 0xa0a   : > { %11726 = vmatprep.mubr.msk.bf16.mxu0 %vm13396_vm7, %v13395_v51 }
 0xa74   : > { %v8985_v32 = vpop.f32.mrb[168].mxu0 }
 0xa75   : > { %v9129_v33 = vmul.f32 %v16861_v41, %v8985_v32  ;;  %v8987_v53 = vpop.f32.mrb[169].mxu0 }
 0xa76   : > { %v8988_v27 = vpop.f32.mrb[170].mxu0 }
 0xa77   : > { %v9163_v17 = vadd.f32 %v16866_v28, %v9129_v33  ;;  %v9130_v60 = vmul.f32 %v16861_v41, %v8988_v27  ;;  %v8990_v30 = vpop.f32.mrb[171].mxu0 }
 0xa79   : > { %v9164_v6 = vadd.f32 %v16866_v28, %v9130_v60  ;;  %v9190_v19 = vmax.f32 %v9163_v17, 0.0  ;;  %v13311_v60 = vld [vmem:[%s17348_s15 + $0xa0] sm:$0xff]  }
 0xa7b   : > { %v9191_v18 = vmax.f32 %v9164_v6, 0.0 }
 0xa7c   : > { %v8993_v22 = vpop.f32.mrb[172].mxu0 }
 0xa7d   : > { %v11560_v52 = vpack.c.bf16 %v9191_v18, %v9190_v19  ;;  %v9131_v37 = vmul.f32 %v16861_v41, %v8993_v22  ;;  %v8995_v57 = vpop.f32.mrb[173].mxu0 }
 0xa7e   : > { %v8996_v21 = vpop.f32.mrb[174].mxu0 }
 0xa7f   : > { %11561 = vst [vmem:[#allocation5] sm:$0xff] %v11560_v52   ;;  %v9165_v54 = vadd.f32 %v16866_v28, %v9131_v37  ;;  %v9132_v29 = vmul.f32 %v16861_v41, %v8996_v21  ;;  %v8998_v16 = vpop.f32.mrb[175].mxu0 }
 0xa81   : > { %v9166_v50 = vadd.f32 %v16866_v28, %v9132_v29  ;;  %v9192_v34 = vmax.f32 %v9165_v54, 0.0  ;;  %v13313_v54 = vld [vmem:[%s17348_s15 + $0xa8] sm:$0xff]  }
 0xa83   : > { %v9193_v35 = vmax.f32 %v9166_v50, 0.0 }
 0xa84   : > { %v9001_v58 = vpop.f32.mrb[176].mxu0 }
 0xa85   : > { %v11565_v43 = vpack.c.bf16 %v9193_v35, %v9192_v34  ;;  %v9133_v31 = vmul.f32 %v16861_v41, %v9001_v58  ;;  %v9003_v44 = vpop.f32.mrb[177].mxu0 }
 0xa86   : > { %v9004_v40 = vpop.f32.mrb[178].mxu0  ;;  %v9355_v49 = vld [vmem:[#allocation5] sm:$0xf]  ;;  %v9356_v61 = vld [vmem:[#allocation5 + $0x4] sm:$0xf] }
 0xa87   : > { %11622 = vst [vmem:[#allocation5 + $0x8] sm:$0xff] %v11565_v43   ;;  %v9167_v48 = vadd.f32 %v16866_v28, %v9133_v31  ;;  %v9134_v13 = vmul.f32 %v16861_v41, %v9004_v40  ;;  %v9006_v20 = vpop.f32.mrb[179].mxu0  ;;  %v11430_v7 = vcombine.low %v9355_v49, %v9356_v61  ;;  %v9397_v9 = vld [vmem:[#allocation5] sm:$0xe]  ;;  %v13316_v31 = vld [vmem:[%s17348_s15 + $0xb0] sm:$0xff]  }
 0xa88   : > { %v9910_v12 = vld [vmem:[#allocation5] sm:$0xc]  ;;  %v11408_v11 = vcombine.low %v9397_v9, %v9356_v61 }
 0xa89   : > { %v9168_v0 = vadd.f32 %v16866_v28, %v9134_v13  ;;  %11795 = vmatmul.mubr.bf16.vlgmr.msra.gmra.mrb[168].mxu1 %v11430_v7  ;;  %v9194_v5 = vmax.f32 %v9167_v48, 0.0  ;;  %v11455_v8 = vcombine.low %v9910_v12, %v9356_v61 }
 0xa8a   : > { %11847 = vmatpush3.bf16.msra.mxu1 %v13298_v47  ;;  %11798 = vmatprep.mubr.msk.bf16.mxu1 %vm13396_vm7, %v13395_v51  ;;  %v9484_v36 = vrot.slane %v11408_v11, 1 }
 0xa8b   : > { %v9195_v55 = vmax.f32 %v9168_v0, 0.0  ;;  %11848 = vmatprep.subr.bf16.mxu1 %v13395_v51  ;;  %v9935_v62 = vrot.slane %v11455_v8, 2  ;;  %v13319_v0 = vld [vmem:[%s17348_s15 + $0xb8] sm:$0xff]  }
 0xa8c   : > { %v9009_v26 = vpop.f32.mrb[180].mxu0 }
 0xa8d   : > { %v11570_v25 = vpack.c.bf16 %v9195_v55, %v9194_v5  ;;  %v9135_v59 = vmul.f32 %v16861_v41, %v9009_v26  ;;  %v9011_v23 = vpop.f32.mrb[181].mxu0 }
 0xa8e   : > { %v9012_v56 = vpop.f32.mrb[182].mxu0  ;;  %v13300_v4 = vld [vmem:[#allocation5 + $0x8] sm:$0xff]   ;;  %11849 = vmatpush3.bf16.msra.mxu1 %v13303_v38 }
 0xa8f   : > { %11623 = vst [vmem:[#allocation5 + $0x10] sm:$0xff] %v11570_v25   ;;  %v9169_v63 = vadd.f32 %v16866_v28, %v9135_v59  ;;  %v9136_v3 = vmul.f32 %v16861_v41, %v9012_v56  ;;  %v9014_v46 = vpop.f32.mrb[183].mxu0  ;;  %11850 = vmatprep.subr.bf16.mxu1 %v13395_v51  ;;  %v9485_v24 = vrot.slane %v13300_v4, 1  ;;  %v9936_v39 = vrot.slane %v13300_v4, 2 }
 0xa91   : > { %v9170_v15 = vadd.f32 %v16866_v28, %v9136_v3  ;;  %11799 = vmatmul.mubr.bf16.gmra.mrb[172].mxu1 %v13300_v4  ;;  %v9486_v14 = vsel %vm3421_vm6, %v9484_v36, %v9485_v24  ;;  %v16904_v42 = vsel %vm810_vm0, %v9935_v62, %v9936_v39  ;;  %v9196_v10 = vmax.f32 %v9169_v63, 0.0 }
 0xa92   : > { %11802 = vmatprep.mubr.msk.bf16.mxu1 %vm13396_vm7, %v13395_v51  ;;  %11851 = vmatpush3.bf16.msra.mxu1 %v13305_v1 }
 0xa93   : > { %v9197_v32 = vmax.f32 %v9170_v15, 0.0  ;;  %11727 = vmatmul.mubr.bf16.vlgmr.msra.gmra.mrb[224].mxu0 %v9486_v14  ;;  %11852 = vmatprep.subr.bf16.mxu1 %v13395_v51 }
 0xa94   : > { %v9017_v33 = vpop.f32.mrb[184].mxu0  ;;  %11730 = vmatprep.mubr.msk.bf16.mxu0 %vm13396_vm7, %v13395_v51 }
 0xa95   : > { %v11575_v53 = vpack.c.bf16 %v9197_v32, %v9196_v10  ;;  %v9137_v27 = vmul.f32 %v16861_v41, %v9017_v33  ;;  %v9019_v17 = vpop.f32.mrb[185].mxu0 }
 0xa96   : > { %v9020_v30 = vpop.f32.mrb[186].mxu0  ;;  %v13302_v6 = vld [vmem:[#allocation5 + $0x10] sm:$0xff]   ;;  %11853 = vmatpush3.bf16.msra.mxu1 %v13308_v2 }
 0xa97   : > { %11624 = vst [vmem:[#allocation5 + $0x18] sm:$0xff] %v11575_v53   ;;  %v9171_v19 = vadd.f32 %v16866_v28, %v9137_v27  ;;  %v9138_v18 = vmul.f32 %v16861_v41, %v9020_v30  ;;  %v9022_v22 = vpop.f32.mrb[187].mxu0  ;;  %11854 = vmatprep.subr.bf16.mxu1 %v13395_v51  ;;  %v9487_v52 = vrot.slane %v13302_v6, 1  ;;  %v9938_v37 = vrot.slane %v13302_v6, 2 }
 0xa99   : > { %v9172_v57 = vadd.f32 %v16866_v28, %v9138_v18  ;;  %11803 = vmatmul.mubr.bf16.gmra.mrb[176].mxu1 %v13302_v6  ;;  %v9488_v21 = vsel %vm3421_vm6, %v9485_v24, %v9487_v52  ;;  %v16924_v29 = vsel %vm810_vm0, %v9936_v39, %v9938_v37  ;;  %v9198_v16 = vmax.f32 %v9171_v19, 0.0 }
 0xa9a   : > { %11806 = vmatprep.mubr.msk.bf16.mxu1 %vm13396_vm7, %v13395_v51  ;;  %11855 = vmatpush3.bf16.msra.mxu1 %v13311_v60 }
 0xa9b   : > { %v9199_v50 = vmax.f32 %v9172_v57, 0.0  ;;  %11731 = vmatmul.mubr.bf16.gmra.mrb[228].mxu0 %v9488_v21  ;;  %11856 = vmatprep.subr.bf16.mxu1 %v13395_v51 }
 0xa9c   : > { %v9025_v34 = vpop.f32.mrb[188].mxu0  ;;  %11734 = vmatprep.mubr.msk.bf16.mxu0 %vm13396_vm7, %v13395_v51 }
 0xa9d   : > { %v11580_v35 = vpack.c.bf16 %v9199_v50, %v9198_v16  ;;  %v9139_v58 = vmul.f32 %v16861_v41, %v9025_v34  ;;  %v9027_v43 = vpop.f32.mrb[189].mxu0 }
 0xa9e   : > { %v9028_v44 = vpop.f32.mrb[190].mxu0  ;;  %v13304_v40 = vld [vmem:[#allocation5 + $0x18] sm:$0xff]   ;;  %11857 = vmatpush3.bf16.msra.mxu1 %v13313_v54 }
 0xa9f   : > { %11625 = vst [vmem:[#allocation5 + $0x20] sm:$0xff] %v11580_v35   ;;  %v9173_v49 = vadd.f32 %v16866_v28, %v9139_v58  ;;  %v9140_v61 = vmul.f32 %v16861_v41, %v9028_v44  ;;  %v9030_v47 = vpop.f32.mrb[191].mxu0  ;;  %11858 = vmatprep.subr.bf16.mxu1 %v13395_v51  ;;  %v9489_v48 = vrot.slane %v13304_v40, 1  ;;  %v9940_v13 = vrot.slane %v13304_v40, 2 }
 0xaa1   : > { %v9174_v20 = vadd.f32 %v16866_v28, %v9140_v61  ;;  %11807 = vmatmul.mubr.bf16.gmra.mrb[180].mxu1 %v13304_v40  ;;  %v9490_v7 = vsel %vm3421_vm6, %v9487_v52, %v9489_v48  ;;  %v16944_v9 = vsel %vm810_vm0, %v9938_v37, %v9940_v13  ;;  %v9200_v12 = vmax.f32 %v9173_v49, 0.0 }
 0xaa2   : > { %11810 = vmatprep.mubr.msk.bf16.mxu1 %vm13396_vm7, %v13395_v51  ;;  %11859 = vmatpush3.bf16.msra.mxu1 %v13316_v31 }
 0xaa3   : > { %v9201_v38 = vmax.f32 %v9174_v20, 0.0  ;;  %11735 = vmatmul.mubr.bf16.gmra.mrb[232].mxu0 %v9490_v7  ;;  %11860 = vmatprep.subr.bf16.mxu1 %v13395_v51 }
 0xaa4   : > { %v9033_v5 = vpop.f32.mrb[192].mxu0  ;;  %11738 = vmatprep.mubr.msk.bf16.mxu0 %vm13396_vm7, %v13395_v51 }
 0xaa5   : > { %v11585_v55 = vpack.c.bf16 %v9201_v38, %v9200_v12  ;;  %v9141_v26 = vmul.f32 %v16861_v41, %v9033_v5  ;;  %v9035_v11 = vpop.f32.mrb[193].mxu0 }
 0xaa6   : > { %v9036_v8 = vpop.f32.mrb[194].mxu0  ;;  %v13306_v25 = vld [vmem:[#allocation5 + $0x20] sm:$0xff]   ;;  %11861 = vmatpush3.bf16.msra.mxu1 %v13319_v0 }
 0xaa7   : > { %11626 = vst [vmem:[#allocation5 + $0x28] sm:$0xff] %v11585_v55   ;;  %v9175_v59 = vadd.f32 %v16866_v28, %v9141_v26  ;;  %v9142_v23 = vmul.f32 %v16861_v41, %v9036_v8  ;;  %v9038_v1 = vpop.f32.mrb[195].mxu0  ;;  %v9491_v56 = vrot.slane %v13306_v25, 1  ;;  %v9942_v4 = vrot.slane %v13306_v25, 2 }
 0xaa9   : > { %v9176_v63 = vadd.f32 %v16866_v28, %v9142_v23  ;;  %11811 = vmatmul.mubr.bf16.gmra.mrb[184].mxu1 %v13306_v25  ;;  %v9492_v3 = vsel %vm3421_vm6, %v9489_v48, %v9491_v56  ;;  %v16957_v46 = vsel %vm810_vm0, %v9940_v13, %v9942_v4  ;;  %v9202_v24 = vmax.f32 %v9175_v59, 0.0 }
 0xaaa   : > { %11814 = vmatprep.mubr.msk.bf16.mxu1 %vm13396_vm7, %v13395_v51 }
 0xaab   : > { %v9203_v39 = vmax.f32 %v9176_v63, 0.0  ;;  %11739 = vmatmul.mubr.bf16.gmra.mrb[236].mxu0 %v9492_v3 }
 0xaac   : > { %v9041_v36 = vpop.f32.mrb[196].mxu0  ;;  %11742 = vmatprep.mubr.msk.bf16.mxu0 %vm13396_vm7, %v13395_v51 }
 0xaad   : > { %v11590_v62 = vpack.c.bf16 %v9203_v39, %v9202_v24  ;;  %v9143_v15 = vmul.f32 %v16861_v41, %v9041_v36  ;;  %v9043_v14 = vpop.f32.mrb[197].mxu0 }
 0xaae   : > { %v9044_v2 = vpop.f32.mrb[198].mxu0  ;;  %v13307_v10 = vld [vmem:[#allocation5 + $0x28] sm:$0xff]  }
 0xaaf   : > { %11627 = vst [vmem:[#allocation5 + $0x30] sm:$0xff] %v11590_v62   ;;  %v9177_v32 = vadd.f32 %v16866_v28, %v9143_v15  ;;  %v9144_v33 = vmul.f32 %v16861_v41, %v9044_v2  ;;  %v9046_v53 = vpop.f32.mrb[199].mxu0  ;;  %v9493_v27 = vrot.slane %v13307_v10, 1  ;;  %v9944_v17 = vrot.slane %v13307_v10, 2 }
 0xab1   : > { %v9178_v60 = vadd.f32 %v16866_v28, %v9144_v33  ;;  %11815 = vmatmul.mubr.bf16.gmra.mrb[188].mxu1 %v13307_v10  ;;  %v9494_v30 = vsel %vm3421_vm6, %v9491_v56, %v9493_v27  ;;  %v16969_v6 = vsel %vm810_vm0, %v9942_v4, %v9944_v17  ;;  %v9204_v19 = vmax.f32 %v9177_v32, 0.0 }
 0xab2   : > { %11818 = vmatprep.mubr.msk.bf16.mxu1 %vm13396_vm7, %v13395_v51 }
 0xab3   : > { %v9205_v18 = vmax.f32 %v9178_v60, 0.0  ;;  %11743 = vmatmul.mubr.bf16.gmra.mrb[240].mxu0 %v9494_v30 }
 0xab4   : > { %v9049_v22 = vpop.f32.mrb[200].mxu0  ;;  %11746 = vmatprep.mubr.msk.bf16.mxu0 %vm13396_vm7, %v13395_v51 }
 0xab5   : > { %v11595_v52 = vpack.c.bf16 %v9205_v18, %v9204_v19  ;;  %v9145_v37 = vmul.f32 %v16861_v41, %v9049_v22  ;;  %v9051_v57 = vpop.f32.mrb[201].mxu0 }
 0xab6   : > { %v9052_v21 = vpop.f32.mrb[202].mxu0  ;;  %v13309_v54 = vld [vmem:[#allocation5 + $0x30] sm:$0xff]  }
 0xab7   : > { %11628 = vst [vmem:[#allocation5 + $0x38] sm:$0xff] %v11595_v52   ;;  %v9179_v16 = vadd.f32 %v16866_v28, %v9145_v37  ;;  %v9146_v50 = vmul.f32 %v16861_v41, %v9052_v21  ;;  %v9054_v34 = vpop.f32.mrb[203].mxu0  ;;  %v9495_v35 = vrot.slane %v13309_v54, 1  ;;  %v9946_v58 = vrot.slane %v13309_v54, 2 }
 0xab9   : > { %v9180_v43 = vadd.f32 %v16866_v28, %v9146_v50  ;;  %11819 = vmatmul.mubr.bf16.gmra.mrb[192].mxu1 %v13309_v54  ;;  %v9496_v31 = vsel %vm3421_vm6, %v9493_v27, %v9495_v35  ;;  %v16981_v44 = vsel %vm810_vm0, %v9944_v17, %v9946_v58  ;;  %v9206_v40 = vmax.f32 %v9179_v16, 0.0 }
 0xaba   : > { %11822 = vmatprep.mubr.msk.bf16.mxu1 %vm13396_vm7, %v13395_v51 }
 0xabb   : > { %v9207_v49 = vmax.f32 %v9180_v43, 0.0  ;;  %11747 = vmatmul.mubr.bf16.gmra.mrb[244].mxu0 %v9496_v31 }
 0xabc   : > { %v9057_v61 = vpop.f32.mrb[204].mxu0  ;;  %11750 = vmatprep.mubr.msk.bf16.mxu0 %vm13396_vm7, %v13395_v51 }
 0xabd   : > { %v11600_v47 = vpack.c.bf16 %v9207_v49, %v9206_v40  ;;  %v9147_v48 = vmul.f32 %v16861_v41, %v9057_v61  ;;  %v9059_v13 = vpop.f32.mrb[205].mxu0 }
 0xabe   : > { %v9060_v20 = vpop.f32.mrb[206].mxu0  ;;  %v13310_v7 = vld [vmem:[#allocation5 + $0x38] sm:$0xff]  }
 0xabf   : > { %11629 = vst [vmem:[#allocation5 + $0x40] sm:$0xff] %v11600_v47   ;;  %v9181_v0 = vadd.f32 %v16866_v28, %v9147_v48  ;;  %v9148_v12 = vmul.f32 %v16861_v41, %v9060_v20  ;;  %v9062_v38 = vpop.f32.mrb[207].mxu0  ;;  %v9497_v5 = vrot.slane %v13310_v7, 1  ;;  %v9948_v55 = vrot.slane %v13310_v7, 2 }
 0xac1   : > { %v9182_v26 = vadd.f32 %v16866_v28, %v9148_v12  ;;  %11823 = vmatmul.mubr.bf16.gmra.mrb[196].mxu1 %v13310_v7  ;;  %v9498_v11 = vsel %vm3421_vm6, %v9495_v35, %v9497_v5  ;;  %v16993_v8 = vsel %vm810_vm0, %v9946_v58, %v9948_v55  ;;  %v9208_v25 = vmax.f32 %v9181_v0, 0.0 }
 0xac2   : > { %11826 = vmatprep.mubr.msk.bf16.mxu1 %vm13396_vm7, %v13395_v51 }
 0xac3   : > { %v9209_v59 = vmax.f32 %v9182_v26, 0.0  ;;  %11751 = vmatmul.mubr.bf16.gmra.mrb[248].mxu0 %v9498_v11 }
 0xac4   : > { %v9065_v23 = vpop.f32.mrb[208].mxu0  ;;  %11754 = vmatprep.mubr.msk.bf16.mxu0 %vm13396_vm7, %v13395_v51 }
 0xac5   : > { %v11605_v1 = vpack.c.bf16 %v9209_v59, %v9208_v25  ;;  %v9149_v56 = vmul.f32 %v16861_v41, %v9065_v23  ;;  %v9067_v4 = vpop.f32.mrb[209].mxu0 }
 0xac6   : > { %v9068_v63 = vpop.f32.mrb[210].mxu0  ;;  %v13312_v3 = vld [vmem:[#allocation5 + $0x40] sm:$0xff]  }
 0xac7   : > { %11630 = vst [vmem:[#allocation5 + $0x48] sm:$0xff] %v11605_v1   ;;  %v9183_v24 = vadd.f32 %v16866_v28, %v9149_v56  ;;  %v9150_v39 = vmul.f32 %v16861_v41, %v9068_v63  ;;  %v9070_v36 = vpop.f32.mrb[211].mxu0  ;;  %v9499_v62 = vrot.slane %v13312_v3, 1  ;;  %v9950_v15 = vrot.slane %v13312_v3, 2 }
 0xac9   : > { %v9184_v14 = vadd.f32 %v16866_v28, %v9150_v39  ;;  %11827 = vmatmul.mubr.bf16.gmra.mrb[200].mxu1 %v13312_v3  ;;  %v9500_v2 = vsel %vm3421_vm6, %v9497_v5, %v9499_v62  ;;  %v17005_v10 = vsel %vm810_vm0, %v9948_v55, %v9950_v15  ;;  %v9210_v32 = vmax.f32 %v9183_v24, 0.0  ;;  %v9352_v24 = vld [vmem:[#allocation5 + $0x68] sm:$0x3] }
 0xaca   : > { %11830 = vmatprep.mubr.msk.bf16.mxu1 %vm13396_vm7, %v13395_v51 }
 0xacb   : > { %v9211_v33 = vmax.f32 %v9184_v14, 0.0  ;;  %11755 = vmatmul.mubr.bf16.gmra.mrb[252].mxu0 %v9500_v2 }
 0xacc   : > { %v9073_v53 = vpop.f32.mrb[212].mxu0  ;;  %11758 = vmatprep.mubr.msk.bf16.mxu0 %vm13396_vm7, %v13395_v51 }
 0xacd   : > { %v11610_v27 = vpack.c.bf16 %v9211_v33, %v9210_v32  ;;  %v9151_v17 = vmul.f32 %v16861_v41, %v9073_v53  ;;  %v9075_v60 = vpop.f32.mrb[213].mxu0 }
 0xace   : > { %v9076_v30 = vpop.f32.mrb[214].mxu0  ;;  %v13314_v19 = vld [vmem:[#allocation5 + $0x48] sm:$0xff]  }
 0xacf   : > { %11631 = vst [vmem:[#allocation5 + $0x50] sm:$0xff] %v11610_v27   ;;  %v9185_v18 = vadd.f32 %v16866_v28, %v9151_v17  ;;  %v9152_v22 = vmul.f32 %v16861_v41, %v9076_v30  ;;  %v9078_v52 = vpop.f32.mrb[215].mxu0  ;;  %v9501_v37 = vrot.slane %v13314_v19, 1  ;;  %v9952_v57 = vrot.slane %v13314_v19, 2 }
 0xad1   : > { %v9186_v21 = vadd.f32 %v16866_v28, %v9152_v22  ;;  %11831 = vmatmul.mubr.bf16.gmra.mrb[204].mxu1 %v13314_v19  ;;  %v9502_v54 = vsel %vm3421_vm6, %v9499_v62, %v9501_v37  ;;  %v17017_v16 = vsel %vm810_vm0, %v9950_v15, %v9952_v57  ;;  %v9212_v50 = vmax.f32 %v9185_v18, 0.0 }
 0xad2   : > { %11834 = vmatprep.mubr.msk.bf16.mxu1 %vm13396_vm7, %v13395_v51 }
 0xad3   : > { %v9213_v34 = vmax.f32 %v9186_v21, 0.0  ;;  %11759 = vmatmul.mubr.bf16.gmra.mrb[0].mxu0 %v9502_v54 }
 0xad4   : > { %v9081_v35 = vpop.f32.mrb[216].mxu0  ;;  %11762 = vmatprep.mubr.msk.bf16.mxu0 %vm13396_vm7, %v13395_v51 }
 0xad5   : > { %v11615_v58 = vpack.c.bf16 %v9213_v34, %v9212_v50  ;;  %v9153_v43 = vmul.f32 %v16861_v41, %v9081_v35  ;;  %v9083_v31 = vpop.f32.mrb[217].mxu0 }
 0xad6   : > { %v9084_v40 = vpop.f32.mrb[218].mxu0  ;;  %v13315_v49 = vld [vmem:[#allocation5 + $0x50] sm:$0xff]  }
 0xad7   : > { %11632 = vst [vmem:[#allocation5 + $0x58] sm:$0xff] %v11615_v58   ;;  %v9187_v61 = vadd.f32 %v16866_v28, %v9153_v43  ;;  %v9154_v47 = vmul.f32 %v16861_v41, %v9084_v40  ;;  %v9086_v48 = vpop.f32.mrb[219].mxu0  ;;  %v9503_v13 = vrot.slane %v13315_v49, 1  ;;  %v9954_v20 = vrot.slane %v13315_v49, 2 }
 0xad9   : > { %v9188_v7 = vadd.f32 %v16866_v28, %v9154_v47  ;;  %11835 = vmatmul.mubr.bf16.gmra.mrb[208].mxu1 %v13315_v49  ;;  %v9504_v0 = vsel %vm3421_vm6, %v9501_v37, %v9503_v13  ;;  %v9955_v12 = vsel %vm810_vm0, %v9952_v57, %v9954_v20  ;;  %v9214_v38 = vmax.f32 %v9187_v61, 0.0 }
 0xada   : > { %11838 = vmatprep.mubr.msk.bf16.mxu1 %vm13396_vm7, %v13395_v51 }
 0xadb   : > { %v9215_v5 = vmax.f32 %v9188_v7, 0.0  ;;  %11763 = vmatmul.mubr.bf16.gmra.mrb[4].mxu0 %v9504_v0 }
 0xadc   : > { %v9089_v55 = vpop.f32.mrb[220].mxu0  ;;  %11766 = vmatprep.mubr.msk.bf16.mxu0 %vm13396_vm7, %v13395_v51 }
 0xadd   : > { %v11620_v26 = vpack.c.bf16 %v9215_v5, %v9214_v38  ;;  %v9155_v11 = vmul.f32 %v16861_v41, %v9089_v55  ;;  %v9091_v25 = vpop.f32.mrb[221].mxu0 }
 0xade   : > { %v9092_v59 = vpop.f32.mrb[222].mxu0  ;;  %v13317_v23 = vld [vmem:[#allocation5 + $0x58] sm:$0xff]  }
 0xadf   : > { %11633 = vst [vmem:[#allocation5 + $0x60] sm:$0xff] %v11620_v26   ;;  %v9189_v1 = vadd.f32 %v16866_v28, %v9155_v11  ;;  %v9093_v56 = vpop.f32.mrb[223].mxu0  ;;  %v9505_v4 = vrot.slane %v13317_v23, 1  ;;  %v9956_v63 = vrot.slane %v13317_v23, 2 }
 0xae1   : > { %v9216_v3 = vmax.f32 %v9189_v1, 0.0  ;;  %11839 = vmatmul.mubr.bf16.gmra.mrb[212].mxu1 %v13317_v23  ;;  %v9506_v39 = vsel %vm3421_vm6, %v9503_v13, %v9505_v4  ;;  %v9957_v36 = vsel %vm810_vm0, %v9954_v20, %v9956_v63  ;;  %v10279_v23 = vld [vmem:[%s17353_s20 + $0x8] sm:$0xff] }
 0xae2   : > { %11842 = vmatprep.mubr.msk.bf16.mxu1 %vm13396_vm7, %v13395_v51 }
 0xae3   : > { %v11556_v41 = vpack.c.bf16 %v9216_v3, %v9216_v3  ;;  %11767 = vmatmul.mubr.bf16.gmra.mrb[8].mxu0 %v9506_v39 }
 0xae4   : > { %11770 = vmatprep.mubr.msk.bf16.mxu0 %vm13396_vm7, %v13395_v51 }
 0xae5   : > { %v9353_v28 = vsel %vm16038_vm15, %v11556_v41, %v9352_v24 }
 0xae6   : > { %9354 = vst [vmem:[#allocation5 + $0x68] sm:$0x3] %v9353_v28  ;;  %v13318_v62 = vld [vmem:[#allocation5 + $0x60] sm:$0xff]   ;;  %v17133_v28 = vld [vmem:[%s17349_s16] ss:$0 sm:$0xff] }
 0xae7   : > { %v9507_v15 = vrot.slane %v13318_v62, 1  ;;  %v9958_v14 = vrot.slane %v13318_v62, 2 }
 0xae9   : > { %11843 = vmatmul.mubr.bf16.gmra.mrb[216].mxu1 %v13318_v62  ;;  %v9508_v2 = vsel %vm3421_vm6, %v9505_v4, %v9507_v15  ;;  %v9959_v32 = vsel %vm810_vm0, %v9956_v63, %v9958_v14 }
 0xaea   : > { %11862 = vmatprep.mubr.msk.bf16.mxu1 %vm13396_vm7, %v13395_v51 }
 0xaeb   : > { %11771 = vmatmul.mubr.bf16.gmra.mrb[12].mxu0 %v9508_v2 }
 0xaec   : > { %11774 = vmatprep.mubr.msk.bf16.mxu0 %vm13396_vm7, %v13395_v51 }
 0xaed   : > { %v13321_v33 = vld [vmem:[#allocation5 + $0x68] ss:$0 sps:$4 sm:$0x11]  }
 0xaee   : > { %v9509_v53 = vrot.slane %v13321_v33, 1 }
 0xaf0   : > { %v9510_v45 = vsel %vm3421_vm6, %v9507_v15, %v9509_v53  ;;  %vm10376_vm6 = vcmask 785408  }
 0xaf1   : > { %11863 = vmatmul.mubr.bf16.vlgmr.msra.gmra.mrb[168].mxu1 %v16904_v42  ;;  %v13322_v42 = vld [vmem:[#allocation5 + $0x68] ss:$0 sps:$4 sm:$0x33]  }
 0xaf2   : > { %11866 = vmatprep.mubr.msk.bf16.mxu1 %vm13396_vm7, %v13395_v51 }
 0xaf3   : > { %11775 = vmatmul.mubr.bf16.gmra.mrb[16].mxu0 %v9510_v45 }
 0xaf9   : > { %11867 = vmatmul.mubr.bf16.gmra.mrb[172].mxu1 %v16924_v29  ;;  %v9960_v29 = vrot.slane %v13322_v42, 2 }
 0xafa   : > { %11870 = vmatprep.mubr.msk.bf16.mxu1 %vm13396_vm7, %v13395_v51 }
 0xb01   : > { %11871 = vmatmul.mubr.bf16.gmra.mrb[176].mxu1 %v16944_v9  ;;  %v9961_v9 = vsel %vm810_vm0, %v9958_v14, %v9960_v29  ;;  %vm10280_vm0 = vcmask 646144   ;;  %v17138_v14 = vld [vmem:[%s17350_s17] ss:$0 sm:$0xff] }
 0xb02   : > { %11874 = vmatprep.mubr.msk.bf16.mxu1 %vm13396_vm7, %v13395_v51  ;;  %11468 = vmatprep.mubr.msk.f32.mxu0 %vm10280_vm0, %v10279_v23 }
 0xb09   : > { %11875 = vmatmul.mubr.bf16.gmra.mrb[180].mxu1 %v16957_v46  ;;  %v13397_v46 = vmov 0.0|0.0  }
 0xb0a   : > { %11878 = vmatprep.mubr.msk.bf16.mxu1 %vm13396_vm7, %v13395_v51  ;;  %11941 = vmatprep.subr.bf16.mxu0 %v13397_v46 }
 0xb11   : > { %11879 = vmatmul.mubr.bf16.gmra.mrb[184].mxu1 %v16969_v6 }
 0xb12   : > { %11882 = vmatprep.mubr.msk.bf16.mxu1 %vm13396_vm7, %v13395_v51 }
 0xb19   : > { %11883 = vmatmul.mubr.bf16.gmra.mrb[188].mxu1 %v16981_v44 }
 0xb1a   : > { %11886 = vmatprep.mubr.msk.bf16.mxu1 %vm13396_vm7, %v13395_v51 }
 0xb21   : > { %11887 = vmatmul.mubr.bf16.gmra.mrb[192].mxu1 %v16993_v8 }
 0xb22   : > { %11890 = vmatprep.mubr.msk.bf16.mxu1 %vm13396_vm7, %v13395_v51 }
 0xb29   : > { %11891 = vmatmul.mubr.bf16.gmra.mrb[196].mxu1 %v17005_v10 }
 0xb2a   : > { %11894 = vmatprep.mubr.msk.bf16.mxu1 %vm13396_vm7, %v13395_v51 }
 0xb31   : > { %11895 = vmatmul.mubr.bf16.gmra.mrb[200].mxu1 %v17017_v16 }
 0xb32   : > { %11898 = vmatprep.mubr.msk.bf16.mxu1 %vm13396_vm7, %v13395_v51 }
 0xb39   : > { %11899 = vmatmul.mubr.bf16.gmra.mrb[204].mxu1 %v9955_v12 }
 0xb3a   : > { %11902 = vmatprep.mubr.msk.bf16.mxu1 %vm13396_vm7, %v13395_v51 }
 0xb41   : > { %11903 = vmatmul.mubr.bf16.gmra.mrb[208].mxu1 %v9957_v36 }
 0xb42   : > { %11906 = vmatprep.mubr.msk.bf16.mxu1 %vm13396_vm7, %v13395_v51 }
 0xb49   : > { %11907 = vmatmul.mubr.bf16.gmra.mrb[212].mxu1 %v9959_v32 }
 0xb4a   : > { %11910 = vmatprep.mubr.msk.bf16.mxu1 %vm13396_vm7, %v13395_v51 }
 0xb51   : > { %11911 = vmatmul.mubr.bf16.gmra.mrb[216].mxu1 %v9961_v9 }
 0xb66   : > { %v9606_v6 = vpop.f32.mrb[224].mxu0 }
 0xb67   : > { %v11728_v44 = vpop.f32.mrb[225].mxu0 }
 0xb68   : > { %v9609_v8 = vpop.f32.mrb[226].mxu0 }
 0xb69   : > { %v11729_v10 = vpop.f32.mrb[227].mxu0 }
 0xb6e   : > { %v17083_v27 = vpop.f32.mrb[228].mxu0 }
 0xb6f   : > { %v11732_v17 = vpop.f32.mrb[229].mxu0 }
 0xb70   : > { %v17085_v60 = vpop.f32.mrb[230].mxu0 }
 0xb71   : > { %v11733_v30 = vpop.f32.mrb[231].mxu0 }
 0xb76   : > { %v17087_v19 = vpop.f32.mrb[232].mxu0 }
 0xb77   : > { %v11736_v18 = vpop.f32.mrb[233].mxu0 }
 0xb78   : > { %v17089_v22 = vpop.f32.mrb[234].mxu0 }
 0xb79   : > { %v11737_v52 = vpop.f32.mrb[235].mxu0 }
 0xb7e   : > { %v17091_v37 = vpop.f32.mrb[236].mxu0 }
 0xb7f   : > { %v11740_v57 = vpop.f32.mrb[237].mxu0 }
 0xb80   : > { %v17093_v21 = vpop.f32.mrb[238].mxu0 }
 0xb81   : > { %v11741_v54 = vpop.f32.mrb[239].mxu0 }
 0xb86   : > { %v17095_v16 = vpop.f32.mrb[240].mxu0 }
 0xb87   : > { %v11744_v50 = vpop.f32.mrb[241].mxu0 }
 0xb88   : > { %v17097_v34 = vpop.f32.mrb[242].mxu0 }
 0xb89   : > { %v11745_v35 = vpop.f32.mrb[243].mxu0 }
 0xb8e   : > { %v17099_v58 = vpop.f32.mrb[244].mxu0 }
 0xb8f   : > { %v11748_v43 = vpop.f32.mrb[245].mxu0 }
 0xb90   : > { %v17101_v31 = vpop.f32.mrb[246].mxu0 }
 0xb91   : > { %v11749_v40 = vpop.f32.mrb[247].mxu0 }
 0xb96   : > { %v17103_v49 = vpop.f32.mrb[248].mxu0 }
 0xb97   : > { %v11752_v61 = vpop.f32.mrb[249].mxu0 }
 0xb98   : > { %v17105_v47 = vpop.f32.mrb[250].mxu0 }
 0xb99   : > { %v11753_v48 = vpop.f32.mrb[251].mxu0 }
 0xb9e   : > { %v17107_v13 = vpop.f32.mrb[252].mxu0 }
 0xb9f   : > { %v11756_v20 = vpop.f32.mrb[253].mxu0 }
 0xba0   : > { %v17109_v7 = vpop.f32.mrb[254].mxu0 }
 0xba1   : > { %v11757_v0 = vpop.f32.mrb[255].mxu0 }
 0xba6   : > { %v17111_v12 = vpop.f32.mrb[0].mxu0 }
 0xba7   : > { %v11760_v38 = vpop.f32.mrb[1].mxu0 }
 0xba8   : > { %v17113_v5 = vpop.f32.mrb[2].mxu0 }
 0xba9   : > { %v11761_v55 = vpop.f32.mrb[3].mxu0 }
 0xbae   : > { %v17115_v26 = vpop.f32.mrb[4].mxu0 }
 0xbaf   : > { %v11764_v11 = vpop.f32.mrb[5].mxu0 }
 0xbb0   : > { %v17117_v25 = vpop.f32.mrb[6].mxu0 }
 0xbb1   : > { %v11765_v59 = vpop.f32.mrb[7].mxu0 }
 0xbb6   : > { %v17122_v1 = vpop.f32.mrb[8].mxu0 }
 0xbb7   : > { %v11768_v56 = vpop.f32.mrb[9].mxu0 }
 0xbb8   : > { %v17124_v4 = vpop.f32.mrb[10].mxu0 }
 0xbb9   : > { %v11769_v63 = vpop.f32.mrb[11].mxu0 }
 0xbbe   : > { %v17126_v3 = vpop.f32.mrb[12].mxu0 }
 0xbbf   : > { %v11772_v24 = vpop.f32.mrb[13].mxu0 }
 0xbc0   : > { %v17128_v39 = vpop.f32.mrb[14].mxu0 }
 0xbc1   : > { %v11773_v36 = vpop.f32.mrb[15].mxu0 }
 0xbc4   : > { %v10057_v41 = vpop.f32.mrb[168].mxu1 }
 0xbc5   : > { %v11999_v62 = vadd.f32 %v10057_v41, %v9606_v6  ;;  %v11864_v15 = vpop.f32.mrb[169].mxu1 }
 0xbc6   : > { %v10060_v2 = vpop.f32.mrb[170].mxu1  ;;  %v17140_v32 = vpop.f32.mrb[16].mxu0 }
 0xbc7   : > { %v10193_v33 = vmul.f32 %v11999_v62, %v17133_v28  ;;  %v12000_v53 = vadd.f32 %v10060_v2, %v9609_v8  ;;  %v11865_v45 = vpop.f32.mrb[171].mxu1  ;;  %v11776_v42 = vpop.f32.mrb[17].mxu0 }
 0xbc8   : > { %v17143_v29 = vpop.f32.mrb[18].mxu0 }
 0xbc9   : > { %v10226_v9 = vadd.f32 %v17138_v14, %v10193_v33  ;;  %v10194_v6 = vmul.f32 %v12000_v53, %v17133_v28  ;;  %v11777_v44 = vpop.f32.mrb[19].mxu0 }
 0xbcb   : > { %v10227_v10 = vadd.f32 %v17138_v14, %v10194_v6  ;;  %v10252_v30 = vmax.f32 %v10226_v9, 0.0 }
 0xbcc   : > { %v10065_v17 = vpop.f32.mrb[172].mxu1 }
 0xbcd   : > { %v10253_v18 = vmax.f32 %v10227_v10, 0.0  ;;  %v12001_v52 = vadd.f32 %v10065_v17, %v17083_v27  ;;  %v11868_v57 = vpop.f32.mrb[173].mxu1 }
 0xbce   : > { %v10068_v54 = vpop.f32.mrb[174].mxu1 }
 0xbcf   : > { %v11942_v50 = vpack.c.bf16 %v10253_v18, %v10252_v30  ;;  %v10195_v8 = vmul.f32 %v12001_v52, %v17133_v28  ;;  %v12002_v35 = vadd.f32 %v10068_v54, %v17085_v60  ;;  %v11869_v43 = vpop.f32.mrb[175].mxu1 }
 0xbd1   : > { %v10228_v40 = vadd.f32 %v17138_v14, %v10195_v8  ;;  %v10196_v61 = vmul.f32 %v12002_v35, %v17133_v28  ;;  %11943 = vmatpush1.bf16.msra.mxu0 %v11942_v50 }
 0xbd2   : > { %11944 = vmatprep.subr.bf16.mxu0 %v13397_v46 }
 0xbd3   : > { %v10229_v48 = vadd.f32 %v17138_v14, %v10196_v61  ;;  %v10254_v0 = vmax.f32 %v10228_v40, 0.0 }
 0xbd4   : > { %v10073_v20 = vpop.f32.mrb[176].mxu1 }
 0xbd5   : > { %v10255_v27 = vmax.f32 %v10229_v48, 0.0  ;;  %v12003_v38 = vadd.f32 %v10073_v20, %v17087_v19  ;;  %v11872_v55 = vpop.f32.mrb[177].mxu1 }
 0xbd6   : > { %v10076_v11 = vpop.f32.mrb[178].mxu1 }
 0xbd7   : > { %v11945_v59 = vpack.c.bf16 %v10255_v27, %v10254_v0  ;;  %v10197_v60 = vmul.f32 %v12003_v38, %v17133_v28  ;;  %v12004_v23 = vadd.f32 %v10076_v11, %v17089_v22  ;;  %v11873_v56 = vpop.f32.mrb[179].mxu1 }
 0xbd9   : > { %v10230_v63 = vadd.f32 %v17138_v14, %v10197_v60  ;;  %v10198_v24 = vmul.f32 %v12004_v23, %v17133_v28  ;;  %11946 = vmatpush1.bf16.msra.mxu0 %v11945_v59 }
 0xbda   : > { %11947 = vmatprep.subr.bf16.mxu0 %v13397_v46 }
 0xbdb   : > { %v10231_v36 = vadd.f32 %v17138_v14, %v10198_v24  ;;  %v10256_v62 = vmax.f32 %v10230_v63, 0.0 }
 0xbdc   : > { %v10081_v41 = vpop.f32.mrb[180].mxu1 }
 0xbdd   : > { %v10257_v19 = vmax.f32 %v10231_v36, 0.0  ;;  %v12005_v15 = vadd.f32 %v10081_v41, %v17091_v37  ;;  %v11876_v2 = vpop.f32.mrb[181].mxu1 }
 0xbde   : > { %v10084_v33 = vpop.f32.mrb[182].mxu1 }
 0xbdf   : > { %v11948_v53 = vpack.c.bf16 %v10257_v19, %v10256_v62  ;;  %v10199_v22 = vmul.f32 %v12005_v15, %v17133_v28  ;;  %v12006_v45 = vadd.f32 %v10084_v33, %v17093_v21  ;;  %v11877_v42 = vpop.f32.mrb[183].mxu1 }
 0xbe1   : > { %v10232_v9 = vadd.f32 %v17138_v14, %v10199_v22  ;;  %v10200_v6 = vmul.f32 %v12006_v45, %v17133_v28  ;;  %11949 = vmatpush1.bf16.msra.mxu0 %v11948_v53 }
 0xbe2   : > { %11950 = vmatprep.subr.bf16.mxu0 %v13397_v46 }
 0xbe3   : > { %v10233_v44 = vadd.f32 %v17138_v14, %v10200_v6  ;;  %v10258_v17 = vmax.f32 %v10232_v9, 0.0 }
 0xbe4   : > { %v10089_v10 = vpop.f32.mrb[184].mxu1 }
 0xbe5   : > { %v10259_v37 = vmax.f32 %v10233_v44, 0.0  ;;  %v12007_v30 = vadd.f32 %v10089_v10, %v17095_v16  ;;  %v11880_v18 = vpop.f32.mrb[185].mxu1 }
 0xbe6   : > { %v10092_v52 = vpop.f32.mrb[186].mxu1 }
 0xbe7   : > { %v11951_v57 = vpack.c.bf16 %v10259_v37, %v10258_v17  ;;  %v10201_v21 = vmul.f32 %v12007_v30, %v17133_v28  ;;  %v12008_v54 = vadd.f32 %v10092_v52, %v17097_v34  ;;  %v11881_v50 = vpop.f32.mrb[187].mxu1 }
 0xbe9   : > { %v10234_v8 = vadd.f32 %v17138_v14, %v10201_v21  ;;  %v10202_v35 = vmul.f32 %v12008_v54, %v17133_v28  ;;  %11952 = vmatpush1.bf16.msra.mxu0 %v11951_v57 }
 0xbea   : > { %11953 = vmatprep.subr.bf16.mxu0 %v13397_v46 }
 0xbeb   : > { %v10235_v43 = vadd.f32 %v17138_v14, %v10202_v35  ;;  %v10260_v61 = vmax.f32 %v10234_v8, 0.0 }
 0xbec   : > { %v10097_v40 = vpop.f32.mrb[188].mxu1 }
 0xbed   : > { %v10261_v16 = vmax.f32 %v10235_v43, 0.0  ;;  %v12009_v48 = vadd.f32 %v10097_v40, %v17099_v58  ;;  %v11884_v20 = vpop.f32.mrb[189].mxu1 }
 0xbee   : > { %v10100_v0 = vpop.f32.mrb[190].mxu1 }
 0xbef   : > { %v11954_v27 = vpack.c.bf16 %v10261_v16, %v10260_v61  ;;  %v10203_v34 = vmul.f32 %v12009_v48, %v17133_v28  ;;  %v12010_v38 = vadd.f32 %v10100_v0, %v17101_v31  ;;  %v11885_v55 = vpop.f32.mrb[191].mxu1 }
 0xbf1   : > { %v10236_v11 = vadd.f32 %v17138_v14, %v10203_v34  ;;  %v10204_v59 = vmul.f32 %v12010_v38, %v17133_v28  ;;  %11955 = vmatpush1.bf16.msra.mxu0 %v11954_v27 }
 0xbf2   : > { %11956 = vmatprep.subr.bf16.mxu0 %v13397_v46 }
 0xbf3   : > { %v10237_v60 = vadd.f32 %v17138_v14, %v10204_v59  ;;  %v10262_v56 = vmax.f32 %v10236_v11, 0.0 }
 0xbf4   : > { %v10105_v23 = vpop.f32.mrb[192].mxu1 }
 0xbf5   : > { %v10263_v58 = vmax.f32 %v10237_v60, 0.0  ;;  %v12011_v63 = vadd.f32 %v10105_v23, %v17103_v49  ;;  %v11888_v24 = vpop.f32.mrb[193].mxu1 }
 0xbf6   : > { %v10108_v36 = vpop.f32.mrb[194].mxu1 }
 0xbf7   : > { %v11957_v41 = vpack.c.bf16 %v10263_v58, %v10262_v56  ;;  %v10205_v31 = vmul.f32 %v12011_v63, %v17133_v28  ;;  %v12012_v62 = vadd.f32 %v10108_v36, %v17105_v47  ;;  %v11889_v19 = vpop.f32.mrb[195].mxu1 }
 0xbf9   : > { %v10238_v15 = vadd.f32 %v17138_v14, %v10205_v31  ;;  %v10206_v2 = vmul.f32 %v12012_v62, %v17133_v28  ;;  %11958 = vmatpush1.bf16.msra.mxu0 %v11957_v41 }
 0xbfa   : > { %11959 = vmatprep.subr.bf16.mxu0 %v13397_v46 }
 0xbfb   : > { %v10239_v33 = vadd.f32 %v17138_v14, %v10206_v2  ;;  %v10264_v22 = vmax.f32 %v10238_v15, 0.0 }
 0xbfc   : > { %v10113_v53 = vpop.f32.mrb[196].mxu1 }
 0xbfd   : > { %v10265_v49 = vmax.f32 %v10239_v33, 0.0  ;;  %v12013_v45 = vadd.f32 %v10113_v53, %v17107_v13  ;;  %v11892_v42 = vpop.f32.mrb[197].mxu1 }
 0xbfe   : > { %v10116_v9 = vpop.f32.mrb[198].mxu1 }
 0xbff   : > { %v11960_v6 = vpack.c.bf16 %v10265_v49, %v10264_v22  ;;  %v10207_v47 = vmul.f32 %v12013_v45, %v17133_v28  ;;  %v12014_v44 = vadd.f32 %v10116_v9, %v17109_v7  ;;  %v11893_v10 = vpop.f32.mrb[199].mxu1 }
 0xc01   : > { %v10240_v17 = vadd.f32 %v17138_v14, %v10207_v47  ;;  %v10208_v37 = vmul.f32 %v12014_v44, %v17133_v28  ;;  %11961 = vmatpush1.bf16.msra.mxu0 %v11960_v6 }
 0xc02   : > { %11962 = vmatprep.subr.bf16.mxu0 %v13397_v46 }
 0xc03   : > { %v10241_v30 = vadd.f32 %v17138_v14, %v10208_v37  ;;  %v10266_v52 = vmax.f32 %v10240_v17, 0.0 }
 0xc04   : > { %v10121_v18 = vpop.f32.mrb[200].mxu1 }
 0xc05   : > { %v10267_v13 = vmax.f32 %v10241_v30, 0.0  ;;  %v12015_v57 = vadd.f32 %v10121_v18, %v17111_v12  ;;  %v11896_v21 = vpop.f32.mrb[201].mxu1 }
 0xc06   : > { %v10124_v54 = vpop.f32.mrb[202].mxu1 }
 0xc07   : > { %v11963_v50 = vpack.c.bf16 %v10267_v13, %v10266_v52  ;;  %v10209_v7 = vmul.f32 %v12015_v57, %v17133_v28  ;;  %v12016_v8 = vadd.f32 %v10124_v54, %v17113_v5  ;;  %v11897_v35 = vpop.f32.mrb[203].mxu1 }
 0xc09   : > { %v10242_v43 = vadd.f32 %v17138_v14, %v10209_v7  ;;  %v10210_v40 = vmul.f32 %v12016_v8, %v17133_v28  ;;  %11964 = vmatpush1.bf16.msra.mxu0 %v11963_v50 }
 0xc0a   : > { %11965 = vmatprep.subr.bf16.mxu0 %v13397_v46 }
 0xc0b   : > { %v10243_v61 = vadd.f32 %v17138_v14, %v10210_v40  ;;  %v10268_v48 = vmax.f32 %v10242_v43, 0.0  ;;  %v10359_v43 = vld [vmem:[%s17351_s18 + $0x10] sm:$0xff]  ;;  %v10360_v40 = vld [vmem:[%s17351_s18 + $0x18] sm:$0xff] }
 0xc0c   : > { %v10129_v16 = vpop.f32.mrb[204].mxu1 }
 0xc0d   : > { %v10269_v12 = vmax.f32 %v10243_v61, 0.0  ;;  %v12017_v20 = vadd.f32 %v10129_v16, %v17115_v26  ;;  %v11900_v0 = vpop.f32.mrb[205].mxu1  ;;  %v11985_v61 = vpack.c.bf16 %v10360_v40, %v10359_v43  ;;  %v10361_v16 = vld [vmem:[%s17351_s18 + $0x20] sm:$0xff] }
 0xc0e   : > { %v10132_v27 = vpop.f32.mrb[206].mxu1 }
 0xc0f   : > { %v11966_v34 = vpack.c.bf16 %v10269_v12, %v10268_v48  ;;  %v10211_v5 = vmul.f32 %v12017_v20, %v17133_v28  ;;  %v12018_v38 = vadd.f32 %v10132_v27, %v17117_v25  ;;  %v11901_v55 = vpop.f32.mrb[207].mxu1  ;;  %v10362_v48 = vld [vmem:[%s17351_s18 + $0x28] sm:$0xff]  ;;  %v10363_v20 = vld [vmem:[%s17351_s18 + $0x30] sm:$0xff]  ;;  %v10365_v27 = vld [vmem:[%s17351_s18 + $0x40] sm:$0xff] }
 0xc10   : > { %v11988_v12 = vpack.c.bf16 %v10362_v48, %v10361_v16  ;;  %v10368_v55 = vld [vmem:[%s17351_s18 + $0x58] sm:$0xff] }
 0xc11   : > { %v10244_v11 = vadd.f32 %v17138_v14, %v10211_v5  ;;  %v10212_v59 = vmul.f32 %v12018_v38, %v17133_v28  ;;  %11967 = vmatpush1.bf16.msra.mxu0 %v11966_v34  ;;  %v10366_v34 = vld [vmem:[%s17351_s18 + $0x48] sm:$0xff]  ;;  %v10367_v38 = vld [vmem:[%s17351_s18 + $0x50] sm:$0xff] }
 0xc12   : > { %11968 = vmatprep.subr.bf16.mxu0 %v13397_v46  ;;  %v11994_v5 = vpack.c.bf16 %v10366_v34, %v10365_v27 }
 0xc13   : > { %v10245_v60 = vadd.f32 %v17138_v14, %v10212_v59  ;;  %v10270_v56 = vmax.f32 %v10244_v11, 0.0  ;;  %v11997_v11 = vpack.c.bf16 %v10368_v55, %v10367_v38 }
 0xc14   : > { %v10137_v23 = vpop.f32.mrb[208].mxu1 }
 0xc15   : > { %v10271_v26 = vmax.f32 %v10245_v60, 0.0  ;;  %v12019_v58 = vadd.f32 %v10137_v23, %v17122_v1  ;;  %v11904_v63 = vpop.f32.mrb[209].mxu1  ;;  %v11469_v23 = vld [vmem:[%s17352_s19] ss:$0 sm:$0xff] }
 0xc16   : > { %v10140_v24 = vpop.f32.mrb[210].mxu1 }
 0xc17   : > { %v11969_v36 = vpack.c.bf16 %v10271_v26, %v10270_v56  ;;  %v10213_v25 = vmul.f32 %v12019_v58, %v17133_v28  ;;  %v12020_v41 = vadd.f32 %v10140_v24, %v17124_v4  ;;  %v11905_v31 = vpop.f32.mrb[211].mxu1 }
 0xc19   : > { %v10246_v62 = vadd.f32 %v17138_v14, %v10213_v25  ;;  %v10214_v19 = vmul.f32 %v12020_v41, %v17133_v28  ;;  %11970 = vmatpush1.bf16.msra.mxu0 %v11969_v36 }
 0xc1a   : > { %11971 = vmatprep.subr.bf16.mxu0 %v13397_v46 }
 0xc1b   : > { %v10247_v15 = vadd.f32 %v17138_v14, %v10214_v19  ;;  %v10272_v33 = vmax.f32 %v10246_v62, 0.0 }
 0xc1c   : > { %v10145_v2 = vpop.f32.mrb[212].mxu1 }
 0xc1d   : > { %v10273_v1 = vmax.f32 %v10247_v15, 0.0  ;;  %v12021_v53 = vadd.f32 %v10145_v2, %v17126_v3  ;;  %v11908_v22 = vpop.f32.mrb[213].mxu1 }
 0xc1e   : > { %v10148_v49 = vpop.f32.mrb[214].mxu1 }
 0xc1f   : > { %v11972_v45 = vpack.c.bf16 %v10273_v1, %v10272_v33  ;;  %v10215_v4 = vmul.f32 %v12021_v53, %v17133_v28  ;;  %v12022_v42 = vadd.f32 %v10148_v49, %v17128_v39  ;;  %v11909_v9 = vpop.f32.mrb[215].mxu1 }
 0xc21   : > { %v10248_v6 = vadd.f32 %v17138_v14, %v10215_v4  ;;  %v10216_v47 = vmul.f32 %v12022_v42, %v17133_v28  ;;  %11973 = vmatpush1.bf16.msra.mxu0 %v11972_v45 }
 0xc22   : > { %11974 = vmatprep.subr.bf16.mxu0 %v13397_v46 }
 0xc23   : > { %v10249_v44 = vadd.f32 %v17138_v14, %v10216_v47  ;;  %v10274_v17 = vmax.f32 %v10248_v6, 0.0 }
 0xc24   : > { %v10153_v10 = vpop.f32.mrb[216].mxu1 }
 0xc25   : > { %v10275_v3 = vmax.f32 %v10249_v44, 0.0  ;;  %v12023_v37 = vadd.f32 %v10153_v10, %v17140_v32  ;;  %v11912_v30 = vpop.f32.mrb[217].mxu1  ;;  %v10357_v32 = vld [vmem:[%s17351_s18] sm:$0xff] }
 0xc26   : > { %v10156_v18 = vpop.f32.mrb[218].mxu1 }
 0xc27   : > { %v11975_v52 = vpack.c.bf16 %v10275_v3, %v10274_v17  ;;  %v10217_v39 = vmul.f32 %v12023_v37, %v17133_v28  ;;  %v12024_v13 = vadd.f32 %v10156_v18, %v17143_v29  ;;  %v11913_v57 = vpop.f32.mrb[219].mxu1  ;;  %v10358_v29 = vld [vmem:[%s17351_s18 + $0x8] sm:$0xff] }
 0xc29   : > { %v10250_v21 = vadd.f32 %v17138_v14, %v10217_v39  ;;  %v10218_v54 = vmul.f32 %v12024_v13, %v17133_v28  ;;  %11976 = vmatpush1.bf16.msra.mxu0 %v11975_v52  ;;  %v10278_v28 = vld [vmem:[%s17353_s20] sm:$0xff] }
 0xc2a   : > { %11977 = vmatprep.subr.bf16.mxu0 %v13397_v46 }
 0xc2b   : > { %v10251_v50 = vadd.f32 %v17138_v14, %v10218_v54  ;;  %v10276_v7 = vmax.f32 %v10250_v21, 0.0  ;;  %v11982_v14 = vpack.c.bf16 %v10358_v29, %v10357_v32 }
 0xc2d   : > { %v10277_v8 = vmax.f32 %v10251_v50, 0.0 }
 0xc2f   : > { %v11978_v35 = vpack.c.bf16 %v10277_v8, %v10276_v7 }
 0xc31   : > { %11980 = vmatpush1.bf16.msk.msra.mxu0 %vm11979_vm13, %v11978_v35 }
 0xc32   : > { %11981 = vmatprep.subr.bf16.mxu0 %v13397_v46 }
 0xc34   : > { %10352 = vmatmul.mubr.f32.vlgmr.msra.gmra.mrb[20].mxu0 %v10278_v28 }
 0xc35   : > { %11983 = vmatpush3.bf16.msra.mxu0 %v11982_v14  ;;  %11938 = vmatprep.mubr.msk.f32.mxu0 %vm13396_vm7, %v13395_v51  ;;  %v10364_v51 = vld [vmem:[%s17351_s18 + $0x38] sm:$0xff] }
 0xc36   : > { %11984 = vmatprep.subr.bf16.mxu0 %v13397_v46  ;;  %v11991_v0 = vpack.c.bf16 %v10364_v51, %v10363_v20 }
 0xc39   : > { %11986 = vmatpush3.bf16.msra.mxu0 %v11985_v61 }
 0xc3a   : > { %11987 = vmatprep.subr.bf16.mxu0 %v13397_v46 }
 0xc3d   : > { %11989 = vmatpush3.bf16.msra.mxu0 %v11988_v12 }
 0xc3e   : > { %11990 = vmatprep.subr.bf16.mxu0 %v13397_v46 }
 0xc41   : > { %11992 = vmatpush3.bf16.msra.mxu0 %v11991_v0 }
 0xc42   : > { %11993 = vmatprep.subr.bf16.mxu0 %v13397_v46 }
 0xc45   : > { %11995 = vmatpush3.bf16.msra.mxu0 %v11994_v5 }
 0xc46   : > { %11996 = vmatprep.subr.bf16.mxu0 %v13397_v46 }
 0xc49   : > { %11998 = vmatpush3.bf16.msra.mxu0 %v11997_v11 }
 0xd07   : > { %v10353_v59 = vpop.f32.mrb[20].mxu0 }
 0xd08   : > { %11939 = vmatmul.mubr.msk.f32.vlgmr.msra.gmra.mrb[22].mxu0 %vm10376_vm6, %v10353_v59  ;;  %v10355_v60 = vpop.f32.mrb[21].mxu0 }
 0xddb   : > { %v10446_v56 = vpop.f32.mrb[22].mxu0 }
 0xddc   : > { %v10447_v26 = vadd.f32 %v11469_v23, %v10446_v56  ;;  %v11940_v58 = vpop.f32.mrb[23].mxu0 }
 0xdde   : > { %v10451_v63 = vsel %vm10450_vm14, %v10447_v26, -inf }
 0xddf   : > { %10452 = vmax.xlane.f32.xlu0 %v10451_v63 }
 0xe6c   : > { %v10453_v24 = vpop.xlane.xlu0 %10452 }
 0xe6d   : > { %v10454_v46 = vsub.f32 %v10447_v26, %v10453_v24 }
 0xe6f   : > { %v10455_v36 = vmul.f32 1.442695, %v10454_v46 }
 0xe71   : > { %13323 = vpow2.f32 %v10455_v36 }
 0xe7b   : > { %v13324_v25 = vpop.eup %13323 }
 0xe7c   : > { %v10457_v41 = vsel %vm10450_vm14, %v13324_v25, 0.0 }
 0xe7d   : > { %10458 = vadd.xlane.f32.xlu0 %v10457_v41 }
 0xf0a   : > { %v10459_v31 = vpop.xlane.xlu0 %10458 }
 0xf0b   : > { %13325 = vlog2.f32 %v10459_v31 }
 0xf15   : > { %v13326_v62 = vpop.eup %13325 }
 0xf16   : > { %v10461_v19 = vmul.f32 0.6931472, %v13326_v62 }
 0xf18   : > { %v10462_v15 = vadd.f32 %v10461_v19, %v10453_v24 }
 0xf1a   : > { %v10463_v2 = vsub.f32 %v10447_v26, %v10462_v15 }
 0xf1c   : > { %10464 = vst.msk [vmem:[%s649_s30] sm:$0xff] %vm10450_vm14, %v10463_v2 }
 0xf1d   : > { %13343 = shalt.err (!%p13340_p3)
}
 0xf1e   : > { %s13344_s2 = scalar_lea.hbm %s17290_s29, 128  ;;  %s13348_s24 = scalar_lea.hbm %s17354_s21, 256 }
 0xf1f   : > { %p13345_p4 = scmp.ne.s32.totalorder %s17290_s29, %s13344_s2  ;;  %p13349_p9 = scmp.lt.u32.totalorder %s17290_s29, %s17354_s21 }
 0xf20   : > { %p13350_p10 = scmp.lt.u32.totalorder %s13348_s24, %s13344_s2  ;;  %p13352_p12 = scmp.lt.u32.totalorder %s13344_s2, %s17290_s29 }
 0xf21   : > { %p13346_p7 = pnand %p13345_p4, %p13548_p5 }
 0xf22   : > { %p13351_p11 = por %p13350_p10, %p13349_p9 }
 0xf23   : > { %p13347_p8 = pneg %p13346_p7 }
 0xf24   : > { %p13353_p13 = por %p13352_p12, %p13351_p11 }
 0xf26   : > { %p13354_p0 = pnand %p13353_p13, %p13347_p8 }
 0xf28   : > { %13357 = shalt.err (!%p13354_p0)
}
 0xf29   : > { %12750 = dma.vmem_to_hbm [thread:$0]  (%p13548_p5), %s17292_s4, 128, %s17290_s29, %s10466_s23  }
 0xf2a PF: > { %s17445_s0 = sld [smem:[#allocation9_spill]]  ;;  %p12756_p1 = scmp.ge.s32.totalorder %s13392_s27, 2 }
 0xf2c   : > { %p12753_p2 = pnand %p12756_p1, %p13552_p6 }
 0xf30   : > { %s10491_s22 = sand.u32 1, %s17445_s0  }
 0xf31   : > { %s10492_s28 = scalar_lea.sflag [#allocation7], %s10491_s22 }
 0xf32   : > { %13375 = dma.done.wait (!%p12753_p2), %s10492_s28, 128  }
 0xf33   : > { %13377 = vsyncadd (!%p12753_p2), %s10492_s28, 4294967168  ;;  %s17447_s27 = sld [smem:[#allocation11_spill]]  ;;  %s17448_s30 = sld [smem:[#allocation10_spill]] }
 0xf34   : > { %s17449_s26 = sld [smem:[#allocation12_spill]]  ;;  %s17450_s2 = smov %s13384_s25 }
 0xf39   : > { %p31_p3 = scmp.ge.s32.totalorder %s17447_s27, 4   ;;  %s17451_s25 = smov %s17448_s30 }
 0xf3b   :  { %33 = sbr.rel (!%p31_p3) target bundleno = 10 (0xa), region = 149 }
 0xf42   :  { %10497 = vsyncpa [#allocation7], 1 }
 0xf43   :  { %10499 = vsyncpa [#allocation7 + $0x1], 1 }

</bundles_post_ra>
